<compile_context>
chip_gen: v7x
topology: tpu7x:2x2x1
jax: 0.10.0
libtpu: 0.0.40
codegen_flags: <defaults>
</compile_context>

<pallas_src>
import functools

import jax
import jax.numpy as jnp
from jax.experimental import pallas as pl
from jax.experimental.pallas import tpu as pltpu

_VMEM_LIMIT = 32 * 1024 * 1024   # per review: do not exceed on v7x (64 MiB VMEM/TC)
_EPS = 1e-5


# ----------------------------------------------------------------------------
# small helpers
# ----------------------------------------------------------------------------
def _round_up(v, m):
    return ((v + m - 1) // m) * m


def _pad_last(a, cp):
    pad = cp - a.shape[-1]
    if pad == 0:
        return a
    return jnp.pad(a, [(0, 0)] * (a.ndim - 1) + [(0, pad)])


def _pad_mat(a, cp):
    return jnp.pad(a, [(0, cp - a.shape[0]), (0, cp - a.shape[1])])


def _row_tile(n_rows, cap=32, floor=8):
    """Largest divisor of n_rows that is <= cap; fall back to n_rows if tiny."""
    best = 1
    for c in range(min(cap, n_rows), 0, -1):
        if n_rows % c == 0:
            best = c
            break
    return n_rows if best < min(floor, n_rows) else best


def _pflu(v):
    # PFLU(x) = x * (1 + x / sqrt(x^2 + 1)) / 2
    return v * (1.0 + v * jax.lax.rsqrt(v * v + 1.0)) * 0.5


# ----------------------------------------------------------------------------
# shared in-kernel branch front:
#   folded (BN0 -> 1x1 conv -> BN1) affine conv (bf16 MXU, f32 acc), PFLU,
#   KxK depthwise conv from static slices of the halo'd activation tile.
# ----------------------------------------------------------------------------
def _branch_front(x_ref, row_tile_idx, w1f_b, b1f, wdw, *, tr, p, h, w):
    th = tr + 2 * p
    start = row_tile_idx * tr
    if tr % 8 == 0:
        start = pl.multiple_of(start, 8)
    xa = x_ref[0, pl.ds(start, th), :, :]                    # bf16 (th, W+2p, Cp)
    _, wx, cp = xa.shape

    z = jnp.dot(xa.reshape(th * wx, cp), w1f_b,
                preferred_element_type=jnp.float32)          # MXU bf16, f32 acc
    z = _pflu(z + b1f).reshape(th, wx, cp)

    # zero the activation where the halo lies outside the real image
    row0 = row_tile_idx * tr - p
    rows = row0 + jax.lax.broadcasted_iota(jnp.int32, (th, wx, cp), 0)
    cols = jax.lax.broadcasted_iota(jnp.int32, (th, wx, cp), 1) - p
    valid = (rows >= 0) & (rows < h) & (cols >= 0) & (cols < w)
    z = jnp.where(valid, z, 0.0)

    # KxK depthwise conv, statically unrolled taps as shifted static slices
    k = wdw.shape[0]
    acc = None
    for ky in range(k):
        for kx in range(k):
            tap = wdw[ky:ky + 1, kx:kx + 1, :]               # (1,1,Cp) lane vector
            term = jax.lax.slice(z, (ky, kx, 0), (ky + tr, kx + w, cp)) * tap
            acc = term if acc is None else acc + term
    return acc                                               # f32 (tr, W, Cp)


# ----------------------------------------------------------------------------
# Pallas kernels
# ----------------------------------------------------------------------------
def _stats0_kernel(x_ref, s1_ref, s2_ref):
    # Per-channel sum and CxC second moment of x (for BN0 + analytic BN1).
    @pl.when(jnp.logical_and(pl.program_id(1) == 0, pl.program_id(2) == 0))
    def _():
        s1_ref[...] = jnp.zeros_like(s1_ref)
        s2_ref[...] = jnp.zeros_like(s2_ref)

    cp = x_ref.shape[-1]
    xf = x_ref[0].astype(jnp.float32).reshape(-1, cp)        # (rows*Wx, Cp)
    s1_ref[0] += jnp.sum(xf, axis=0, keepdims=True)
    # contract axis 0 of both operands directly on the MXU (no transpose)
    s2_ref[0] += jax.lax.dot_general(
        xf, xf, dimension_numbers=(((0,), (0,)), ((), ())),
        preferred_element_type=jnp.float32)


def _u_stats_kernel(x_ref, w1f_ref, b1f_ref, wdw_ref, st_ref, *, tr, p, h, w):
    # Per-channel sum / sum-of-squares of the depthwise-conv output (BN2 stats).
    r = pl.program_id(2)

    @pl.when(jnp.logical_and(pl.program_id(1) == 0, r == 0))
    def _():
        st_ref[...] = jnp.zeros_like(st_ref)

    u = _branch_front(x_ref, r, w1f_ref[...], b1f_ref[...], wdw_ref[...],
                      tr=tr, p=p, h=h, w=w)
    uf = u.reshape(-1, u.shape[-1])
    su = jnp.sum(uf, axis=0, keepdims=True)
    sq = jnp.sum(uf * uf, axis=0, keepdims=True)
    st_ref[0] += jnp.concatenate([su, sq], axis=0)


def _apply_kernel(x_ref, w1f_ref, b1f_ref, wdw_ref, bn2_ref, w2f_ref, o_ref,
                  *, tr, p, h, w, cb):
    # Recompute u for this row tile, apply BN2 + PFLU, final 1x1 conv
    # (scale_path_rate folded into w2f); store only the cb real channels.
    r = pl.program_id(1)
    u = _branch_front(x_ref, r, w1f_ref[...], b1f_ref[...], wdw_ref[...],
                      tr=tr, p=p, h=h, w=w)
    cp = u.shape[-1]
    sc = bn2_ref[0:1, :].reshape(1, 1, cp)
    sh = bn2_ref[1:2, :].reshape(1, 1, cp)
    v = _pflu(u * sc + sh)
    y = jnp.dot(v.reshape(tr * w, cp).astype(jnp.bfloat16), w2f_ref[...],
                preferred_element_type=jnp.float32)
    o_ref[0] = y.reshape(tr, w, cp)[:, :, :cb].astype(o_ref.dtype)


# ----------------------------------------------------------------------------
# pallas_call wrappers
# ----------------------------------------------------------------------------
def _stats0_call(xb, *, gsp):
    n, hx, wx, cp = xb.shape
    ng = n // gsp
    trs = _row_tile(hx)
    r0 = hx // trs
    return pl.pallas_call(
        _stats0_kernel,
        grid=(gsp, ng, r0),
        in_specs=[pl.BlockSpec((1, trs, wx, cp),
                               lambda g, i, r: (g * ng + i, r, 0, 0))],
        out_specs=(pl.BlockSpec((1, 1, cp), lambda g, i, r: (g, 0, 0)),
                   pl.BlockSpec((1, cp, cp), lambda g, i, r: (g, 0, 0))),
        out_shape=(jax.ShapeDtypeStruct((gsp, 1, cp), jnp.float32),
                   jax.ShapeDtypeStruct((gsp, cp, cp), jnp.float32)),
        compiler_params=pltpu.CompilerParams(
            dimension_semantics=("parallel", "arbitrary", "arbitrary"),
            vmem_limit_bytes=_VMEM_LIMIT),
    )(xb)


def _u_stats_call(xb, w1f_b, b1f, wdw, *, gsp, tr, p, h, w):
    n, hx, wx, cp = xb.shape
    ng = n // gsp
    rr = h // tr
    k = wdw.shape[0]
    kernel = functools.partial(_u_stats_kernel, tr=tr, p=p, h=h, w=w)
    return pl.pallas_call(
        kernel,
        grid=(gsp, ng, rr),
        in_specs=[
            pl.BlockSpec((1, hx, wx, cp), lambda g, i, r: (g * ng + i, 0, 0, 0)),
            pl.BlockSpec((cp, cp), lambda g, i, r: (0, 0)),
            pl.BlockSpec((1, cp), lambda g, i, r: (0, 0)),
            pl.BlockSpec((k, k, cp), lambda g, i, r: (0, 0, 0)),
        ],
        out_specs=pl.BlockSpec((1, 2, cp), lambda g, i, r: (g, 0, 0)),
        out_shape=jax.ShapeDtypeStruct((gsp, 2, cp), jnp.float32),
        compiler_params=pltpu.CompilerParams(
            dimension_semantics=("parallel", "arbitrary", "arbitrary"),
            vmem_limit_bytes=_VMEM_LIMIT),
    )(xb, w1f_b, b1f, wdw)


def _apply_call(xb, w1f_b, b1f, wdw, bn2, w2f_b, *, tr, p, h, w, cb):
    n, hx, wx, cp = xb.shape
    rr = h // tr
    k = wdw.shape[0]
    kernel = functools.partial(_apply_kernel, tr=tr, p=p, h=h, w=w, cb=cb)
    return pl.pallas_call(
        kernel,
        grid=(n, rr),
        in_specs=[
            pl.BlockSpec((1, hx, wx, cp), lambda i, r: (i, 0, 0, 0)),
            pl.BlockSpec((cp, cp), lambda i, r: (0, 0)),
            pl.BlockSpec((1, cp), lambda i, r: (0, 0)),
            pl.BlockSpec((k, k, cp), lambda i, r: (0, 0, 0)),
            pl.BlockSpec((2, cp), lambda i, r: (0, 0)),
            pl.BlockSpec((cp, cp), lambda i, r: (0, 0)),
        ],
        out_specs=pl.BlockSpec((1, tr, w, cb), lambda i, r: (i, r, 0, 0)),
        out_shape=jax.ShapeDtypeStruct((n, h, w, cb), jnp.float32),
        compiler_params=pltpu.CompilerParams(
            dimension_semantics=("parallel", "parallel"),
            vmem_limit_bytes=_VMEM_LIMIT),
    )(xb, w1f_b, b1f, wdw, bn2, w2f_b)


# ----------------------------------------------------------------------------
# wrapper: layout, BN folding, channel shuffle
# ----------------------------------------------------------------------------
def conv_shuffle_block(x_nchw, params, *, scale_path_rate=1.0, eps=_EPS):
    """Forward pass of ConvShuffleBlock. Input/output: NCHW, like PyTorch."""
    n, cu, h, w = x_nchw.shape
    cb = cu // 2
    cp = _round_up(cb, 128)                 # lane-dense channel padding
    k = params["w_dw"].shape[0]
    p = k // 2
    tr = _row_tile(h)                       # row tile for the compute passes
    gsp = 2 if (n >= 2 and n % 2 == 0) else 1   # per-core stats accumulators

    ident = x_nchw[:, :cb]                  # identity branch (NCHW)
    branch = x_nchw[:, cb:]                 # conv branch

    # NCHW -> NHWC, bf16 in HBM, pad channels to a 128-lane multiple and the
    # spatial dims by K//2 so every depthwise tap is an in-bounds static slice.
    xb = jnp.pad(jnp.transpose(branch, (0, 2, 3, 1)).astype(jnp.bfloat16),
                 ((0, 0), (p, p), (p, p), (0, cp - cb)))

    w1 = _pad_mat(params["w1"].astype(jnp.float32), cp)
    w2 = _pad_mat(params["w2"].astype(jnp.float32), cp)
    wdw = _pad_last(params["w_dw"].astype(jnp.float32), cp)
    bn = _pad_last(params["bn"].astype(jnp.float32), cp)
    g0, b0, g1, b1, g2, b2 = bn[0], bn[1], bn[2], bn[3], bn[4], bn[5]

    m = float(n * h * w)

    # ---- pass 1: x stats -> BN0, analytic BN1 (conv1 is linear) -------------
    s1, s2 = _stats0_call(xb, gsp=gsp)
    s1 = jnp.sum(s1, axis=(0, 1))                            # (Cp,)
    gmat = jnp.sum(s2, axis=0) / m                           # E[x x^T]
    mean0 = s1 / m
    var0 = jnp.maximum(jnp.diagonal(gmat) - mean0 * mean0, 0.0)
    scale0 = g0 * jax.lax.rsqrt(var0 + eps)
    shift0 = b0 - mean0 * scale0

    mn = mean0 * scale0 + shift0                             # E[BN0(x)]
    enn = (scale0[:, None] * gmat * scale0[None, :]
           + jnp.outer(scale0 * mean0, shift0)
           + jnp.outer(shift0, scale0 * mean0)
           + jnp.outer(shift0, shift0))                      # E[BN0(x) BN0(x)^T]
    mean_z = mn @ w1
    ez2 = jnp.sum(w1 * (enn @ w1), axis=0)
    var_z = jnp.maximum(ez2 - mean_z * mean_z, 0.0)
    scale1 = g1 * jax.lax.rsqrt(var_z + eps)
    shift1 = b1 - mean_z * scale1

    # fold BN0 -> conv1 -> BN1 into one affine 1x1 conv (padded lanes stay 0
    # because padded gamma/beta/weights are exactly 0)
    w1f = (scale0[:, None] * w1) * scale1[None, :]
    b1f = ((shift0 @ w1) * scale1 + shift1)[None, :]         # (1, Cp) f32
    w1f_b = w1f.astype(jnp.bfloat16)                         # MXU operand

    # ---- pass 2: depthwise-conv output stats -> BN2 --------------------------
    ust = jnp.sum(_u_stats_call(xb, w1f_b, b1f, wdw, gsp=gsp,
                                tr=tr, p=p, h=h, w=w), axis=0)   # (2, Cp)
    mean2 = ust[0] / m
    var2 = jnp.maximum(ust[1] / m - mean2 * mean2, 0.0)
    scale2 = g2 * jax.lax.rsqrt(var2 + eps)
    shift2 = b2 - mean2 * scale2
    bn2 = jnp.stack([scale2, shift2], axis=0)                # (2, Cp)

    w2f_b = (w2 * scale_path_rate).astype(jnp.bfloat16)      # fold path scale

    # ---- pass 3: apply BN2 / PFLU / conv2, write cb-channel branch output ----
    y_nhwc = _apply_call(xb, w1f_b, b1f, wdw, bn2, w2f_b,
                         tr=tr, p=p, h=h, w=w, cb=cb)        # (N,H,W,cb)

    y = jnp.transpose(y_nhwc, (0, 3, 1, 2)).astype(x_nchw.dtype)
    # concat(i, x) then shuffle(out, chunks=2, axis=1) == interleave channels
    out = jnp.stack([ident, y], axis=2).reshape(n, 2 * cb, h, w)
    return out


# ----------------------------------------------------------------------------
# params + pure-JAX reference (for correctness verification)
# ----------------------------------------------------------------------------
def init_params(key, units, kernel_size=3):
    """Deterministic synthetic parameters matching the module's shapes.

    Conv2d weights (all bias=False) in kernel-friendly layouts:
      w1, w2 : (C_in, C_out)  == torch (C_out, C_in, 1, 1) transposed
      w_dw   : (K, K, C)      == torch depthwise (C, 1, K, K) transposed
    BN affine params packed as rows [g_pre, b_pre, g1, b1, g2, b2].
    """
    cb = units // 2
    k1, k2, k3, k4 = jax.random.split(key, 4)
    w1 = jax.random.normal(k1, (cb, cb), jnp.float32) * 0.3
    w2 = jax.random.normal(k2, (cb, cb), jnp.float32) * 0.3
    w_dw = jax.random.normal(k3, (kernel_size, kernel_size, cb), jnp.float32) * 0.3
    gb = jax.random.normal(k4, (3, cb), jnp.float32) * 0.1
    bn = jnp.stack(
        [1.0 + gb[0], 0.5 * gb[0],
         1.0 + gb[1], 0.5 * gb[1],
         1.0 + gb[2], 0.5 * gb[2]], axis=0)
    return {"w1": w1, "w2": w2, "w_dw": w_dw, "bn": bn}


def _reference(x_nchw, params, *, scale_path_rate=1.0, eps=_EPS):
    """Pure-JAX (non-Pallas) mirror of the PyTorch module forward."""
    n, cu, h, w = x_nchw.shape
    cb = cu // 2
    ident, xb = x_nchw[:, :cb], x_nchw[:, cb:]
    # mirror the kernel's bf16 storage of the branch activation
    xb = xb.astype(jnp.bfloat16).astype(jnp.float32)

    def bn(v, gamma, beta):
        mean = jnp.mean(v, axis=(0, 2, 3), keepdims=True)
        var = jnp.mean(jnp.square(v - mean), axis=(0, 2, 3), keepdims=True)
        return ((v - mean) * jax.lax.rsqrt(var + eps)
                * gamma[None, :, None, None] + beta[None, :, None, None])

    def pflu(v):
        return v * (1.0 + v * jax.lax.rsqrt(jnp.square(v) + 1.0)) * 0.5

    g0, b0, g1, b1, g2, b2 = params["bn"]
    v = bn(xb, g0, b0)
    v = jnp.einsum("nchw,cd->ndhw", v, params["w1"])
    v = pflu(bn(v, g1, b1))
    wdw = jnp.transpose(params["w_dw"], (2, 0, 1))[:, None]    # (C,1,K,K)
    v = jax.lax.conv_general_dilated(
        v, wdw, window_strides=(1, 1), padding="SAME",
        feature_group_count=cb, dimension_numbers=("NCHW", "OIHW", "NCHW"))
    v = pflu(bn(v, g2, b2))
    v = jnp.einsum("nchw,cd->ndhw", v, params["w2"]) * scale_path_rate
    out = jnp.concatenate([ident, v], axis=1)
    out = out.reshape(n, 2, cb, h, w).transpose(0, 2, 1, 3, 4)
    return out.reshape(n, 2 * cb, h, w)


if __name__ == "__main__":
    key = jax.random.PRNGKey(0)
    kx, kp = jax.random.split(key)

    units = 4
    n, h, w = 2, 16, 16
    x = jax.random.normal(kx, (n, units, h, w), jnp.float32)   # NCHW, like PyTorch
    params = init_params(kp, units, kernel_size=3)

    fwd = jax.jit(lambda v: conv_shuffle_block(v, params, scale_path_rate=1.0))
    out = jax.block_until_ready(fwd(x))

    assert out.shape == x.shape, (out.shape, x.shape)
    assert bool(jnp.all(jnp.isfinite(out)))

    ref = jax.block_until_ready(_reference(x, params, scale_path_rate=1.0))
    err = float(jnp.max(jnp.abs(out - ref)))
    # tolerance accounts for bf16 MXU operands (f32 accumulation) in the kernel
    assert err < 3e-2, f"kernel vs pure-JAX reference: max abs err = {err}"

    print("KERNEL_OK")
</pallas_src>

<mosaic_0001>
module attributes {stable_mosaic.version = 11 : i64} {
  func.func @_stats0_kernel(%arg0: i32, %arg1: i32, %arg2: i32, %arg3: memref<1x18x18x128xbf16, #tpu.memory_space<vmem>>, %arg4: memref<1x1x128xf32, #tpu.memory_space<vmem>>, %arg5: memref<1x128x128xf32, #tpu.memory_space<vmem>>) attributes {dimension_semantics = [#tpu.dimension_semantics<parallel>, #tpu.dimension_semantics<arbitrary>, #tpu.dimension_semantics<arbitrary>], iteration_bounds = array<i64: 2, 1, 1>, scalar_prefetch = 0 : i64, scratch_operands = 0 : i64, tpu.core_type = #tpu.core_type<tc>, window_params = [{transform_indices = @transform_0, window_bounds = array<i64: 1, 18, 18, 128>}, {transform_indices = @transform_1, window_bounds = array<i64: 1, 1, 128>}, {transform_indices = @transform_2, window_bounds = array<i64: 1, 128, 128>}]} {
    %c0_i32 = arith.constant 0 : i32
    %0 = arith.cmpi eq, %arg1, %c0_i32 : i32
    %c0_i32_0 = arith.constant 0 : i32
    %1 = arith.cmpi eq, %arg2, %c0_i32_0 : i32
    %2 = arith.andi %0, %1 : i1
    %3 = arith.extui %2 : i1 to i32
    %c0_i32_1 = arith.constant 0 : i32
    %4 = arith.cmpi ne, %3, %c0_i32_1 : i32
    scf.if %4 {
      %cst_18 = arith.constant 0.000000e+00 : f32
      %24 = vector.broadcast %cst_18 : f32 to vector<1x1x128xf32>
      %c0_19 = arith.constant 0 : index
      %c0_20 = arith.constant 0 : index
      %c0_21 = arith.constant 0 : index
      %25 = vector.load %arg4[%c0_19, %c0_20, %c0_21] : memref<1x1x128xf32, #tpu.memory_space<vmem>>, vector<1x1x128xf32>
      tpu.vector_store %arg4[%c0_19, %c0_20, %c0_21], %24 {strides = array<i32>} : memref<1x1x128xf32, #tpu.memory_space<vmem>>, vector<1x1x128xf32>,
      %cst_22 = arith.constant 0.000000e+00 : f32
      %26 = vector.broadcast %cst_22 : f32 to vector<1x128x128xf32>
      %c0_23 = arith.constant 0 : index
      %c0_24 = arith.constant 0 : index
      %c0_25 = arith.constant 0 : index
      %27 = vector.load %arg5[%c0_23, %c0_24, %c0_25] : memref<1x128x128xf32, #tpu.memory_space<vmem>>, vector<1x128x128xf32>
      tpu.vector_store %arg5[%c0_23, %c0_24, %c0_25], %26 {strides = array<i32>} : memref<1x128x128xf32, #tpu.memory_space<vmem>>, vector<1x128x128xf32>,
    } else {
    }
    %c0 = arith.constant 0 : index
    %c0_2 = arith.constant 0 : index
    %c0_3 = arith.constant 0 : index
    %c0_4 = arith.constant 0 : index
    %5 = vector.load %arg3[%c0, %c0_2, %c0_3, %c0_4] : memref<1x18x18x128xbf16, #tpu.memory_space<vmem>>, vector<1x18x18x128xbf16>
    %6 = vector.shape_cast %5 : vector<1x18x18x128xbf16> to vector<18x18x128xbf16>
    %7 = arith.extf %6 : vector<18x18x128xbf16> to vector<18x18x128xf32>
    %8 = vector.shape_cast %7 : vector<18x18x128xf32> to vector<324x128xf32>
    %c0_5 = arith.constant 0 : index
    %c0_6 = arith.constant 0 : index
    %c0_7 = arith.constant 0 : index
    %9 = vector.load %arg4[%c0_5, %c0_6, %c0_7] : memref<1x1x128xf32, #tpu.memory_space<vmem>>, vector<1x1x128xf32>
    %10 = vector.shape_cast %9 : vector<1x1x128xf32> to vector<1x128xf32>
    %cst = arith.constant dense<0.000000e+00> : vector<128xf32>
    %11 = vector.multi_reduction <add>, %8, %cst [0] : vector<324x128xf32> to vector<128xf32>
    %12 = vector.shape_cast %11 : vector<128xf32> to vector<1x128xf32>
    %13 = arith.addf %10, %12 : vector<1x128xf32>
    %c0_8 = arith.constant 0 : index
    %c0_9 = arith.constant 0 : index
    %c0_10 = arith.constant 0 : index
    %14 = vector.load %arg4[%c0_8, %c0_9, %c0_10] : memref<1x1x128xf32, #tpu.memory_space<vmem>>, vector<1x1x128xf32>
    %15 = vector.shape_cast %14 : vector<1x1x128xf32> to vector<1x128xf32>
    %16 = vector.shape_cast %13 : vector<1x128xf32> to vector<1x1x128xf32>
    tpu.vector_store %arg4[%c0_8, %c0_9, %c0_10], %16 {strides = array<i32>} : memref<1x1x128xf32, #tpu.memory_space<vmem>>, vector<1x1x128xf32>,
    %c0_11 = arith.constant 0 : index
    %c0_12 = arith.constant 0 : index
    %c0_13 = arith.constant 0 : index
    %17 = vector.load %arg5[%c0_11, %c0_12, %c0_13] : memref<1x128x128xf32, #tpu.memory_space<vmem>>, vector<1x128x128xf32>
    %18 = vector.shape_cast %17 : vector<1x128x128xf32> to vector<128x128xf32>
    %cst_14 = arith.constant dense<0.000000e+00> : vector<128x128xf32>
    %19 = tpu.matmul %8, %8, %cst_14 {dimension_numbers = #tpu.dot_dimension_numbers<[0], [0], [1], [1], [0, 1, 1, 1], [], []>} : vector<324x128xf32>, vector<324x128xf32>, vector<128x128xf32> -> vector<128x128xf32>
    %20 = arith.addf %18, %19 : vector<128x128xf32>
    %c0_15 = arith.constant 0 : index
    %c0_16 = arith.constant 0 : index
    %c0_17 = arith.constant 0 : index
    %21 = vector.load %arg5[%c0_15, %c0_16, %c0_17] : memref<1x128x128xf32, #tpu.memory_space<vmem>>, vector<1x128x128xf32>
    %22 = vector.shape_cast %21 : vector<1x128x128xf32> to vector<128x128xf32>
    %23 = vector.shape_cast %20 : vector<128x128xf32> to vector<1x128x128xf32>
    tpu.vector_store %arg5[%c0_15, %c0_16, %c0_17], %23 {strides = array<i32>} : memref<1x128x128xf32, #tpu.memory_space<vmem>>, vector<1x128x128xf32>,
    return
  }
  func.func @transform_0(%arg0: i32, %arg1: i32, %arg2: i32) -> (i32, i32, i32, i32) {
    %c1_i32 = arith.constant 1 : i32
    %0 = arith.muli %arg0, %c1_i32 : i32
    %1 = arith.addi %0, %arg1 : i32
    %c0_i32 = arith.constant 0 : i32
    %c0_i32_0 = arith.constant 0 : i32
    %c0_i32_1 = arith.constant 0 : i32
    return %1, %arg2, %c0_i32, %c0_i32_0 : i32, i32, i32, i32
  }
  func.func @transform_1(%arg0: i32, %arg1: i32, %arg2: i32) -> (i32, i32, i32) {
    %c0_i32 = arith.constant 0 : i32
    %c0_i32_0 = arith.constant 0 : i32
    %c0_i32_1 = arith.constant 0 : i32
    return %arg0, %c0_i32, %c0_i32_0 : i32, i32, i32
  }
  func.func @transform_2(%arg0: i32, %arg1: i32, %arg2: i32) -> (i32, i32, i32) {
    %c0_i32 = arith.constant 0 : i32
    %c0_i32_0 = arith.constant 0 : i32
    %c0_i32_1 = arith.constant 0 : i32
    return %arg0, %c0_i32, %c0_i32_0 : i32, i32, i32
  }
}

module attributes {stable_mosaic.version = 11 : i64} {
  func.func @_u_stats_kernel(%arg0: i32, %arg1: i32, %arg2: i32, %arg3: memref<1x18x18x128xbf16, #tpu.memory_space<vmem>>, %arg4: memref<128x128xbf16, #tpu.memory_space<vmem>>, %arg5: memref<1x128xf32, #tpu.memory_space<vmem>>, %arg6: memref<3x3x128xf32, #tpu.memory_space<vmem>>, %arg7: memref<1x2x128xf32, #tpu.memory_space<vmem>>) attributes {dimension_semantics = [#tpu.dimension_semantics<parallel>, #tpu.dimension_semantics<arbitrary>, #tpu.dimension_semantics<arbitrary>], iteration_bounds = array<i64: 2, 1, 1>, scalar_prefetch = 0 : i64, scratch_operands = 0 : i64, tpu.core_type = #tpu.core_type<tc>, window_params = [{transform_indices = @transform_0, window_bounds = array<i64: 1, 18, 18, 128>}, {pipeline_mode = #tpu.pipeline_mode<synchronous>, transform_indices = @transform_1, window_bounds = array<i64: 128, 128>}, {pipeline_mode = #tpu.pipeline_mode<synchronous>, transform_indices = @transform_2, window_bounds = array<i64: 1, 128>}, {pipeline_mode = #tpu.pipeline_mode<synchronous>, transform_indices = @transform_3, window_bounds = array<i64: 3, 3, 128>}, {transform_indices = @transform_4, window_bounds = array<i64: 1, 2, 128>}]} {
    %c0_i32 = arith.constant 0 : i32
    %0 = arith.cmpi eq, %arg1, %c0_i32 : i32
    %c0_i32_0 = arith.constant 0 : i32
    %1 = arith.cmpi eq, %arg2, %c0_i32_0 : i32
    %2 = arith.andi %0, %1 : i1
    %3 = arith.extui %2 : i1 to i32
    %c0_i32_1 = arith.constant 0 : i32
    %4 = arith.cmpi ne, %3, %c0_i32_1 : i32
    scf.if %4 {
      %cst_29 = arith.constant 0.000000e+00 : f32
      %106 = vector.broadcast %cst_29 : f32 to vector<1x2x128xf32>
      %c0_30 = arith.constant 0 : index
      %c0_31 = arith.constant 0 : index
      %c0_32 = arith.constant 0 : index
      %107 = vector.load %arg7[%c0_30, %c0_31, %c0_32] : memref<1x2x128xf32, #tpu.memory_space<vmem>>, vector<1x2x128xf32>
      tpu.vector_store %arg7[%c0_30, %c0_31, %c0_32], %106 {strides = array<i32>} : memref<1x2x128xf32, #tpu.memory_space<vmem>>, vector<1x2x128xf32>,
    } else {
    }
    %c0 = arith.constant 0 : index
    %c0_2 = arith.constant 0 : index
    %5 = vector.load %arg4[%c0, %c0_2] : memref<128x128xbf16, #tpu.memory_space<vmem>>, vector<128x128xbf16>
    %c0_3 = arith.constant 0 : index
    %c0_4 = arith.constant 0 : index
    %6 = vector.load %arg5[%c0_3, %c0_4] : memref<1x128xf32, #tpu.memory_space<vmem>>, vector<1x128xf32>
    %c0_5 = arith.constant 0 : index
    %c0_6 = arith.constant 0 : index
    %c0_7 = arith.constant 0 : index
    %7 = vector.load %arg6[%c0_5, %c0_6, %c0_7] : memref<3x3x128xf32, #tpu.memory_space<vmem>>, vector<3x3x128xf32>
    %c16_i32 = arith.constant 16 : i32
    %8 = arith.muli %arg2, %c16_i32 : i32
    %9 = tpu.assume_multiple %8, 8 : i32
    %c0_8 = arith.constant 0 : index
    %10 = arith.index_cast %9 : i32 to index
    %c0_9 = arith.constant 0 : index
    %c0_10 = arith.constant 0 : index
    %11 = vector.load %arg3[%c0_8, %10, %c0_9, %c0_10] : memref<1x18x18x128xbf16, #tpu.memory_space<vmem>>, vector<1x18x18x128xbf16>
    %12 = vector.shape_cast %11 : vector<1x18x18x128xbf16> to vector<18x18x128xbf16>
    %13 = vector.shape_cast %12 : vector<18x18x128xbf16> to vector<324x128xbf16>
    %cst = arith.constant dense<0.000000e+00> : vector<324x128xf32>
    %14 = tpu.matmul %13, %5, %cst {dimension_numbers = #tpu.dot_dimension_numbers<[1], [0], [0], [1], [0, 0, 1, 1], [], []>} : vector<324x128xbf16>, vector<128x128xbf16>, vector<324x128xf32> -> vector<324x128xf32>
    %15 = vector.broadcast %6 : vector<1x128xf32> to vector<324x128xf32>
    %16 = arith.addf %14, %15 : vector<324x128xf32>
    %17 = arith.mulf %16, %16 : vector<324x128xf32>
    %cst_11 = arith.constant 1.000000e+00 : f32
    %18 = vector.broadcast %cst_11 : f32 to vector<324x128xf32>
    %19 = arith.addf %17, %18 : vector<324x128xf32>
    %20 = math.rsqrt %19 : vector<324x128xf32>
    %21 = arith.mulf %16, %20 : vector<324x128xf32>
    %cst_12 = arith.constant 1.000000e+00 : f32
    %22 = vector.broadcast %cst_12 : f32 to vector<324x128xf32>
    %23 = arith.addf %22, %21 : vector<324x128xf32>
    %24 = arith.mulf %16, %23 : vector<324x128xf32>
    %cst_13 = arith.constant 5.000000e-01 : f32
    %25 = vector.broadcast %cst_13 : f32 to vector<324x128xf32>
    %26 = arith.mulf %24, %25 : vector<324x128xf32>
    %27 = vector.shape_cast %26 : vector<324x128xf32> to vector<18x18x128xf32>
    %c16_i32_14 = arith.constant 16 : i32
    %28 = arith.muli %arg2, %c16_i32_14 : i32
    %c1_i32 = arith.constant 1 : i32
    %29 = arith.subi %28, %c1_i32 : i32
    %30 = tpu.iota {dimensions = array<i32: 0>} : vector<18x18x128xi32>
    %31 = vector.broadcast %29 : i32 to vector<18x18x128xi32>
    %32 = arith.addi %31, %30 : vector<18x18x128xi32>
    %33 = tpu.iota {dimensions = array<i32: 1>} : vector<18x18x128xi32>
    %c1_i32_15 = arith.constant 1 : i32
    %34 = vector.broadcast %c1_i32_15 : i32 to vector<18x18x128xi32>
    %35 = arith.subi %33, %34 : vector<18x18x128xi32>
    %c0_i32_16 = arith.constant 0 : i32
    %36 = vector.broadcast %c0_i32_16 : i32 to vector<18x18x128xi32>
    %37 = arith.cmpi sge, %32, %36 : vector<18x18x128xi32>
    %c16_i32_17 = arith.constant 16 : i32
    %38 = vector.broadcast %c16_i32_17 : i32 to vector<18x18x128xi32>
    %39 = arith.cmpi slt, %32, %38 : vector<18x18x128xi32>
    %40 = arith.andi %37, %39 : vector<18x18x128xi1>
    %c0_i32_18 = arith.constant 0 : i32
    %41 = vector.broadcast %c0_i32_18 : i32 to vector<18x18x128xi32>
    %42 = arith.cmpi sge, %35, %41 : vector<18x18x128xi32>
    %43 = arith.andi %40, %42 : vector<18x18x128xi1>
    %c16_i32_19 = arith.constant 16 : i32
    %44 = vector.broadcast %c16_i32_19 : i32 to vector<18x18x128xi32>
    %45 = arith.cmpi slt, %35, %44 : vector<18x18x128xi32>
    %46 = arith.andi %43, %45 : vector<18x18x128xi1>
    %cst_20 = arith.constant 0.000000e+00 : f32
    %47 = vector.broadcast %cst_20 : f32 to vector<18x18x128xf32>
    %48 = arith.select %46, %27, %47 : vector<18x18x128xi1>, vector<18x18x128xf32>
    %49 = vector.extract_strided_slice %7 {offsets = [0, 0, 0], sizes = [1, 1, 128], strides = [1, 1, 1]} : vector<3x3x128xf32> to vector<1x1x128xf32>
    %50 = vector.extract_strided_slice %48 {offsets = [0, 0, 0], sizes = [16, 16, 128], strides = [1, 1, 1]} : vector<18x18x128xf32> to vector<16x16x128xf32>
    %51 = vector.broadcast %49 : vector<1x1x128xf32> to vector<16x16x128xf32>
    %52 = arith.mulf %50, %51 : vector<16x16x128xf32>
    %53 = vector.extract_strided_slice %7 {offsets = [0, 1, 0], sizes = [1, 1, 128], strides = [1, 1, 1]} : vector<3x3x128xf32> to vector<1x1x128xf32>
    %54 = vector.extract_strided_slice %48 {offsets = [0, 1, 0], sizes = [16, 16, 128], strides = [1, 1, 1]} : vector<18x18x128xf32> to vector<16x16x128xf32>
    %55 = vector.broadcast %53 : vector<1x1x128xf32> to vector<16x16x128xf32>
    %56 = arith.mulf %54, %55 : vector<16x16x128xf32>
    %57 = arith.addf %52, %56 : vector<16x16x128xf32>
    %58 = vector.extract_strided_slice %7 {offsets = [0, 2, 0], sizes = [1, 1, 128], strides = [1, 1, 1]} : vector<3x3x128xf32> to vector<1x1x128xf32>
    %59 = vector.extract_strided_slice %48 {offsets = [0, 2, 0], sizes = [16, 16, 128], strides = [1, 1, 1]} : vector<18x18x128xf32> to vector<16x16x128xf32>
    %60 = vector.broadcast %58 : vector<1x1x128xf32> to vector<16x16x128xf32>
    %61 = arith.mulf %59, %60 : vector<16x16x128xf32>
    %62 = arith.addf %57, %61 : vector<16x16x128xf32>
    %63 = vector.extract_strided_slice %7 {offsets = [1, 0, 0], sizes = [1, 1, 128], strides = [1, 1, 1]} : vector<3x3x128xf32> to vector<1x1x128xf32>
    %64 = vector.extract_strided_slice %48 {offsets = [1, 0, 0], sizes = [16, 16, 128], strides = [1, 1, 1]} : vector<18x18x128xf32> to vector<16x16x128xf32>
    %65 = vector.broadcast %63 : vector<1x1x128xf32> to vector<16x16x128xf32>
    %66 = arith.mulf %64, %65 : vector<16x16x128xf32>
    %67 = arith.addf %62, %66 : vector<16x16x128xf32>
    %68 = vector.extract_strided_slice %7 {offsets = [1, 1, 0], sizes = [1, 1, 128], strides = [1, 1, 1]} : vector<3x3x128xf32> to vector<1x1x128xf32>
    %69 = vector.extract_strided_slice %48 {offsets = [1, 1, 0], sizes = [16, 16, 128], strides = [1, 1, 1]} : vector<18x18x128xf32> to vector<16x16x128xf32>
    %70 = vector.broadcast %68 : vector<1x1x128xf32> to vector<16x16x128xf32>
    %71 = arith.mulf %69, %70 : vector<16x16x128xf32>
    %72 = arith.addf %67, %71 : vector<16x16x128xf32>
    %73 = vector.extract_strided_slice %7 {offsets = [1, 2, 0], sizes = [1, 1, 128], strides = [1, 1, 1]} : vector<3x3x128xf32> to vector<1x1x128xf32>
    %74 = vector.extract_strided_slice %48 {offsets = [1, 2, 0], sizes = [16, 16, 128], strides = [1, 1, 1]} : vector<18x18x128xf32> to vector<16x16x128xf32>
    %75 = vector.broadcast %73 : vector<1x1x128xf32> to vector<16x16x128xf32>
    %76 = arith.mulf %74, %75 : vector<16x16x128xf32>
    %77 = arith.addf %72, %76 : vector<16x16x128xf32>
    %78 = vector.extract_strided_slice %7 {offsets = [2, 0, 0], sizes = [1, 1, 128], strides = [1, 1, 1]} : vector<3x3x128xf32> to vector<1x1x128xf32>
    %79 = vector.extract_strided_slice %48 {offsets = [2, 0, 0], sizes = [16, 16, 128], strides = [1, 1, 1]} : vector<18x18x128xf32> to vector<16x16x128xf32>
    %80 = vector.broadcast %78 : vector<1x1x128xf32> to vector<16x16x128xf32>
    %81 = arith.mulf %79, %80 : vector<16x16x128xf32>
    %82 = arith.addf %77, %81 : vector<16x16x128xf32>
    %83 = vector.extract_strided_slice %7 {offsets = [2, 1, 0], sizes = [1, 1, 128], strides = [1, 1, 1]} : vector<3x3x128xf32> to vector<1x1x128xf32>
    %84 = vector.extract_strided_slice %48 {offsets = [2, 1, 0], sizes = [16, 16, 128], strides = [1, 1, 1]} : vector<18x18x128xf32> to vector<16x16x128xf32>
    %85 = vector.broadcast %83 : vector<1x1x128xf32> to vector<16x16x128xf32>
    %86 = arith.mulf %84, %85 : vector<16x16x128xf32>
    %87 = arith.addf %82, %86 : vector<16x16x128xf32>
    %88 = vector.extract_strided_slice %7 {offsets = [2, 2, 0], sizes = [1, 1, 128], strides = [1, 1, 1]} : vector<3x3x128xf32> to vector<1x1x128xf32>
    %89 = vector.extract_strided_slice %48 {offsets = [2, 2, 0], sizes = [16, 16, 128], strides = [1, 1, 1]} : vector<18x18x128xf32> to vector<16x16x128xf32>
    %90 = vector.broadcast %88 : vector<1x1x128xf32> to vector<16x16x128xf32>
    %91 = arith.mulf %89, %90 : vector<16x16x128xf32>
    %92 = arith.addf %87, %91 : vector<16x16x128xf32>
    %93 = vector.shape_cast %92 : vector<16x16x128xf32> to vector<256x128xf32>
    %cst_21 = arith.constant dense<0.000000e+00> : vector<128xf32>
    %94 = vector.multi_reduction <add>, %93, %cst_21 [0] : vector<256x128xf32> to vector<128xf32>
    %95 = vector.shape_cast %94 : vector<128xf32> to vector<1x128xf32>
    %96 = arith.mulf %93, %93 : vector<256x128xf32>
    %cst_22 = arith.constant dense<0.000000e+00> : vector<128xf32>
    %97 = vector.multi_reduction <add>, %96, %cst_22 [0] : vector<256x128xf32> to vector<128xf32>
    %98 = vector.shape_cast %97 : vector<128xf32> to vector<1x128xf32>
    %c0_23 = arith.constant 0 : index
    %c0_24 = arith.constant 0 : index
    %c0_25 = arith.constant 0 : index
    %99 = vector.load %arg7[%c0_23, %c0_24, %c0_25] : memref<1x2x128xf32, #tpu.memory_space<vmem>>, vector<1x2x128xf32>
    %100 = vector.shape_cast %99 : vector<1x2x128xf32> to vector<2x128xf32>
    %101 = tpu.concatenate %95, %98 in 0 : vector<1x128xf32>, vector<1x128xf32> -> vector<2x128xf32>
    %102 = arith.addf %100, %101 : vector<2x128xf32>
    %c0_26 = arith.constant 0 : index
    %c0_27 = arith.constant 0 : index
    %c0_28 = arith.constant 0 : index
    %103 = vector.load %arg7[%c0_26, %c0_27, %c0_28] : memref<1x2x128xf32, #tpu.memory_space<vmem>>, vector<1x2x128xf32>
    %104 = vector.shape_cast %103 : vector<1x2x128xf32> to vector<2x128xf32>
    %105 = vector.shape_cast %102 : vector<2x128xf32> to vector<1x2x128xf32>
    tpu.vector_store %arg7[%c0_26, %c0_27, %c0_28], %105 {strides = array<i32>} : memref<1x2x128xf32, #tpu.memory_space<vmem>>, vector<1x2x128xf32>,
    return
  }
  func.func @transform_0(%arg0: i32, %arg1: i32, %arg2: i32) -> (i32, i32, i32, i32) {
    %c1_i32 = arith.constant 1 : i32
    %0 = arith.muli %arg0, %c1_i32 : i32
    %1 = arith.addi %0, %arg1 : i32
    %c0_i32 = arith.constant 0 : i32
    %c0_i32_0 = arith.constant 0 : i32
    %c0_i32_1 = arith.constant 0 : i32
    %c0_i32_2 = arith.constant 0 : i32
    return %1, %c0_i32, %c0_i32_0, %c0_i32_1 : i32, i32, i32, i32
  }
  func.func @transform_1(%arg0: i32, %arg1: i32, %arg2: i32) -> (i32, i32) {
    %c0_i32 = arith.constant 0 : i32
    %c0_i32_0 = arith.constant 0 : i32
    %c0_i32_1 = arith.constant 0 : i32
    return %c0_i32, %c0_i32_0 : i32, i32
  }
  func.func @transform_2(%arg0: i32, %arg1: i32, %arg2: i32) -> (i32, i32) {
    %c0_i32 = arith.constant 0 : i32
    %c0_i32_0 = arith.constant 0 : i32
    %c0_i32_1 = arith.constant 0 : i32
    return %c0_i32, %c0_i32_0 : i32, i32
  }
  func.func @transform_3(%arg0: i32, %arg1: i32, %arg2: i32) -> (i32, i32, i32) {
    %c0_i32 = arith.constant 0 : i32
    %c0_i32_0 = arith.constant 0 : i32
    %c0_i32_1 = arith.constant 0 : i32
    %c0_i32_2 = arith.constant 0 : i32
    return %c0_i32, %c0_i32_0, %c0_i32_1 : i32, i32, i32
  }
  func.func @transform_4(%arg0: i32, %arg1: i32, %arg2: i32) -> (i32, i32, i32) {
    %c0_i32 = arith.constant 0 : i32
    %c0_i32_0 = arith.constant 0 : i32
    %c0_i32_1 = arith.constant 0 : i32
    return %arg0, %c0_i32, %c0_i32_0 : i32, i32, i32
  }
}

module attributes {stable_mosaic.version = 11 : i64} {
  func.func @_apply_kernel(%arg0: i32, %arg1: i32, %arg2: memref<1x18x18x128xbf16, #tpu.memory_space<vmem>>, %arg3: memref<128x128xbf16, #tpu.memory_space<vmem>>, %arg4: memref<1x128xf32, #tpu.memory_space<vmem>>, %arg5: memref<3x3x128xf32, #tpu.memory_space<vmem>>, %arg6: memref<2x128xf32, #tpu.memory_space<vmem>>, %arg7: memref<128x128xbf16, #tpu.memory_space<vmem>>, %arg8: memref<1x16x16x2xf32, #tpu.memory_space<vmem>>) attributes {dimension_semantics = [#tpu.dimension_semantics<parallel>, #tpu.dimension_semantics<parallel>], iteration_bounds = array<i64: 2, 1>, scalar_prefetch = 0 : i64, scratch_operands = 0 : i64, tpu.core_type = #tpu.core_type<tc>, window_params = [{transform_indices = @transform_0, window_bounds = array<i64: 1, 18, 18, 128>}, {pipeline_mode = #tpu.pipeline_mode<synchronous>, transform_indices = @transform_1, window_bounds = array<i64: 128, 128>}, {pipeline_mode = #tpu.pipeline_mode<synchronous>, transform_indices = @transform_2, window_bounds = array<i64: 1, 128>}, {pipeline_mode = #tpu.pipeline_mode<synchronous>, transform_indices = @transform_3, window_bounds = array<i64: 3, 3, 128>}, {pipeline_mode = #tpu.pipeline_mode<synchronous>, transform_indices = @transform_4, window_bounds = array<i64: 2, 128>}, {pipeline_mode = #tpu.pipeline_mode<synchronous>, transform_indices = @transform_5, window_bounds = array<i64: 128, 128>}, {transform_indices = @transform_6, window_bounds = array<i64: 1, 16, 16, 2>}]} {
    %c0 = arith.constant 0 : index
    %c0_0 = arith.constant 0 : index
    %0 = vector.load %arg3[%c0, %c0_0] : memref<128x128xbf16, #tpu.memory_space<vmem>>, vector<128x128xbf16>
    %c0_1 = arith.constant 0 : index
    %c0_2 = arith.constant 0 : index
    %1 = vector.load %arg4[%c0_1, %c0_2] : memref<1x128xf32, #tpu.memory_space<vmem>>, vector<1x128xf32>
    %c0_3 = arith.constant 0 : index
    %c0_4 = arith.constant 0 : index
    %c0_5 = arith.constant 0 : index
    %2 = vector.load %arg5[%c0_3, %c0_4, %c0_5] : memref<3x3x128xf32, #tpu.memory_space<vmem>>, vector<3x3x128xf32>
    %c16_i32 = arith.constant 16 : i32
    %3 = arith.muli %arg1, %c16_i32 : i32
    %4 = tpu.assume_multiple %3, 8 : i32
    %c0_6 = arith.constant 0 : index
    %5 = arith.index_cast %4 : i32 to index
    %c0_7 = arith.constant 0 : index
    %c0_8 = arith.constant 0 : index
    %6 = vector.load %arg2[%c0_6, %5, %c0_7, %c0_8] : memref<1x18x18x128xbf16, #tpu.memory_space<vmem>>, vector<1x18x18x128xbf16>
    %7 = vector.shape_cast %6 : vector<1x18x18x128xbf16> to vector<18x18x128xbf16>
    %8 = vector.shape_cast %7 : vector<18x18x128xbf16> to vector<324x128xbf16>
    %cst = arith.constant dense<0.000000e+00> : vector<324x128xf32>
    %9 = tpu.matmul %8, %0, %cst {dimension_numbers = #tpu.dot_dimension_numbers<[1], [0], [0], [1], [0, 0, 1, 1], [], []>} : vector<324x128xbf16>, vector<128x128xbf16>, vector<324x128xf32> -> vector<324x128xf32>
    %10 = vector.broadcast %1 : vector<1x128xf32> to vector<324x128xf32>
    %11 = arith.addf %9, %10 : vector<324x128xf32>
    %12 = arith.mulf %11, %11 : vector<324x128xf32>
    %cst_9 = arith.constant 1.000000e+00 : f32
    %13 = vector.broadcast %cst_9 : f32 to vector<324x128xf32>
    %14 = arith.addf %12, %13 : vector<324x128xf32>
    %15 = math.rsqrt %14 : vector<324x128xf32>
    %16 = arith.mulf %11, %15 : vector<324x128xf32>
    %cst_10 = arith.constant 1.000000e+00 : f32
    %17 = vector.broadcast %cst_10 : f32 to vector<324x128xf32>
    %18 = arith.addf %17, %16 : vector<324x128xf32>
    %19 = arith.mulf %11, %18 : vector<324x128xf32>
    %cst_11 = arith.constant 5.000000e-01 : f32
    %20 = vector.broadcast %cst_11 : f32 to vector<324x128xf32>
    %21 = arith.mulf %19, %20 : vector<324x128xf32>
    %22 = vector.shape_cast %21 : vector<324x128xf32> to vector<18x18x128xf32>
    %c16_i32_12 = arith.constant 16 : i32
    %23 = arith.muli %arg1, %c16_i32_12 : i32
    %c1_i32 = arith.constant 1 : i32
    %24 = arith.subi %23, %c1_i32 : i32
    %25 = tpu.iota {dimensions = array<i32: 0>} : vector<18x18x128xi32>
    %26 = vector.broadcast %24 : i32 to vector<18x18x128xi32>
    %27 = arith.addi %26, %25 : vector<18x18x128xi32>
    %28 = tpu.iota {dimensions = array<i32: 1>} : vector<18x18x128xi32>
    %c1_i32_13 = arith.constant 1 : i32
    %29 = vector.broadcast %c1_i32_13 : i32 to vector<18x18x128xi32>
    %30 = arith.subi %28, %29 : vector<18x18x128xi32>
    %c0_i32 = arith.constant 0 : i32
    %31 = vector.broadcast %c0_i32 : i32 to vector<18x18x128xi32>
    %32 = arith.cmpi sge, %27, %31 : vector<18x18x128xi32>
    %c16_i32_14 = arith.constant 16 : i32
    %33 = vector.broadcast %c16_i32_14 : i32 to vector<18x18x128xi32>
    %34 = arith.cmpi slt, %27, %33 : vector<18x18x128xi32>
    %35 = arith.andi %32, %34 : vector<18x18x128xi1>
    %c0_i32_15 = arith.constant 0 : i32
    %36 = vector.broadcast %c0_i32_15 : i32 to vector<18x18x128xi32>
    %37 = arith.cmpi sge, %30, %36 : vector<18x18x128xi32>
    %38 = arith.andi %35, %37 : vector<18x18x128xi1>
    %c16_i32_16 = arith.constant 16 : i32
    %39 = vector.broadcast %c16_i32_16 : i32 to vector<18x18x128xi32>
    %40 = arith.cmpi slt, %30, %39 : vector<18x18x128xi32>
    %41 = arith.andi %38, %40 : vector<18x18x128xi1>
    %cst_17 = arith.constant 0.000000e+00 : f32
    %42 = vector.broadcast %cst_17 : f32 to vector<18x18x128xf32>
    %43 = arith.select %41, %22, %42 : vector<18x18x128xi1>, vector<18x18x128xf32>
    %44 = vector.extract_strided_slice %2 {offsets = [0, 0, 0], sizes = [1, 1, 128], strides = [1, 1, 1]} : vector<3x3x128xf32> to vector<1x1x128xf32>
    %45 = vector.extract_strided_slice %43 {offsets = [0, 0, 0], sizes = [16, 16, 128], strides = [1, 1, 1]} : vector<18x18x128xf32> to vector<16x16x128xf32>
    %46 = vector.broadcast %44 : vector<1x1x128xf32> to vector<16x16x128xf32>
    %47 = arith.mulf %45, %46 : vector<16x16x128xf32>
    %48 = vector.extract_strided_slice %2 {offsets = [0, 1, 0], sizes = [1, 1, 128], strides = [1, 1, 1]} : vector<3x3x128xf32> to vector<1x1x128xf32>
    %49 = vector.extract_strided_slice %43 {offsets = [0, 1, 0], sizes = [16, 16, 128], strides = [1, 1, 1]} : vector<18x18x128xf32> to vector<16x16x128xf32>
    %50 = vector.broadcast %48 : vector<1x1x128xf32> to vector<16x16x128xf32>
    %51 = arith.mulf %49, %50 : vector<16x16x128xf32>
    %52 = arith.addf %47, %51 : vector<16x16x128xf32>
    %53 = vector.extract_strided_slice %2 {offsets = [0, 2, 0], sizes = [1, 1, 128], strides = [1, 1, 1]} : vector<3x3x128xf32> to vector<1x1x128xf32>
    %54 = vector.extract_strided_slice %43 {offsets = [0, 2, 0], sizes = [16, 16, 128], strides = [1, 1, 1]} : vector<18x18x128xf32> to vector<16x16x128xf32>
    %55 = vector.broadcast %53 : vector<1x1x128xf32> to vector<16x16x128xf32>
    %56 = arith.mulf %54, %55 : vector<16x16x128xf32>
    %57 = arith.addf %52, %56 : vector<16x16x128xf32>
    %58 = vector.extract_strided_slice %2 {offsets = [1, 0, 0], sizes = [1, 1, 128], strides = [1, 1, 1]} : vector<3x3x128xf32> to vector<1x1x128xf32>
    %59 = vector.extract_strided_slice %43 {offsets = [1, 0, 0], sizes = [16, 16, 128], strides = [1, 1, 1]} : vector<18x18x128xf32> to vector<16x16x128xf32>
    %60 = vector.broadcast %58 : vector<1x1x128xf32> to vector<16x16x128xf32>
    %61 = arith.mulf %59, %60 : vector<16x16x128xf32>
    %62 = arith.addf %57, %61 : vector<16x16x128xf32>
    %63 = vector.extract_strided_slice %2 {offsets = [1, 1, 0], sizes = [1, 1, 128], strides = [1, 1, 1]} : vector<3x3x128xf32> to vector<1x1x128xf32>
    %64 = vector.extract_strided_slice %43 {offsets = [1, 1, 0], sizes = [16, 16, 128], strides = [1, 1, 1]} : vector<18x18x128xf32> to vector<16x16x128xf32>
    %65 = vector.broadcast %63 : vector<1x1x128xf32> to vector<16x16x128xf32>
    %66 = arith.mulf %64, %65 : vector<16x16x128xf32>
    %67 = arith.addf %62, %66 : vector<16x16x128xf32>
    %68 = vector.extract_strided_slice %2 {offsets = [1, 2, 0], sizes = [1, 1, 128], strides = [1, 1, 1]} : vector<3x3x128xf32> to vector<1x1x128xf32>
    %69 = vector.extract_strided_slice %43 {offsets = [1, 2, 0], sizes = [16, 16, 128], strides = [1, 1, 1]} : vector<18x18x128xf32> to vector<16x16x128xf32>
    %70 = vector.broadcast %68 : vector<1x1x128xf32> to vector<16x16x128xf32>
    %71 = arith.mulf %69, %70 : vector<16x16x128xf32>
    %72 = arith.addf %67, %71 : vector<16x16x128xf32>
    %73 = vector.extract_strided_slice %2 {offsets = [2, 0, 0], sizes = [1, 1, 128], strides = [1, 1, 1]} : vector<3x3x128xf32> to vector<1x1x128xf32>
    %74 = vector.extract_strided_slice %43 {offsets = [2, 0, 0], sizes = [16, 16, 128], strides = [1, 1, 1]} : vector<18x18x128xf32> to vector<16x16x128xf32>
    %75 = vector.broadcast %73 : vector<1x1x128xf32> to vector<16x16x128xf32>
    %76 = arith.mulf %74, %75 : vector<16x16x128xf32>
    %77 = arith.addf %72, %76 : vector<16x16x128xf32>
    %78 = vector.extract_strided_slice %2 {offsets = [2, 1, 0], sizes = [1, 1, 128], strides = [1, 1, 1]} : vector<3x3x128xf32> to vector<1x1x128xf32>
    %79 = vector.extract_strided_slice %43 {offsets = [2, 1, 0], sizes = [16, 16, 128], strides = [1, 1, 1]} : vector<18x18x128xf32> to vector<16x16x128xf32>
    %80 = vector.broadcast %78 : vector<1x1x128xf32> to vector<16x16x128xf32>
    %81 = arith.mulf %79, %80 : vector<16x16x128xf32>
    %82 = arith.addf %77, %81 : vector<16x16x128xf32>
    %83 = vector.extract_strided_slice %2 {offsets = [2, 2, 0], sizes = [1, 1, 128], strides = [1, 1, 1]} : vector<3x3x128xf32> to vector<1x1x128xf32>
    %84 = vector.extract_strided_slice %43 {offsets = [2, 2, 0], sizes = [16, 16, 128], strides = [1, 1, 1]} : vector<18x18x128xf32> to vector<16x16x128xf32>
    %85 = vector.broadcast %83 : vector<1x1x128xf32> to vector<16x16x128xf32>
    %86 = arith.mulf %84, %85 : vector<16x16x128xf32>
    %87 = arith.addf %82, %86 : vector<16x16x128xf32>
    %c0_18 = arith.constant 0 : index
    %c0_19 = arith.constant 0 : index
    %88 = vector.load %arg6[%c0_18, %c0_19] : memref<2x128xf32, #tpu.memory_space<vmem>>, vector<1x128xf32>
    %89 = vector.shape_cast %88 : vector<1x128xf32> to vector<1x1x128xf32>
    %c1 = arith.constant 1 : index
    %c0_20 = arith.constant 0 : index
    %90 = vector.load %arg6[%c1, %c0_20] : memref<2x128xf32, #tpu.memory_space<vmem>>, vector<1x128xf32>
    %91 = vector.shape_cast %90 : vector<1x128xf32> to vector<1x1x128xf32>
    %92 = vector.broadcast %89 : vector<1x1x128xf32> to vector<16x16x128xf32>
    %93 = arith.mulf %87, %92 : vector<16x16x128xf32>
    %94 = vector.broadcast %91 : vector<1x1x128xf32> to vector<16x16x128xf32>
    %95 = arith.addf %93, %94 : vector<16x16x128xf32>
    %96 = arith.mulf %95, %95 : vector<16x16x128xf32>
    %cst_21 = arith.constant 1.000000e+00 : f32
    %97 = vector.broadcast %cst_21 : f32 to vector<16x16x128xf32>
    %98 = arith.addf %96, %97 : vector<16x16x128xf32>
    %99 = math.rsqrt %98 : vector<16x16x128xf32>
    %100 = arith.mulf %95, %99 : vector<16x16x128xf32>
    %cst_22 = arith.constant 1.000000e+00 : f32
    %101 = vector.broadcast %cst_22 : f32 to vector<16x16x128xf32>
    %102 = arith.addf %101, %100 : vector<16x16x128xf32>
    %103 = arith.mulf %95, %102 : vector<16x16x128xf32>
    %cst_23 = arith.constant 5.000000e-01 : f32
    %104 = vector.broadcast %cst_23 : f32 to vector<16x16x128xf32>
    %105 = arith.mulf %103, %104 : vector<16x16x128xf32>
    %106 = vector.shape_cast %105 : vector<16x16x128xf32> to vector<256x128xf32>
    %107 = arith.truncf %106 : vector<256x128xf32> to vector<256x128xbf16>
    %c0_24 = arith.constant 0 : index
    %c0_25 = arith.constant 0 : index
    %108 = vector.load %arg7[%c0_24, %c0_25] : memref<128x128xbf16, #tpu.memory_space<vmem>>, vector<128x128xbf16>
    %cst_26 = arith.constant dense<0.000000e+00> : vector<256x128xf32>
    %109 = tpu.matmul %107, %108, %cst_26 {dimension_numbers = #tpu.dot_dimension_numbers<[1], [0], [0], [1], [0, 0, 1, 1], [], []>} : vector<256x128xbf16>, vector<128x128xbf16>, vector<256x128xf32> -> vector<256x128xf32>
    %110 = vector.shape_cast %109 : vector<256x128xf32> to vector<16x16x128xf32>
    %111 = vector.extract_strided_slice %110 {offsets = [0, 0, 0], sizes = [16, 16, 2], strides = [1, 1, 1]} : vector<16x16x128xf32> to vector<16x16x2xf32>
    %c0_27 = arith.constant 0 : index
    %c0_28 = arith.constant 0 : index
    %c0_29 = arith.constant 0 : index
    %c0_30 = arith.constant 0 : index
    %112 = vector.load %arg8[%c0_27, %c0_28, %c0_29, %c0_30] : memref<1x16x16x2xf32, #tpu.memory_space<vmem>>, vector<1x16x16x2xf32>
    %113 = vector.shape_cast %112 : vector<1x16x16x2xf32> to vector<16x16x2xf32>
    %114 = vector.shape_cast %111 : vector<16x16x2xf32> to vector<1x16x16x2xf32>
    tpu.vector_store %arg8[%c0_27, %c0_28, %c0_29, %c0_30], %114 {strides = array<i32>} : memref<1x16x16x2xf32, #tpu.memory_space<vmem>>, vector<1x16x16x2xf32>,
    return
  }
  func.func @transform_0(%arg0: i32, %arg1: i32) -> (i32, i32, i32, i32) {
    %c0_i32 = arith.constant 0 : i32
    %c0_i32_0 = arith.constant 0 : i32
    %c0_i32_1 = arith.constant 0 : i32
    %c0_i32_2 = arith.constant 0 : i32
    return %arg0, %c0_i32, %c0_i32_0, %c0_i32_1 : i32, i32, i32, i32
  }
  func.func @transform_1(%arg0: i32, %arg1: i32) -> (i32, i32) {
    %c0_i32 = arith.constant 0 : i32
    %c0_i32_0 = arith.constant 0 : i32
    %c0_i32_1 = arith.constant 0 : i32
    return %c0_i32, %c0_i32_0 : i32, i32
  }
  func.func @transform_2(%arg0: i32, %arg1: i32) -> (i32, i32) {
    %c0_i32 = arith.constant 0 : i32
    %c0_i32_0 = arith.constant 0 : i32
    %c0_i32_1 = arith.constant 0 : i32
    return %c0_i32, %c0_i32_0 : i32, i32
  }
  func.func @transform_3(%arg0: i32, %arg1: i32) -> (i32, i32, i32) {
    %c0_i32 = arith.constant 0 : i32
    %c0_i32_0 = arith.constant 0 : i32
    %c0_i32_1 = arith.constant 0 : i32
    %c0_i32_2 = arith.constant 0 : i32
    return %c0_i32, %c0_i32_0, %c0_i32_1 : i32, i32, i32
  }
  func.func @transform_4(%arg0: i32, %arg1: i32) -> (i32, i32) {
    %c0_i32 = arith.constant 0 : i32
    %c0_i32_0 = arith.constant 0 : i32
    %c0_i32_1 = arith.constant 0 : i32
    return %c0_i32, %c0_i32_0 : i32, i32
  }
  func.func @transform_5(%arg0: i32, %arg1: i32) -> (i32, i32) {
    %c0_i32 = arith.constant 0 : i32
    %c0_i32_0 = arith.constant 0 : i32
    %c0_i32_1 = arith.constant 0 : i32
    return %c0_i32, %c0_i32_0 : i32, i32
  }
  func.func @transform_6(%arg0: i32, %arg1: i32) -> (i32, i32, i32, i32) {
    %c0_i32 = arith.constant 0 : i32
    %c0_i32_0 = arith.constant 0 : i32
    %c0_i32_1 = arith.constant 0 : i32
    return %arg0, %arg1, %c0_i32, %c0_i32_0 : i32, i32, i32, i32
  }
}

</mosaic_0001>

<bundles_post_ra>
// kernel: _lambda_.3
= control target key start
LH: loop header
LB: loop body
LE: loop exit
PB: predicated region body
PF: predicated region fallthrough
CT: control target
= control target key end

     0   :  { %s2933_s9 = smov 0   ;;  %s2935_s10 = smov 0   ;;  %s3443_s0 = inlined_call_operand.vmem [shape: bf16[2,18,18,128], index: 0, kind: input, shape index: {}]   ;;  %s3444_s1 = inlined_call_operand.vmem [shape: f32[2,1,128], index: 1, kind: output, shape index: {0}]   ;;  %s3445_s2 = inlined_call_operand.vmem [shape: f32[2,128,128], index: 2, kind: output, shape index: {1}]  }
   0x1   :  { %s2937_s11 = smov 0  }
   0x2 LB: > { %s32_s12 = sadd.s32 1, %s2910_s10  ;;  %p2490_p0 = scmp.ge.s32.totalorder %s2914_s11, 1  ;;  %s2914_s11 = sphi %s2937_s11, %s13_s11   ;;  %s2910_s10 = sphi %s2935_s10, %s3454_s10   ;;  %s2906_s9 = sphi %s2933_s9, %s3453_s9  }
   0x3   : > { %p34_p1 = scmp.ge.s32.totalorder %s32_s12, 2  ;;  %p146_p2 = scmp.lt.s32.totalorder %s2914_s11, 3 }
   0x5   : > { %s3456_s12 = smov (%p34_p1, %s32_s12), 0  ;;  %p147_p3 = pnand %p2490_p0, %p146_p2 }
   0x7   : > { %150 = sbr.rel (%p147_p3) target bundleno = 499 (0x1f3), region = 24 }
   0xe   : > { %p179_p4 = scmp.lt.s32.totalorder %s2906_s9, 1  ;;  %v387_v0 = vlaneseq  ;;  %v2916_v1 = vmov 1983009808   ;;  %vm1890_vm0 = vcmask 1043456   ;;  %vm2013_vm1 = vcmask 556032  }
   0xf   : > { %v385_v2 = vunpack.c.l.s4 %v2916_v1 }
  0x10   : > { %s3458_s9 = smov (!%p179_p4, %s2906_s9), 1  ;;  %v388_v3 = vshrl.u32 %v387_v0, 7 }
  0x11   : > { %v386_v4 = vunpack.c.0.s8 %v385_v2  ;;  %s2753_s13 = smul.u32 216, %s3458_s9  ;;  %s3336_s19 = scalar_lea.vmem %s3444_s1, %s3458_s9 }
  0x12   : > { %s2513_s20 = sshll.u32 %s3458_s9, 7 }
  0x13   : > { %s2957_s16 = scalar_lea.vmem %s3443_s0, %s2753_s13  ;;  %v2959_v5 = vsub.s32 %v386_v4, %v388_v3  ;;  %s3416_s23 = scalar_lea.vmem %s3445_s2, %s2513_s20 }
  0x14   : > { %v2515_v6 = vld [vmem:[%s2957_s16] sm:$0xff]   ;;  %v242_v7 = vld [vmem:[%s2957_s16 + $0x54] sm:$0xff]   ;;  %v2556_v8 = vld [vmem:[%s2957_s16 + $0xa8] sm:$0xff]  }
  0x15   : > { %v2516_v9 = vunpack.c.l.bf16 %v2515_v6  ;;  %v296_v10 = vunpack.c.l.bf16 %v242_v7  ;;  %v297_v11 = vunpack.c.h.bf16 %v242_v7  ;;  %v2964_v12 = vunpack.c.l.bf16 %v2556_v8  ;;  %v244_v13 = vld [vmem:[%s2957_s16 + $0x5c] sm:$0x1]  ;;  %v265_v14 = vld [vmem:[%s2957_s16 + $0xb0] sm:$0x1]  ;;  %v266_v47 = vld [vmem:[%s2957_s16 + $0xb4] sm:$0xff]  }
  0x16   : > { %v2545_v15 = vunpack.c.h.bf16 %v2556_v8  ;;  %v2517_v16 = vunpack.c.h.bf16 %v2515_v6  ;;  %v298_v17 = vunpack.c.l.bf16 %v244_v13  ;;  %v319_v18 = vunpack.c.l.bf16 %v265_v14  ;;  %v2553_v0 = vld [vmem:[%s2957_s16 + $0x60] sm:$0xff]   ;;  %v223_v6 = vld [vmem:[%s2957_s16 + $0x8] sm:$0x1]  ;;  %v224_v7 = vld [vmem:[%s2957_s16 + $0xc] sm:$0xff]  }
  0x17   : > { %v383_v19 = vcombine.high %v2516_v9, %v2516_v9  ;;  %v390_v20 = vrot.slane %v2516_v9, %v2959_v5  ;;  %v670_v21 = vcombine.high %v296_v10, %v296_v10  ;;  %v2970_v22 = vrot.slane %v296_v10, %v2959_v5 }
  0x18   : > { %v694_v23 = vrot.slane %v297_v11, %v2959_v5  ;;  %v957_v24 = vcombine.high %v2964_v12, %v2964_v12  ;;  %v981_v25 = vrot.slane %v2545_v15, %v2959_v5  ;;  %v400_v26 = vcombine.high %v2517_v16, %v2517_v16 }
  0x19   : > { %v397_v27 = vrot.slane %v383_v19, %v2959_v5  ;;  %v398_v28 = vcombine.high %v390_v20, %v390_v20  ;;  %v684_v29 = vrot.slane %v670_v21, %v2959_v5  ;;  %v685_v30 = vcombine.high %v2970_v22, %v2970_v22 }
  0x1a   : > { %v971_v31 = vrot.slane %v957_v24, %v2959_v5  ;;  %v989_v32 = vcombine.high %v981_v25, %v981_v25  ;;  %v407_v33 = vrot.slane %v2517_v16, %v2959_v5  ;;  %v414_v34 = vrot.slane %v400_v26, %v2959_v5 }
  0x1b   : > { %v399_v35 = vcombine.high %v397_v27, %v397_v27  ;;  %v686_v36 = vcombine.high %v684_v29, %v684_v29  ;;  %v1122_v37 = vcombine.low %v390_v20, %v398_v28  ;;  %v1394_v38 = vcombine.low %v685_v30, %v684_v29 }
  0x1c   : > { %v973_v39 = vcombine.high %v971_v31, %v971_v31  ;;  %v1667_v40 = vcombine.low %v981_v25, %v989_v32  ;;  %v415_v41 = vcombine.high %v407_v33, %v407_v33  ;;  %v416_v42 = vcombine.high %v414_v34, %v414_v34 }
  0x1d   : > { %v1123_v43 = vcombine.low %v397_v27, %v399_v35  ;;  %v1130_v44 = vrot.slane %v1122_v37, %v2959_v5  ;;  %v1395_v45 = vcombine.low %v686_v36, %v694_v23  ;;  %v1402_v46 = vrot.slane %v1394_v38, %v2959_v5 }
  0x1e   : > { %v1666_v48 = vcombine.low %v971_v31, %v973_v39  ;;  %v1681_v49 = vrot.slane %v1667_v40, %v2959_v5  ;;  %v687_v50 = vcombine.high %v297_v11, %v297_v11  ;;  %v702_v51 = vcombine.high %v694_v23, %v694_v23 }
  0x1f   : > { %v1137_v52 = vrot.slane %v1123_v43, %v2959_v5  ;;  %v1409_v53 = vrot.slane %v1395_v45, %v2959_v5  ;;  %v710_v54 = vrot.slane %v298_v17, %v2959_v5  ;;  %v1139_v55 = vcombine.low %v407_v33, %v415_v41 }
  0x20   : > { %v1674_v56 = vrot.slane %v1666_v48, %v2959_v5  ;;  %v701_v57 = vrot.slane %v687_v50, %v2959_v5  ;;  %v1140_v58 = vcombine.low %v414_v34, %v416_v42  ;;  %v320_v59 = vunpack.c.l.bf16 %v266_v47 }
  0x21   : > { %v2992_v60 = vcombine.low %v1130_v44, %v1137_v52  ;;  %v2994_v61 = vcombine.low %v1402_v46, %v1409_v53  ;;  %v1147_v62 = vrot.slane %v1139_v55, %v2959_v5  ;;  %v974_v63 = vcombine.high %v2545_v15, %v2545_v15 }
  0x22   : > { %v2998_v1 = vcombine.low %v1674_v56, %v1681_v49  ;;  %v703_v2 = vcombine.high %v701_v57, %v701_v57  ;;  %v1154_v3 = vrot.slane %v1140_v58, %v2959_v5  ;;  %v1411_v4 = vcombine.low %v702_v51, %v701_v57  ;;  %v268_v58 = vld [vmem:[%s2957_s16 + $0xbc] sm:$0x1] }
  0x23   : > { %v2780_v8 = vpack.i.bf16 %v2992_v60, %v2994_v61  ;;  %v988_v9 = vrot.slane %v974_v63, %v2959_v5  ;;  %v997_v10 = vrot.slane %v319_v18, %v2959_v5  ;;  %v1005_v11 = vrot.slane %v320_v59, %v2959_v5 }
  0x24   : > { %1981 = vxpose.xlu1.b32.start [1/9] (short) %v2998_v1, 128  ;;  %v3009_v13 = vcombine.low %v1147_v62, %v1154_v3  ;;  %v1412_v14 = vcombine.low %v703_v2, %v710_v54  ;;  %v1419_v15 = vrot.slane %v1411_v4, %v2959_v5  ;;  %v2532_v16 = vunpack.c.l.bf16 %v2553_v0 }
  0x25   : > { %2781 = vxpose.xlu0.b32.start [1/16] %v2780_v8, 128  ;;  %v990_v17 = vcombine.high %v988_v9, %v988_v9  ;;  %v1684_v19 = vcombine.low %v997_v10, %v1005_v11  ;;  %v277_v20 = vunpack.c.l.bf16 %v223_v6  ;;  %v278_v21 = vunpack.c.l.bf16 %v224_v7 }
  0x26   : > { %v1426_v23 = vrot.slane %v1412_v14, %v2959_v5  ;;  %v1851_v18 = vadd.f32 %v3009_v13, %v2992_v60  ;;  %v711_v24 = vcombine.high %v2532_v16, %v2532_v16  ;;  %v718_v25 = vrot.slane %v2532_v16, %v2959_v5 }
  0x27   : > { %v1683_v26 = vcombine.low %v988_v9, %v990_v17  ;;  %v1698_v27 = vrot.slane %v1684_v19, %v2959_v5  ;;  %v423_v28 = vrot.slane %v277_v20, %v2959_v5  ;;  %v424_v29 = vcombine.high %v278_v21, %v278_v21  ;;  %v2550_v17 = vld [vmem:[%s2957_s16 + $0x18] sm:$0xff]  }
  0x28   : > { %v3018_v30 = vcombine.low %v1419_v15, %v1426_v23  ;;  %v431_v31 = vrot.slane %v278_v21, %v2959_v5  ;;  %v725_v32 = vrot.slane %v711_v24, %v2959_v5  ;;  %v726_v33 = vcombine.high %v718_v25, %v718_v25  ;;  %v226_v24 = vld [vmem:[%s2957_s16 + $0x14] sm:$0x1] }
  0x29   : > { %v1691_v34 = vrot.slane %v1683_v26, %v2959_v5  ;;  %v438_v35 = vrot.slane %v424_v29, %v2959_v5  ;;  %v321_v36 = vunpack.c.h.bf16 %v266_v47  ;;  %v998_v37 = vcombine.high %v320_v59, %v320_v59 }
  0x2a   : > { %v2782_v38 = vpack.i.bf16 %v3009_v13, %v3018_v30  ;;  %v439_v39 = vcombine.high %v431_v31, %v431_v31  ;;  %v727_v40 = vcombine.high %v725_v32, %v725_v32  ;;  %v1156_v41 = vcombine.low %v423_v28, %v431_v31  ;;  %v248_v31 = vld [vmem:[%s2957_s16 + $0x6c] sm:$0xff]  }
  0x2b   : > { %v3026_v42 = vcombine.low %v1691_v34, %v1698_v27  ;;  %v1428_v43 = vcombine.low %v718_v25, %v726_v33  ;;  %v1012_v44 = vrot.slane %v998_v37, %v2959_v5  ;;  %v1013_v45 = vcombine.high %v1005_v11, %v1005_v11  ;;  %v247_v25 = vld [vmem:[%s2957_s16 + $0x68] sm:$0x1] }
  0x2c   : > { %2783 = vxpose.xlu0.b32.cont [2/16] %v2782_v38, 128  ;;  %v1157_v46 = vcombine.low %v439_v39, %v438_v35  ;;  %v1164_v48 = vrot.slane %v1156_v41, %v2959_v5  ;;  %v1429_v49 = vcombine.low %v725_v32, %v727_v40  ;;  %v1022_v47 = vrot.slane %v321_v36, %v2959_v5 }
  0x2d   : > { %1982 = vxpose.xlu1.b32.cont [2/9] (short) %v3026_v42, 128  ;;  %v1436_v50 = vrot.slane %v1428_v43, %v2959_v5  ;;  %v1014_v51 = vcombine.high %v1012_v44, %v1012_v44  ;;  %v1700_v52 = vcombine.low %v1013_v45, %v1012_v44  ;;  %v2533_v53 = vunpack.c.h.bf16 %v2553_v0 }
  0x2e   : > { %v1171_v54 = vrot.slane %v1157_v46, %v2959_v5  ;;  %v1443_v55 = vrot.slane %v1429_v49, %v2959_v5  ;;  %v279_v56 = vunpack.c.h.bf16 %v224_v7  ;;  %v440_v57 = vcombine.high %v438_v35, %v438_v35 }
  0x2f   : > { %v1701_v59 = vcombine.low %v1014_v51, %v1022_v47  ;;  %v1708_v62 = vrot.slane %v1700_v52, %v2959_v5  ;;  %v728_v63 = vcombine.high %v2533_v53, %v2533_v53  ;;  %v735_v2 = vrot.slane %v2533_v53, %v2959_v5  ;;  %v2557_v52 = vld [vmem:[%s2957_s16 + $0xc0] sm:$0xff]  }
  0x30   : > { %v3038_v3 = vcombine.low %v1164_v48, %v1171_v54  ;;  %v3040_v4 = vcombine.low %v1436_v50, %v1443_v55  ;;  %v441_v0 = vcombine.high %v279_v56, %v279_v56  ;;  %v448_v6 = vrot.slane %v279_v56, %v2959_v5 }
  0x31   : > { %v1715_v7 = vrot.slane %v1701_v59, %v2959_v5  ;;  %v742_v8 = vrot.slane %v728_v63, %v2959_v5  ;;  %v743_v9 = vcombine.high %v735_v2, %v735_v2  ;;  %v322_v10 = vunpack.c.l.bf16 %v268_v58 }
  0x32   : > { %v2784_v11 = vpack.i.bf16 %v3038_v3, %v3040_v4  ;;  %v1852_v14 = vadd.f32 %v1851_v18, %v3038_v3  ;;  %v455_v15 = vrot.slane %v441_v0, %v2959_v5  ;;  %v456_v16 = vcombine.high %v448_v6, %v448_v6 }
  0x33   : > { %v3050_v19 = vcombine.low %v1708_v62, %v1715_v7  ;;  %v744_v20 = vcombine.high %v742_v8, %v742_v8  ;;  %v1173_v21 = vcombine.low %v440_v57, %v448_v6  ;;  %v1445_v23 = vcombine.low %v735_v2, %v743_v9 }
  0x34   : > { %2785 = vxpose.xlu0.b32.cont [3/16] %v2784_v11, 128  ;;  %v1174_v26 = vcombine.low %v456_v16, %v455_v15  ;;  %v1015_v27 = vcombine.high %v321_v36, %v321_v36  ;;  %v1030_v28 = vcombine.high %v1022_v47, %v1022_v47  ;;  %v1038_v29 = vrot.slane %v322_v10, %v2959_v5 }
  0x35   : > { %1983 = vxpose.xlu1.b32.cont [3/9] (short) %v3050_v19, 128  ;;  %v1181_v18 = vrot.slane %v1173_v21, %v2959_v5  ;;  %v1446_v32 = vcombine.low %v742_v8, %v744_v20  ;;  %v1453_v33 = vrot.slane %v1445_v23, %v2959_v5  ;;  %v2520_v34 = vunpack.c.l.bf16 %v2550_v17 }
  0x36   : > { %v1188_v35 = vrot.slane %v1174_v26, %v2959_v5  ;;  %v1029_v37 = vrot.slane %v1015_v27, %v2959_v5  ;;  %v280_v38 = vunpack.c.l.bf16 %v226_v24  ;;  %v301_v39 = vunpack.c.l.bf16 %v247_v25 }
  0x37   : > { %v1460_v36 = vrot.slane %v1446_v32, %v2959_v5  ;;  %v302_v40 = vunpack.c.l.bf16 %v248_v31  ;;  %v457_v41 = vcombine.high %v455_v15, %v455_v15  ;;  %v472_v43 = vrot.slane %v2520_v34, %v2959_v5 }
  0x38   : > { %v3063_v44 = vcombine.low %v1181_v18, %v1188_v35  ;;  %v1031_v45 = vcombine.high %v1029_v37, %v1029_v37  ;;  %v1717_v46 = vcombine.low %v1030_v28, %v1029_v37  ;;  %v464_v48 = vrot.slane %v280_v38, %v2959_v5 }
  0x39   : > { %v3066_v49 = vcombine.low %v1453_v33, %v1460_v36  ;;  %v480_v47 = vcombine.high %v472_v43, %v472_v43  ;;  %v751_v50 = vrot.slane %v301_v39, %v2959_v5  ;;  %v752_v51 = vcombine.high %v302_v40, %v302_v40 }
  0x3a   : > { %v1853_v53 = vadd.f32 %v1852_v14, %v3063_v44  ;;  %v1718_v54 = vcombine.low %v1031_v45, %v1038_v29  ;;  %v1725_v55 = vrot.slane %v1717_v46, %v2959_v5  ;;  %v759_v56 = vrot.slane %v302_v40, %v2959_v5  ;;  %v229_v46 = vld [vmem:[%s2957_s16 + $0x20] sm:$0x1] }
  0x3b   : > { %v2786_v57 = vpack.i.bf16 %v3063_v44, %v3066_v49  ;;  %v766_v58 = vrot.slane %v752_v51, %v2959_v5  ;;  %v1190_v59 = vcombine.low %v457_v41, %v464_v48  ;;  %v1191_v62 = vcombine.low %v472_v43, %v480_v47  ;;  %v2554_v48 = vld [vmem:[%s2957_s16 + $0x78] sm:$0xff]  }
  0x3c   : > { %v1732_v63 = vrot.slane %v1718_v54, %v2959_v5  ;;  %v767_v2 = vcombine.high %v759_v56, %v759_v56  ;;  %v1462_v0 = vcombine.low %v751_v50, %v759_v56  ;;  %v2548_v6 = vunpack.c.l.bf16 %v2557_v52  ;;  %v230_v54 = vld [vmem:[%s2957_s16 + $0x24] sm:$0xff]  }
  0x3d   : > { %2787 = vxpose.xlu0.b32.cont [4/16] %v2786_v57, 128  ;;  %v1198_v7 = vrot.slane %v1190_v59, %v2959_v5  ;;  %v1205_v8 = vrot.slane %v1191_v62, %v2959_v5  ;;  %v3079_v9 = vunpack.c.h.bf16 %v2550_v17  ;;  %v303_v10 = vunpack.c.h.bf16 %v248_v31 }
  0x3e   : > { %v3081_v11 = vcombine.low %v1725_v55, %v1732_v63  ;;  %v1463_v14 = vcombine.low %v767_v2, %v766_v58  ;;  %v1470_v15 = vrot.slane %v1462_v0, %v2959_v5  ;;  %v1039_v16 = vcombine.high %v2548_v6, %v2548_v6 }
  0x3f   : > { %v3084_v20 = vcombine.low %v1198_v7, %v1205_v8  ;;  %v1046_v21 = vrot.slane %v2548_v6, %v2959_v5  ;;  %v465_v23 = vcombine.high %v2520_v34, %v2520_v34  ;;  %v489_v24 = vrot.slane %v3079_v9, %v2959_v5 }
  0x40   : > { %1984 = vxpose.xlu1.b32.cont [4/9] (short) %v3081_v11, 128  ;;  %v1477_v17 = vrot.slane %v1463_v14, %v2959_v5  ;;  %v1053_v25 = vrot.slane %v1039_v16, %v2959_v5  ;;  %v768_v26 = vcombine.high %v766_v58, %v766_v58  ;;  %v769_v27 = vcombine.high %v303_v10, %v303_v10  ;;  %v250_v58 = vld [vmem:[%s2957_s16 + $0x74] sm:$0x1] }
  0x41   : > { %v1854_v28 = vadd.f32 %v1853_v53, %v3084_v20  ;;  %v1054_v29 = vcombine.high %v1046_v21, %v1046_v21  ;;  %v479_v31 = vrot.slane %v465_v23, %v2959_v5  ;;  %v497_v18 = vcombine.high %v489_v24, %v489_v24 }
  0x42   : > { %v3094_v32 = vcombine.low %v1470_v15, %v1477_v17  ;;  %v1055_v33 = vcombine.high %v1053_v25, %v1053_v25  ;;  %v776_v34 = vrot.slane %v303_v10, %v2959_v5  ;;  %v783_v35 = vrot.slane %v769_v27, %v2959_v5 }
  0x43   : > { %v1734_v37 = vcombine.low %v1046_v21, %v1054_v29  ;;  %v481_v38 = vcombine.high %v479_v31, %v479_v31  ;;  %v1208_v39 = vcombine.low %v489_v24, %v497_v18  ;;  %v2549_v36 = vunpack.c.h.bf16 %v2557_v52  ;;  %v272_v18 = vld [vmem:[%s2957_s16 + $0xcc] sm:$0xff]  }
  0x44   : > { %v2788_v40 = vpack.i.bf16 %v3084_v20, %v3094_v32  ;;  %v1735_v41 = vcombine.low %v1053_v25, %v1055_v33  ;;  %v784_v43 = vcombine.high %v776_v34, %v776_v34  ;;  %v1479_v45 = vcombine.low %v768_v26, %v776_v34  ;;  %v271_v25 = vld [vmem:[%s2957_s16 + $0xc8] sm:$0x1] }
  0x45   : > { %v1742_v47 = vrot.slane %v1734_v37, %v2959_v5  ;;  %v1207_v50 = vcombine.low %v479_v31, %v481_v38  ;;  %v1222_v51 = vrot.slane %v1208_v39, %v2959_v5  ;;  %v1056_v53 = vcombine.high %v2549_v36, %v2549_v36 }
  0x46   : > { %2789 = vxpose.xlu0.b32.cont [5/16] %v2788_v40, 128  ;;  %v1749_v55 = vrot.slane %v1735_v41, %v2959_v5  ;;  %v1480_v52 = vcombine.low %v784_v43, %v783_v35  ;;  %v1487_v56 = vrot.slane %v1479_v45, %v2959_v5  ;;  %v1063_v57 = vrot.slane %v2549_v36, %v2959_v5 }
  0x47   : > { %v1215_v59 = vrot.slane %v1207_v50, %v2959_v5  ;;  %v1070_v62 = vrot.slane %v1056_v53, %v2959_v5  ;;  %v2536_v63 = vunpack.c.l.bf16 %v2554_v48  ;;  %v283_v2 = vunpack.c.l.bf16 %v229_v46 }
  0x48   : > { %v3111_v0 = vcombine.low %v1742_v47, %v1749_v55  ;;  %v1494_v6 = vrot.slane %v1480_v52, %v2959_v5  ;;  %v1071_v7 = vcombine.high %v1063_v57, %v1063_v57  ;;  %v284_v8 = vunpack.c.l.bf16 %v230_v54 }
  0x49   : > { %v3114_v10 = vcombine.low %v1215_v59, %v1222_v51  ;;  %v1072_v14 = vcombine.high %v1070_v62, %v1070_v62  ;;  %v304_v15 = vunpack.c.l.bf16 %v250_v58  ;;  %v482_v16 = vcombine.high %v3079_v9, %v3079_v9 }
  0x4a   : > { %1985 = vxpose.xlu1.b32.cont [5/9] (short) %v3111_v0, 128  ;;  %v3119_v21 = vcombine.low %v1487_v56, %v1494_v6  ;;  %v1751_v23 = vcombine.low %v1063_v57, %v1071_v7  ;;  %v505_v24 = vrot.slane %v283_v2, %v2959_v5  ;;  %v513_v17 = vrot.slane %v284_v8, %v2959_v5 }
  0x4b   : > { %v1855_v26 = vadd.f32 %v1854_v28, %v3114_v10  ;;  %v1752_v27 = vcombine.low %v1070_v62, %v1072_v14  ;;  %v496_v29 = vrot.slane %v482_v16, %v2959_v5  ;;  %v785_v31 = vcombine.high %v783_v35, %v783_v35 }
  0x4c   : > { %v2790_v9 = vpack.i.bf16 %v3114_v10, %v3119_v21  ;;  %v1759_v33 = vrot.slane %v1751_v23, %v2959_v5  ;;  %v792_v34 = vrot.slane %v304_v15, %v2959_v5  ;;  %v800_v37 = vrot.slane %v2536_v63, %v2959_v5 }
  0x4d   : > { %v1766_v38 = vrot.slane %v1752_v27, %v2959_v5  ;;  %v498_v39 = vcombine.high %v496_v29, %v496_v29  ;;  %v1225_v36 = vcombine.low %v505_v24, %v513_v17  ;;  %v325_v40 = vunpack.c.l.bf16 %v271_v25 }
  0x4e   : > { %2791 = vxpose.xlu0.b32.cont [6/16] %v2790_v9, 128  ;;  %v808_v28 = vcombine.high %v800_v37, %v800_v37  ;;  %v1496_v41 = vcombine.low %v785_v31, %v792_v34  ;;  %v326_v43 = vunpack.c.l.bf16 %v272_v18  ;;  %v3133_v35 = vunpack.c.h.bf16 %v2554_v48  ;;  %v232_v34 = vld [vmem:[%s2957_s16 + $0x2c] sm:$0x1] }
  0x4f   : > { %v3135_v45 = vcombine.low %v1759_v33, %v1766_v38  ;;  %v1224_v46 = vcombine.low %v496_v29, %v498_v39  ;;  %v1239_v47 = vrot.slane %v1225_v36, %v2959_v5  ;;  %v1079_v50 = vrot.slane %v325_v40, %v2959_v5 }
  0x50   : > { %v1497_v51 = vcombine.low %v800_v37, %v808_v28  ;;  %v1504_v53 = vrot.slane %v1496_v41, %v2959_v5  ;;  %v1080_v55 = vcombine.high %v326_v43, %v326_v43  ;;  %v1087_v52 = vrot.slane %v326_v43, %v2959_v5  ;;  %v253_v37 = vld [vmem:[%s2957_s16 + $0x80] sm:$0x1] }
  0x51   : > { %1986 = vxpose.xlu1.b32.cont [6/9] (short) %v3135_v45, 128  ;;  %v1232_v56 = vrot.slane %v1224_v46, %v2959_v5  ;;  %v285_v57 = vunpack.c.h.bf16 %v230_v54  ;;  %v506_v48 = vcombine.high %v284_v8, %v284_v8  ;;  %v521_v58 = vcombine.high %v513_v17, %v513_v17  ;;  %v254_v46 = vld [vmem:[%s2957_s16 + $0x84] sm:$0xff]  }
  0x52   : > { %v1511_v59 = vrot.slane %v1497_v51, %v2959_v5  ;;  %v1094_v62 = vrot.slane %v1080_v55, %v2959_v5  ;;  %v1095_v2 = vcombine.high %v1087_v52, %v1087_v52  ;;  %v1768_v6 = vcombine.low %v1079_v50, %v1087_v52 }
  0x53   : > { %v3145_v7 = vcombine.low %v1232_v56, %v1239_v47  ;;  %v520_v14 = vrot.slane %v506_v48, %v2959_v5  ;;  %v530_v15 = vrot.slane %v285_v57, %v2959_v5  ;;  %v793_v16 = vcombine.high %v2536_v63, %v2536_v63 }
  0x54   : > { %v3149_v23 = vcombine.low %v1504_v53, %v1511_v59  ;;  %v1769_v54 = vcombine.low %v1095_v2, %v1094_v62  ;;  %v1776_v8 = vrot.slane %v1768_v6, %v2959_v5  ;;  %v817_v24 = vrot.slane %v3133_v35, %v2959_v5  ;;  %v274_v2 = vld [vmem:[%s2957_s16 + $0xd4] sm:$0x1] }
  0x55   : > { %v1856_v17 = vadd.f32 %v1855_v26, %v3145_v7  ;;  %v522_v25 = vcombine.high %v520_v14, %v520_v14  ;;  %v807_v27 = vrot.slane %v793_v16, %v2959_v5  ;;  %v1241_v29 = vcombine.low %v521_v58, %v520_v14 }
  0x56   : > { %v2792_v31 = vpack.i.bf16 %v3145_v7, %v3149_v23  ;;  %v1783_v63 = vrot.slane %v1769_v54, %v2959_v5  ;;  %v825_v9 = vcombine.high %v817_v24, %v817_v24  ;;  %v327_v33 = vunpack.c.h.bf16 %v272_v18 }
  0x57   : > { %v809_v38 = vcombine.high %v807_v27, %v807_v27  ;;  %v1242_v39 = vcombine.low %v522_v25, %v530_v15  ;;  %v1249_v36 = vrot.slane %v1241_v29, %v2959_v5  ;;  %v1096_v40 = vcombine.high %v1094_v62, %v1094_v62 }
  0x58   : > { %2793 = vxpose.xlu0.b32.cont [7/16] %v2792_v31, 128  ;;  %v3162_v26 = vcombine.low %v1776_v8, %v1783_v63  ;;  %v1514_v28 = vcombine.low %v817_v24, %v825_v9  ;;  %v1097_v41 = vcombine.high %v327_v33, %v327_v33  ;;  %v1104_v43 = vrot.slane %v327_v33, %v2959_v5  ;;  %v2551_v9 = vld [vmem:[%s2957_s16 + $0x30] sm:$0xff]  }
  0x59   : > { %v1256_v47 = vrot.slane %v1242_v39, %v2959_v5  ;;  %v1513_v50 = vcombine.low %v807_v27, %v809_v38  ;;  %v286_v18 = vunpack.c.l.bf16 %v232_v34  ;;  %v307_v51 = vunpack.c.l.bf16 %v253_v37 }
  0x5a   : > { %1987 = vxpose.xlu1.b32.cont [7/9] (short) %v3162_v26, 128  ;;  %v1528_v53 = vrot.slane %v1514_v28, %v2959_v5  ;;  %v1111_v55 = vrot.slane %v1097_v41, %v2959_v5  ;;  %v1112_v52 = vcombine.high %v1104_v43, %v1104_v43  ;;  %v1785_v56 = vcombine.low %v1096_v40, %v1104_v43 }
  0x5b   : > { %v3170_v48 = vcombine.low %v1249_v36, %v1256_v47  ;;  %v1521_v58 = vrot.slane %v1513_v50, %v2959_v5  ;;  %v308_v59 = vunpack.c.l.bf16 %v254_v46  ;;  %v523_v62 = vcombine.high %v285_v57, %v285_v57 }
  0x5c   : > { %v1786_v6 = vcombine.low %v1112_v52, %v1111_v55  ;;  %v1793_v14 = vrot.slane %v1785_v56, %v2959_v5  ;;  %v538_v16 = vcombine.high %v530_v15, %v530_v15  ;;  %v546_v54 = vrot.slane %v286_v18, %v2959_v5  ;;  %v256_v56 = vld [vmem:[%s2957_s16 + $0x8c] sm:$0x1] }
  0x5d   : > { %v3176_v8 = vcombine.low %v1521_v58, %v1528_v53  ;;  %v1857_v24 = vadd.f32 %v1856_v17, %v3170_v48  ;;  %v537_v25 = vrot.slane %v523_v62, %v2959_v5  ;;  %v810_v27 = vcombine.high %v3133_v35, %v3133_v35 }
  0x5e   : > { %v1800_v29 = vrot.slane %v1786_v6, %v2959_v5  ;;  %v833_v57 = vrot.slane %v307_v51, %v2959_v5  ;;  %v841_v31 = vrot.slane %v308_v59, %v2959_v5  ;;  %v328_v63 = vunpack.c.l.bf16 %v274_v2 }
  0x5f   : > { %v2794_v15 = vpack.i.bf16 %v3170_v48, %v3176_v8  ;;  %v539_v33 = vcombine.high %v537_v25, %v537_v25  ;;  %v824_v34 = vrot.slane %v810_v27, %v2959_v5  ;;  %v1258_v17 = vcombine.low %v538_v16, %v537_v25 }
  0x60   : > { %v3189_v37 = vcombine.low %v1793_v14, %v1800_v29  ;;  %v1531_v38 = vcombine.low %v833_v57, %v841_v31  ;;  %v1113_v39 = vcombine.high %v1111_v55, %v1111_v55  ;;  %v1120_v35 = vrot.slane %v328_v63, %v2959_v5 }
  0x61   : > { %2795 = vxpose.xlu0.b32.cont [8/16] %v2794_v15, 128  ;;  %v826_v36 = vcombine.high %v824_v34, %v824_v34  ;;  %v1259_v40 = vcombine.low %v539_v33, %v546_v54  ;;  %v1266_v28 = vrot.slane %v1258_v17, %v2959_v5  ;;  %v2524_v41 = vunpack.c.l.bf16 %v2551_v9 }
  0x62   : > { %1988 = vxpose.xlu1.b32.cont [8/9] (short) %v3189_v37, 128  ;;  %v1545_v43 = vrot.slane %v1531_v38, %v2959_v5  ;;  %v1802_v47 = vcombine.low %v1113_v39, %v1120_v35  ;;  %v309_v50 = vunpack.c.h.bf16 %v254_v46  ;;  %v834_v18 = vcombine.high %v308_v59, %v308_v59  ;;  %v2555_v39 = vld [vmem:[%s2957_s16 + $0x90] sm:$0xff]  }
  0x63   : > { %v1273_v51 = vrot.slane %v1259_v40, %v2959_v5  ;;  %v1530_v53 = vcombine.low %v824_v34, %v826_v36  ;;  %v547_v55 = vcombine.high %v2524_v41, %v2524_v41  ;;  %v554_v52 = vrot.slane %v2524_v41, %v2959_v5 }
  0x64   : > { %v3199_v58 = vrot.slane %v1802_v47, %v2959_v5  ;;  %v848_v62 = vrot.slane %v834_v18, %v2959_v5  ;;  %v849_v2 = vcombine.high %v841_v31, %v841_v31  ;;  %v858_v6 = vrot.slane %v309_v50, %v2959_v5  ;;  %v236_v18 = vld [vmem:[%s2957_s16 + $0x3c] sm:$0xff]  }
  0x65   : > { %v3203_v14 = vcombine.low %v1266_v28, %v1273_v51  ;;  %v1538_v46 = vrot.slane %v1530_v53, %v2959_v5  ;;  %v561_v59 = vrot.slane %v547_v55, %v2959_v5  ;;  %v562_v16 = vcombine.high %v554_v52, %v554_v52  ;;  %v235_v28 = vld [vmem:[%s2957_s16 + $0x38] sm:$0x1] }
  0x66   : > { %3449 = vst [vmem:[#allocation2_spill] sm:$0xff] %v3199_v58  ;;  %1989 = vxpose.xlu1.b32.end [9/9] (short) %v3199_v58, 128  ;;  %v850_v54 = vcombine.high %v848_v62, %v848_v62  ;;  %v1547_v25 = vcombine.low %v849_v2, %v848_v62  ;;  %v2525_v27 = vunpack.c.h.bf16 %v2551_v9  ;;  %v310_v29 = vunpack.c.l.bf16 %v256_v56 }
  0x67   : > { %v3208_v57 = vcombine.low %v1538_v46, %v1545_v43  ;;  %v1858_v31 = vadd.f32 %v1857_v24, %v3203_v14  ;;  %v563_v63 = vcombine.high %v561_v59, %v561_v59  ;;  %v1275_v15 = vcombine.low %v554_v52, %v562_v16 }
  0x68   : > { %v1548_v33 = vcombine.low %v850_v54, %v858_v6  ;;  %v1555_v34 = vrot.slane %v1547_v25, %v2959_v5  ;;  %v564_v17 = vcombine.high %v2525_v27, %v2525_v27  ;;  %v571_v38 = vrot.slane %v2525_v27, %v2959_v5 }
  0x69   : > { %v2796_v35 = vpack.i.bf16 %v3203_v14, %v3208_v57  ;;  %v1276_v36 = vcombine.low %v561_v59, %v563_v63  ;;  %v1283_v9 = vrot.slane %v1275_v15, %v2959_v5  ;;  %v851_v40 = vcombine.high %v309_v50, %v309_v50 }
  0x6a   : > { %v1562_v24 = vrot.slane %v1548_v33, %v2959_v5  ;;  %v578_v41 = vrot.slane %v564_v17, %v2959_v5  ;;  %v579_v43 = vcombine.high %v571_v38, %v571_v38  ;;  %v866_v47 = vcombine.high %v858_v6, %v858_v6 }
  0x6b   : > { %2797 = vxpose.xlu0.b32.cont [9/16] %v2796_v35, 128  ;;  %v1290_v51 = vrot.slane %v1276_v36, %v2959_v5  ;;  %v865_v53 = vrot.slane %v851_v40, %v2959_v5  ;;  %v874_v55 = vrot.slane %v310_v29, %v2959_v5  ;;  %v2540_v52 = vunpack.c.l.bf16 %v2555_v39 }
  0x6c   : > { %v3224_v56 = vcombine.low %v1555_v34, %v1562_v24  ;;  %v580_v62 = vcombine.high %v578_v41, %v578_v41  ;;  %v1292_v50 = vcombine.low %v571_v38, %v579_v43  ;;  %v289_v2 = vunpack.c.l.bf16 %v235_v28 }
  0x6d   : > { %v3226_v46 = vcombine.low %v1283_v9, %v1290_v51  ;;  %v867_v59 = vcombine.high %v865_v53, %v865_v53  ;;  %v1564_v16 = vcombine.low %v866_v47, %v865_v53  ;;  %v290_v54 = vunpack.c.l.bf16 %v236_v18 }
  0x6e   : > { %v1293_v6 = vcombine.low %v578_v41, %v580_v62  ;;  %v1300_v25 = vrot.slane %v1292_v50, %v2959_v5  ;;  %v587_v27 = vrot.slane %v289_v2, %v2959_v5  ;;  %v875_v63 = vcombine.high %v2540_v52, %v2540_v52 }
  0x6f   : > { %v2798_v29 = vpack.i.bf16 %v3226_v46, %v3224_v56  ;;  %v1859_v15 = vadd.f32 %v1858_v31, %v3226_v46  ;;  %v1565_v33 = vcombine.low %v867_v59, %v874_v55  ;;  %v1572_v34 = vrot.slane %v1564_v16, %v2959_v5 }
  0x70   : > { %v1307_v17 = vrot.slane %v1293_v6, %v2959_v5  ;;  %v588_v38 = vcombine.high %v290_v54, %v290_v54  ;;  %v595_v35 = vrot.slane %v290_v54, %v2959_v5  ;;  %v882_v36 = vrot.slane %v2540_v52, %v2959_v5  ;;  %v238_v6 = vld [vmem:[%s2957_s16 + $0x44] sm:$0x1] }
  0x71   : > { %2799 = vxpose.xlu0.b32.cont [10/16] %v2798_v29, 128  ;;  %v1579_v9 = vrot.slane %v1565_v33, %v2959_v5  ;;  %v889_v40 = vrot.slane %v875_v63, %v2959_v5  ;;  %v2541_v28 = vunpack.c.h.bf16 %v2555_v39  ;;  %v291_v24 = vunpack.c.h.bf16 %v236_v18 }
  0x72   : > { %v3239_v41 = vcombine.low %v1300_v25, %v1307_v17  ;;  %v602_v31 = vrot.slane %v588_v38, %v2959_v5  ;;  %v603_v43 = vcombine.high %v595_v35, %v595_v35  ;;  %v890_v47 = vcombine.high %v882_v36, %v882_v36  ;;  %v2552_v25 = vld [vmem:[%s2957_s16 + $0x48] sm:$0xff]  }
  0x73   : > { %v3242_v51 = vcombine.low %v1572_v34, %v1579_v9  ;;  %v891_v53 = vcombine.high %v889_v40, %v889_v40  ;;  %v1309_v55 = vcombine.low %v587_v27, %v595_v35  ;;  %v605_v52 = vcombine.high %v291_v24, %v291_v24  ;;  %v259_v35 = vld [vmem:[%s2957_s16 + $0x98] sm:$0x1] }
  0x74   : > { %v1860_v62 = vadd.f32 %v1859_v15, %v3239_v41  ;;  %v1310_v50 = vcombine.low %v603_v43, %v602_v31  ;;  %v1581_v2 = vcombine.low %v882_v36, %v890_v47  ;;  %v604_v59 = vcombine.high %v602_v31, %v602_v31  ;;  %v260_v36 = vld [vmem:[%s2957_s16 + $0x9c] sm:$0xff]  }
  0x75   : > { %v2800_v39 = vpack.i.bf16 %v3239_v41, %v3242_v51  ;;  %v1317_v18 = vrot.slane %v1309_v55, %v2959_v5  ;;  %v1582_v16 = vcombine.low %v889_v40, %v891_v53  ;;  %v612_v54 = vrot.slane %v291_v24, %v2959_v5 }
  0x76   : > { %v1324_v27 = vrot.slane %v1310_v50, %v2959_v5  ;;  %v1589_v63 = vrot.slane %v1581_v2, %v2959_v5  ;;  %v619_v29 = vrot.slane %v605_v52, %v2959_v5  ;;  %v892_v15 = vcombine.high %v2541_v28, %v2541_v28 }
  0x77   : > { %2801 = vxpose.xlu0.b32.cont [11/16] %v2800_v39, 128  ;;  %v1596_v33 = vrot.slane %v1582_v16, %v2959_v5  ;;  %v620_v34 = vcombine.high %v612_v54, %v612_v54  ;;  %v899_v17 = vrot.slane %v2541_v28, %v2959_v5  ;;  %v1326_v38 = vcombine.low %v604_v59, %v612_v54 }
  0x78   : > { %v3258_v9 = vcombine.low %v1317_v18, %v1324_v27  ;;  %v906_v40 = vrot.slane %v892_v15, %v2959_v5  ;;  %v2528_v24 = vunpack.c.l.bf16 %v2552_v25  ;;  %v292_v31 = vunpack.c.l.bf16 %v238_v6 }
  0x79   : > { %v3261_v43 = vcombine.low %v1589_v63, %v1596_v33  ;;  %v907_v47 = vcombine.high %v899_v17, %v899_v17  ;;  %v1327_v53 = vcombine.low %v620_v34, %v619_v29  ;;  %v1334_v55 = vrot.slane %v1326_v38, %v2959_v5 }
  0x7a   : > { %v1861_v52 = vadd.f32 %v1860_v62, %v3258_v9  ;;  %v908_v50 = vcombine.high %v906_v40, %v906_v40  ;;  %v313_v2 = vunpack.c.l.bf16 %v259_v35  ;;  %v314_v28 = vunpack.c.l.bf16 %v260_v36 }
  0x7b   : > { %v2802_v59 = vpack.i.bf16 %v3258_v9, %v3261_v43  ;;  %v1341_v39 = vrot.slane %v1327_v53, %v2959_v5  ;;  %v1598_v18 = vcombine.low %v899_v17, %v907_v47  ;;  %v621_v16 = vcombine.high %v619_v29, %v619_v29 }
  0x7c   : > { %v1599_v54 = vcombine.low %v906_v40, %v908_v50  ;;  %v628_v6 = vrot.slane %v292_v31, %v2959_v5  ;;  %v636_v27 = vrot.slane %v2528_v24, %v2959_v5  ;;  %v915_v63 = vrot.slane %v313_v2, %v2959_v5 }
  0x7d   : > { %2803 = vxpose.xlu0.b32.cont [12/16] %v2802_v59, 128  ;;  %v3271_v15 = vcombine.low %v1334_v55, %v1341_v39  ;;  %v1606_v62 = vrot.slane %v1598_v18, %v2959_v5  ;;  %v916_v33 = vcombine.high %v314_v28, %v314_v28  ;;  %v923_v34 = vrot.slane %v314_v28, %v2959_v5 }
  0x7e   : > { %v1613_v38 = vrot.slane %v1599_v54, %v2959_v5  ;;  %v644_v17 = vcombine.high %v636_v27, %v636_v27  ;;  %v1343_v29 = vcombine.low %v621_v16, %v628_v6  ;;  %v2529_v35 = vunpack.c.h.bf16 %v2552_v25  ;;  %v241_v16 = vld [vmem:[%s2957_s16 + $0x50] sm:$0x1]  ;;  %v262_v25 = vld [vmem:[%s2957_s16 + $0xa4] sm:$0x1] }
  0x7f   : > { %3450 = vst [vmem:[#allocation3_spill] sm:$0xff] %v3271_v15  ;;  %v1862_v40 = vadd.f32 %v1861_v52, %v3271_v15  ;;  %v930_v31 = vrot.slane %v916_v33, %v2959_v5  ;;  %v931_v47 = vcombine.high %v923_v34, %v923_v34  ;;  %v1615_v53 = vcombine.low %v915_v63, %v923_v34 }
  0x80   : > { %v3278_v55 = vcombine.low %v1606_v62, %v1613_v38  ;;  %v1344_v50 = vcombine.low %v636_v27, %v644_v17  ;;  %v1351_v2 = vrot.slane %v1343_v29, %v2959_v5  ;;  %v315_v59 = vunpack.c.h.bf16 %v260_v36 }
  0x81   : > { %v1616_v28 = vcombine.low %v931_v47, %v930_v31  ;;  %v1623_v39 = vrot.slane %v1615_v53, %v2959_v5  ;;  %v629_v18 = vcombine.high %v2528_v24, %v2528_v24  ;;  %v653_v54 = vrot.slane %v2529_v35, %v2959_v5 }
  0x82   : > { %v2804_v52 = vpack.i.bf16 %v3271_v15, %v3278_v55  ;;  %v1358_v6 = vrot.slane %v1344_v50, %v2959_v5  ;;  %v932_v63 = vcombine.high %v930_v31, %v930_v31  ;;  %v933_v62 = vcombine.high %v315_v59, %v315_v59 }
  0x83   : > { %v1630_v27 = vrot.slane %v1616_v28, %v2959_v5  ;;  %v643_v33 = vrot.slane %v629_v18, %v2959_v5  ;;  %v661_v36 = vcombine.high %v653_v54, %v653_v54  ;;  %v940_v34 = vrot.slane %v315_v59, %v2959_v5 }
  0x84   : > { %2805 = vxpose.xlu0.b32.cont [13/16] %v2804_v52, 128  ;;  %v3291_v24 = vcombine.low %v1351_v2, %v1358_v6  ;;  %v947_v38 = vrot.slane %v933_v62, %v2959_v5  ;;  %v295_v17 = vunpack.c.l.bf16 %v241_v16  ;;  %v316_v29 = vunpack.c.l.bf16 %v262_v25 }
  0x85   : > { %v3294_v47 = vcombine.low %v1623_v39, %v1630_v27  ;;  %v645_v53 = vcombine.high %v643_v33, %v643_v33  ;;  %v948_v50 = vcombine.high %v940_v34, %v940_v34  ;;  %v1361_v31 = vcombine.low %v653_v54, %v661_v36 }
  0x86   : > { %v1863_v15 = vadd.f32 %v1862_v40, %v3291_v24  ;;  %v1632_v28 = vcombine.low %v932_v63, %v940_v34  ;;  %v646_v58 = vcombine.high %v2529_v35, %v2529_v35  ;;  %v669_v18 = vrot.slane %v295_v17, %v2959_v5 }
  0x87   : > { %v2806_v59 = vpack.i.bf16 %v3291_v24, %v3294_v47  ;;  %v1360_v2 = vcombine.low %v643_v33, %v645_v53  ;;  %v1375_v52 = vrot.slane %v1361_v31, %v2959_v5  ;;  %v1633_v6 = vcombine.low %v948_v50, %v947_v38 }
  0x88   : > { %v1640_v16 = vrot.slane %v1632_v28, %v2959_v5  ;;  %v660_v39 = vrot.slane %v646_v58, %v2959_v5  ;;  %v949_v25 = vcombine.high %v947_v38, %v947_v38  ;;  %v956_v54 = vrot.slane %v316_v29, %v2959_v5 }
  0x89   : > { %2807 = vxpose.xlu0.b32.cont [14/16] %v2806_v59, 128  ;;  %v1368_v40 = vrot.slane %v1360_v2, %v2959_v5  ;;  %v1647_v35 = vrot.slane %v1633_v6, %v2959_v5  ;;  %v964_v63 = vrot.slane %v2964_v12, %v2959_v5  ;;  %v1378_v62 = vcombine.low %v669_v18, %v2970_v22 }
  0x8a   : > { %v662_v27 = vcombine.high %v660_v39, %v660_v39  ;;  %v1649_v33 = vcombine.low %v949_v25, %v956_v54  ;;  %v2705_v36 = vpack.c.bf16 %v3018_v30, %v2994_v61  ;;  %v2707_v58 = vpack.c.bf16 %v3009_v13, %v2992_v60 }
  0x8b   : > { %v3313_v34 = vcombine.low %v1368_v40, %v1375_v52  ;;  %v3315_v38 = vcombine.low %v1640_v16, %v1647_v35  ;;  %v972_v17 = vcombine.high %v964_v63, %v964_v63  ;;  %v1392_v53 = vrot.slane %v1378_v62, %v2959_v5 }
  0x8c   : > { %v1377_v29 = vcombine.low %v660_v39, %v662_v27  ;;  %2706 = vmatprep.subr.bf16.mxu0 %v2705_v36  ;;  %v2709_v12 = vpack.c.bf16 %v3066_v49, %v3040_v4  ;;  %v1657_v31 = vrot.slane %v1649_v33, %v2959_v5  ;;  %v2711_v60 = vpack.c.bf16 %v3063_v44, %v3038_v3  ;;  %v3452_v27 = vld [vmem:[#allocation3_spill] sm:$0xff] }
  0x8d   : > { %v2808_v22 = vpack.i.bf16 %v3313_v34, %v3315_v38  ;;  %v1650_v50 = vcombine.low %v964_v63, %v972_v17  ;;  %2708 = vmatpush3.bf16.msra.mxu0 %v2707_v58  ;;  %v1864_v13 = vadd.f32 %v1863_v15, %v3313_v34  ;;  %v2713_v18 = vpack.c.bf16 %v3119_v21, %v3094_v32 }
  0x8e   : > { %v1385_v28 = vrot.slane %v1377_v29, %v2959_v5  ;;  %2710 = vmatprep.subr.bf16.mxu0 %v2709_v12  ;;  %v2737_v2 = vpack.c.bf16 %v3026_v42, %v2998_v1  ;;  %v2741_v44 = vpack.c.bf16 %v3081_v11, %v3050_v19  ;;  %v2715_v52 = vpack.c.bf16 %v3114_v10, %v3084_v20 }
  0x8f   : > { %2809 = vxpose.xlu0.b32.cont [15/16] %v2808_v22, 128  ;;  %v1664_v59 = vrot.slane %v1650_v50, %v2959_v5  ;;  %v2717_v6 = vpack.c.bf16 %v3176_v8, %v3149_v23  ;;  %v2917_v16 = vmov 0.0   ;;  %v2745_v25 = vpack.c.bf16 %v3135_v45, %v3111_v0 }
  0x90   : > { %v1393_v3 = vcombine.low %v1385_v28, %v1392_v53  ;;  %2738 = vmatprep.subr.bf16.mxu1 %v2737_v2  ;;  %204 = vst [vmem:[%s3336_s19] sm:$0x1] %v2917_v16  ;;  %v2719_v20 = vpack.c.bf16 %v3170_v48, %v3145_v7  ;;  %v2721_v40 = vpack.c.bf16 %v3224_v56, %v3208_v57 }
  0x91   : > { %v1665_v15 = vcombine.low %v1657_v31, %v1664_v59  ;;  %2712 = vmatpush3.bf16.msra.mxu0 %v2711_v60  ;;  %2740 = vmatpush3.bf16.msra.mxu1 %v2737_v2  ;;  %v2749_v35 = vpack.c.bf16 %v3189_v37, %v3162_v26  ;;  %v2727_v48 = vpack.c.bf16 %v3258_v9, %v3239_v41 }
  0x92   : > { %v1865_v5 = vadd.f32 %v1864_v13, %v1393_v3  ;;  %2714 = vmatprep.subr.bf16.mxu0 %v2713_v18  ;;  %2742 = vmatprep.subr.bf16.mxu1 %v2741_v44  ;;  %v2735_v9 = vpack.c.bf16 %v1393_v3, %v3313_v34 }
  0x93   : > { %v2810_v39 = vpack.i.bf16 %v1393_v3, %v1665_v15  ;;  %v2733_v41 = vpack.c.bf16 %v1665_v15, %v3315_v38 }
  0x94   : > { %v1866_v54 = vadd.f32 %v1865_v5, %v2994_v61  ;;  %v2723_v61 = vpack.c.bf16 %v3226_v46, %v3203_v14  ;;  %v2729_v14 = vpack.c.bf16 %v3294_v47, %v3278_v55 }
  0x95   : > { %2811 = vxpose.xlu0.b32.end [16/16] %v2810_v39, 128  ;;  %2716 = vmatpush3.bf16.msra.mxu0 %v2715_v52 }
  0x96   : > { %v1867_v10 = vadd.f32 %v1866_v54, %v3018_v30  ;;  %2718 = vmatprep.subr.bf16.mxu0 %v2717_v6  ;;  %2744 = vmatpush3.bf16.msra.mxu1 %v2741_v44  ;;  %v2725_v30 = vpack.c.bf16 %v3261_v43, %v3242_v51 }
  0x97   : > { %2746 = vmatprep.subr.bf16.mxu1 %v2745_v25  ;;  %v1121_v50 = vld [vmem:[%s3336_s19] sm:$0x1] }
  0x98   : > { %v1868_v63 = vadd.f32 %v1867_v10, %v3040_v4 }
  0x99   : > { %2720 = vmatpush3.bf16.msra.mxu0 %v2719_v20 }
  0x9a   : > { %v1869_v62 = vadd.f32 %v1868_v63, %v3066_v49  ;;  %2722 = vmatprep.subr.bf16.mxu0 %v2721_v40  ;;  %2748 = vmatpush3.bf16.msra.mxu1 %v2745_v25  ;;  %v3451_v49 = vld [vmem:[#allocation2_spill] sm:$0xff] }
  0x9b   : > { %2750 = vmatprep.subr.bf16.mxu1 %v2749_v35 }
  0x9c   : > { %v1870_v7 = vadd.f32 %v1869_v62, %v3094_v32  ;;  %v2731_v32 = vpack.c.bf16 %v3291_v24, %v3452_v27 }
  0x9d   : > { %2724 = vmatpush3.bf16.msra.mxu0 %v2723_v61 }
  0x9e   : > { %v1871_v4 = vadd.f32 %v1870_v7, %v3119_v21  ;;  %2726 = vmatprep.subr.bf16.mxu0 %v2725_v30  ;;  %2752 = vmatpush3.bf16.msra.mxu1 %v2749_v35 }
  0x9f   : > { %2679 = vmatprep.subr.msk.mxu1 %vm1890_vm0, %v3451_v49 }
  0xa0   : > { %v1872_v46 = vadd.f32 %v1871_v4, %v3149_v23 }
  0xa1   : > { %2728 = vmatpush3.bf16.msra.mxu0 %v2727_v48 }
  0xa2   : > { %v1873_v33 = vadd.f32 %v1872_v46, %v3176_v8  ;;  %2730 = vmatprep.subr.bf16.mxu0 %v2729_v14  ;;  %2680 = vmatpush3.msk.msra.mxu1 %vm1890_vm0, %v3451_v49 }
  0xa4   : > { %v1874_v21 = vadd.f32 %v1873_v33, %v3208_v57 }
  0xa5   : > { %2732 = vmatpush3.bf16.msra.mxu0 %v2731_v32 }
  0xa6   : > { %v1875_v36 = vadd.f32 %v1874_v21, %v3224_v56  ;;  %2734 = vmatprep.subr.bf16.mxu0 %v2733_v41 }
  0xa8   : > { %v1876_v23 = vadd.f32 %v1875_v36, %v3242_v51 }
  0xa9   : > { %2736 = vmatpush3.bf16.msra.mxu0 %v2735_v9 }
  0xaa   : > { %v1877_v24 = vadd.f32 %v1876_v23, %v3261_v43 }
  0xac   : > { %v1878_v8 = vadd.f32 %v1877_v24, %v3278_v55  ;;  %v1891_v55 = vsel %vm1890_vm0, %v3451_v49, 0.0 }
  0xae   : > { %v1879_v58 = vadd.f32 %v1878_v8, %v3294_v47 }
  0xb0   : > { %v1880_v17 = vadd.f32 %v1879_v58, %v3315_v38 }
  0xb2   : > { %v1881_v29 = vadd.f32 %v1880_v17, %v1665_v15 }
  0xb4   : > { %v1882_v57 = vadd.f32 %v1881_v29, %v2998_v1 }
  0xb6   : > { %v1883_v53 = vadd.f32 %v1882_v57, %v3026_v42 }
  0xb8   : > { %v1884_v34 = vadd.f32 %v1883_v53, %v3050_v19 }
  0xba   : > { %v1885_v56 = vadd.f32 %v1884_v34, %v3081_v11 }
  0xbc   : > { %v1886_v51 = vadd.f32 %v1885_v56, %v3111_v0 }
  0xbe   : > { %v1887_v12 = vadd.f32 %v1886_v51, %v3135_v45 }
  0xc0   : > { %v1888_v43 = vadd.f32 %v1887_v12, %v3162_v26 }
  0xc2   : > { %v1889_v47 = vadd.f32 %v1888_v43, %v3189_v37 }
  0xc4   : > { %v1892_v38 = vadd.f32 %v1891_v55, %v1889_v47 }
  0xc6   : > { %v1997_v1 = vpop.trf.xlu1  ;;  %v1893_v42 = vrot.slane %v1892_v38, 4 }
  0xc7   : > { %2681 = vmatprep.mubr.msk.f32.mxu1 %vm2013_vm1, %v1997_v1 }
  0xc8   : > { %v1894_v19 = vadd.f32 %v1893_v42, %v1892_v38 }
  0xca   : > { %v1895_v11 = vrot.slane %v1894_v19, 2  ;;  %v1998_v0 = vpop.trf.xlu1 }
  0xcb   : > { %2682 = vmatmul.mubr.msk.f32.vlgmr.msra.gmra.mrb[0].mxu1 %vm2013_vm1, %v1998_v0 }
  0xcc   : > { %v1896_v45 = vadd.f32 %v1895_v11, %v1894_v19 }
  0xce   : > { %v1897_v22 = vrot.slane %v1896_v45, 1  ;;  %v1999_v26 = vpop.trf.xlu1 }
  0xcf   : > { %2684 = vmatprep.mubr.msk.f32.mxu1 %vm2013_vm1, %v1999_v26 }
  0xd0   : > { %v1898_v31 = vadd.f32 %v1897_v22, %v1896_v45 }
  0xd2   : > { %v1899_v37 = vadd.f32 %v1898_v31, %v1121_v50  ;;  %v2000_v60 = vpop.trf.xlu1 }
  0xd3   : > { %2685 = vmatmul.mubr.msk.f32.gmra.mrb[2].mxu1 %vm2013_vm1, %v2000_v60 }
  0xd4   : > { %1900 = vst [vmem:[%s3336_s19] sm:$0x1] %v1899_v37 }
  0xd6   : > { %v2001_v13 = vpop.trf.xlu1 }
  0xd7   : > { %2687 = vmatprep.mubr.msk.f32.mxu1 %vm2013_vm1, %v2001_v13 }
  0xd9   : > { %v2812_v28 = vpop.trf.xlu0 }
  0xda   : > { %v2813_v18 = vunpack.i.l.bf16 %v2812_v28  ;;  %v2816_v59 = vunpack.i.h.bf16 %v2812_v28  ;;  %v2002_v2 = vpop.trf.xlu1 }
  0xdb   : > { %2688 = vmatmul.mubr.msk.f32.gmra.mrb[4].mxu1 %vm2013_vm1, %v2002_v2 }
  0xdc   : > { %2128 = vmatprep.mubr.f32.mxu0 %v2813_v18 }
  0xdd   : > { %v2817_v3 = vpop.trf.xlu0  ;;  %2129 = vmatmul.mubr.f32.vlgmr.msra.gmra.mrb[0].mxu0 %v2816_v59 }
  0xde   : > { %v2818_v44 = vunpack.i.l.bf16 %v2817_v3  ;;  %v2821_v15 = vunpack.i.h.bf16 %v2817_v3  ;;  %v2003_v52 = vpop.trf.xlu1 }
  0xdf   : > { %2690 = vmatprep.mubr.msk.f32.mxu1 %vm2013_vm1, %v2003_v52 }
  0xe0   : > { %2133 = vmatprep.mubr.f32.mxu0 %v2818_v44 }
  0xe1   : > { %v2822_v5 = vpop.trf.xlu0  ;;  %2134 = vmatmul.mubr.f32.gmra.mrb[2].mxu0 %v2821_v15 }
  0xe2   : > { %v2823_v6 = vunpack.i.l.bf16 %v2822_v5  ;;  %v2826_v16 = vunpack.i.h.bf16 %v2822_v5  ;;  %v2004_v39 = vpop.trf.xlu1 }
  0xe3   : > { %2691 = vmatmul.mubr.msk.f32.gmra.mrb[6].mxu1 %vm2013_vm1, %v2004_v39 }
  0xe4   : > { %2138 = vmatprep.mubr.f32.mxu0 %v2823_v6 }
  0xe5   : > { %v2827_v25 = vpop.trf.xlu0  ;;  %2139 = vmatmul.mubr.f32.gmra.mrb[4].mxu0 %v2826_v16 }
  0xe6   : > { %v2828_v54 = vunpack.i.l.bf16 %v2827_v25  ;;  %v2831_v20 = vunpack.i.h.bf16 %v2827_v25  ;;  %v2005_v10 = vpop.trf.xlu1 }
  0xe7   : > { %2693 = vmatprep.mubr.msk.f32.mxu1 %vm2013_vm1, %v2005_v10 }
  0xe8   : > { %2143 = vmatprep.mubr.f32.mxu0 %v2828_v54 }
  0xe9   : > { %v2832_v40 = vpop.trf.xlu0  ;;  %2144 = vmatmul.mubr.f32.gmra.mrb[6].mxu0 %v2831_v20 }
  0xea   : > { %v2833_v35 = vunpack.i.l.bf16 %v2832_v40  ;;  %v2836_v63 = vunpack.i.h.bf16 %v2832_v40  ;;  %v2006_v61 = vpop.trf.xlu1 }
  0xeb   : > { %2694 = vmatmul.mubr.msk.f32.gmra.mrb[8].mxu1 %vm2013_vm1, %v2006_v61 }
  0xec   : > { %2148 = vmatprep.mubr.f32.mxu0 %v2833_v35 }
  0xed   : > { %v2837_v62 = vpop.trf.xlu0  ;;  %2149 = vmatmul.mubr.f32.gmra.mrb[8].mxu0 %v2836_v63 }
  0xee   : > { %v2838_v30 = vunpack.i.l.bf16 %v2837_v62  ;;  %v2841_v7 = vunpack.i.h.bf16 %v2837_v62  ;;  %v2007_v48 = vpop.trf.xlu1 }
  0xef   : > { %2696 = vmatprep.mubr.msk.f32.mxu1 %vm2013_vm1, %v2007_v48 }
  0xf0   : > { %2153 = vmatprep.mubr.f32.mxu0 %v2838_v30 }
  0xf1   : > { %v2842_v4 = vpop.trf.xlu0  ;;  %2154 = vmatmul.mubr.f32.gmra.mrb[10].mxu0 %v2841_v7 }
  0xf2   : > { %v2843_v14 = vunpack.i.l.bf16 %v2842_v4  ;;  %v2846_v49 = vunpack.i.h.bf16 %v2842_v4  ;;  %v2008_v46 = vpop.trf.xlu1 }
  0xf3   : > { %2697 = vmatmul.mubr.msk.f32.gmra.mrb[10].mxu1 %vm2013_vm1, %v2008_v46 }
  0xf4   : > { %2158 = vmatprep.mubr.f32.mxu0 %v2843_v14 }
  0xf5   : > { %v2847_v27 = vpop.trf.xlu0  ;;  %2159 = vmatmul.mubr.f32.gmra.mrb[12].mxu0 %v2846_v49 }
  0xf6   : > { %v2848_v32 = vunpack.i.l.bf16 %v2847_v27  ;;  %v2851_v33 = vunpack.i.h.bf16 %v2847_v27  ;;  %v2009_v41 = vpop.trf.xlu1 }
  0xf7   : > { %2699 = vmatprep.mubr.msk.f32.mxu1 %vm2013_vm1, %v2009_v41 }
  0xf8   : > { %2163 = vmatprep.mubr.f32.mxu0 %v2848_v32 }
  0xf9   : > { %v2852_v21 = vpop.trf.xlu0  ;;  %2164 = vmatmul.mubr.f32.gmra.mrb[14].mxu0 %v2851_v33 }
  0xfa   : > { %v2853_v9 = vunpack.i.l.bf16 %v2852_v21  ;;  %v2856_v36 = vunpack.i.h.bf16 %v2852_v21  ;;  %v2010_v23 = vpop.trf.xlu1 }
  0xfb   : > { %2700 = vmatmul.mubr.msk.f32.gmra.mrb[12].mxu1 %vm2013_vm1, %v2010_v23 }
  0xfc   : > { %2168 = vmatprep.mubr.f32.mxu0 %v2853_v9 }
  0xfd   : > { %v2857_v24 = vpop.trf.xlu0  ;;  %2169 = vmatmul.mubr.f32.gmra.mrb[16].mxu0 %v2856_v36 }
  0xfe   : > { %v2858_v8 = vunpack.i.l.bf16 %v2857_v24  ;;  %v2861_v58 = vunpack.i.h.bf16 %v2857_v24  ;;  %v2011_v17 = vpop.trf.xlu1 }
  0xff   : > { %2702 = vmatprep.mubr.msk.f32.mxu1 %vm2013_vm1, %v2011_v17 }
 0x100   : > { %2173 = vmatprep.mubr.f32.mxu0 %v2858_v8 }
 0x101   : > { %v2862_v29 = vpop.trf.xlu0  ;;  %2174 = vmatmul.mubr.f32.gmra.mrb[18].mxu0 %v2861_v58 }
 0x102   : > { %v2863_v57 = vunpack.i.l.bf16 %v2862_v29  ;;  %v2866_v53 = vunpack.i.h.bf16 %v2862_v29  ;;  %v2012_v34 = vpop.trf.xlu1 }
 0x103   : > { %2703 = vmatmul.mubr.msk.f32.gmra.mrb[14].mxu1 %vm2013_vm1, %v2012_v34 }
 0x104   : > { %2178 = vmatprep.mubr.f32.mxu0 %v2863_v57 }
 0x105   : > { %v2867_v56 = vpop.trf.xlu0  ;;  %2179 = vmatmul.mubr.f32.gmra.mrb[20].mxu0 %v2866_v53 }
 0x106   : > { %v2868_v51 = vunpack.i.l.bf16 %v2867_v56  ;;  %v2871_v12 = vunpack.i.h.bf16 %v2867_v56 }
 0x108   : > { %2183 = vmatprep.mubr.f32.mxu0 %v2868_v51 }
 0x109   : > { %v2872_v43 = vpop.trf.xlu0  ;;  %2184 = vmatmul.mubr.f32.gmra.mrb[22].mxu0 %v2871_v12 }
 0x10a   : > { %v2873_v55 = vunpack.i.l.bf16 %v2872_v43  ;;  %v2876_v47 = vunpack.i.h.bf16 %v2872_v43 }
 0x10c   : > { %2188 = vmatprep.mubr.f32.mxu0 %v2873_v55 }
 0x10d   : > { %v2877_v38 = vpop.trf.xlu0  ;;  %2189 = vmatmul.mubr.f32.gmra.mrb[24].mxu0 %v2876_v47 }
 0x10e   : > { %v2878_v1 = vunpack.i.l.bf16 %v2877_v38  ;;  %v2881_v42 = vunpack.i.h.bf16 %v2877_v38 }
 0x110   : > { %2193 = vmatprep.mubr.f32.mxu0 %v2878_v1 }
 0x111   : > { %v2882_v19 = vpop.trf.xlu0  ;;  %2194 = vmatmul.mubr.f32.gmra.mrb[26].mxu0 %v2881_v42 }
 0x112   : > { %v2883_v11 = vunpack.i.l.bf16 %v2882_v19  ;;  %v2886_v0 = vunpack.i.h.bf16 %v2882_v19 }
 0x114   : > { %2198 = vmatprep.mubr.f32.mxu0 %v2883_v11 }
 0x115   : > { %v2887_v45 = vpop.trf.xlu0  ;;  %2199 = vmatmul.mubr.f32.gmra.mrb[28].mxu0 %v2886_v0 }
 0x116   : > { %v2891_v22 = vunpack.i.h.bf16 %v2887_v45  ;;  %v2888_v26 = vunpack.i.l.bf16 %v2887_v45 }
 0x118   : > { %2203 = vmatprep.mubr.f32.mxu0 %v2888_v26 }
 0x119   : > { %2204 = vmatmul.mubr.f32.gmra.mrb[30].mxu0 %v2891_v22 }
 0x19e   : > { %v2683_v50 = vpop.f32.mrb[0].mxu1 }
 0x19f   : > { %v2275_v31 = vpop.f32.mrb[1].mxu1 }
 0x1a6   : > { %v2686_v37 = vpop.f32.mrb[2].mxu1 }
 0x1a7   : > { %v2285_v60 = vpop.f32.mrb[3].mxu1 }
 0x1ae   : > { %v2689_v13 = vpop.f32.mrb[4].mxu1 }
 0x1af   : > { %v2295_v28 = vpop.f32.mrb[5].mxu1 }
 0x1b0   : > { %v2590_v18 = vpop.f32.mrb[0].mxu0 }
 0x1b1   : > { %v2591_v59 = vpop.f32.mrb[1].mxu0 }
 0x1b2   : > { %v2592_v2 = vadd.f32 %v2591_v59, %v2590_v18 }
 0x1b4   : > { %v2276_v3 = vadd.f32 %v2592_v2, %v2275_v31  ;;  %v2593_v44 = vpop.f32.mrb[2].mxu0 }
 0x1b5   : > { %v2594_v15 = vpop.f32.mrb[3].mxu0 }
 0x1b6   : > { %v2595_v52 = vadd.f32 %v2594_v15, %v2593_v44  ;;  %v2692_v5 = vpop.f32.mrb[6].mxu1  ;;  %2370 = vst [vmem:[%s3416_s23] sm:$0xff] %v2276_v3 }
 0x1b7   : > { %v2305_v6 = vpop.f32.mrb[7].mxu1 }
 0x1b8   : > { %v2281_v16 = vadd.f32 %v2683_v50, %v2595_v52  ;;  %v2596_v39 = vpop.f32.mrb[4].mxu0 }
 0x1b9   : > { %v2597_v25 = vpop.f32.mrb[5].mxu0 }
 0x1ba   : > { %v2598_v54 = vadd.f32 %v2597_v25, %v2596_v39  ;;  %2371 = vst [vmem:[%s3416_s23 + $0x8] sm:$0xff] %v2281_v16 }
 0x1bc   : > { %v2286_v20 = vadd.f32 %v2598_v54, %v2285_v60  ;;  %v2599_v10 = vpop.f32.mrb[6].mxu0 }
 0x1bd   : > { %v2600_v40 = vpop.f32.mrb[7].mxu0 }
 0x1be   : > { %v2601_v35 = vadd.f32 %v2600_v40, %v2599_v10  ;;  %v2695_v63 = vpop.f32.mrb[8].mxu1  ;;  %2372 = vst [vmem:[%s3416_s23 + $0x10] sm:$0xff] %v2286_v20 }
 0x1bf   : > { %v2315_v61 = vpop.f32.mrb[9].mxu1 }
 0x1c0   : > { %v2291_v62 = vadd.f32 %v2686_v37, %v2601_v35  ;;  %v2602_v30 = vpop.f32.mrb[8].mxu0 }
 0x1c1   : > { %v2603_v7 = vpop.f32.mrb[9].mxu0 }
 0x1c2   : > { %v2604_v48 = vadd.f32 %v2603_v7, %v2602_v30  ;;  %2373 = vst [vmem:[%s3416_s23 + $0x18] sm:$0xff] %v2291_v62 }
 0x1c4   : > { %v2296_v4 = vadd.f32 %v2604_v48, %v2295_v28  ;;  %v2605_v14 = vpop.f32.mrb[10].mxu0 }
 0x1c5   : > { %v2606_v49 = vpop.f32.mrb[11].mxu0 }
 0x1c6   : > { %v2607_v46 = vadd.f32 %v2606_v49, %v2605_v14  ;;  %v2698_v27 = vpop.f32.mrb[10].mxu1  ;;  %2374 = vst [vmem:[%s3416_s23 + $0x20] sm:$0xff] %v2296_v4 }
 0x1c7   : > { %v2325_v32 = vpop.f32.mrb[11].mxu1 }
 0x1c8   : > { %v2301_v33 = vadd.f32 %v2689_v13, %v2607_v46  ;;  %v2608_v41 = vpop.f32.mrb[12].mxu0 }
 0x1c9   : > { %v2609_v21 = vpop.f32.mrb[13].mxu0 }
 0x1ca   : > { %v2610_v9 = vadd.f32 %v2609_v21, %v2608_v41  ;;  %2375 = vst [vmem:[%s3416_s23 + $0x28] sm:$0xff] %v2301_v33 }
 0x1cc   : > { %v2306_v36 = vadd.f32 %v2610_v9, %v2305_v6  ;;  %v2611_v23 = vpop.f32.mrb[14].mxu0 }
 0x1cd   : > { %v2612_v24 = vpop.f32.mrb[15].mxu0 }
 0x1ce   : > { %v2613_v8 = vadd.f32 %v2612_v24, %v2611_v23  ;;  %v2701_v58 = vpop.f32.mrb[12].mxu1  ;;  %2376 = vst [vmem:[%s3416_s23 + $0x30] sm:$0xff] %v2306_v36 }
 0x1cf   : > { %v2335_v17 = vpop.f32.mrb[13].mxu1 }
 0x1d0   : > { %v2311_v29 = vadd.f32 %v2692_v5, %v2613_v8  ;;  %v2614_v57 = vpop.f32.mrb[16].mxu0 }
 0x1d1   : > { %v2615_v53 = vpop.f32.mrb[17].mxu0 }
 0x1d2   : > { %v2616_v34 = vadd.f32 %v2615_v53, %v2614_v57  ;;  %2377 = vst [vmem:[%s3416_s23 + $0x38] sm:$0xff] %v2311_v29 }
 0x1d4   : > { %v2316_v56 = vadd.f32 %v2616_v34, %v2315_v61  ;;  %v2617_v51 = vpop.f32.mrb[18].mxu0 }
 0x1d5   : > { %v2618_v12 = vpop.f32.mrb[19].mxu0 }
 0x1d6   : > { %v2619_v43 = vadd.f32 %v2618_v12, %v2617_v51  ;;  %v2704_v55 = vpop.f32.mrb[14].mxu1  ;;  %2378 = vst [vmem:[%s3416_s23 + $0x40] sm:$0xff] %v2316_v56 }
 0x1d7   : > { %v2345_v47 = vpop.f32.mrb[15].mxu1 }
 0x1d8   : > { %v2321_v38 = vadd.f32 %v2695_v63, %v2619_v43  ;;  %v2620_v1 = vpop.f32.mrb[20].mxu0 }
 0x1d9   : > { %v2621_v42 = vpop.f32.mrb[21].mxu0 }
 0x1da   : > { %v2622_v19 = vadd.f32 %v2621_v42, %v2620_v1  ;;  %2379 = vst [vmem:[%s3416_s23 + $0x48] sm:$0xff] %v2321_v38 }
 0x1dc   : > { %v2326_v11 = vadd.f32 %v2622_v19, %v2325_v32  ;;  %v2623_v0 = vpop.f32.mrb[22].mxu0 }
 0x1dd   : > { %v2624_v45 = vpop.f32.mrb[23].mxu0 }
 0x1de   : > { %v2625_v22 = vadd.f32 %v2624_v45, %v2623_v0  ;;  %2380 = vst [vmem:[%s3416_s23 + $0x50] sm:$0xff] %v2326_v11 }
 0x1e0   : > { %v2331_v26 = vadd.f32 %v2698_v27, %v2625_v22  ;;  %v2626_v50 = vpop.f32.mrb[24].mxu0 }
 0x1e1   : > { %v2627_v31 = vpop.f32.mrb[25].mxu0 }
 0x1e2   : > { %v2628_v37 = vadd.f32 %v2627_v31, %v2626_v50  ;;  %2381 = vst [vmem:[%s3416_s23 + $0x58] sm:$0xff] %v2331_v26 }
 0x1e4   : > { %v2336_v60 = vadd.f32 %v2628_v37, %v2335_v17  ;;  %v2629_v13 = vpop.f32.mrb[26].mxu0 }
 0x1e5   : > { %v2630_v28 = vpop.f32.mrb[27].mxu0 }
 0x1e6   : > { %v2631_v18 = vadd.f32 %v2630_v28, %v2629_v13  ;;  %2382 = vst [vmem:[%s3416_s23 + $0x60] sm:$0xff] %v2336_v60 }
 0x1e8   : > { %v2341_v59 = vadd.f32 %v2701_v58, %v2631_v18  ;;  %v2632_v2 = vpop.f32.mrb[28].mxu0 }
 0x1e9   : > { %v2633_v3 = vpop.f32.mrb[29].mxu0 }
 0x1ea   : > { %v2634_v44 = vadd.f32 %v2633_v3, %v2632_v2  ;;  %2383 = vst [vmem:[%s3416_s23 + $0x68] sm:$0xff] %v2341_v59 }
 0x1ec   : > { %v2346_v15 = vadd.f32 %v2634_v44, %v2345_v47  ;;  %v2635_v52 = vpop.f32.mrb[30].mxu0 }
 0x1ed   : > { %v2636_v5 = vpop.f32.mrb[31].mxu0 }
 0x1ee   : > { %v2637_v6 = vadd.f32 %v2636_v5, %v2635_v52  ;;  %2384 = vst [vmem:[%s3416_s23 + $0x70] sm:$0xff] %v2346_v15 }
 0x1f0   : > { %v2351_v16 = vadd.f32 %v2704_v55, %v2637_v6 }
 0x1f2   : > { %2385 = vst [vmem:[%s3416_s23 + $0x78] sm:$0xff] %v2351_v16 }
 0x1f3 PF: > { %s13_s11 = sadd.s32 1, %s2914_s11   ;;  %s3453_s9 = smov %s2910_s10 }
 0x1f4   : > { %p10_p5 = scmp.ge.s32.totalorder %s13_s11, 4   ;;  %s3454_s10 = smov %s3456_s12 }
 0x1f6   :  { %12 = sbr.rel (!%p10_p5) target bundleno = 2 (0x2), region = 70 }

// kernel: _lambda_.4
= control target key start
LH: loop header
LB: loop body
LE: loop exit
PB: predicated region body
PF: predicated region fallthrough
CT: control target
= control target key end

     0   :  { %s7023_s15 = smov 0   ;;  %s7025_s16 = smov 0   ;;  %s9968_s0 = inlined_call_operand.vmem [shape: bf16[2,18,18,128], index: 0, kind: input, shape index: {}]   ;;  %s9969_s1 = inlined_call_operand.vmem [shape: bf16[128,128], index: 1, kind: input, shape index: {}]   ;;  %s9970_s2 = inlined_call_operand.vmem [shape: f32[1,128], index: 2, kind: input, shape index: {}]   ;;  %s9971_s3 = inlined_call_operand.vmem [shape: f32[3,3,128], index: 3, kind: input, shape index: {}]   ;;  %s9972_s4 = inlined_call_operand.vmem [shape: f32[2,2,128], index: 4, kind: output, shape index: {}]  }
   0x1   :  { %s7027_s17 = smov 0  }
   0x2 LB: > { %s33_s18 = sadd.s32 1, %s6988_s16  ;;  %p6623_p0 = scmp.ge.s32.totalorder %s6992_s17, 1  ;;  %s6992_s17 = sphi %s7027_s17, %s14_s17   ;;  %s6988_s16 = sphi %s7025_s16, %s10366_s16   ;;  %s6984_s15 = sphi %s7023_s15, %s10365_s15  }
   0x3   : > { %p35_p1 = scmp.ge.s32.totalorder %s33_s18, 2  ;;  %p185_p2 = scmp.lt.s32.totalorder %s6992_s17, 3 }
   0x5   : > { %s10368_s18 = smov (%p35_p1, %s33_s18), 0  ;;  %p186_p3 = pnand %p6623_p0, %p185_p2 }
   0x7   : > { %189 = sbr.rel (%p186_p3) target bundleno = 791 (0x317), region = 36 }
   0xe   : > { %v6886_v0 = vld [vmem:[%s9969_s1] sm:$0xff]   ;;  %v9973_v1 = vmov 0.0   ;;  %v6887_v2 = vld [vmem:[%s9969_s1 + $0x8] sm:$0xff]   ;;  %p212_p4 = scmp.lt.s32.totalorder %s6984_s15, 1  ;;  %vm6995_vm0 = vmmov 0   ;;  %v373_v3 = vlaneseq  ;;  %v6888_v4 = vld [vmem:[%s9969_s1 + $0x10] sm:$0xff]  }
   0xf   : > { %6741 = vmatprep.subr.bf16.mxu0 %v9973_v1  ;;  %6841 = vmatprep.subr.bf16.mxu1 %v9973_v1  ;;  %v6996_v6 = vmov 1966171168   ;;  %v6889_v9 = vld [vmem:[%s9969_s1 + $0x18] sm:$0xff]   ;;  %v6890_v19 = vld [vmem:[%s9969_s1 + $0x20] sm:$0xff]   ;;  %v6891_v33 = vld [vmem:[%s9969_s1 + $0x28] sm:$0xff]   ;;  %vm4940_vm3 = vcmask 1046528  }
  0x10   : > { %6742 = vmatpush3.bf16.msra.mxu0 %v6886_v0  ;;  %6849 = vmatpush3.bf16.msra.mxu1 %v6886_v0  ;;  %s10370_s15 = smov (!%p212_p4, %s6984_s15), 1  ;;  %v371_v7 = vunpack.c.l.s4 %v6996_v6  ;;  %v7069_v8 = vshrl.u32 %v373_v3, 7  ;;  %v6892_v51 = vld [vmem:[%s9969_s1 + $0x30] sm:$0xff]   ;;  %v6893_v6 = vld [vmem:[%s9969_s1 + $0x38] sm:$0xff]   ;;  %vm5185_vm4 = vcmask 1045504   ;;  %vm6549_vm5 = vcmask 1040384  }
  0x11   : > { %6743 = vmatprep.subr.bf16.mxu0 %v9973_v1  ;;  %6842 = vmatprep.subr.bf16.mxu1 %v9973_v1  ;;  %s6857_s25 = smul.u32 216, %s10370_s15  ;;  %s6625_s27 = sshll.u32 %s10370_s15, 1 }
  0x12   : > { %6757 = vmatprep.mubr.msk.bf16.mxu0 %vm6995_vm0, %v9973_v1  ;;  %6801 = vmatprep.mubr.msk.bf16.mxu1 %vm6995_vm0, %v9973_v1  ;;  %v372_v12 = vunpack.c.0.s8 %v371_v7  ;;  %s9248_s30 = scalar_lea.vmem %s9972_s4, %s6625_s27 }
  0x13   : > { %s7066_s28 = scalar_lea.vmem %s9968_s0, %s6857_s25 }
  0x14   : > { %6744 = vmatpush3.bf16.msra.mxu0 %v6887_v2  ;;  %6850 = vmatpush3.bf16.msra.mxu1 %v6887_v2  ;;  %v6626_v5 = vld.sshfl [vmem:[%s7066_s28] sm:$0x33 pattern:$0x75316420]  ;;  %v7080_v16 = vsub.s32 %v372_v12, %v7069_v8 }
  0x15   : > { %6745 = vmatprep.subr.bf16.mxu0 %v9973_v1  ;;  %6843 = vmatprep.subr.bf16.mxu1 %v9973_v1  ;;  %v6627_v10 = vld.sshfl [vmem:[%s7066_s28 + $0x4] sm:$0x33 pattern:$0x75316420]  ;;  %v369_v11 = vcombine.high %v6626_v5, %v6626_v5 }
  0x16   : > { %v393_v13 = vcombine.high %v6627_v10, %v6627_v10  ;;  %v6628_v14 = vld.sshfl [vmem:[%s7066_s28 + $0x8] sm:$0x1 pattern:$0x75316420]  ;;  %v376_v21 = vrot.slane %v6626_v5, %v7080_v16  ;;  %v400_v23 = vrot.slane %v6627_v10, %v7080_v16 }
  0x17   : > { %v6629_v15 = vld.sshfl [vmem:[%s7066_s28 + $0xc] sm:$0x33 pattern:$0x75316420]  ;;  %v383_v22 = vrot.slane %v369_v11, %v7080_v16  ;;  %v423_v25 = vrot.slane %v6628_v14, %v7080_v16 }
  0x18   : > { %6746 = vmatpush3.bf16.msra.mxu0 %v6888_v4  ;;  %6851 = vmatpush3.bf16.msra.mxu1 %v6888_v4  ;;  %v6630_v17 = vld.sshfl [vmem:[%s7066_s28 + $0x10] sm:$0x33 pattern:$0x75316420]  ;;  %v431_v18 = vcombine.high %v6629_v15, %v6629_v15  ;;  %v407_v24 = vrot.slane %v393_v13, %v7080_v16  ;;  %v438_v26 = vrot.slane %v6629_v15, %v7080_v16 }
  0x19   : > { %6747 = vmatprep.subr.bf16.mxu0 %v9973_v1  ;;  %6844 = vmatprep.subr.bf16.mxu1 %v9973_v1  ;;  %v455_v20 = vcombine.high %v6630_v17, %v6630_v17  ;;  %v462_v28 = vrot.slane %v6630_v17, %v7080_v16  ;;  %v1484_v29 = vcombine.low %v376_v21, %v383_v22  ;;  %v6631_v37 = vld.sshfl [vmem:[%s7066_s28 + $0x14] sm:$0x1 pattern:$0x75316420] }
  0x1a   : > { %v445_v27 = vrot.slane %v431_v18, %v7080_v16  ;;  %v6681_v30 = vcombine.high %v376_v21, %v383_v22  ;;  %v1486_v31 = vcombine.low %v400_v23, %v407_v24  ;;  %v6682_v32 = vcombine.high %v400_v23, %v407_v24  ;;  %v6632_v48 = vld.sshfl [vmem:[%s7066_s28 + $0x18] sm:$0x33 pattern:$0x75316420] }
  0x1b   : > { %v446_v34 = vcombine.high %v438_v26, %v438_v26  ;;  %v469_v36 = vrot.slane %v455_v20, %v7080_v16  ;;  %v1494_v38 = vrot.slane %v1484_v29, %v7080_v16  ;;  %v470_v42 = vcombine.high %v462_v28, %v462_v28  ;;  %v6633_v55 = vld.sshfl [vmem:[%s7066_s28 + $0x1c] sm:$0x33 pattern:$0x75316420] }
  0x1c   : > { %6748 = vmatpush3.bf16.msra.mxu0 %v6889_v9  ;;  %6852 = vmatpush3.bf16.msra.mxu1 %v6889_v9  ;;  %v447_v35 = vcombine.high %v445_v27, %v445_v27  ;;  %v1501_v39 = vrot.slane %v6681_v30, %v7080_v16  ;;  %v1508_v40 = vrot.slane %v1486_v31, %v7080_v16  ;;  %v7123_v63 = vld.sshfl [vmem:[%s7066_s28 + $0x70] sm:$0x33 pattern:$0x75316420] }
  0x1d   : > { %6749 = vmatprep.subr.bf16.mxu0 %v9973_v1  ;;  %6845 = vmatprep.subr.bf16.mxu1 %v9973_v1  ;;  %v1515_v41 = vrot.slane %v6682_v32, %v7080_v16  ;;  %v1533_v43 = vcombine.low %v423_v25, %v438_v26  ;;  %v1534_v44 = vcombine.low %v445_v27, %v446_v34  ;;  %v6655_v5 = vld.sshfl [vmem:[%s7066_s28 + $0x74] sm:$0x1 pattern:$0x75316420] }
  0x1e   : > { %v1535_v45 = vcombine.low %v447_v35, %v462_v28  ;;  %v1516_v46 = vcombine.low %v1494_v38, %v1501_v39  ;;  %v471_v49 = vcombine.high %v469_v36, %v469_v36  ;;  %v485_v50 = vrot.slane %v6631_v37, %v7080_v16  ;;  %v6656_v11 = vld.sshfl [vmem:[%s7066_s28 + $0x78] sm:$0x33 pattern:$0x75316420] }
  0x1f   : > { %v1517_v47 = vcombine.low %v1508_v40, %v1515_v41  ;;  %v1536_v52 = vcombine.low %v469_v36, %v470_v42  ;;  %v1543_v53 = vrot.slane %v1533_v43, %v7080_v16  ;;  %v1550_v54 = vrot.slane %v1534_v44, %v7080_v16  ;;  %v6657_v14 = vld.sshfl [vmem:[%s7066_s28 + $0x7c] sm:$0x33 pattern:$0x75316420] }
  0x20   : > { %6750 = vmatpush3.bf16.msra.mxu0 %v6890_v19  ;;  %6853 = vmatpush3.bf16.msra.mxu1 %v6890_v19  ;;  %v1524_v56 = vrot.slane %v1516_v46, %v7080_v16  ;;  %v1557_v58 = vrot.slane %v1535_v45, %v7080_v16  ;;  %v493_v61 = vcombine.high %v6632_v48, %v6632_v48  ;;  %v6634_v21 = vld.sshfl [vmem:[%s7066_s28 + $0x20] sm:$0x1 pattern:$0x75316420] }
  0x21   : > { %6751 = vmatprep.subr.bf16.mxu0 %v9973_v1  ;;  %6846 = vmatprep.subr.bf16.mxu1 %v9973_v1  ;;  %v1531_v57 = vrot.slane %v1517_v47, %v7080_v16  ;;  %v1564_v59 = vrot.slane %v1536_v52, %v7080_v16  ;;  %v1565_v60 = vcombine.low %v1543_v53, %v1550_v54  ;;  %v6635_v26 = vld.sshfl [vmem:[%s7066_s28 + $0x24] sm:$0x33 pattern:$0x75316420] }
  0x22   : > { %v500_v62 = vrot.slane %v6632_v48, %v7080_v16  ;;  %v517_v2 = vcombine.high %v6633_v55, %v6633_v55  ;;  %v7126_v3 = vrot.slane %v6633_v55, %v7080_v16  ;;  %v1582_v4 = vcombine.low %v471_v49, %v485_v50  ;;  %v6636_v42 = vld.sshfl [vmem:[%s7066_s28 + $0x28] sm:$0x33 pattern:$0x75316420] }
  0x23   : > { %v1532_v0 = vcombine.low %v1524_v56, %v1531_v57  ;;  %v1566_v7 = vcombine.low %v1557_v58, %v1564_v59  ;;  %v1573_v9 = vrot.slane %v1565_v60, %v7080_v16  ;;  %v507_v10 = vrot.slane %v493_v61, %v7080_v16  ;;  %v6659_v56 = vld.sshfl [vmem:[%s7066_s28 + $0x84] sm:$0x33 pattern:$0x75316420] }
  0x24   : > { %6752 = vmatpush3.bf16.msra.mxu0 %v6891_v33  ;;  %6854 = vmatpush3.bf16.msra.mxu1 %v6891_v33  ;;  %v531_v12 = vrot.slane %v517_v2, %v7080_v16  ;;  %v1592_v13 = vrot.slane %v1582_v4, %v7080_v16  ;;  %v951_v15 = vcombine.high %v7123_v63, %v7123_v63  ;;  %v6660_v2 = vld.sshfl [vmem:[%s7066_s28 + $0x88] sm:$0x33 pattern:$0x75316420] }
  0x25   : > { %6753 = vmatprep.subr.bf16.mxu0 %v9973_v1  ;;  %6847 = vmatprep.subr.bf16.mxu1 %v9973_v1  ;;  %v1580_v17 = vrot.slane %v1566_v7, %v7080_v16  ;;  %v1583_v18 = vcombine.low %v500_v62, %v507_v10  ;;  %v6683_v19 = vcombine.high %v500_v62, %v507_v10 }
  0x26   : > { %v981_v20 = vrot.slane %v6655_v5, %v7080_v16  ;;  %v1585_v22 = vcombine.low %v7126_v3, %v531_v12  ;;  %v7147_v23 = vrot.slane %v951_v15, %v7080_v16  ;;  %v989_v24 = vcombine.high %v6656_v11, %v6656_v11 }
  0x27   : > { %v996_v25 = vrot.slane %v6656_v11, %v7080_v16  ;;  %v1581_v27 = vcombine.low %v1573_v9, %v1580_v17  ;;  %v1599_v28 = vrot.slane %v1583_v18, %v7080_v16  ;;  %v1606_v29 = vrot.slane %v6683_v19, %v7080_v16 }
  0x28   : > { %6754 = vmatpush3.bf16.msra.mxu0 %v6892_v51  ;;  %6855 = vmatpush3.bf16.msra.mxu1 %v6892_v51  ;;  %v1613_v30 = vrot.slane %v1585_v22, %v7080_v16  ;;  %v967_v31 = vcombine.high %v7147_v23, %v7147_v23  ;;  %v1003_v32 = vrot.slane %v989_v24, %v7080_v16  ;;  %v6658_v51 = vld.sshfl [vmem:[%s7066_s28 + $0x80] sm:$0x1 pattern:$0x75316420] }
  0x29   : > { %6755 = vmatprep.subr.bf16.mxu0 %v9973_v1  ;;  %6848 = vmatprep.subr.bf16.mxu1 %v9973_v1  ;;  %v1013_v33 = vcombine.high %v6657_v14, %v6657_v14  ;;  %v1614_v34 = vcombine.low %v1592_v13, %v1599_v28  ;;  %v1020_v35 = vrot.slane %v6657_v14, %v7080_v16  ;;  %v6637_v22 = vld.sshfl [vmem:[%s7066_s28 + $0x2c] sm:$0x1 pattern:$0x75316420] }
  0x2a   : > { %v547_v36 = vrot.slane %v6634_v21, %v7080_v16  ;;  %v555_v37 = vcombine.high %v6635_v26, %v6635_v26  ;;  %v1615_v38 = vcombine.low %v1606_v29, %v1613_v30  ;;  %v2023_v40 = vcombine.low %v967_v31, %v981_v20 }
  0x2b   : > { %v1027_v39 = vrot.slane %v1013_v33, %v7080_v16  ;;  %v2024_v41 = vcombine.low %v996_v25, %v1003_v32  ;;  %v1622_v43 = vrot.slane %v1614_v34, %v7080_v16  ;;  %v6691_v44 = vcombine.high %v996_v25, %v1003_v32 }
  0x2c   : > { %6756 = vmatpush3.bf16.msra.mxu0 %v6893_v6  ;;  %6856 = vmatpush3.bf16.msra.mxu1 %v6893_v6  ;;  %v562_v45 = vrot.slane %v6635_v26, %v7080_v16  ;;  %v569_v46 = vrot.slane %v555_v37, %v7080_v16  ;;  %v1629_v47 = vrot.slane %v1615_v38, %v7080_v16 }
  0x2d   : > { %v2026_v48 = vcombine.low %v1020_v35, %v1027_v39  ;;  %v2033_v49 = vrot.slane %v2023_v40, %v7080_v16  ;;  %v2040_v50 = vrot.slane %v2024_v41, %v7080_v16  ;;  %v2047_v52 = vrot.slane %v6691_v44, %v7080_v16  ;;  %v6661_v41 = vld.sshfl [vmem:[%s7066_s28 + $0x8c] sm:$0x1 pattern:$0x75316420] }
  0x2e   : > { %v570_v53 = vcombine.high %v562_v45, %v562_v45  ;;  %v571_v54 = vcombine.high %v569_v46, %v569_v46  ;;  %v586_v55 = vrot.slane %v6636_v42, %v7080_v16  ;;  %v1630_v57 = vcombine.low %v1622_v43, %v1629_v47 }
  0x2f   : > { %6758 = vmatmul.mubr.bf16.vlgmr.msra.gmra.mrb[0].mxu0 %v1532_v0  ;;  %v2054_v58 = vrot.slane %v2026_v48, %v7080_v16  ;;  %v2055_v59 = vcombine.low %v2033_v49, %v2040_v50  ;;  %v6684_v60 = vcombine.high %v7126_v3, %v531_v12  ;;  %v1632_v61 = vcombine.low %v547_v36, %v562_v45 }
  0x30   : > { %6761 = vmatprep.mubr.msk.bf16.mxu0 %vm6995_vm0, %v9973_v1  ;;  %v1633_v62 = vcombine.low %v569_v46, %v570_v53  ;;  %v1634_v0 = vcombine.low %v571_v54, %v586_v55  ;;  %v1043_v4 = vrot.slane %v6658_v51, %v7080_v16  ;;  %v1051_v9 = vcombine.high %v6659_v56, %v6659_v56  ;;  %v6662_v46 = vld.sshfl [vmem:[%s7066_s28 + $0x90] sm:$0x33 pattern:$0x75316420] }
  0x31   : > { %v2056_v5 = vcombine.low %v2047_v52, %v2054_v58  ;;  %v2063_v6 = vrot.slane %v2055_v59, %v7080_v16  ;;  %v1641_v7 = vrot.slane %v6684_v60, %v7080_v16  ;;  %v1648_v10 = vrot.slane %v1632_v61, %v7080_v16  ;;  %v6639_v51 = vld.sshfl [vmem:[%s7066_s28 + $0x34] sm:$0x33 pattern:$0x75316420] }
  0x32   : > { %v1655_v11 = vrot.slane %v1633_v62, %v7080_v16  ;;  %v1662_v13 = vrot.slane %v1634_v0, %v7080_v16  ;;  %v1058_v3 = vrot.slane %v6659_v56, %v7080_v16  ;;  %v1065_v14 = vrot.slane %v1051_v9, %v7080_v16 }
  0x33   : > { %v2070_v12 = vrot.slane %v2056_v5, %v7080_v16  ;;  %v1082_v15 = vrot.slane %v6660_v2, %v7080_v16  ;;  %v6692_v17 = vcombine.high %v1020_v35, %v1027_v39  ;;  %v1663_v18 = vcombine.low %v1641_v7, %v1648_v10  ;;  %v6640_v7 = vld.sshfl [vmem:[%s7066_s28 + $0x38] sm:$0x1 pattern:$0x75316420] }
  0x34   : > { %v1664_v19 = vcombine.low %v1655_v11, %v1662_v13  ;;  %v1066_v20 = vcombine.high %v1058_v3, %v1058_v3  ;;  %v2073_v21 = vcombine.low %v1043_v4, %v1058_v3  ;;  %v1067_v25 = vcombine.high %v1065_v14, %v1065_v14 }
  0x35   : > { %v2071_v24 = vcombine.low %v2063_v6, %v2070_v12  ;;  %v2082_v26 = vrot.slane %v6692_v17, %v7080_v16  ;;  %v579_v28 = vcombine.high %v6636_v42, %v6636_v42  ;;  %v1671_v29 = vrot.slane %v1663_v18, %v7080_v16  ;;  %v6641_v17 = vld.sshfl [vmem:[%s7066_s28 + $0x3c] sm:$0x33 pattern:$0x75316420] }
  0x36   : > { %v1678_v30 = vrot.slane %v1664_v19, %v7080_v16  ;;  %v2074_v31 = vcombine.low %v1065_v14, %v1066_v20  ;;  %v2089_v32 = vrot.slane %v2073_v21, %v7080_v16  ;;  %v2075_v33 = vcombine.low %v1067_v25, %v1082_v15 }
  0x37   : > { %6762 = vmatmul.mubr.bf16.gmra.mrb[4].mxu0 %v1581_v27  ;;  %v6638_v27 = vld.sshfl [vmem:[%s7066_s28 + $0x30] sm:$0x33 pattern:$0x75316420]  ;;  %6802 = vmatmul.mubr.bf16.vlgmr.msra.gmra.mrb[0].mxu1 %v2071_v24  ;;  %v593_v34 = vrot.slane %v579_v28, %v7080_v16  ;;  %v594_v35 = vcombine.high %v586_v55, %v586_v55  ;;  %v609_v36 = vrot.slane %v6637_v22, %v7080_v16 }
  0x38   : > { %6765 = vmatprep.mubr.msk.bf16.mxu0 %vm6995_vm0, %v9973_v1  ;;  %v1679_v37 = vcombine.low %v1671_v29, %v1678_v30  ;;  %6805 = vmatprep.mubr.msk.bf16.mxu1 %vm6995_vm0, %v9973_v1  ;;  %v2096_v38 = vrot.slane %v2074_v31, %v7080_v16  ;;  %v2104_v39 = vcombine.low %v2082_v26, %v2089_v32  ;;  %v6663_v22 = vld.sshfl [vmem:[%s7066_s28 + $0x94] sm:$0x33 pattern:$0x75316420] }
  0x39   : > { %v617_v40 = vcombine.high %v6638_v27, %v6638_v27  ;;  %v2103_v42 = vrot.slane %v2075_v33, %v7080_v16  ;;  %v595_v43 = vcombine.high %v593_v34, %v593_v34  ;;  %v624_v44 = vrot.slane %v6638_v27, %v7080_v16 }
  0x3a   : > { %v1680_v45 = vcombine.low %v593_v34, %v594_v35  ;;  %v2112_v47 = vrot.slane %v2104_v39, %v7080_v16  ;;  %v1075_v49 = vcombine.high %v6660_v2, %v6660_v2  ;;  %v1090_v50 = vcombine.high %v1082_v15, %v1082_v15  ;;  %v6664_v35 = vld.sshfl [vmem:[%s7066_s28 + $0x98] sm:$0x1 pattern:$0x75316420] }
  0x3b   : > { %v631_v48 = vrot.slane %v617_v40, %v7080_v16  ;;  %v2105_v52 = vcombine.low %v2096_v38, %v2103_v42  ;;  %v1681_v53 = vcombine.low %v595_v43, %v609_v36  ;;  %v1105_v55 = vrot.slane %v6661_v41, %v7080_v16  ;;  %v6665_v41 = vld.sshfl [vmem:[%s7066_s28 + $0x9c] sm:$0x33 pattern:$0x75316420] }
  0x3c   : > { %v1690_v54 = vrot.slane %v1680_v45, %v7080_v16  ;;  %v1089_v59 = vrot.slane %v1075_v49, %v7080_v16  ;;  %v1113_v60 = vcombine.high %v6662_v46, %v6662_v46  ;;  %v641_v0 = vcombine.high %v6639_v51, %v6639_v51 }
  0x3d   : > { %v1682_v56 = vcombine.low %v624_v44, %v631_v48  ;;  %v6685_v58 = vcombine.high %v624_v44, %v631_v48  ;;  %v2119_v61 = vrot.slane %v2105_v52, %v7080_v16  ;;  %v1697_v62 = vrot.slane %v1681_v53, %v7080_v16 }
  0x3e   : > { %v1091_v5 = vcombine.high %v1089_v59, %v1089_v59  ;;  %v1127_v6 = vrot.slane %v1113_v60, %v7080_v16  ;;  %v2121_v11 = vcombine.low %v1089_v59, %v1090_v50  ;;  %v648_v13 = vrot.slane %v6639_v51, %v7080_v16  ;;  %v6643_v59 = vld.sshfl [vmem:[%s7066_s28 + $0x44] sm:$0x1 pattern:$0x75316420] }
  0x3f   : > { %6766 = vmatmul.mubr.bf16.gmra.mrb[8].mxu0 %v1630_v57  ;;  %v1120_v57 = vrot.slane %v6662_v46, %v7080_v16  ;;  %v1704_v2 = vrot.slane %v1682_v56, %v7080_v16  ;;  %v1711_v4 = vrot.slane %v6685_v58, %v7080_v16  ;;  %v2120_v9 = vcombine.low %v2112_v47, %v2119_v61 }
  0x40   : > { %6769 = vmatprep.mubr.msk.bf16.mxu0 %vm6995_vm0, %v9973_v1  ;;  %v1712_v10 = vcombine.low %v1690_v54, %v1697_v62  ;;  %v2122_v12 = vcombine.low %v1091_v5, %v1105_v55  ;;  %v2131_v19 = vrot.slane %v2121_v11, %v7080_v16  ;;  %v655_v20 = vrot.slane %v641_v0, %v7080_v16  ;;  %v6642_v54 = vld.sshfl [vmem:[%s7066_s28 + $0x40] sm:$0x33 pattern:$0x75316420] }
  0x41   : > { %v1713_v3 = vcombine.low %v1704_v2, %v1711_v4  ;;  %v2123_v14 = vcombine.low %v1120_v57, %v1127_v6  ;;  %v6693_v15 = vcombine.high %v1120_v57, %v1127_v6  ;;  %6806 = vmatmul.mubr.bf16.gmra.mrb[4].mxu1 %v2120_v9  ;;  %v671_v21 = vrot.slane %v6640_v7, %v7080_v16  ;;  %v6644_v2 = vld.sshfl [vmem:[%s7066_s28 + $0x48] sm:$0x33 pattern:$0x75316420] }
  0x42   : > { %v1720_v18 = vrot.slane %v1712_v10, %v7080_v16  ;;  %6809 = vmatprep.mubr.msk.bf16.mxu1 %vm6995_vm0, %v9973_v1  ;;  %v2138_v25 = vrot.slane %v2122_v12, %v7080_v16  ;;  %v679_v28 = vcombine.high %v6641_v17, %v6641_v17  ;;  %v686_v29 = vrot.slane %v6641_v17, %v7080_v16 }
  0x43   : > { %v1727_v24 = vrot.slane %v1713_v3, %v7080_v16  ;;  %v2145_v26 = vrot.slane %v2123_v14, %v7080_v16  ;;  %v2152_v27 = vrot.slane %v6693_v15, %v7080_v16  ;;  %v1729_v30 = vcombine.low %v648_v13, %v655_v20 }
  0x44   : > { %v6686_v31 = vcombine.high %v648_v13, %v655_v20  ;;  %v2153_v33 = vcombine.low %v2131_v19, %v2138_v25  ;;  %v1137_v36 = vcombine.high %v6663_v22, %v6663_v22  ;;  %v693_v38 = vrot.slane %v679_v28, %v7080_v16  ;;  %v6666_v20 = vld.sshfl [vmem:[%s7066_s28 + $0xa0] sm:$0x33 pattern:$0x75316420] }
  0x45   : > { %v1728_v32 = vcombine.low %v1720_v18, %v1727_v24  ;;  %v2154_v34 = vcombine.low %v2145_v26, %v2152_v27  ;;  %v694_v39 = vcombine.high %v686_v29, %v686_v29  ;;  %v1731_v40 = vcombine.low %v671_v21, %v686_v29  ;;  %v6667_v26 = vld.sshfl [vmem:[%s7066_s28 + $0xa4] sm:$0x1 pattern:$0x75316420] }
  0x46   : > { %v2161_v42 = vrot.slane %v2153_v33, %v7080_v16  ;;  %v1746_v44 = vrot.slane %v6686_v31, %v7080_v16  ;;  %v1144_v45 = vrot.slane %v6663_v22, %v7080_v16  ;;  %v1151_v48 = vrot.slane %v1137_v36, %v7080_v16 }
  0x47   : > { %6770 = vmatmul.mubr.bf16.gmra.mrb[12].mxu0 %v1679_v37  ;;  %v1739_v37 = vrot.slane %v1729_v30, %v7080_v16  ;;  %v2168_v43 = vrot.slane %v2154_v34, %v7080_v16  ;;  %v1732_v46 = vcombine.low %v693_v38, %v694_v39  ;;  %v1753_v47 = vrot.slane %v1731_v40, %v7080_v16  ;;  %v6668_v30 = vld.sshfl [vmem:[%s7066_s28 + $0xa8] sm:$0x33 pattern:$0x75316420] }
  0x48   : > { %6773 = vmatprep.mubr.msk.bf16.mxu0 %vm6995_vm0, %v9973_v1  ;;  %v1167_v49 = vrot.slane %v6664_v35, %v7080_v16  ;;  %v1175_v52 = vcombine.high %v6665_v41, %v6665_v41  ;;  %v1182_v53 = vrot.slane %v6665_v41, %v7080_v16  ;;  %v2170_v56 = vcombine.low %v1144_v45, %v1151_v48 }
  0x49   : > { %v2169_v50 = vcombine.low %v2161_v42, %v2168_v43  ;;  %v1761_v51 = vcombine.low %v1739_v37, %v1746_v44  ;;  %v1760_v55 = vrot.slane %v1732_v46, %v7080_v16  ;;  %v6694_v58 = vcombine.high %v1144_v45, %v1151_v48  ;;  %v6645_v44 = vld.sshfl [vmem:[%s7066_s28 + $0x4c] sm:$0x33 pattern:$0x75316420] }
  0x4a   : > { %v695_v60 = vcombine.high %v693_v38, %v693_v38  ;;  %v1189_v62 = vrot.slane %v1175_v52, %v7080_v16  ;;  %v1190_v57 = vcombine.high %v1182_v53, %v1182_v53  ;;  %v2172_v0 = vcombine.low %v1167_v49, %v1182_v53  ;;  %v6646_v49 = vld.sshfl [vmem:[%s7066_s28 + $0x50] sm:$0x1 pattern:$0x75316420] }
  0x4b   : > { %6810 = vmatmul.mubr.bf16.gmra.mrb[8].mxu1 %v2169_v50  ;;  %v1769_v61 = vrot.slane %v1761_v51, %v7080_v16  ;;  %v1762_v4 = vcombine.low %v1753_v47, %v1760_v55  ;;  %v2180_v5 = vrot.slane %v2170_v56, %v7080_v16  ;;  %v2187_v6 = vrot.slane %v6694_v58, %v7080_v16 }
  0x4c   : > { %6813 = vmatprep.mubr.msk.bf16.mxu1 %vm6995_vm0, %v9973_v1  ;;  %v2173_v7 = vcombine.low %v1189_v62, %v1190_v57  ;;  %v2194_v9 = vrot.slane %v2172_v0, %v7080_v16  ;;  %v703_v10 = vcombine.high %v6642_v54, %v6642_v54  ;;  %v710_v11 = vrot.slane %v6642_v54, %v7080_v16  ;;  %v6647_v54 = vld.sshfl [vmem:[%s7066_s28 + $0x54] sm:$0x33 pattern:$0x75316420] }
  0x4d   : > { %v1776_v13 = vrot.slane %v1762_v4, %v7080_v16  ;;  %v2202_v3 = vcombine.low %v2180_v5, %v2187_v6  ;;  %v733_v12 = vrot.slane %v6643_v59, %v7080_v16  ;;  %v741_v14 = vcombine.high %v6644_v2, %v6644_v2  ;;  %v6669_v6 = vld.sshfl [vmem:[%s7066_s28 + $0xac] sm:$0x33 pattern:$0x75316420] }
  0x4e   : > { %v2201_v15 = vrot.slane %v2173_v7, %v7080_v16  ;;  %v717_v17 = vrot.slane %v703_v10, %v7080_v16  ;;  %v718_v18 = vcombine.high %v710_v11, %v710_v11  ;;  %v7265_v19 = vrot.slane %v6644_v2, %v7080_v16 }
  0x4f   : > { %6774 = vmatmul.mubr.bf16.gmra.mrb[16].mxu0 %v1728_v32  ;;  %v1777_v21 = vcombine.low %v1769_v61, %v1776_v13  ;;  %v2210_v22 = vrot.slane %v2202_v3, %v7080_v16  ;;  %v755_v24 = vrot.slane %v741_v14, %v7080_v16  ;;  %v1778_v25 = vcombine.low %v695_v60, %v710_v11  ;;  %v6670_v13 = vld.sshfl [vmem:[%s7066_s28 + $0xb0] sm:$0x1 pattern:$0x75316420] }
  0x50   : > { %6777 = vmatprep.mubr.msk.bf16.mxu0 %vm6995_vm0, %v9973_v1  ;;  %v2203_v27 = vcombine.low %v2194_v9, %v2201_v15  ;;  %v719_v28 = vcombine.high %v717_v17, %v717_v17  ;;  %v1779_v29 = vcombine.low %v717_v17, %v718_v18  ;;  %v1191_v31 = vcombine.high %v1189_v62, %v1189_v62  ;;  %v6671_v17 = vld.sshfl [vmem:[%s7066_s28 + $0xb4] sm:$0x33 pattern:$0x75316420] }
  0x51   : > { %v1781_v32 = vcombine.low %v7265_v19, %v755_v24  ;;  %v1788_v33 = vrot.slane %v1778_v25, %v7080_v16  ;;  %v1199_v34 = vcombine.high %v6666_v20, %v6666_v20  ;;  %v1206_v35 = vrot.slane %v6666_v20, %v7080_v16 }
  0x52   : > { %v2217_v36 = vrot.slane %v2203_v27, %v7080_v16  ;;  %v1780_v38 = vcombine.low %v719_v28, %v733_v12  ;;  %v1795_v39 = vrot.slane %v1779_v29, %v7080_v16  ;;  %v1229_v40 = vrot.slane %v6667_v26, %v7080_v16 }
  0x53   : > { %v1809_v37 = vrot.slane %v1781_v32, %v7080_v16  ;;  %v1213_v41 = vrot.slane %v1199_v34, %v7080_v16  ;;  %v1214_v42 = vcombine.high %v1206_v35, %v1206_v35  ;;  %v1237_v43 = vcombine.high %v6668_v30, %v6668_v30 }
  0x54   : > { %v2218_v45 = vcombine.low %v2210_v22, %v2217_v36  ;;  %v1802_v46 = vrot.slane %v1780_v38, %v7080_v16  ;;  %v1810_v47 = vcombine.low %v1788_v33, %v1795_v39  ;;  %v1244_v48 = vrot.slane %v6668_v30, %v7080_v16 }
  0x55   : > { %v1215_v50 = vcombine.high %v1213_v41, %v1213_v41  ;;  %v1251_v51 = vrot.slane %v1237_v43, %v7080_v16  ;;  %v2219_v52 = vcombine.low %v1191_v31, %v1206_v35  ;;  %v2220_v53 = vcombine.low %v1213_v41, %v1214_v42  ;;  %v6649_v43 = vld.sshfl [vmem:[%s7066_s28 + $0x5c] sm:$0x1 pattern:$0x75316420] }
  0x56   : > { %6814 = vmatmul.mubr.bf16.gmra.mrb[12].mxu1 %v2218_v45  ;;  %v1811_v55 = vcombine.low %v1802_v46, %v1809_v37  ;;  %v1818_v56 = vrot.slane %v1810_v47, %v7080_v16  ;;  %v765_v58 = vcombine.high %v6645_v44, %v6645_v44  ;;  %v772_v59 = vrot.slane %v6645_v44, %v7080_v16 }
  0x57   : > { %6778 = vmatmul.mubr.bf16.gmra.mrb[20].mxu0 %v1777_v21  ;;  %6817 = vmatprep.mubr.msk.bf16.mxu1 %vm6995_vm0, %v9973_v1  ;;  %v2221_v60 = vcombine.low %v1215_v50, %v1229_v40  ;;  %v2222_v61 = vcombine.low %v1244_v48, %v1251_v51  ;;  %v2229_v62 = vrot.slane %v2219_v52, %v7080_v16  ;;  %v6648_v40 = vld.sshfl [vmem:[%s7066_s28 + $0x58] sm:$0x33 pattern:$0x75316420] }
  0x58   : > { %6781 = vmatprep.mubr.msk.bf16.mxu0 %vm6995_vm0, %v9973_v1  ;;  %v2236_v57 = vrot.slane %v2220_v53, %v7080_v16  ;;  %v1825_v0 = vrot.slane %v1811_v55, %v7080_v16  ;;  %v779_v2 = vrot.slane %v765_v58, %v7080_v16  ;;  %v795_v4 = vrot.slane %v6646_v49, %v7080_v16  ;;  %v6672_v58 = vld.sshfl [vmem:[%s7066_s28 + $0xb8] sm:$0x33 pattern:$0x75316420] }
  0x59   : > { %v810_v5 = vrot.slane %v6647_v54, %v7080_v16  ;;  %v2243_v7 = vrot.slane %v2221_v60, %v7080_v16  ;;  %v2250_v9 = vrot.slane %v2222_v61, %v7080_v16  ;;  %v6687_v11 = vcombine.high %v7265_v19, %v755_v24 }
  0x5a   : > { %v2251_v10 = vcombine.low %v2229_v62, %v2236_v57  ;;  %v1826_v3 = vcombine.low %v1818_v56, %v1825_v0  ;;  %v1828_v12 = vcombine.low %v772_v59, %v779_v2  ;;  %v6688_v14 = vcombine.high %v772_v59, %v779_v2  ;;  %v6673_v62 = vld.sshfl [vmem:[%s7066_s28 + $0xbc] sm:$0x1 pattern:$0x75316420] }
  0x5b   : > { %v1830_v15 = vcombine.low %v795_v4, %v810_v5  ;;  %v2252_v18 = vcombine.low %v2243_v7, %v2250_v9  ;;  %v1837_v21 = vrot.slane %v6687_v11, %v7080_v16  ;;  %v1261_v22 = vcombine.high %v6669_v6, %v6669_v6  ;;  %v6650_v11 = vld.sshfl [vmem:[%s7066_s28 + $0x60] sm:$0x33 pattern:$0x75316420] }
  0x5c   : > { %v2259_v20 = vrot.slane %v2251_v10, %v7080_v16  ;;  %v1844_v25 = vrot.slane %v1828_v12, %v7080_v16  ;;  %v1851_v26 = vrot.slane %v6688_v14, %v7080_v16  ;;  %v1268_v24 = vrot.slane %v6669_v6, %v7080_v16 }
  0x5d   : > { %v1858_v19 = vrot.slane %v1830_v15, %v7080_v16  ;;  %v2266_v27 = vrot.slane %v2252_v18, %v7080_v16  ;;  %v1275_v28 = vrot.slane %v1261_v22, %v7080_v16  ;;  %v1291_v29 = vrot.slane %v6670_v13, %v7080_v16 }
  0x5e   : > { %v1306_v30 = vrot.slane %v6671_v17, %v7080_v16  ;;  %v1859_v31 = vcombine.low %v1837_v21, %v1844_v25  ;;  %v6695_v33 = vcombine.high %v1244_v48, %v1251_v51  ;;  %v803_v34 = vcombine.high %v6647_v54, %v6647_v54 }
  0x5f   : > { %6782 = vmatmul.mubr.bf16.gmra.mrb[24].mxu0 %v1826_v3  ;;  %v1860_v32 = vcombine.low %v1851_v26, %v1858_v19  ;;  %v2267_v35 = vcombine.low %v2259_v20, %v2266_v27  ;;  %v2269_v36 = vcombine.low %v1268_v24, %v1275_v28  ;;  %v6696_v38 = vcombine.high %v1268_v24, %v1275_v28  ;;  %v6651_v26 = vld.sshfl [vmem:[%s7066_s28 + $0x64] sm:$0x33 pattern:$0x75316420] }
  0x60   : > { %6785 = vmatprep.mubr.msk.bf16.mxu0 %vm6995_vm0, %v9973_v1  ;;  %v2271_v39 = vcombine.low %v1291_v29, %v1306_v30  ;;  %v1867_v37 = vrot.slane %v1859_v31, %v7080_v16  ;;  %v2278_v42 = vrot.slane %v6695_v33, %v7080_v16  ;;  %v817_v44 = vrot.slane %v803_v34, %v7080_v16  ;;  %v6674_v34 = vld.sshfl [vmem:[%s7066_s28 + $0xc0] sm:$0x33 pattern:$0x75316420] }
  0x61   : > { %v1874_v41 = vrot.slane %v1860_v32, %v7080_v16  ;;  %6818 = vmatmul.mubr.bf16.gmra.mrb[16].mxu1 %v2267_v35  ;;  %v2285_v45 = vrot.slane %v2269_v36, %v7080_v16  ;;  %v2292_v46 = vrot.slane %v6696_v38, %v7080_v16  ;;  %v818_v48 = vcombine.high %v810_v5, %v810_v5 }
  0x62   : > { %v2299_v47 = vrot.slane %v2271_v39, %v7080_v16  ;;  %6821 = vmatprep.mubr.msk.bf16.mxu1 %vm6995_vm0, %v9973_v1  ;;  %v819_v50 = vcombine.high %v817_v44, %v817_v44  ;;  %v827_v51 = vcombine.high %v6648_v40, %v6648_v40  ;;  %v834_v52 = vrot.slane %v6648_v40, %v7080_v16 }
  0x63   : > { %v1875_v49 = vcombine.low %v1867_v37, %v1874_v41  ;;  %v2300_v53 = vcombine.low %v2278_v42, %v2285_v45  ;;  %v857_v55 = vrot.slane %v6649_v43, %v7080_v16  ;;  %v1876_v56 = vcombine.low %v817_v44, %v818_v48 }
  0x64   : > { %v2301_v54 = vcombine.low %v2292_v46, %v2299_v47  ;;  %v841_v59 = vrot.slane %v827_v51, %v7080_v16  ;;  %v842_v60 = vcombine.high %v834_v52, %v834_v52  ;;  %v1877_v61 = vcombine.low %v819_v50, %v834_v52  ;;  %v6675_v46 = vld.sshfl [vmem:[%s7066_s28 + $0xc4] sm:$0x33 pattern:$0x75316420] }
  0x65   : > { %v1299_v57 = vcombine.high %v6671_v17, %v6671_v17  ;;  %v2308_v0 = vrot.slane %v2300_v53, %v7080_v16  ;;  %v1886_v4 = vrot.slane %v1876_v56, %v7080_v16  ;;  %v1314_v5 = vcombine.high %v1306_v30, %v1306_v30  ;;  %v6652_v52 = vld.sshfl [vmem:[%s7066_s28 + $0x68] sm:$0x1 pattern:$0x75316420] }
  0x66   : > { %v2315_v2 = vrot.slane %v2301_v54, %v7080_v16  ;;  %v843_v6 = vcombine.high %v841_v59, %v841_v59  ;;  %v1878_v7 = vcombine.low %v841_v59, %v842_v60  ;;  %v1893_v9 = vrot.slane %v1877_v61, %v7080_v16 }
  0x67   : > { %6786 = vmatmul.mubr.bf16.gmra.mrb[28].mxu0 %v1875_v49  ;;  %v1313_v10 = vrot.slane %v1299_v57, %v7080_v16  ;;  %v1323_v3 = vcombine.high %v6672_v58, %v6672_v58  ;;  %v1330_v12 = vrot.slane %v6672_v58, %v7080_v16  ;;  %v1353_v14 = vrot.slane %v6673_v62, %v7080_v16  ;;  %v6653_v62 = vld.sshfl [vmem:[%s7066_s28 + $0x6c] sm:$0x33 pattern:$0x75316420] }
  0x68   : > { %6789 = vmatprep.mubr.msk.bf16.mxu0 %vm6995_vm0, %v9973_v1  ;;  %v2316_v13 = vcombine.low %v2308_v0, %v2315_v2  ;;  %v1879_v15 = vcombine.low %v843_v6, %v857_v55  ;;  %v1900_v17 = vrot.slane %v1878_v7, %v7080_v16  ;;  %v1908_v18 = vcombine.low %v1886_v4, %v1893_v9 }
  0x69   : > { %v1315_v20 = vcombine.high %v1313_v10, %v1313_v10  ;;  %v1337_v21 = vrot.slane %v1323_v3, %v7080_v16  ;;  %v1338_v22 = vcombine.high %v1330_v12, %v1330_v12  ;;  %v2317_v25 = vcombine.low %v1313_v10, %v1314_v5 }
  0x6a   : > { %6822 = vmatmul.mubr.bf16.gmra.mrb[20].mxu1 %v2316_v13  ;;  %v865_v19 = vcombine.high %v6650_v11, %v6650_v11  ;;  %v1907_v24 = vrot.slane %v1879_v15, %v7080_v16  ;;  %v1916_v27 = vrot.slane %v1908_v18, %v7080_v16  ;;  %v872_v29 = vrot.slane %v6650_v11, %v7080_v16 }
  0x6b   : > { %6825 = vmatprep.mubr.msk.bf16.mxu1 %vm6995_vm0, %v9973_v1  ;;  %v2318_v28 = vcombine.low %v1315_v20, %v1330_v12  ;;  %v1339_v30 = vcombine.high %v1337_v21, %v1337_v21  ;;  %v2319_v31 = vcombine.low %v1337_v21, %v1338_v22  ;;  %v2327_v32 = vrot.slane %v2317_v25, %v7080_v16  ;;  %v6676_v25 = vld.sshfl [vmem:[%s7066_s28 + $0xc8] sm:$0x1 pattern:$0x75316420] }
  0x6c   : > { %v879_v33 = vrot.slane %v865_v19, %v7080_v16  ;;  %v1909_v35 = vcombine.low %v1900_v17, %v1907_v24  ;;  %v889_v38 = vcombine.high %v6651_v26, %v6651_v26  ;;  %v896_v39 = vrot.slane %v6651_v26, %v7080_v16 }
  0x6d   : > { %v2334_v36 = vrot.slane %v2318_v28, %v7080_v16  ;;  %v2320_v40 = vcombine.low %v1339_v30, %v1353_v14  ;;  %v2341_v37 = vrot.slane %v2319_v31, %v7080_v16  ;;  %v1361_v47 = vcombine.high %v6674_v34, %v6674_v34  ;;  %v6677_v28 = vld.sshfl [vmem:[%s7066_s28 + $0xcc] sm:$0x33 pattern:$0x75316420] }
  0x6e   : > { %v1925_v41 = vcombine.low %v872_v29, %v879_v33  ;;  %v6689_v42 = vcombine.high %v872_v29, %v879_v33  ;;  %v1923_v43 = vrot.slane %v1909_v35, %v7080_v16  ;;  %v903_v45 = vrot.slane %v889_v38, %v7080_v16  ;;  %v6678_v33 = vld.sshfl [vmem:[%s7066_s28 + $0xd0] sm:$0x33 pattern:$0x75316420] }
  0x6f   : > { %v2349_v44 = vcombine.low %v2327_v32, %v2334_v36  ;;  %v2348_v48 = vrot.slane %v2320_v40, %v7080_v16  ;;  %v1368_v51 = vrot.slane %v6674_v34, %v7080_v16  ;;  %v1375_v60 = vrot.slane %v1361_v47, %v7080_v16 }
  0x70   : > { %v1935_v49 = vrot.slane %v1925_v41, %v7080_v16  ;;  %v1942_v50 = vrot.slane %v6689_v42, %v7080_v16  ;;  %v1924_v53 = vcombine.low %v1916_v27, %v1923_v43  ;;  %v1927_v55 = vcombine.low %v896_v39, %v903_v45 }
  0x71   : > { %v2357_v54 = vrot.slane %v2349_v44, %v7080_v16  ;;  %v6690_v56 = vcombine.high %v896_v39, %v903_v45  ;;  %v2350_v58 = vcombine.low %v2341_v37, %v2348_v48  ;;  %v1385_v61 = vcombine.high %v6675_v46, %v6675_v46 }
  0x72   : > { %v1957_v59 = vcombine.low %v1935_v49, %v1942_v50  ;;  %6790 = vmatmul.mubr.bf16.gmra.mrb[32].mxu0 %v1924_v53  ;;  %v1949_v57 = vrot.slane %v1927_v55, %v7080_v16  ;;  %v1392_v2 = vrot.slane %v6675_v46, %v7080_v16  ;;  %v919_v4 = vrot.slane %v6652_v52, %v7080_v16 }
  0x73   : > { %v1956_v0 = vrot.slane %v6690_v56, %v7080_v16  ;;  %v2364_v5 = vrot.slane %v2350_v58, %v7080_v16  ;;  %6793 = vmatprep.mubr.msk.bf16.mxu0 %vm6995_vm0, %v9973_v1  ;;  %v1399_v7 = vrot.slane %v1385_v61, %v7080_v16  ;;  %v2366_v9 = vcombine.low %v1368_v51, %v1375_v60 }
  0x74   : > { %v1965_v6 = vrot.slane %v1957_v59, %v7080_v16  ;;  %v6697_v11 = vcombine.high %v1368_v51, %v1375_v60  ;;  %v927_v13 = vcombine.high %v6653_v62, %v6653_v62  ;;  %v934_v3 = vrot.slane %v6653_v62, %v7080_v16  ;;  %v6679_v59 = vld.sshfl [vmem:[%s7066_s28 + $0xd4] sm:$0x1 pattern:$0x75316420] }
  0x75   : > { %v1958_v10 = vcombine.low %v1949_v57, %v1956_v0  ;;  %v2365_v12 = vcombine.low %v2357_v54, %v2364_v5  ;;  %v2368_v14 = vcombine.low %v1392_v2, %v1399_v7  ;;  %v6698_v15 = vcombine.high %v1392_v2, %v1399_v7 }
  0x76   : > { %v2376_v17 = vrot.slane %v2366_v9, %v7080_v16  ;;  %v2383_v20 = vrot.slane %v6697_v11, %v7080_v16  ;;  %v941_v21 = vrot.slane %v927_v13, %v7080_v16  ;;  %v942_v22 = vcombine.high %v934_v3, %v934_v3 }
  0x77   : > { %v1972_v18 = vrot.slane %v1958_v10, %v7080_v16  ;;  %6826 = vmatmul.mubr.bf16.gmra.mrb[24].mxu1 %v2365_v12  ;;  %v2390_v26 = vrot.slane %v2368_v14, %v7080_v16  ;;  %v2397_v19 = vrot.slane %v6698_v15, %v7080_v16  ;;  %v958_v24 = vrot.slane %v7123_v63, %v7080_v16 }
  0x78   : > { %v1974_v27 = vcombine.low %v919_v4, %v934_v3  ;;  %6829 = vmatprep.mubr.msk.bf16.mxu1 %vm6995_vm0, %v9973_v1  ;;  %v2398_v30 = vcombine.low %v2376_v17, %v2383_v20  ;;  %v943_v31 = vcombine.high %v941_v21, %v941_v21  ;;  %v1975_v32 = vcombine.low %v941_v21, %v942_v22  ;;  %v7423_v22 = vld [vmem:[%s9970_s2] ss:$0 sm:$0xff] }
  0x79   : > { %v1973_v29 = vcombine.low %v1965_v6, %v1972_v18  ;;  %v2399_v34 = vcombine.low %v2390_v26, %v2397_v19  ;;  %v966_v35 = vcombine.high %v958_v24, %v958_v24  ;;  %v1415_v38 = vrot.slane %v6676_v25, %v7080_v16 }
  0x7a   : > { %v1984_v36 = vrot.slane %v1974_v27, %v7080_v16  ;;  %v2406_v39 = vrot.slane %v2398_v30, %v7080_v16  ;;  %v1976_v63 = vcombine.low %v943_v31, %v958_v24  ;;  %v1991_v40 = vrot.slane %v1975_v32, %v7080_v16 }
  0x7b   : > { %6794 = vmatmul.mubr.bf16.gmra.mrb[36].mxu0 %v1973_v29  ;;  %v1423_v37 = vcombine.high %v6677_v28, %v6677_v28  ;;  %v2413_v41 = vrot.slane %v2399_v34, %v7080_v16  ;;  %v1977_v42 = vcombine.low %v7147_v23, %v966_v35  ;;  %v1430_v43 = vrot.slane %v6677_v28, %v7080_v16 }
  0x7c   : > { %6797 = vmatprep.mubr.msk.bf16.mxu0 %vm6995_vm0, %v9973_v1  ;;  %v1447_v44 = vcombine.high %v6678_v33, %v6678_v33  ;;  %v1998_v45 = vrot.slane %v1976_v63, %v7080_v16  ;;  %v2006_v46 = vcombine.low %v1984_v36, %v1991_v40  ;;  %v1454_v48 = vrot.slane %v6678_v33, %v7080_v16 }
  0x7d   : > { %v1437_v47 = vrot.slane %v1423_v37, %v7080_v16  ;;  %v2414_v49 = vcombine.low %v2406_v39, %v2413_v41  ;;  %v2005_v50 = vrot.slane %v1977_v42, %v7080_v16  ;;  %v1438_v51 = vcombine.high %v1430_v43, %v1430_v43 }
  0x7e   : > { %v1461_v52 = vrot.slane %v1447_v44, %v7080_v16  ;;  %v1462_v54 = vcombine.high %v1454_v48, %v1454_v48  ;;  %v2415_v23 = vcombine.low %v1415_v38, %v1430_v43  ;;  %v2014_v56 = vrot.slane %v2006_v46, %v7080_v16 }
  0x7f   : > { %v1439_v53 = vcombine.high %v1437_v47, %v1437_v47  ;;  %6830 = vmatmul.mubr.bf16.gmra.mrb[28].mxu1 %v2414_v49  ;;  %v2007_v55 = vcombine.low %v1998_v45, %v2005_v50  ;;  %v2416_v58 = vcombine.low %v1437_v47, %v1438_v51  ;;  %v1477_v6 = vrot.slane %v6679_v59, %v7080_v16  ;;  %v247_v45 = vld [vmem:[%s9971_s3] sm:$0x7] }
  0x80   : > { %6833 = vmatprep.mubr.msk.bf16.mxu1 %vm6995_vm0, %v9973_v1  ;;  %v2418_v61 = vcombine.low %v1461_v52, %v1462_v54  ;;  %v2425_v62 = vrot.slane %v2415_v23, %v7080_v16  ;;  %v1463_v5 = vcombine.high %v1461_v52, %v1461_v52  ;;  %v7449_v43 = vsub.s32 1, %v7069_v8 }
  0x81   : > { %v2417_v60 = vcombine.low %v1439_v53, %v1454_v48  ;;  %v2021_v57 = vrot.slane %v2007_v55, %v7080_v16  ;;  %v2432_v0 = vrot.slane %v2416_v58, %v7080_v16  ;;  %v6997_v50 = vmov 1983009808  }
  0x82   : > { %v2446_v4 = vrot.slane %v2418_v61, %v7080_v16  ;;  %v2464_v3 = vcombine.low %v1463_v5, %v1477_v6  ;;  %v3112_v51 = vunpack.c.l.s4 %v6997_v50  ;;  %v7460_v52 = vsub.s32 0, %v7069_v8 }
  0x83   : > { %v2439_v2 = vrot.slane %v2417_v60, %v7080_v16  ;;  %v2022_v7 = vcombine.low %v2014_v56, %v2021_v57  ;;  %v2447_v9 = vcombine.low %v2425_v62, %v2432_v0  ;;  %v7465_v23 = vrot.slane %v247_v45, %v7449_v43 }
  0x84   : > { %v2471_v14 = vrot.slane %v2464_v3, %v7080_v16  ;;  %v7468_v56 = vsub.s32 2, %v7069_v8  ;;  %v3113_v60 = vunpack.c.0.s8 %v3112_v51  ;;  %v7473_v0 = vrot.slane %v247_v45, %v7460_v52 }
  0x85   : > { %v2448_v10 = vcombine.low %v2439_v2, %v2446_v4  ;;  %6798 = vmatmul.mubr.bf16.gmra.mrb[40].mxu0 %v2022_v7  ;;  %v2455_v11 = vrot.slane %v2447_v9, %v7080_v16  ;;  %10051 = vst [vmem:[#allocation2_spill] sm:$0xff] %v7465_v23  ;;  %v4844_v7 = vmul.f32 0.0, %v7465_v23 }
  0x86   : > { %v2478_v15 = vrot.slane %v2471_v14, %v7080_v16  ;;  %10052 = vst [vmem:[#allocation3_spill] sm:$0xff] %v7473_v0 }
  0x87   : > { %v2462_v13 = vrot.slane %v2448_v10, %v7080_v16 }
  0x89   : > { %v2463_v12 = vcombine.low %v2455_v11, %v2462_v13  ;;  %v7481_v11 = vrot.slane %v247_v45, %v7468_v56 }
  0x8b   : > { %6834 = vmatmul.mubr.bf16.gmra.mrb[32].mxu1 %v2463_v12  ;;  %10053 = vst [vmem:[#allocation4_spill] sm:$0xff] %v7481_v11 }
  0x8c   : > { %6837 = vmatprep.mubr.msk.bf16.mxu1 %vm6995_vm0, %v9973_v1 }
  0x93   : > { %6838 = vmatmul.mubr.bf16.gmra.mrb[36].mxu1 %v2478_v15  ;;  %v7489_v15 = vsub.s32 %v3113_v60, %v7069_v8 }
 0x102   : > { %v2582_v17 = vpop.f32.mrb[0].mxu0 }
 0x103   : > { %v6759_v18 = vpop.f32.mrb[1].mxu0 }
 0x104   : > { %v2585_v20 = vpop.f32.mrb[2].mxu0  ;;  %v7493_v18 = vadd.s32 4294967295, %v7069_v8 }
 0x105   : > { %v6760_v21 = vpop.f32.mrb[3].mxu0 }
 0x106   : > { %10054 = vst [vmem:[#allocation5_spill] sm:$0xff] %v7493_v18  ;;  %v248_v21 = vld [vmem:[%s9971_s3 + $0x4] sm:$0x7]  ;;  %vm3844_vm1 = vcmp.ge.s32.totalorder %v7493_v18, 0 }
 0x107   : > { %v7517_v45 = vrot.slane %v248_v21, %v7449_v43 }
 0x10a   : > { %v2590_v25 = vpop.f32.mrb[4].mxu0  ;;  %v2670_v29 = vpop.f32.mrb[0].mxu1 }
 0x10b   : > { %v7426_v26 = vadd.f32 %v7423_v22, %v2590_v25  ;;  %v6763_v19 = vpop.f32.mrb[5].mxu0  ;;  %v7436_v32 = vadd.f32 %v7423_v22, %v2670_v29  ;;  %v6803_v33 = vpop.f32.mrb[1].mxu1  ;;  %v4808_v25 = vmul.f32 0.0, %v7473_v0 }
 0x10c   : > { %v2593_v24 = vpop.f32.mrb[6].mxu0  ;;  %v2673_v34 = vpop.f32.mrb[2].mxu1  ;;  %v3786_v19 = vadd.s32 16, %v7069_v8 }
 0x10d   : > { %v2750_v27 = vmul.f32 %v7426_v26, %v7426_v26  ;;  %v7431_v16 = vadd.f32 %v7423_v22, %v2593_v24  ;;  %v6764_v28 = vpop.f32.mrb[7].mxu0  ;;  %v2770_v36 = vmul.f32 %v7436_v32, %v7436_v32  ;;  %v7441_v38 = vadd.f32 %v7423_v22, %v2673_v34  ;;  %v6804_v39 = vpop.f32.mrb[3].mxu1 }
 0x10e   : > { %v5089_v34 = vmul.f32 0.0, %v7481_v11 }
 0x10f   : > { %v2791_v30 = vadd.f32 1.0, %v2750_v27  ;;  %v2751_v31 = vmul.f32 %v7431_v16, %v7431_v16  ;;  %v2811_v41 = vadd.f32 1.0, %v2770_v36  ;;  %v2771_v42 = vmul.f32 %v7441_v38, %v7441_v38 }
 0x111   : > { %6894 = vrsqrt.f32 %v2791_v30  ;;  %v2792_v35 = vadd.f32 1.0, %v2751_v31  ;;  %v2812_v49 = vadd.f32 1.0, %v2771_v42  ;;  %v4941_v30 = vrot.slane %v4844_v7, 1 }
 0x112   : > { %v2598_v63 = vpop.f32.mrb[8].mxu0 }
 0x113   : > { %6896 = vrsqrt.f32 %v2792_v35  ;;  %v7444_v40 = vadd.f32 %v7423_v22, %v2598_v63  ;;  %v6767_v37 = vpop.f32.mrb[9].mxu0  ;;  %v5053_v60 = vadd.f32 %v4941_v30, %v4808_v25 }
 0x114   : > { %v2601_v44 = vpop.f32.mrb[10].mxu0  ;;  %6898 = vrsqrt.f32 %v2811_v41  ;;  %v2678_v55 = vpop.f32.mrb[4].mxu1  ;;  %v7512_v37 = vrot.slane %v248_v21, %v7460_v52 }
 0x115   : > { %v2752_v46 = vmul.f32 %v7444_v40, %v7444_v40  ;;  %v7457_v47 = vadd.f32 %v7423_v22, %v2601_v44  ;;  %v6768_v48 = vpop.f32.mrb[11].mxu0  ;;  %6900 = vrsqrt.f32 %v2812_v49  ;;  %v6807_v59 = vpop.f32.mrb[5].mxu1  ;;  %v7506_v36 = vadd.f32 %v7423_v22, %v2678_v55 }
 0x116   : > { %v7470_v62 = vpop.f32.mrb[6].mxu1 }
 0x117   : > { %v2793_v53 = vadd.f32 1.0, %v2752_v46  ;;  %v2753_v54 = vmul.f32 %v7457_v47, %v7457_v47  ;;  %v6808_v5 = vpop.f32.mrb[7].mxu1  ;;  %v7519_v46 = vadd.s32 4294967295, %v3786_v19 }
 0x119   : > { %6902 = vrsqrt.f32 %v2793_v53  ;;  %v2794_v58 = vadd.f32 1.0, %v2753_v54  ;;  %10055 = vst [vmem:[#allocation6_spill] sm:$0xff] %v7519_v46  ;;  %vm3903_vm2 = vcmp.lt.s32.totalorder %v7519_v46, 16 }
 0x11a   : > { %v2606_v61 = vpop.f32.mrb[12].mxu0 }
 0x11b   : > { %v6895_v57 = vpop.eup %6894  ;;  %6904 = vrsqrt.f32 %v2794_v58  ;;  %v7476_v2 = vadd.f32 %v7423_v22, %v2606_v61  ;;  %v6771_v4 = vpop.f32.mrb[13].mxu0  ;;  %v5186_v61 = vrot.slane %v5089_v34, 2 }
 0x11c   : > { %v2873_v6 = vmul.f32 %v6895_v57, %v7426_v26  ;;  %v2609_v9 = vpop.f32.mrb[14].mxu0  ;;  %v2772_v4 = vmul.f32 %v7506_v36, %v7506_v36 }
 0x11d   : > { %v6897_v10 = vpop.eup %6896  ;;  %v2754_v13 = vmul.f32 %v7476_v2, %v7476_v2  ;;  %v7486_v3 = vadd.f32 %v7423_v22, %v2609_v9  ;;  %v6772_v12 = vpop.f32.mrb[15].mxu0 }
 0x11e   : > { %v2914_v14 = vadd.f32 1.0, %v2873_v6  ;;  %v2874_v17 = vmul.f32 %v6897_v10, %v7431_v16  ;;  %v6899_v20 = vpop.eup %6898  ;;  %v7508_v39 = vpop.f32.mrb[8].mxu1  ;;  %v7537_v12 = vld [vmem:[%s9971_s3 + $0x8] sm:$0x7] }
 0x11f   : > { %v2795_v24 = vadd.f32 1.0, %v2754_v13  ;;  %v2755_v27 = vmul.f32 %v7486_v3, %v7486_v3  ;;  %v2893_v31 = vmul.f32 %v6899_v20, %v7436_v32  ;;  %v6901_v33 = vpop.eup %6900  ;;  %v6811_v42 = vpop.f32.mrb[9].mxu1  ;;  %v7552_v34 = vrot.slane %v7537_v12, %v7460_v52 }
 0x120   : > { %v2955_v28 = vmul.f32 %v2914_v14, %v7426_v26  ;;  %v2915_v29 = vadd.f32 1.0, %v2874_v17  ;;  %v2894_v48 = vmul.f32 %v6901_v33, %v7441_v38  ;;  %v7522_v50 = vpop.f32.mrb[10].mxu1  ;;  %v7564_v42 = vadd.f32 1.0, %v2772_v4 }
 0x121   : > { %6906 = vrsqrt.f32 %v2795_v24  ;;  %v2796_v35 = vadd.f32 1.0, %v2755_v27  ;;  %v2934_v26 = vadd.f32 1.0, %v2893_v31  ;;  %10056 = vst [vmem:[#allocation7_spill] sm:$0xff] %v7522_v50  ;;  %v6812_v58 = vpop.f32.mrb[11].mxu1  ;;  %v7543_v27 = vadd.f32 %v5186_v61, %v5053_v60 }
 0x122   : > { %v2996_v8 = vmul.f32 0.5, %v2955_v28  ;;  %v2956_v63 = vmul.f32 %v2915_v29, %v7431_v16  ;;  %v7514_v41 = vpop.f32.mrb[16].mxu0  ;;  %v7546_v28 = vrot.slane %v248_v21, %v7468_v56 }
 0x123   : > { %v6903_v44 = vpop.eup %6902  ;;  %6908 = vrsqrt.f32 %v2796_v35  ;;  %v6775_v49 = vpop.f32.mrb[17].mxu0  ;;  %v2975_v57 = vmul.f32 %v2934_v26, %v7436_v32  ;;  %v2935_v32 = vadd.f32 1.0, %v2894_v48  ;;  %v7556_v35 = vrot.slane %v7537_v12, %v7449_v43 }
 0x124   : > { %v3110_v16 = vcombine.high %v2996_v8, %v2996_v8  ;;  %v3117_v51 = vrot.slane %v2996_v8, %v7489_v15  ;;  %v2997_v53 = vmul.f32 0.5, %v2956_v63  ;;  %v2875_v54 = vmul.f32 %v6903_v44, %v7444_v40  ;;  %v7526_v55 = vpop.f32.mrb[18].mxu0 }
 0x125   : > { %v6905_v59 = vpop.eup %6904  ;;  %v6776_v5 = vpop.f32.mrb[19].mxu0  ;;  %v7540_v17 = vmul.f32 0.5, %v2975_v57  ;;  %6910 = vrsqrt.f32 %v7564_v42 }
 0x126   : > { %v3124_v6 = vrot.slane %v3110_v16, %v7489_v15  ;;  %v3125_v7 = vcombine.high %v3117_v51, %v3117_v51  ;;  %v3127_v9 = vcombine.high %v2997_v53, %v2997_v53  ;;  %v3134_v10 = vrot.slane %v2997_v53, %v7489_v15 }
 0x127   : > { %v2916_v13 = vadd.f32 1.0, %v2875_v54  ;;  %v2876_v14 = vmul.f32 %v6905_v59, %v7457_v47 }
 0x128   : > { %v3999_v20 = vcombine.low %v3125_v7, %v3124_v6  ;;  %v3126_v25 = vcombine.high %v3124_v6, %v3124_v6  ;;  %v3141_v19 = vrot.slane %v3127_v9, %v7489_v15  ;;  %v3142_v24 = vcombine.high %v3134_v10, %v3134_v10 }
 0x129   : > { %v2957_v29 = vmul.f32 %v2916_v13, %v7444_v40  ;;  %v2917_v30 = vadd.f32 1.0, %v2876_v14  ;;  %v7562_v40 = vmul.f32 %v2935_v32, %v7441_v38  ;;  %v7574_v58 = vpop.f32.mrb[12].mxu1 }
 0x12a   : > { %v4000_v31 = vcombine.low %v3126_v25, %v3134_v10  ;;  %v4016_v33 = vcombine.low %v3142_v24, %v3141_v19  ;;  %v7558_v8 = vpop.f32.mrb[20].mxu0  ;;  %v4007_v48 = vrot.slane %v3999_v20, %v7489_v15  ;;  %v3143_v53 = vcombine.high %v3141_v19, %v3141_v19  ;;  %10059 = vst [vmem:[#allocation10_spill] sm:$0xff] %v7574_v58  ;;  %v6815_v5 = vpop.f32.mrb[13].mxu1 }
 0x12b   : > { %10057 = vst [vmem:[#allocation8_spill] sm:$0xff] %v7558_v8  ;;  %v6907_v63 = vpop.eup %6906  ;;  %v2998_v21 = vmul.f32 0.5, %v2957_v29  ;;  %v2958_v26 = vmul.f32 %v2917_v30, %v7457_v47  ;;  %v6779_v44 = vpop.f32.mrb[21].mxu0 }
 0x12c   : > { %v4014_v52 = vrot.slane %v4000_v31, %v7489_v15  ;;  %v2877_v49 = vmul.f32 %v6907_v63, %v7476_v2  ;;  %v7571_v16 = vpop.f32.mrb[22].mxu0  ;;  %v4024_v61 = vrot.slane %v4016_v33, %v7489_v15  ;;  %v7585_v25 = vpop.f32.mrb[14].mxu1 }
 0x12d   : > { %10058 = vst [vmem:[#allocation9_spill] sm:$0xff] %v7571_v16  ;;  %v6909_v51 = vpop.eup %6908  ;;  %v3144_v47 = vcombine.high %v2998_v21, %v2998_v21  ;;  %v3151_v38 = vrot.slane %v2998_v21, %v7489_v15  ;;  %v2999_v54 = vmul.f32 0.5, %v2958_v26  ;;  %v6780_v59 = vpop.f32.mrb[23].mxu0  ;;  %10060 = vst [vmem:[#allocation11_spill] sm:$0xff] %v7585_v25 }
 0x12e   : > { %v4015_v60 = vcombine.low %v4007_v48, %v4014_v52  ;;  %v2918_v57 = vadd.f32 1.0, %v2877_v49  ;;  %v2878_v4 = vmul.f32 %v6909_v51, %v7486_v3  ;;  %v6816_v31 = vpop.f32.mrb[15].mxu1 }
 0x12f   : > { %v3158_v6 = vrot.slane %v3144_v47, %v7489_v15  ;;  %v3159_v7 = vcombine.high %v3151_v38, %v3151_v38  ;;  %v4017_v9 = vcombine.low %v3143_v53, %v3151_v38  ;;  %v3161_v10 = vcombine.high %v2999_v54, %v2999_v54 }
 0x130   : > { %v4753_v13 = vsel %vm3844_vm1, %v4015_v60, 0.0  ;;  %v3168_v14 = vrot.slane %v2999_v54, %v7489_v15  ;;  %v2959_v32 = vmul.f32 %v2918_v57, %v7476_v2  ;;  %v7583_v20 = vadd.f32 1.0, %v2878_v4 }
 0x131   : > { %v4810_v19 = vmul.f32 %v7473_v0, %v4753_v13  ;;  %v4847_v24 = vmul.f32 %v7465_v23, %v4753_v13  ;;  %v5092_v29 = vmul.f32 %v7481_v11, %v4753_v13  ;;  %v5334_v30 = vmul.f32 %v7512_v37, %v4753_v13 }
 0x132   : > { %v5402_v33 = vmul.f32 %v7517_v45, %v4753_v13  ;;  %v5646_v63 = vmul.f32 %v7546_v28, %v4753_v13  ;;  %v3160_v21 = vcombine.high %v3158_v6, %v3158_v6  ;;  %v4031_v2 = vrot.slane %v4017_v9, %v7489_v15  ;;  %v7615_v25 = vpop.f32.mrb[24].mxu0 }
 0x133   : > { %v4946_v26 = vrot.slane %v4847_v24, 1  ;;  %v5191_v44 = vrot.slane %v5092_v29, 2  ;;  %v5366_v48 = vadd.f32 %v5334_v30, %v7543_v27  ;;  %v4039_v52 = vrot.slane %v3159_v7, %v7489_v15  ;;  %10061 = vst [vmem:[#allocation12_spill] sm:$0xff] %v7615_v25 }
 0x134   : > { %v5498_v49 = vrot.slane %v5402_v33, 1  ;;  %v5742_v51 = vrot.slane %v5646_v63, 2  ;;  %v4032_v53 = vcombine.low %v4024_v61, %v4031_v2  ;;  %v4040_v47 = vcombine.low %v3158_v6, %v3160_v21 }
 0x135   : > { %v4755_v38 = vsel %vm3903_vm2, %v4039_v52, 0.0  ;;  %v3175_v54 = vrot.slane %v3161_v10, %v7489_v15  ;;  %v3176_v59 = vcombine.high %v3168_v14, %v3168_v14  ;;  %v3000_v60 = vmul.f32 0.5, %v2959_v32 }
 0x136   : > { %v4048_v57 = vrot.slane %v4040_v47, %v7489_v15  ;;  %v4811_v4 = vmul.f32 %v7473_v0, %v4032_v53  ;;  %v4848_v5 = vmul.f32 %v7465_v23, %v4032_v53  ;;  %v4849_v9 = vmul.f32 %v7465_v23, %v4755_v38 }
 0x137   : > { %v5093_v7 = vmul.f32 %v7481_v11, %v4032_v53  ;;  %v5094_v61 = vmul.f32 %v7481_v11, %v4755_v38  ;;  %v5335_v6 = vmul.f32 %v7512_v37, %v4032_v53  ;;  %v5403_v13 = vmul.f32 %v7517_v45, %v4032_v53 }
 0x138   : > { %v4947_v24 = vrot.slane %v4848_v5, 1  ;;  %v4949_v10 = vrot.slane %v4849_v9, 1  ;;  %v5404_v32 = vmul.f32 %v7517_v45, %v4755_v38  ;;  %v5647_v29 = vmul.f32 %v7546_v28, %v4032_v53 }
 0x139   : > { %v5192_v30 = vrot.slane %v5093_v7, 2  ;;  %v5194_v31 = vrot.slane %v5094_v61, 2  ;;  %v5367_v33 = vadd.f32 %v5335_v6, %v7543_v27  ;;  %v5499_v63 = vrot.slane %v5403_v13, 1 }
 0x13a   : > { %v4948_v21 = vsel %vm4940_vm3, %v4946_v26, %v4947_v24  ;;  %v4950_v2 = vsel %vm4940_vm3, %v4947_v24, %v4949_v10  ;;  %v5501_v52 = vrot.slane %v5404_v32, 1  ;;  %v5648_v47 = vmul.f32 %v7546_v28, %v4755_v38  ;;  %v6783_v26 = vpop.f32.mrb[25].mxu0 }
 0x13b   : > { %v5055_v1 = vadd.f32 %v4948_v21, %v4810_v19  ;;  %v5056_v43 = vadd.f32 %v4950_v2, %v4811_v4  ;;  %v5193_v5 = vsel %vm5185_vm4, %v5191_v44, %v5192_v30  ;;  %v5195_v9 = vsel %vm5185_vm4, %v5192_v30, %v5194_v31 }
 0x13c   : > { %v5500_v53 = vsel %vm4940_vm3, %v5498_v49, %v5499_v63  ;;  %v5502_v27 = vsel %vm4940_vm3, %v5499_v63, %v5501_v52  ;;  %v5743_v7 = vrot.slane %v5647_v29, 2  ;;  %v5745_v61 = vrot.slane %v5648_v47, 2 }
 0x13d   : > { %v5300_v6 = vadd.f32 %v5193_v5, %v5055_v1  ;;  %v7619_v13 = vadd.f32 %v5195_v9, %v5056_v43  ;;  %v5610_v24 = vadd.f32 %v5500_v53, %v5366_v48  ;;  %v5611_v38 = vadd.f32 %v5502_v27, %v5367_v33 }
 0x13e   : > { %v5744_v19 = vsel %vm5185_vm4, %v5742_v51, %v5743_v7  ;;  %v5746_v44 = vsel %vm5185_vm4, %v5743_v7, %v5745_v61  ;;  %v3177_v4 = vcombine.high %v3175_v54, %v3175_v54  ;;  %v4041_v10 = vcombine.low %v3168_v14, %v3176_v59 }
 0x13f   : > { %v5854_v32 = vadd.f32 %v5744_v19, %v5610_v24  ;;  %v7623_v30 = vadd.f32 %v5746_v44, %v5611_v38  ;;  %v3178_v49 = vcombine.high %v3000_v60, %v3000_v60  ;;  %v3185_v31 = vrot.slane %v3000_v60, %v7489_v15 }
 0x140   : > { %v4055_v29 = vrot.slane %v4041_v10, %v7489_v15  ;;  %v4057_v63 = vcombine.low %v3175_v54, %v3177_v4  ;;  %v7629_v1 = vrot.slane %v7537_v12, %v7468_v56  ;;  %v2960_v43 = vmul.f32 %v7583_v20, %v7486_v3 }
 0x141   : > { %v7634_v48 = vrot.slane %v3178_v49, %v7489_v15  ;;  %v3193_v14 = vcombine.high %v3185_v31, %v3185_v31  ;;  %v7639_v51 = vadd.f32 %v7423_v22, %v7514_v41  ;;  %v7643_v54 = vrot.slane %v7540_v17, %v7489_v15 }
 0x142   : > { %v4056_v59 = vcombine.low %v4048_v57, %v4055_v29  ;;  %v3001_v60 = vmul.f32 0.5, %v2960_v43  ;;  %v10063_v56 = vcombine.high %v7540_v17, %v7540_v17  ;;  %v4065_v12 = vrot.slane %v4057_v63, %v7489_v15 }
 0x143   : > { %10062 = vst [vmem:[#allocation13_spill] sm:$0xff] %v7643_v54  ;;  %v4058_v20 = vcombine.low %v3185_v31, %v3193_v14  ;;  %v4080_v42 = vrot.slane %v7634_v48, %v7489_v15  ;;  %v7655_v41 = vmul.f32 0.5, %v7562_v40 }
 0x144   : > { %v7649_v3 = vrot.slane %v10063_v56, %v7489_v15  ;;  %v4756_v57 = vsel %vm3844_vm1, %v4056_v59, 0.0  ;;  %v3195_v21 = vcombine.high %v3001_v60, %v3001_v60  ;;  %v7662_v17 = vrot.slane %v3001_v60, %v7489_v15  ;;  %v7685_v59 = vpop.eup %6910 }
 0x145   : > { %v4812_v2 = vmul.f32 %v7473_v0, %v4756_v57  ;;  %v4850_v52 = vmul.f32 %v7465_v23, %v4756_v57  ;;  %v5095_v47 = vmul.f32 %v7481_v11, %v4756_v57  ;;  %v5336_v5 = vmul.f32 %v7512_v37, %v4756_v57 }
 0x146   : > { %v5405_v40 = vmul.f32 %v7517_v45, %v4756_v57  ;;  %v5649_v9 = vmul.f32 %v7546_v28, %v4756_v57  ;;  %v5890_v53 = vmul.f32 %v7552_v34, %v4756_v57  ;;  %v5958_v27 = vmul.f32 %v7556_v35, %v4756_v57 }
 0x147   : > { %v4951_v7 = vrot.slane %v4850_v52, 1  ;;  %v5196_v61 = vrot.slane %v5095_v47, 2  ;;  %v5368_v26 = vadd.f32 %v5336_v5, %v5300_v6  ;;  %v7673_v24 = vmul.f32 %v7629_v1, %v4756_v57 }
 0x148   : > { %v5503_v38 = vrot.slane %v5405_v40, 1  ;;  %v5747_v19 = vrot.slane %v5649_v9, 2  ;;  %v6054_v44 = vrot.slane %v5958_v27, 1  ;;  %v4072_v4 = vrot.slane %v4058_v20, %v7489_v15 }
 0x149   : > { %v6298_v10 = vrot.slane %v7673_v24, 2  ;;  %v4758_v49 = vsel %vm3903_vm2, %v4080_v42, 0.0  ;;  %v5922_v31 = vadd.f32 %v5890_v53, %v5854_v32  ;;  %v7680_v29 = vrot.slane %v3195_v21, %v7489_v15 }
 0x14a   : > { %v4073_v63 = vcombine.low %v4065_v12, %v4072_v4  ;;  %v4852_v6 = vmul.f32 %v7465_v23, %v4758_v49  ;;  %v5097_v43 = vmul.f32 %v7481_v11, %v4758_v49  ;;  %v5407_v14 = vmul.f32 %v7517_v45, %v4758_v49 }
 0x14b   : > { %v5651_v60 = vmul.f32 %v7546_v28, %v4758_v49  ;;  %v5960_v56 = vmul.f32 %v7556_v35, %v4758_v49  ;;  %v6204_v20 = vmul.f32 %v7629_v1, %v4758_v49  ;;  %v3210_v32 = vcombine.high %v7662_v17, %v7662_v17 }
 0x14c   : > { %v4813_v42 = vmul.f32 %v7473_v0, %v4073_v63  ;;  %v4851_v12 = vmul.f32 %v7465_v23, %v4073_v63  ;;  %v4954_v57 = vrot.slane %v4852_v6, 1  ;;  %v5096_v21 = vmul.f32 %v7481_v11, %v4073_v63 }
 0x14d   : > { %v5199_v52 = vrot.slane %v5097_v43, 2  ;;  %v5337_v47 = vmul.f32 %v7512_v37, %v4073_v63  ;;  %v5406_v5 = vmul.f32 %v7517_v45, %v4073_v63  ;;  %v5506_v40 = vrot.slane %v5407_v14, 1 }
 0x14e   : > { %v4952_v9 = vrot.slane %v4851_v12, 1  ;;  %v5197_v53 = vrot.slane %v5096_v21, 2  ;;  %v5650_v27 = vmul.f32 %v7546_v28, %v4073_v63  ;;  %v5750_v24 = vrot.slane %v5651_v60, 2 }
 0x14f   : > { %v5369_v4 = vadd.f32 %v5337_v47, %v7619_v13  ;;  %v5504_v49 = vrot.slane %v5406_v5, 1  ;;  %v5891_v33 = vmul.f32 %v7552_v34, %v4073_v63  ;;  %v5959_v6 = vmul.f32 %v7556_v35, %v4073_v63 }
 0x150   : > { %v4953_v25 = vsel %vm4940_vm3, %v4951_v7, %v4952_v9  ;;  %v4955_v43 = vsel %vm4940_vm3, %v4952_v9, %v4954_v57  ;;  %v5198_v16 = vsel %vm5185_vm4, %v5196_v61, %v5197_v53  ;;  %v5200_v14 = vsel %vm5185_vm4, %v5197_v53, %v5199_v52 }
 0x151   : > { %v5057_v12 = vadd.f32 %v4953_v25, %v4812_v2  ;;  %v5058_v21 = vadd.f32 %v4955_v43, %v4813_v42  ;;  %v5505_v58 = vsel %vm4940_vm3, %v5503_v38, %v5504_v49  ;;  %v5507_v60 = vsel %vm4940_vm3, %v5504_v49, %v5506_v40 }
 0x152   : > { %v5612_v13 = vadd.f32 %v5505_v58, %v5368_v26  ;;  %v5613_v47 = vadd.f32 %v5507_v60, %v5369_v4  ;;  %v5748_v5 = vrot.slane %v5650_v27, 2  ;;  %v5923_v8 = vadd.f32 %v5891_v33, %v7623_v30 }
 0x153   : > { %v5302_v50 = vadd.f32 %v5198_v16, %v5057_v12  ;;  %v7708_v0 = vadd.f32 %v5200_v14, %v5058_v21  ;;  %v6055_v7 = vrot.slane %v5959_v6, 1  ;;  %v6057_v57 = vrot.slane %v5960_v56, 1 }
 0x154   : > { %v5749_v61 = vsel %vm5185_vm4, %v5747_v19, %v5748_v5  ;;  %v5751_v52 = vsel %vm5185_vm4, %v5748_v5, %v5750_v24  ;;  %v6203_v25 = vmul.f32 %v7629_v1, %v4073_v63  ;;  %v6301_v2 = vrot.slane %v6204_v20, 2  ;;  %v7754_v5 = vpop.f32.mrb[16].mxu1 }
 0x155   : > { %v5856_v38 = vadd.f32 %v5749_v61, %v5612_v13  ;;  %v7713_v42 = vadd.f32 %v5751_v52, %v5613_v47  ;;  %v6056_v58 = vsel %vm4940_vm3, %v6054_v44, %v6055_v7  ;;  %v6058_v26 = vsel %vm4940_vm3, %v6055_v7, %v6057_v57  ;;  %10067 = vst [vmem:[#allocation16_spill] sm:$0xff] %v7754_v5  ;;  %v6819_v52 = vpop.f32.mrb[17].mxu1 }
 0x156   : > { %v6166_v30 = vadd.f32 %v6056_v58, %v5922_v31  ;;  %v6167_v16 = vadd.f32 %v6058_v26, %v5923_v8  ;;  %v6299_v33 = vrot.slane %v6203_v25, 2  ;;  %v10064_v56 = vcombine.high %v7634_v48, %v7634_v48 }
 0x157   : > { %v4082_v40 = vcombine.low %v3210_v32, %v7680_v29  ;;  %v7724_v63 = vadd.f32 %v7423_v22, %v7470_v62  ;;  %v3465_v8 = vcombine.high %v7643_v54, %v7643_v54  ;;  %v3467_v62 = vcombine.high %v7655_v41, %v7655_v41 }
 0x158   : > { %v4081_v19 = vcombine.low %v10064_v56, %v7662_v17  ;;  %v6300_v20 = vsel %vm5185_vm4, %v6298_v10, %v6299_v33  ;;  %v6302_v44 = vsel %vm5185_vm4, %v6299_v33, %v6301_v2  ;;  %v3466_v17 = vcombine.high %v7649_v3, %v7649_v3 }
 0x159   : > { %v6410_v31 = vadd.f32 %v6300_v20, %v6166_v30  ;;  %v6411_v53 = vadd.f32 %v6302_v44, %v6167_v16  ;;  %v4096_v48 = vrot.slane %v4082_v40, %v7489_v15  ;;  %v3474_v10 = vrot.slane %v7655_v41, %v7489_v15  ;;  %v10072_v44 = vld [vmem:[#allocation3_spill] sm:$0xff] }
 0x15a   : > { %v4089_v9 = vrot.slane %v4081_v19, %v7489_v15  ;;  %v2756_v32 = vmul.f32 %v7639_v51, %v7639_v51  ;;  %v4367_v6 = vrot.slane %v3465_v8, %v7489_v15  ;;  %v2773_v43 = vmul.f32 %v7724_v63, %v7724_v63 }
 0x15b   : > { %v7740_v27 = vadd.f32 %v6411_v53, %v6410_v31  ;;  %v6479_v24 = vmul.f32 %v6410_v31, %v6410_v31  ;;  %v6480_v4 = vmul.f32 %v6411_v53, %v6411_v53  ;;  %v4368_v41 = vcombine.low %v7649_v3, %v3466_v17 }
 0x15c   : > { %v4097_v49 = vcombine.low %v4089_v9, %v4096_v48  ;;  %v3481_v60 = vrot.slane %v3467_v62, %v7489_v15  ;;  %v3482_v13 = vcombine.high %v3474_v10, %v3474_v10  ;;  %v2895_v47 = vmul.f32 %v7685_v59, %v7506_v36 }
 0x15d   : > { %10065 = vst [vmem:[#allocation14_spill] sm:$0xff] %v7740_v27  ;;  %v7745_v14 = vadd.f32 %v6480_v4, %v6479_v24  ;;  %v2797_v57 = vadd.f32 1.0, %v2756_v32  ;;  %v7759_v61 = vadd.f32 %v7423_v22, %v7526_v55  ;;  %v7763_v3 = vadd.f32 %v7423_v22, %v7508_v39 }
 0x15e   : > { %v4759_v12 = vsel %vm3844_vm1, %v4097_v49, 0.0  ;;  %v7772_v59 = vsel %vm3903_vm2, %v4367_v6, 0.0  ;;  %v2814_v58 = vadd.f32 1.0, %v2773_v43  ;;  %v4376_v39 = vrot.slane %v4368_v41, %v7489_v15 }
 0x15f   : > { %10066 = vst [vmem:[#allocation15_spill] sm:$0xff] %v7745_v14  ;;  %v5338_v21 = vmul.f32 %v7512_v37, %v4759_v12  ;;  %v5892_v7 = vmul.f32 %v7552_v34, %v4759_v12  ;;  %v7766_v25 = vmul.f32 %v7465_v23, %v4759_v12  ;;  %10068 = vst [vmem:[#allocation17_spill] sm:$0xff] %v7772_v59  ;;  %v2936_v56 = vadd.f32 1.0, %v2895_v47 }
 0x160   : > { %v7775_v26 = vmul.f32 %v7481_v11, %v4759_v12  ;;  %v7778_v55 = vmul.f32 %v7517_v45, %v4759_v12  ;;  %v7784_v16 = vmul.f32 %v7546_v28, %v4759_v12  ;;  %v4369_v33 = vcombine.low %v3474_v10, %v3482_v13  ;;  %v10074_v10 = vld [vmem:[#allocation7_spill] sm:$0xff] }
 0x161   : > { %v7768_v2 = vadd.f32 %v5338_v21, %v5302_v50  ;;  %v7780_v30 = vadd.f32 %v5892_v7, %v5856_v38  ;;  %v3483_v50 = vcombine.high %v3481_v60, %v3481_v60  ;;  %v7787_v19 = vmul.f32 %v7556_v35, %v4759_v12  ;;  %v7793_v38 = vpop.f32.mrb[26].mxu0  ;;  %v10076_v7 = vld [vmem:[#allocation8_spill] sm:$0xff] }
 0x162   : > { %6912 = vrsqrt.f32 %v2797_v57  ;;  %v2757_v40 = vmul.f32 %v7759_v61, %v7759_v61  ;;  %v2774_v20 = vmul.f32 %v7763_v3, %v7763_v3  ;;  %10071 = vst [vmem:[#allocation20_spill] sm:$0xff] %v7793_v38  ;;  %v7796_v9 = vmul.f32 %v10072_v44, %v4759_v12  ;;  %v6784_v48 = vpop.f32.mrb[27].mxu0 }
 0x163   : > { %10069 = vst [vmem:[#allocation18_spill] sm:$0xff] %v7780_v30  ;;  %10070 = vst [vmem:[#allocation19_spill] sm:$0xff] %v7787_v19  ;;  %v4383_v31 = vrot.slane %v4369_v33, %v7489_v15  ;;  %v2977_v53 = vmul.f32 %v2936_v56, %v7506_v36  ;;  %v7803_v62 = vmul.f32 %v7629_v1, %v4759_v12  ;;  %6914 = vrsqrt.f32 %v2814_v58 }
 0x164   : > { %v7807_v32 = vadd.f32 %v7423_v22, %v10074_v10  ;;  %v4385_v4 = vcombine.low %v3481_v60, %v3483_v50  ;;  %v2798_v6 = vadd.f32 1.0, %v2757_v40  ;;  %v2815_v21 = vadd.f32 1.0, %v2774_v20 }
 0x165   : > { %10073 = vst [vmem:[#allocation3_spill] sm:$0xff] %v7803_v62  ;;  %v4384_v24 = vcombine.low %v4376_v39, %v4383_v31  ;;  %v3018_v49 = vmul.f32 0.5, %v2977_v53  ;;  %v7819_v57 = vadd.f32 %v7423_v22, %v10076_v7  ;;  %v10078_v53 = vld [vmem:[#allocation10_spill] sm:$0xff] }
 0x166   : > { %v2775_v39 = vmul.f32 %v7807_v32, %v7807_v32  ;;  %v4393_v50 = vrot.slane %v4385_v4, %v7489_v15  ;;  %6916 = vrsqrt.f32 %v2798_v6  ;;  %v7855_v48 = vadd.f32 %v7423_v22, %v10078_v53 }
 0x167   : > { %v7814_v12 = vsel %vm3844_vm1, %v4384_v24, 0.0  ;;  %v3484_v13 = vcombine.high %v3018_v49, %v3018_v49  ;;  %v3491_v47 = vrot.slane %v3018_v49, %v7489_v15  ;;  %10077 = vst [vmem:[#allocation8_spill] sm:$0xff] %v7819_v57  ;;  %6918 = vrsqrt.f32 %v2815_v21 }
 0x168   : > { %10075 = vst [vmem:[#allocation7_spill] sm:$0xff] %v7814_v12  ;;  %v7823_v60 = vmul.f32 %v7465_v23, %v7814_v12  ;;  %v7827_v52 = vmul.f32 %v7481_v11, %v7814_v12  ;;  %v7836_v33 = vmul.f32 %v7517_v45, %v7814_v12  ;;  %v7840_v56 = vmul.f32 %v7546_v28, %v7814_v12 }
 0x169   : > { %v7844_v40 = vmul.f32 %v7556_v35, %v7814_v12  ;;  %v7848_v20 = vmul.f32 %v7629_v1, %v7814_v12  ;;  %v7851_v31 = vrot.slane %v3484_v13, %v7489_v15  ;;  %10079 = vst [vmem:[#allocation10_spill] sm:$0xff] %v7855_v48  ;;  %v4828_v10 = vmul.f32 %v10072_v44, %v7814_v12 }
 0x16a   : > { %v3499_v24 = vcombine.high %v3491_v47, %v3491_v47  ;;  %v2758_v4 = vmul.f32 %v7819_v57, %v7819_v57  ;;  %v4991_v6 = vrot.slane %v7823_v60, 1  ;;  %v5236_v7 = vrot.slane %v7827_v52, 2 }
 0x16b   : > { %v4408_v13 = vrot.slane %v7851_v31, %v7489_v15  ;;  %v2816_v36 = vadd.f32 1.0, %v2775_v39  ;;  %v5543_v22 = vrot.slane %v7836_v33, 1  ;;  %v5787_v53 = vrot.slane %v7840_v56, 2 }
 0x16c   : > { %v6913_v49 = vpop.eup %6912  ;;  %v4386_v41 = vcombine.low %v3491_v47, %v3499_v24  ;;  %v6094_v17 = vrot.slane %v7844_v40, 1  ;;  %v6338_v8 = vrot.slane %v7848_v20, 2 }
 0x16d   : > { %v2879_v43 = vmul.f32 %v6913_v49, %v7639_v51  ;;  %v6915_v21 = vpop.eup %6914  ;;  %v4782_v60 = vsel %vm3903_vm2, %v4408_v13, 0.0  ;;  %6920 = vrsqrt.f32 %v2816_v36  ;;  %v2799_v13 = vadd.f32 1.0, %v2758_v4 }
 0x16e   : > { %v4400_v52 = vrot.slane %v4386_v41, %v7489_v15  ;;  %v4876_v39 = vmul.f32 %v7465_v23, %v4782_v60  ;;  %v5121_v33 = vmul.f32 %v7481_v11, %v4782_v60  ;;  %v5431_v56 = vmul.f32 %v7517_v45, %v4782_v60 }
 0x16f   : > { %v5675_v47 = vmul.f32 %v7546_v28, %v4782_v60  ;;  %v5984_v24 = vmul.f32 %v7556_v35, %v4782_v60  ;;  %v6228_v40 = vmul.f32 %v7629_v1, %v4782_v60  ;;  %v2920_v49 = vadd.f32 1.0, %v2879_v43 }
 0x170   : > { %v7879_v20 = vcombine.low %v4393_v50, %v4400_v52  ;;  %v4994_v58 = vrot.slane %v4876_v39, 1  ;;  %v2896_v36 = vmul.f32 %v6915_v21, %v7724_v63  ;;  %v5239_v41 = vrot.slane %v5121_v33, 2  ;;  %v6917_v5 = vpop.eup %6916 }
 0x171   : > { %v5546_v54 = vrot.slane %v5431_v56, 1  ;;  %v5790_v12 = vrot.slane %v5675_v47, 2  ;;  %v2961_v38 = vmul.f32 %v2920_v49, %v7639_v51  ;;  %v6097_v60 = vrot.slane %v5984_v24, 1  ;;  %v6919_v52 = vpop.eup %6918  ;;  %v7897_v24 = vpop.f32.mrb[18].mxu1 }
 0x172   : > { %10080 = vst [vmem:[#allocation21_spill] sm:$0xff] %v7879_v20  ;;  %v4875_v14 = vmul.f32 %v7465_v23, %v7879_v20  ;;  %v5120_v27 = vmul.f32 %v7481_v11, %v7879_v20  ;;  %v6341_v43 = vrot.slane %v6228_v40, 2  ;;  %v4829_v50 = vmul.f32 %v10072_v44, %v7879_v20  ;;  %10081 = vst [vmem:[#allocation22_spill] sm:$0xff] %v7897_v24  ;;  %v6820_v18 = vpop.f32.mrb[19].mxu1 }
 0x173   : > { %v5430_v4 = vmul.f32 %v7517_v45, %v7879_v20  ;;  %v5674_v21 = vmul.f32 %v7546_v28, %v7879_v20  ;;  %v5983_v51 = vmul.f32 %v7556_v35, %v7879_v20  ;;  %v6227_v56 = vmul.f32 %v7629_v1, %v7879_v20 }
 0x174   : > { %v4992_v39 = vrot.slane %v4875_v14, 1  ;;  %v5237_v33 = vrot.slane %v5120_v27, 2  ;;  %v3002_v47 = vmul.f32 0.5, %v2961_v38  ;;  %v2880_v57 = vmul.f32 %v6917_v5, %v7759_v61 }
 0x175   : > { %v5544_v40 = vrot.slane %v5430_v4, 1  ;;  %v5788_v49 = vrot.slane %v5674_v21, 2  ;;  %v6095_v30 = vrot.slane %v5983_v51, 1  ;;  %6922 = vrsqrt.f32 %v2799_v13 }
 0x176   : > { %v4993_v62 = vsel %vm4940_vm3, %v4991_v6, %v4992_v39  ;;  %v4995_v59 = vsel %vm4940_vm3, %v4992_v39, %v4994_v58  ;;  %v5238_v48 = vsel %vm5185_vm4, %v5236_v7, %v5237_v33  ;;  %v5240_v27 = vsel %vm5185_vm4, %v5237_v33, %v5239_v41 }
 0x177   : > { %v6921_v14 = vpop.eup %6920  ;;  %v5073_v19 = vadd.f32 %v4993_v62, %v4828_v10  ;;  %v5074_v20 = vadd.f32 %v4995_v59, %v4829_v50  ;;  %v7905_v38 = vsel %vm4940_vm3, %v5543_v22, %v5544_v40  ;;  %v7908_v4 = vsel %vm4940_vm3, %v5544_v40, %v5546_v54 }
 0x178   : > { %10082 = vst [vmem:[#allocation23_spill] sm:$0xff] %v7905_v38  ;;  %10083 = vst [vmem:[#allocation24_spill] sm:$0xff] %v7908_v4  ;;  %v7911_v5 = vsel %vm5185_vm4, %v5787_v53, %v5788_v49  ;;  %v7914_v18 = vsel %vm5185_vm4, %v5788_v49, %v5790_v12  ;;  %v7917_v58 = vsel %vm4940_vm3, %v6094_v17, %v6095_v30  ;;  %v6339_v10 = vrot.slane %v6227_v56, 2 }
 0x179   : > { %10084 = vst [vmem:[#allocation25_spill] sm:$0xff] %v7911_v5  ;;  %10085 = vst [vmem:[#allocation26_spill] sm:$0xff] %v7914_v18  ;;  %v7920_v6 = vsel %vm4940_vm3, %v6095_v30, %v6097_v60  ;;  %v7922_v62 = vadd.f32 %v5238_v48, %v5073_v19  ;;  %v7924_v59 = vadd.f32 %v5240_v27, %v5074_v20  ;;  %v2921_v22 = vadd.f32 1.0, %v2880_v57 }
 0x17a   : > { %10086 = vst [vmem:[#allocation27_spill] sm:$0xff] %v7917_v58  ;;  %10087 = vst [vmem:[#allocation28_spill] sm:$0xff] %v7920_v6  ;;  %v3212_v7 = vcombine.high %v3002_v47, %v3002_v47  ;;  %v3219_v54 = vrot.slane %v3002_v47, %v7489_v15  ;;  %v2937_v53 = vadd.f32 1.0, %v2896_v36  ;;  %v2897_v41 = vmul.f32 %v6919_v52, %v7763_v3 }
 0x17b   : > { %v7929_v12 = vsel %vm5185_vm4, %v6338_v8, %v6339_v10  ;;  %v7932_v17 = vsel %vm5185_vm4, %v6339_v10, %v6341_v43  ;;  %v2898_v19 = vmul.f32 %v6921_v14, %v7807_v32  ;;  %v10090_v20 = vcombine.high %v7680_v29, %v7680_v29 }
 0x17c   : > { %10088 = vst [vmem:[#allocation29_spill] sm:$0xff] %v7929_v12  ;;  %10089 = vst [vmem:[#allocation30_spill] sm:$0xff] %v7932_v17  ;;  %v3226_v30 = vrot.slane %v3212_v7, %v7489_v15  ;;  %v3227_v48 = vcombine.high %v3219_v54, %v3219_v54  ;;  %v2962_v57 = vmul.f32 %v2921_v22, %v7759_v61  ;;  %v2938_v21 = vadd.f32 1.0, %v2897_v41  ;;  %v7966_v22 = vpop.f32.mrb[28].mxu0 }
 0x17d   : > { %v4098_v60 = vcombine.low %v10090_v20, %v3219_v54  ;;  %v2978_v36 = vmul.f32 %v2937_v53, %v7724_v63  ;;  %v3500_v8 = vcombine.high %v7851_v31, %v7851_v31  ;;  %v2939_v43 = vadd.f32 1.0, %v2898_v19  ;;  %10091 = vst [vmem:[#allocation31_spill] sm:$0xff] %v7966_v22 }
 0x17e   : > { %v3228_v50 = vcombine.high %v3226_v30, %v3226_v30  ;;  %v4099_v51 = vcombine.low %v3227_v48, %v3226_v30  ;;  %v3003_v52 = vmul.f32 0.5, %v2962_v57  ;;  %v2979_v56 = vmul.f32 %v2938_v21, %v7763_v3  ;;  %v6787_v48 = vpop.f32.mrb[29].mxu0 }
 0x17f   : > { %v7943_v39 = vmul.f32 0.5, %v2978_v36  ;;  %v4106_v33 = vrot.slane %v4098_v60, %v7489_v15  ;;  %v2980_v61 = vmul.f32 %v2939_v43, %v7807_v32  ;;  %v10093_v48 = vrot.slane %v7775_v26, 2 }
 0x180   : > { %v4121_v29 = vrot.slane %v3228_v50, %v7489_v15  ;;  %v4113_v63 = vrot.slane %v4099_v51, %v7489_v15  ;;  %v3229_v47 = vcombine.high %v3003_v52, %v3003_v52  ;;  %v3236_v40 = vrot.slane %v3003_v52, %v7489_v15 }
 0x181   : > { %v3501_v49 = vcombine.high %v7943_v39, %v7943_v39  ;;  %v7957_v13 = vrot.slane %v7943_v39, %v7489_v15  ;;  %v7959_v14 = vmul.f32 0.5, %v2979_v56  ;;  %v7961_v3 = vmul.f32 0.5, %v2980_v61 }
 0x182   : > { %v4761_v27 = vsel %vm3903_vm2, %v4121_v29, 0.0  ;;  %v4114_v32 = vcombine.low %v4106_v33, %v4113_v63  ;;  %v3243_v19 = vrot.slane %v3229_v47, %v7489_v15 }
 0x183   : > { %v4855_v10 = vmul.f32 %v7465_v23, %v4761_v27  ;;  %v5100_v7 = vmul.f32 %v7481_v11, %v4761_v27  ;;  %v5410_v54 = vmul.f32 %v7517_v45, %v4761_v27  ;;  %v5654_v53 = vmul.f32 %v7546_v28, %v4761_v27 }
 0x184   : > { %v5963_v41 = vmul.f32 %v7556_v35, %v4761_v27  ;;  %v6207_v30 = vmul.f32 %v7629_v1, %v4761_v27  ;;  %v4815_v20 = vmul.f32 %v10072_v44, %v4114_v32  ;;  %v4854_v60 = vmul.f32 %v7465_v23, %v4114_v32  ;;  %v7981_v27 = vpop.eup %6922 }
 0x185   : > { %v4959_v57 = vrot.slane %v4855_v10, 1  ;;  %v5099_v36 = vmul.f32 %v7481_v11, %v4114_v32  ;;  %v5204_v50 = vrot.slane %v5100_v7, 2  ;;  %v5339_v21 = vmul.f32 %v7512_v37, %v4114_v32 }
 0x186   : > { %v5409_v43 = vmul.f32 %v7517_v45, %v4114_v32  ;;  %v5511_v51 = vrot.slane %v5410_v54, 1  ;;  %v4957_v52 = vrot.slane %v4854_v60, 1  ;;  %v5653_v33 = vmul.f32 %v7546_v28, %v4114_v32 }
 0x187   : > { %v5202_v39 = vrot.slane %v5099_v36, 2  ;;  %v5755_v29 = vrot.slane %v5654_v53, 2  ;;  %v5371_v56 = vadd.f32 %v5339_v21, %v7708_v0  ;;  %v5893_v63 = vmul.f32 %v7552_v34, %v4114_v32 }
 0x188   : > { %v5509_v61 = vrot.slane %v5409_v43, 1  ;;  %v5962_v47 = vmul.f32 %v7556_v35, %v4114_v32  ;;  %v10092_v10 = vrot.slane %v7766_v25, 1  ;;  %v4960_v54 = vsel %vm4940_vm3, %v4957_v52, %v4959_v57 }
 0x189   : > { %v7990_v60 = vsel %vm5185_vm4, %v10093_v48, %v5202_v39  ;;  %v7993_v0 = vsel %vm5185_vm4, %v5202_v39, %v5204_v50  ;;  %v7998_v36 = vadd.f32 %v4960_v54, %v4815_v20  ;;  %v10094_v21 = vrot.slane %v7778_v55, 1 }
 0x18a   : > { %v4958_v7 = vsel %vm4940_vm3, %v10092_v10, %v4957_v52  ;;  %v5512_v43 = vsel %vm4940_vm3, %v5509_v61, %v5511_v51  ;;  %v5753_v52 = vrot.slane %v5653_v33, 2  ;;  %v5925_v50 = vadd.f32 %v5893_v63, %v7713_v42 }
 0x18b   : > { %v7996_v53 = vadd.f32 %v4958_v7, %v7796_v9  ;;  %v5510_v25 = vsel %vm4940_vm3, %v10094_v21, %v5509_v61  ;;  %v8007_v26 = vadd.f32 %v5512_v43, %v5371_v56  ;;  %v6060_v39 = vrot.slane %v5962_v47, 1  ;;  %v10099_v61 = vld [vmem:[#allocation19_spill] sm:$0xff] }
 0x18c   : > { %v8005_v57 = vadd.f32 %v5510_v25, %v7768_v2  ;;  %v6062_v10 = vrot.slane %v5963_v41, 1  ;;  %v8011_v9 = vmul.f32 %v7629_v1, %v4114_v32  ;;  %v6306_v20 = vrot.slane %v6207_v30, 2 }
 0x18d   : > { %10095 = vst [vmem:[#allocation32_spill] sm:$0xff] %v8007_v26  ;;  %v10097_v55 = vrot.slane %v7784_v16, 2  ;;  %v8019_v51 = vsel %vm5185_vm4, %v5753_v52, %v5755_v29  ;;  %v3244_v2 = vcombine.high %v3236_v40, %v3236_v40  ;;  %v3245_v56 = vcombine.high %v3243_v19, %v3243_v19  ;;  %v8029_v16 = vpop.f32.mrb[20].mxu1 }
 0x18e   : > { %10096 = vst [vmem:[#allocation33_spill] sm:$0xff] %v8011_v9  ;;  %10098 = vst [vmem:[#allocation34_spill] sm:$0xff] %v8019_v51  ;;  %v10100_v33 = vrot.slane %v10099_v61, 1  ;;  %v6063_v41 = vsel %vm4940_vm3, %v6060_v39, %v6062_v10  ;;  %v9989_v32 = vrot.slane %v8011_v9, 2  ;;  %v3515_v30 = vrot.slane %v3501_v49, %v7489_v15  ;;  %v6823_v48 = vpop.f32.mrb[21].mxu1 }
 0x18f   : > { %v8016_v7 = vsel %vm5185_vm4, %v10097_v55, %v5753_v52  ;;  %10102 = vst [vmem:[#allocation35_spill] sm:$0xff] %v8029_v16  ;;  %v6169_v63 = vadd.f32 %v6063_v41, %v5925_v50  ;;  %v4122_v47 = vcombine.low %v3236_v40, %v3244_v2  ;;  %v4123_v54 = vcombine.low %v3243_v19, %v3245_v56  ;;  %v8176_v46 = vpop.f32.mrb[22].mxu1 }
 0x190   : > { %v8024_v42 = vsel %vm4940_vm3, %v10100_v33, %v6060_v39  ;;  %v3516_v29 = vcombine.high %v7957_v13, %v7957_v13  ;;  %v6307_v21 = vsel %vm5185_vm4, %v9989_v32, %v6306_v20  ;;  %v4409_v25 = vcombine.low %v3500_v8, %v7957_v13  ;;  %v10104_v20 = vld [vmem:[#allocation10_spill] sm:$0xff]  ;;  %v8054_v8 = vld [vmem:[%s9970_s2] ss:$0 sm:$0xff]  ;;  %v10106_v13 = vld [vmem:[#allocation9_spill] sm:$0xff]  ;;  %10119 = vst [vmem:[#allocation43_spill] sm:$0xff] %v8176_v46 }
 0x191   : > { %10101 = vst [vmem:[#allocation19_spill] sm:$0xff] %v8024_v42  ;;  %v3517_v43 = vcombine.high %v3515_v30, %v3515_v30  ;;  %v3518_v49 = vcombine.high %v7959_v14, %v7959_v14  ;;  %v8042_v52 = vadd.f32 %v6307_v21, %v6169_v63  ;;  %v4130_v40 = vrot.slane %v4122_v47, %v7489_v15  ;;  %v10108_v33 = vld [vmem:[#allocation17_spill] sm:$0xff]  ;;  %v10114_v32 = vld [vmem:[#allocation8_spill] sm:$0xff]  ;;  %v6824_v42 = vpop.f32.mrb[23].mxu1 }
 0x192   : > { %v4137_v19 = vrot.slane %v4123_v54, %v7489_v15  ;;  %v4410_v50 = vcombine.low %v3516_v29, %v3515_v30  ;;  %v4417_v39 = vrot.slane %v4409_v25, %v7489_v15  ;;  %v3525_v10 = vrot.slane %v7959_v14, %v7489_v15  ;;  %10105 = vst [vmem:[#allocation10_spill] sm:$0xff] %v8054_v8  ;;  %v8075_v25 = vpop.f32.mrb[30].mxu0 }
 0x193   : > { %10103 = vst [vmem:[#allocation36_spill] sm:$0xff] %v8042_v52  ;;  %v2776_v31 = vmul.f32 %v10104_v20, %v10104_v20  ;;  %v8058_v55 = vadd.f32 %v8054_v8, %v10106_v13  ;;  %v3535_v61 = vcombine.high %v7961_v3, %v7961_v3  ;;  %v3542_v14 = vrot.slane %v7961_v3, %v7489_v15 }
 0x194   : > { %v4138_v2 = vcombine.low %v4130_v40, %v4137_v19  ;;  %v4424_v56 = vrot.slane %v4410_v50, %v7489_v15  ;;  %v8067_v41 = vmul.f32 %v7465_v23, %v10108_v33  ;;  %v4426_v30 = vcombine.low %v3517_v43, %v3525_v10  ;;  %10112 = vst [vmem:[#allocation38_spill] sm:$0xff] %v8075_v25  ;;  %v6788_v50 = vpop.f32.mrb[31].mxu0 }
 0x195   : > { %10107 = vst [vmem:[#allocation9_spill] sm:$0xff] %v8058_v55  ;;  %v3532_v21 = vrot.slane %v3518_v49, %v7489_v15  ;;  %v8079_v40 = vmul.f32 %v8042_v52, %v8042_v52  ;;  %v3533_v3 = vcombine.high %v3525_v10, %v3525_v10  ;;  %v2817_v19 = vadd.f32 1.0, %v2776_v31 }
 0x196   : > { %10109 = vst [vmem:[#allocation37_spill] sm:$0xff] %v8067_v41  ;;  %v8072_v29 = vsel %vm3844_vm1, %v4138_v2, 0.0  ;;  %v4425_v48 = vcombine.low %v4417_v39, %v4424_v56  ;;  %v2759_v43 = vmul.f32 %v8058_v55, %v8058_v55  ;;  %v3549_v47 = vrot.slane %v3535_v61, %v7489_v15 }
 0x197   : > { %10113 = vst [vmem:[#allocation39_spill] sm:$0xff] %v8079_v40  ;;  %v3534_v13 = vcombine.high %v3532_v21, %v3532_v21  ;;  %v3550_v2 = vcombine.high %v3542_v14, %v3542_v14  ;;  %v2881_v39 = vmul.f32 %v7981_v27, %v10114_v32  ;;  %v8088_v49 = vmul.f32 %v10072_v44, %v8072_v29 }
 0x198   : > { %v8092_v56 = vmul.f32 %v7465_v23, %v8072_v29  ;;  %v8096_v10 = vmul.f32 %v7481_v11, %v8072_v29  ;;  %v8100_v31 = vsel %vm3844_vm1, %v4425_v48, 0.0  ;;  %v8104_v61 = vmul.f32 %v7512_v37, %v8072_v29 }
 0x199   : > { %10115 = vst [vmem:[#allocation8_spill] sm:$0xff] %v8088_v49  ;;  %10116 = vst [vmem:[#allocation40_spill] sm:$0xff] %v8100_v31  ;;  %v8108_v27 = vmul.f32 %v7517_v45, %v8072_v29  ;;  %v8112_v50 = vmul.f32 %v7546_v28, %v8072_v29  ;;  %v8116_v17 = vmul.f32 %v7552_v34, %v8072_v29  ;;  %6924 = vrsqrt.f32 %v2817_v19 }
 0x19a   : > { %v8120_v48 = vmul.f32 %v7556_v35, %v8072_v29  ;;  %v4877_v6 = vmul.f32 %v7465_v23, %v8100_v31  ;;  %v5122_v18 = vmul.f32 %v7481_v11, %v8100_v31  ;;  %v5354_v12 = vmul.f32 %v7512_v37, %v8100_v31 }
 0x19b   : > { %10117 = vst [vmem:[#allocation41_spill] sm:$0xff] %v8116_v17  ;;  %v4830_v5 = vmul.f32 %v10072_v44, %v8100_v31  ;;  %v5432_v4 = vmul.f32 %v7517_v45, %v8100_v31  ;;  %v8134_v58 = vmul.f32 %v7546_v28, %v8100_v31  ;;  %v8138_v38 = vmul.f32 %v7556_v35, %v8100_v31 }
 0x19c   : > { %v4996_v25 = vrot.slane %v4877_v6, 1  ;;  %v5241_v16 = vrot.slane %v5122_v18, 2  ;;  %v5386_v22 = vadd.f32 %v5354_v12, %v7922_v62  ;;  %v8143_v24 = vmul.f32 %v7629_v1, %v8100_v31 }
 0x19d   : > { %v5548_v41 = vrot.slane %v5432_v4, 1  ;;  %v5792_v33 = vrot.slane %v8134_v58, 2  ;;  %v6099_v40 = vrot.slane %v8138_v38, 1  ;;  %v4427_v49 = vcombine.low %v3533_v3, %v3532_v21 }
 0x19e   : > { %v4434_v55 = vrot.slane %v4426_v30, %v7489_v15  ;;  %v4449_v8 = vrot.slane %v3534_v13, %v7489_v15  ;;  %v3551_v6 = vcombine.high %v3549_v47, %v3549_v47  ;;  %v4450_v62 = vcombine.low %v3542_v14, %v3550_v2 }
 0x19f   : > { %v4441_v18 = vrot.slane %v4427_v49, %v7489_v15  ;;  %v2922_v12 = vadd.f32 1.0, %v2881_v39  ;;  %v2800_v58 = vadd.f32 1.0, %v2759_v43  ;;  %v5304_v38 = vadd.f32 %v7990_v60, %v7996_v53 }
 0x1a0   : > { %v4785_v4 = vsel %vm3903_vm2, %v4449_v8, 0.0  ;;  %v4451_v31 = vcombine.low %v3549_v47, %v3551_v6  ;;  %v4458_v8 = vrot.slane %v4450_v62, %v7489_v15 }
 0x1a1   : > { %v8155_v21 = vcombine.low %v4434_v55, %v4441_v18  ;;  %v4879_v30 = vmul.f32 %v7465_v23, %v4785_v4  ;;  %v5124_v3 = vmul.f32 %v7481_v11, %v4785_v4  ;;  %v5434_v13 = vmul.f32 %v7517_v45, %v4785_v4 }
 0x1a2   : > { %v5678_v14 = vmul.f32 %v7546_v28, %v4785_v4  ;;  %v5987_v19 = vmul.f32 %v7556_v35, %v4785_v4  ;;  %v6231_v2 = vmul.f32 %v7629_v1, %v4785_v4  ;;  %6926 = vrsqrt.f32 %v2800_v58  ;;  %v10130_v58 = vld [vmem:[#allocation33_spill] sm:$0xff] }
 0x1a3   : > { %10118 = vst [vmem:[#allocation42_spill] sm:$0xff] %v8155_v21  ;;  %v4831_v47 = vmul.f32 %v10072_v44, %v8155_v21  ;;  %v4878_v60 = vmul.f32 %v7465_v23, %v8155_v21  ;;  %v4999_v53 = vrot.slane %v4879_v30, 1  ;;  %v5123_v55 = vmul.f32 %v7481_v11, %v8155_v21 }
 0x1a4   : > { %v5244_v43 = vrot.slane %v5124_v3, 2  ;;  %v5355_v39 = vmul.f32 %v7512_v37, %v8155_v21  ;;  %v5433_v49 = vmul.f32 %v7517_v45, %v8155_v21  ;;  %v5551_v6 = vrot.slane %v5434_v13, 1 }
 0x1a5   : > { %v4997_v18 = vrot.slane %v4878_v60, 1  ;;  %v5242_v62 = vrot.slane %v5123_v55, 2  ;;  %v5677_v4 = vmul.f32 %v7546_v28, %v8155_v21  ;;  %v5795_v52 = vrot.slane %v5678_v14, 2 }
 0x1a6   : > { %v5387_v30 = vadd.f32 %v5355_v39, %v7924_v59  ;;  %v5549_v63 = vrot.slane %v5433_v49, 1  ;;  %v5986_v3 = vmul.f32 %v7556_v35, %v8155_v21  ;;  %v6102_v9 = vrot.slane %v5987_v19, 1  ;;  %v6925_v39 = vpop.eup %6924 }
 0x1a7   : > { %v4998_v17 = vsel %vm4940_vm3, %v4996_v25, %v4997_v18  ;;  %v5000_v13 = vsel %vm4940_vm3, %v4997_v18, %v4999_v53  ;;  %v5243_v60 = vsel %vm5185_vm4, %v5241_v16, %v5242_v62  ;;  %v5245_v55 = vsel %vm5185_vm4, %v5242_v62, %v5244_v43 }
 0x1a8   : > { %v5075_v51 = vadd.f32 %v4998_v17, %v4830_v5  ;;  %v5076_v14 = vadd.f32 %v5000_v13, %v4831_v47  ;;  %v5550_v46 = vsel %vm4940_vm3, %v5548_v41, %v5549_v63  ;;  %v5552_v59 = vsel %vm4940_vm3, %v5549_v63, %v5551_v6 }
 0x1a9   : > { %v5630_v49 = vadd.f32 %v5550_v46, %v5386_v22  ;;  %v8187_v26 = vadd.f32 %v5552_v59, %v5387_v30  ;;  %v5793_v19 = vrot.slane %v5677_v4, 2  ;;  %v6100_v42 = vrot.slane %v5986_v3, 1 }
 0x1aa   : > { %v6230_v25 = vmul.f32 %v7629_v1, %v8155_v21  ;;  %v6346_v53 = vrot.slane %v6231_v2, 2  ;;  %v4465_v16 = vrot.slane %v4451_v31, %v7489_v15  ;;  %v2963_v43 = vmul.f32 %v2922_v12, %v10114_v32 }
 0x1ab   : > { %v5794_v5 = vsel %vm5185_vm4, %v5792_v33, %v5793_v19  ;;  %v5796_v17 = vsel %vm5185_vm4, %v5793_v19, %v5795_v52  ;;  %v8196_v41 = vsel %vm4940_vm3, %v6099_v40, %v6100_v42  ;;  %v8199_v46 = vsel %vm4940_vm3, %v6100_v42, %v6102_v9  ;;  %v10125_v42 = vld [vmem:[#allocation32_spill] sm:$0xff]  ;;  %v10134_v9 = vld [vmem:[#allocation11_spill] sm:$0xff] }
 0x1ac   : > { %10120 = vst [vmem:[#allocation44_spill] sm:$0xff] %v8196_v41  ;;  %10121 = vst [vmem:[#allocation45_spill] sm:$0xff] %v8199_v46  ;;  %v8203_v22 = vmul.f32 %v7629_v1, %v8072_v29  ;;  %v6344_v63 = vrot.slane %v6230_v25, 2  ;;  %v4466_v2 = vcombine.low %v4458_v8, %v4465_v16  ;;  %v3004_v47 = vmul.f32 0.5, %v2963_v43  ;;  %v10126_v25 = vld [vmem:[#allocation34_spill] sm:$0xff]  ;;  %v10127_v43 = vld [vmem:[#allocation41_spill] sm:$0xff] }
 0x1ad   : > { %v8207_v32 = vadd.f32 %v7993_v0, %v7998_v36  ;;  %v8210_v52 = vadd.f32 %v8104_v61, %v5304_v38  ;;  %v5858_v33 = vadd.f32 %v8016_v7, %v8005_v57  ;;  %v10122_v40 = vrot.slane %v8143_v24, 2 }
 0x1ae   : > { %v8221_v31 = vsel %vm5185_vm4, %v6344_v63, %v6346_v53  ;;  %v3246_v12 = vcombine.high %v3004_v47, %v3004_v47  ;;  %v8227_v61 = vsel %vm3844_vm1, %v4466_v2, 0.0  ;;  %v2899_v57 = vmul.f32 %v6925_v39, %v10104_v20  ;;  %v10128_v2 = vld [vmem:[#allocation18_spill] sm:$0xff] }
 0x1af   : > { %v8218_v29 = vsel %vm5185_vm4, %v10122_v40, %v6344_v63  ;;  %10124 = vst [vmem:[#allocation47_spill] sm:$0xff] %v8221_v31  ;;  %v8235_v38 = vmul.f32 %v10072_v44, %v8227_v61  ;;  %v8239_v8 = vmul.f32 %v7465_v23, %v8227_v61  ;;  %v8243_v6 = vmul.f32 %v7481_v11, %v8227_v61  ;;  %v10135_v31 = vld [vmem:[#allocation10_spill] sm:$0xff] }
 0x1b0   : > { %10123 = vst [vmem:[#allocation46_spill] sm:$0xff] %v8218_v29  ;;  %v5356_v18 = vmul.f32 %v7512_v37, %v8227_v61  ;;  %v3253_v62 = vrot.slane %v3004_v47, %v7489_v15  ;;  %v8250_v4 = vmul.f32 %v7517_v45, %v8227_v61  ;;  %v8254_v30 = vmul.f32 %v7546_v28, %v8227_v61  ;;  %v10129_v47 = vld [vmem:[#allocation19_spill] sm:$0xff] }
 0x1b1   : > { %v5910_v3 = vmul.f32 %v7552_v34, %v8227_v61  ;;  %v3260_v13 = vrot.slane %v3246_v12, %v7489_v15  ;;  %v8261_v59 = vmul.f32 %v7556_v35, %v8227_v61  ;;  %v2940_v19 = vadd.f32 1.0, %v2899_v57  ;;  %v10132_v12 = vld [vmem:[#allocation3_spill] sm:$0xff] }
 0x1b2   : > { %v3261_v39 = vcombine.high %v3253_v62, %v3253_v62  ;;  %v8265_v53 = vadd.f32 %v10126_v25, %v10125_v42  ;;  %v8268_v63 = vadd.f32 %v10127_v43, %v5858_v33  ;;  %v6168_v40 = vadd.f32 %v10129_v47, %v10128_v2  ;;  %v8284_v2 = vpop.f32.mrb[32].mxu0 }
 0x1b3   : > { %v3262_v16 = vcombine.high %v3260_v13, %v3260_v13  ;;  %v10131_v24 = vrot.slane %v10130_v58, 2  ;;  %v10133_v7 = vrot.slane %v10132_v12, 2  ;;  %v2981_v57 = vmul.f32 %v2940_v19, %v10104_v20  ;;  %v6927_v58 = vpop.eup %6926 }
 0x1b4   : > { %v4139_v0 = vcombine.low %v3253_v62, %v3261_v39  ;;  %v8280_v42 = vadd.f32 %v10135_v31, %v10134_v9  ;;  %v5320_v25 = vadd.f32 %v5243_v60, %v5075_v51  ;;  %v8282_v43 = vadd.f32 %v5245_v55, %v5076_v14  ;;  %v10136_v51 = vld [vmem:[#allocation9_spill] sm:$0xff] }
 0x1b5   : > { %v6305_v36 = vsel %vm5185_vm4, %v10133_v7, %v10131_v24  ;;  %v4140_v29 = vcombine.low %v3260_v13, %v3262_v16  ;;  %v5874_v46 = vadd.f32 %v5794_v5, %v5630_v49  ;;  %v3022_v12 = vmul.f32 0.5, %v2981_v57  ;;  %v6791_v24 = vpop.f32.mrb[33].mxu0  ;;  %v10139_v16 = vld [vmem:[#allocation15_spill] sm:$0xff] }
 0x1b6   : > { %v6412_v33 = vadd.f32 %v6305_v36, %v6168_v40  ;;  %v4147_v47 = vrot.slane %v4139_v0, %v7489_v15  ;;  %v2777_v7 = vmul.f32 %v8280_v42, %v8280_v42  ;;  %v8289_v20 = vadd.f32 %v5356_v18, %v5320_v25  ;;  %v10137_v36 = vld [vmem:[#allocation14_spill] sm:$0xff]  ;;  %v10138_v18 = vld [vmem:[#allocation36_spill] sm:$0xff] }
 0x1b7   : > { %v4154_v9 = vrot.slane %v4140_v29, %v7489_v15  ;;  %v2882_v60 = vmul.f32 %v6927_v58, %v10136_v51  ;;  %v3552_v5 = vcombine.high %v3022_v12, %v3022_v12  ;;  %v3559_v62 = vrot.slane %v3022_v12, %v7489_v15 }
 0x1b8   : > { %v6443_v55 = vadd.f32 %v10137_v36, %v6412_v33  ;;  %v6481_v14 = vmul.f32 %v6412_v33, %v6412_v33  ;;  %v8297_v0 = vadd.f32 %v5796_v17, %v8187_v26  ;;  %v2818_v25 = vadd.f32 1.0, %v2777_v7 }
 0x1b9   : > { %v4155_v13 = vcombine.low %v4147_v47, %v4154_v9  ;;  %v2923_v39 = vadd.f32 1.0, %v2882_v60  ;;  %v3566_v40 = vrot.slane %v3552_v5, %v7489_v15  ;;  %v3567_v57 = vcombine.high %v3559_v62, %v3559_v62 }
 0x1ba   : > { %v8300_v19 = vadd.f32 %v6443_v55, %v10138_v18  ;;  %v8303_v29 = vadd.f32 %v10139_v16, %v6481_v14  ;;  %v8306_v33 = vadd.f32 %v5910_v3, %v5874_v46  ;;  %6928 = vrsqrt.f32 %v2818_v25  ;;  %v10142_v25 = vld [vmem:[#allocation8_spill] sm:$0xff] }
 0x1bb   : > { %v2964_v12 = vmul.f32 %v2923_v39, %v10136_v51  ;;  %v4857_v26 = vmul.f32 %v7465_v23, %v4155_v13  ;;  %v5102_v17 = vmul.f32 %v7481_v11, %v4155_v13  ;;  %v3568_v47 = vcombine.high %v3566_v40, %v3566_v40 }
 0x1bc   : > { %v4467_v24 = vcombine.low %v3559_v62, %v3567_v57  ;;  %v5341_v9 = vmul.f32 %v7512_v37, %v4155_v13  ;;  %v5412_v60 = vmul.f32 %v7517_v45, %v4155_v13  ;;  %v5656_v46 = vmul.f32 %v7546_v28, %v4155_v13  ;;  %v8332_v57 = vpop.f32.mrb[34].mxu0 }
 0x1bd   : > { %v8314_v36 = vmul.f32 0.5, %v2964_v12  ;;  %v4962_v55 = vrot.slane %v4857_v26, 1  ;;  %v5207_v7 = vrot.slane %v5102_v17, 2  ;;  %v4468_v3 = vcombine.low %v3566_v40, %v3568_v47  ;;  %v6792_v47 = vpop.f32.mrb[35].mxu0 }
 0x1be   : > { %v5373_v14 = vadd.f32 %v5341_v9, %v8207_v32  ;;  %v5514_v51 = vrot.slane %v5412_v60, 1  ;;  %v8320_v5 = vmul.f32 %v7629_v1, %v8227_v61  ;;  %v10140_v39 = vrot.slane %v8092_v56, 1 }
 0x1bf   : > { %v8324_v62 = vrot.slane %v8314_v36, %v7489_v15  ;;  %v10141_v16 = vrot.slane %v8096_v10, 2  ;;  %v10143_v61 = vrot.slane %v8108_v27, 1  ;;  %v5758_v17 = vrot.slane %v5656_v46, 2 }
 0x1c0   : > { %v4963_v18 = vsel %vm4940_vm3, %v10140_v39, %v4962_v55  ;;  %v4475_v56 = vrot.slane %v4467_v24, %v7489_v15  ;;  %v4482_v9 = vrot.slane %v4468_v3, %v7489_v15  ;;  %v5895_v46 = vmul.f32 %v7552_v34, %v4155_v13 }
 0x1c1   : > { %v5208_v40 = vsel %vm5185_vm4, %v10141_v16, %v5207_v7  ;;  %v5061_v12 = vadd.f32 %v4963_v18, %v10142_v25  ;;  %v5515_v26 = vsel %vm4940_vm3, %v10143_v61, %v5514_v51  ;;  %v4162_v10 = vrot.slane %v8324_v62, %v7489_v15 }
 0x1c2   : > { %v5616_v60 = vadd.f32 %v5515_v26, %v8210_v52  ;;  %v10145_v18 = vrot.slane %v8112_v50, 2  ;;  %v4817_v3 = vmul.f32 %v10072_v44, %v4155_v13  ;;  %v5965_v47 = vmul.f32 %v7556_v35, %v4155_v13 }
 0x1c3   : > { %v8345_v16 = vadd.f32 %v5208_v40, %v5061_v12  ;;  %v4764_v24 = vsel %vm3903_vm2, %v4162_v10, 0.0  ;;  %v8361_v26 = vcombine.low %v4475_v56, %v4482_v9  ;;  %v10148_v49 = vrot.slane %v8120_v48, 1 }
 0x1c4   : > { %v5759_v27 = vsel %vm5185_vm4, %v10145_v18, %v5758_v17  ;;  %v4858_v52 = vmul.f32 %v7465_v23, %v4764_v24  ;;  %v5103_v40 = vmul.f32 %v7481_v11, %v4764_v24  ;;  %v5413_v12 = vmul.f32 %v7517_v45, %v4764_v24  ;;  %v6929_v56 = vpop.eup %6928 }
 0x1c5   : > { %10144 = vst [vmem:[#allocation32_spill] sm:$0xff] %v8345_v16  ;;  %v8354_v61 = vadd.f32 %v5759_v27, %v5616_v60  ;;  %v5657_v50 = vmul.f32 %v7546_v28, %v4764_v24  ;;  %v5927_v18 = vadd.f32 %v5895_v46, %v8265_v53  ;;  %v5966_v10 = vmul.f32 %v7556_v35, %v4764_v24 }
 0x1c6   : > { %v6065_v39 = vrot.slane %v5965_v47, 1  ;;  %v4964_v32 = vrot.slane %v4858_v52, 1  ;;  %v5209_v60 = vrot.slane %v5103_v40, 2  ;;  %v5516_v27 = vrot.slane %v5413_v12, 1 }
 0x1c7   : > { %10147 = vst [vmem:[#allocation34_spill] sm:$0xff] %v8354_v61  ;;  %v5760_v58 = vrot.slane %v5657_v50, 2  ;;  %v6067_v21 = vrot.slane %v5966_v10, 1  ;;  %v6209_v61 = vmul.f32 %v7629_v1, %v4155_v13  ;;  %v6210_v16 = vmul.f32 %v7629_v1, %v4764_v24  ;;  %v10149_v10 = vld [vmem:[#allocation39_spill] sm:$0xff] }
 0x1c8   : > { %v6066_v41 = vsel %vm4940_vm3, %v10148_v49, %v6065_v39  ;;  %v4965_v9 = vsel %vm4940_vm3, %v4962_v55, %v4964_v32  ;;  %v5210_v53 = vsel %vm5185_vm4, %v5207_v7, %v5209_v60  ;;  %v5517_v46 = vsel %vm4940_vm3, %v5514_v51, %v5516_v27 }
 0x1c9   : > { %v5761_v47 = vsel %vm5185_vm4, %v5758_v17, %v5760_v58  ;;  %v5062_v52 = vadd.f32 %v4965_v9, %v4817_v3  ;;  %v5617_v40 = vadd.f32 %v5517_v46, %v5373_v14  ;;  %v6068_v48 = vsel %vm4940_vm3, %v6065_v39, %v6067_v21 }
 0x1ca   : > { %v6170_v49 = vadd.f32 %v6066_v41, %v8268_v63  ;;  %v6171_v12 = vadd.f32 %v6068_v48, %v5927_v18  ;;  %v6309_v50 = vrot.slane %v6209_v61, 2  ;;  %v6311_v13 = vrot.slane %v6210_v16, 2  ;;  %v8398_v16 = vpop.f32.mrb[24].mxu1 }
 0x1cb   : > { %v6513_v24 = vadd.f32 %v8303_v29, %v10149_v10  ;;  %v6104_v55 = vrot.slane %v8261_v59, 1  ;;  %v8379_v32 = vadd.f32 %v5210_v53, %v5062_v52  ;;  %v8381_v7 = vadd.f32 %v5761_v47, %v5617_v40  ;;  %v6827_v60 = vpop.f32.mrb[25].mxu1 }
 0x1cc   : > { %v2900_v58 = vmul.f32 %v6929_v56, %v8280_v42  ;;  %v10150_v14 = vrot.slane %v8203_v22, 2  ;;  %v6312_v41 = vsel %vm5185_vm4, %v6309_v50, %v6311_v13  ;;  %v8390_v63 = vmul.f32 %v7465_v23, %v8361_v26 }
 0x1cd   : > { %v8394_v29 = vmul.f32 %v7481_v11, %v8361_v26  ;;  %v6415_v51 = vadd.f32 %v6312_v41, %v6171_v12  ;;  %v5357_v39 = vmul.f32 %v7512_v37, %v8361_v26  ;;  %v5436_v61 = vmul.f32 %v7517_v45, %v8361_v26  ;;  %v8415_v12 = vpop.f32.mrb[26].mxu1 }
 0x1ce   : > { %v6310_v21 = vsel %vm5185_vm4, %v10150_v14, %v6309_v50  ;;  %v2941_v17 = vadd.f32 1.0, %v2900_v58  ;;  %v5002_v22 = vrot.slane %v8390_v63, 1  ;;  %v5680_v18 = vmul.f32 %v7546_v28, %v8361_v26  ;;  %v6828_v10 = vpop.f32.mrb[27].mxu1 }
 0x1cf   : > { %v6414_v59 = vadd.f32 %v6310_v21, %v6170_v49  ;;  %v5247_v3 = vrot.slane %v8394_v29, 2  ;;  %v6484_v9 = vmul.f32 %v6415_v51, %v6415_v51  ;;  %v10151_v46 = vrot.slane %v8239_v8, 1 }
 0x1d0   : > { %v2982_v53 = vmul.f32 %v2941_v17, %v8280_v42  ;;  %v10152_v52 = vrot.slane %v8243_v6, 2  ;;  %v5389_v48 = vadd.f32 %v5357_v39, %v8282_v43  ;;  %v5554_v49 = vrot.slane %v5436_v61, 1 }
 0x1d1   : > { %v6445_v27 = vadd.f32 %v8300_v19, %v6414_v59  ;;  %v6483_v56 = vmul.f32 %v6414_v59, %v6414_v59  ;;  %v5003_v47 = vsel %vm4940_vm3, %v10151_v46, %v5002_v22  ;;  %v10153_v8 = vrot.slane %v8250_v4, 1 }
 0x1d2   : > { %v5248_v40 = vsel %vm5185_vm4, %v10152_v52, %v5247_v3  ;;  %v8419_v13 = vmul.f32 0.5, %v2982_v53  ;;  %v5077_v42 = vadd.f32 %v5003_v47, %v8235_v38  ;;  %v5798_v6 = vrot.slane %v5680_v18, 2  ;;  %v10158_v53 = vld [vmem:[#allocation12_spill] sm:$0xff] }
 0x1d3   : > { %v8417_v50 = vadd.f32 %v6445_v27, %v6415_v51  ;;  %v6514_v19 = vadd.f32 %v6513_v24, %v6483_v56  ;;  %v5555_v58 = vsel %vm4940_vm3, %v10153_v8, %v5554_v49  ;;  %v5911_v14 = vmul.f32 %v7552_v34, %v8361_v26  ;;  %v10155_v51 = vld [vmem:[#allocation17_spill] sm:$0xff] }
 0x1d4   : > { %v5989_v43 = vmul.f32 %v7556_v35, %v8361_v26  ;;  %v8433_v24 = vrot.slane %v8419_v13, %v7489_v15  ;;  %v8435_v41 = vadd.f32 %v5248_v40, %v5077_v42  ;;  %v5632_v38 = vadd.f32 %v5555_v58, %v8289_v20 }
 0x1d5   : > { %v8429_v21 = vadd.f32 %v6514_v19, %v6484_v9  ;;  %v10154_v4 = vrot.slane %v8254_v30, 2  ;;  %v5943_v29 = vadd.f32 %v5911_v14, %v8297_v0  ;;  %v8444_v17 = vmul.f32 %v7481_v11, %v10155_v51 }
 0x1d6   : > { %v6105_v59 = vrot.slane %v5989_v43, 1  ;;  %v6348_v39 = vrot.slane %v8320_v5, 2  ;;  %v4490_v61 = vrot.slane %v8433_v24, %v7489_v15  ;;  %v6233_v18 = vmul.f32 %v7629_v1, %v8361_v26 }
 0x1d7   : > { %v5799_v63 = vsel %vm5185_vm4, %v10154_v4, %v5798_v6  ;;  %10156 = vst [vmem:[#allocation41_spill] sm:$0xff] %v8444_v17  ;;  %v3263_v30 = vcombine.high %v8314_v36, %v8314_v36  ;;  %v8462_v46 = vadd.f32 %v10135_v31, %v10158_v53 }
 0x1d8   : > { %v8454_v27 = vadd.f32 %v5799_v63, %v5632_v38  ;;  %v6106_v0 = vsel %vm4940_vm3, %v6104_v55, %v6105_v59  ;;  %v4788_v56 = vsel %vm3903_vm2, %v4490_v61, 0.0  ;;  %v6349_v9 = vrot.slane %v6233_v18, 2 }
 0x1d9   : > { %v6186_v5 = vadd.f32 %v6106_v0, %v8306_v33  ;;  %v4882_v47 = vmul.f32 %v7465_v23, %v4788_v56  ;;  %v5127_v52 = vmul.f32 %v7481_v11, %v4788_v56  ;;  %v5437_v36 = vmul.f32 %v7517_v45, %v4788_v56 }
 0x1da   : > { %v5681_v40 = vmul.f32 %v7546_v28, %v4788_v56  ;;  %v4833_v55 = vmul.f32 %v10072_v44, %v8361_v26  ;;  %v5990_v19 = vmul.f32 %v7556_v35, %v4788_v56  ;;  %v6234_v33 = vmul.f32 %v7629_v1, %v4788_v56 }
 0x1db   : > { %v6350_v42 = vsel %vm5185_vm4, %v6348_v39, %v6349_v9  ;;  %v5004_v10 = vrot.slane %v4882_v47, 1  ;;  %v5249_v8 = vrot.slane %v5127_v52, 2  ;;  %v5556_v58 = vrot.slane %v5437_v36, 1  ;;  %v2654_v39 = vpop.f32.mrb[36].mxu0 }
 0x1dc   : > { %v5800_v14 = vrot.slane %v5681_v40, 2  ;;  %v6107_v43 = vrot.slane %v5990_v19, 1  ;;  %v6351_v38 = vrot.slane %v6234_v33, 2  ;;  %v8473_v4 = vadd.f32 %v6350_v42, %v6186_v5  ;;  %v6795_v5 = vpop.f32.mrb[37].mxu0  ;;  %v10161_v19 = vld [vmem:[#allocation16_spill] sm:$0xff]  ;;  %v10164_v33 = vld [vmem:[#allocation22_spill] sm:$0xff] }
 0x1dd   : > { %v2760_v63 = vmul.f32 %v8462_v46, %v8462_v46  ;;  %v5005_v61 = vsel %vm4940_vm3, %v5002_v22, %v5004_v10  ;;  %v5250_v26 = vsel %vm5185_vm4, %v5247_v3, %v5249_v8  ;;  %v5557_v18 = vsel %vm4940_vm3, %v5554_v49, %v5556_v58  ;;  %v10165_v10 = vld [vmem:[#allocation31_spill] sm:$0xff] }
 0x1de   : > { %10159 = vst [vmem:[#allocation18_spill] sm:$0xff] %v8473_v4  ;;  %v5801_v0 = vsel %vm5185_vm4, %v5798_v6, %v5800_v14  ;;  %v5078_v56 = vadd.f32 %v5005_v61, %v4833_v55  ;;  %v5633_v53 = vadd.f32 %v5557_v18, %v5389_v48  ;;  %v6108_v47 = vsel %vm4940_vm3, %v6105_v59, %v6107_v43  ;;  %v10162_v59 = vld [vmem:[#allocation20_spill] sm:$0xff]  ;;  %v10166_v58 = vld [vmem:[#allocation35_spill] sm:$0xff]  ;;  %v10167_v43 = vld [vmem:[#allocation38_spill] sm:$0xff] }
 0x1df   : > { %v6352_v52 = vsel %vm5185_vm4, %v6349_v9, %v6351_v38  ;;  %v8485_v36 = vmul.f32 %v7517_v45, %v10155_v51  ;;  %v6187_v40 = vadd.f32 %v6108_v47, %v5943_v29  ;;  %v2801_v22 = vadd.f32 1.0, %v2760_v63  ;;  %v10169_v18 = vld [vmem:[#allocation43_spill] sm:$0xff] }
 0x1e0   : > { %v8489_v3 = vadd.f32 %v10135_v31, %v10161_v19  ;;  %v8492_v49 = vrot.slane %v3263_v30, %v7489_v15  ;;  %v8494_v6 = vadd.f32 %v5250_v26, %v5078_v56  ;;  %v8496_v48 = vadd.f32 %v5801_v0, %v5633_v53 }
 0x1e1   : > { %10160 = vst [vmem:[#allocation19_spill] sm:$0xff] %v8485_v36  ;;  %v8500_v9 = vadd.f32 %v10135_v31, %v10162_v59  ;;  %v8502_v55 = vadd.f32 %v6352_v52, %v6187_v40  ;;  %6930 = vrsqrt.f32 %v2801_v22  ;;  %v8508_v42 = vadd.f32 %v10135_v31, %v10164_v33 }
 0x1e2   : > { %v2778_v29 = vmul.f32 %v8489_v3, %v8489_v3  ;;  %v8514_v8 = vadd.f32 %v10135_v31, %v10165_v10  ;;  %v8518_v14 = vadd.f32 %v10135_v31, %v10166_v58  ;;  %v8522_v38 = vadd.f32 %v10135_v31, %v10167_v43 }
 0x1e3   : > { %10163 = vst [vmem:[#allocation33_spill] sm:$0xff] %v8502_v55  ;;  %v2761_v30 = vmul.f32 %v8500_v9, %v8500_v9  ;;  %v3278_v63 = vcombine.high %v8324_v62, %v8324_v62  ;;  %v2779_v26 = vmul.f32 %v8508_v42, %v8508_v42  ;;  %v8530_v0 = vadd.f32 %v10135_v31, %v10169_v18 }
 0x1e4   : > { %10168 = vst [vmem:[#allocation3_spill] sm:$0xff] %v8522_v38  ;;  %v2819_v61 = vadd.f32 1.0, %v2778_v29  ;;  %v2762_v53 = vmul.f32 %v8514_v8, %v8514_v8  ;;  %v2780_v47 = vmul.f32 %v8518_v14, %v8518_v14  ;;  %v2763_v52 = vmul.f32 %v8522_v38, %v8522_v38  ;;  %v2726_v29 = vpop.f32.mrb[28].mxu1 }
 0x1e5   : > { %10170 = vst [vmem:[#allocation11_spill] sm:$0xff] %v8530_v0  ;;  %v2802_v56 = vadd.f32 1.0, %v2761_v30  ;;  %v3569_v62 = vcombine.high %v8419_v13, %v8419_v13  ;;  %v2820_v5 = vadd.f32 1.0, %v2779_v26  ;;  %v8542_v40 = vadd.f32 %v10135_v31, %v8284_v2  ;;  %v6831_v10 = vpop.f32.mrb[29].mxu1 }
 0x1e6   : > { %6932 = vrsqrt.f32 %v2819_v61  ;;  %v2803_v22 = vadd.f32 1.0, %v2762_v53  ;;  %v2821_v19 = vadd.f32 1.0, %v2780_v47  ;;  %v2804_v59 = vadd.f32 1.0, %v2763_v52 }
 0x1e7   : > { %10171 = vst [vmem:[#allocation10_spill] sm:$0xff] %v8542_v40  ;;  %6934 = vrsqrt.f32 %v2802_v56  ;;  %v8546_v33 = vmul.f32 %v7546_v28, %v10155_v51  ;;  %v3584_v30 = vcombine.high %v8433_v24, %v8433_v24  ;;  %v8552_v13 = vadd.f32 %v10135_v31, %v8332_v57 }
 0x1e8   : > { %6936 = vrsqrt.f32 %v2820_v5  ;;  %v8556_v2 = vmul.f32 %v7556_v35, %v10155_v51  ;;  %v8560_v58 = vmul.f32 %v7629_v1, %v10155_v51  ;;  %v2781_v43 = vmul.f32 %v8530_v0, %v8530_v0 }
 0x1e9   : > { %10172 = vst [vmem:[#allocation9_spill] sm:$0xff] %v8546_v33  ;;  %10173 = vst [vmem:[#allocation14_spill] sm:$0xff] %v8552_v13  ;;  %6938 = vrsqrt.f32 %v2803_v22  ;;  %v8565_v24 = vrot.slane %v3569_v62, %v7489_v15  ;;  %v2764_v57 = vmul.f32 %v8542_v40, %v8542_v40  ;;  %v8571_v61 = vadd.f32 %v10135_v31, %v8398_v16  ;;  %v2657_v22 = vpop.f32.mrb[38].mxu0 }
 0x1ea   : > { %10174 = vst [vmem:[#allocation36_spill] sm:$0xff] %v8556_v2  ;;  %10175 = vst [vmem:[#allocation15_spill] sm:$0xff] %v8560_v58  ;;  %6940 = vrsqrt.f32 %v2821_v19  ;;  %v8575_v51 = vcombine.low %v3278_v63, %v8492_v49  ;;  %v8579_v18 = vadd.f32 %v10135_v31, %v8415_v12  ;;  %v2765_v16 = vmul.f32 %v8552_v13, %v8552_v13  ;;  %v6796_v53 = vpop.f32.mrb[39].mxu0  ;;  %v8699_v13 = vpop.f32.mrb[30].mxu1 }
 0x1eb   : > { %10176 = vst [vmem:[#allocation8_spill] sm:$0xff] %v8571_v61  ;;  %6942 = vrsqrt.f32 %v2804_v59  ;;  %v6931_v56 = vpop.eup %6930  ;;  %v8583_v47 = vcombine.low %v3584_v30, %v8565_v24  ;;  %v8588_v52 = vadd.f32 %v10135_v31, %v2654_v39  ;;  %v2822_v12 = vadd.f32 1.0, %v2781_v43  ;;  %v10180_v39 = vld [vmem:[#allocation7_spill] sm:$0xff] }
 0x1ec   : > { %10177 = vst [vmem:[#allocation39_spill] sm:$0xff] %v8579_v18  ;;  %v2883_v5 = vmul.f32 %v6931_v56, %v8462_v46  ;;  %v2805_v59 = vadd.f32 1.0, %v2764_v57  ;;  %v2782_v30 = vmul.f32 %v8571_v61, %v8571_v61  ;;  %v8597_v10 = vadd.f32 %v10135_v31, %v2726_v29 }
 0x1ed   : > { %10178 = vst [vmem:[#allocation17_spill] sm:$0xff] %v8588_v52  ;;  %v8601_v26 = vmul.f32 %v7512_v37, %v10180_v39  ;;  %v4171_v62 = vrot.slane %v8575_v51, %v7489_v15  ;;  %v2783_v43 = vmul.f32 %v8579_v18, %v8579_v18  ;;  %v3279_v29 = vcombine.high %v8492_v49, %v8492_v49  ;;  %v10191_v18 = vld [vmem:[#allocation34_spill] sm:$0xff] }
 0x1ee   : > { %10179 = vst [vmem:[#allocation12_spill] sm:$0xff] %v8597_v10  ;;  %v2924_v56 = vadd.f32 1.0, %v2883_v5  ;;  %v2806_v63 = vadd.f32 1.0, %v2765_v16  ;;  %v2766_v53 = vmul.f32 %v8588_v52, %v8588_v52  ;;  %v3585_v5 = vcombine.high %v8565_v24, %v8565_v24  ;;  %10193 = vst [vmem:[#allocation34_spill] sm:$0xff] %v8699_v13 }
 0x1ef   : > { %10181 = vst [vmem:[#allocation16_spill] sm:$0xff] %v8601_v26  ;;  %6944 = vrsqrt.f32 %v2822_v12  ;;  %v2823_v57 = vadd.f32 1.0, %v2782_v30  ;;  %v8620_v49 = vmul.f32 %v8597_v10, %v8597_v10 }
 0x1f0   : > { %v6933_v19 = vpop.eup %6932  ;;  %v2965_v55 = vmul.f32 %v2924_v56, %v8462_v46  ;;  %6946 = vrsqrt.f32 %v2805_v59  ;;  %v8623_v56 = vadd.f32 1.0, %v2783_v43  ;;  %v8626_v12 = vadd.f32 1.0, %v2766_v53 }
 0x1f1   : > { %v6935_v60 = vpop.eup %6934  ;;  %v2901_v51 = vmul.f32 %v6933_v19, %v8489_v3  ;;  %10182 = vst [vmem:[#allocation20_spill] sm:$0xff] %v8620_v49  ;;  %6948 = vrsqrt.f32 %v2806_v63  ;;  %v8633_v43 = vadd.f32 %v10135_v31, %v2657_v22 }
 0x1f2   : > { %v6937_v4 = vpop.eup %6936  ;;  %v2884_v58 = vmul.f32 %v6935_v60, %v8500_v9  ;;  %v3006_v2 = vmul.f32 0.5, %v2965_v55  ;;  %10183 = vst [vmem:[#allocation22_spill] sm:$0xff] %v8623_v56  ;;  %10184 = vst [vmem:[#allocation31_spill] sm:$0xff] %v8626_v12  ;;  %6950 = vrsqrt.f32 %v2823_v57 }
 0x1f3   : > { %v6939_v16 = vpop.eup %6938  ;;  %v2942_v26 = vadd.f32 1.0, %v2901_v51  ;;  %v2902_v46 = vmul.f32 %v6937_v4, %v8508_v42  ;;  %10185 = vst [vmem:[#allocation35_spill] sm:$0xff] %v8633_v43 }
 0x1f4   : > { %v6941_v19 = vpop.eup %6940  ;;  %v2925_v33 = vadd.f32 1.0, %v2884_v58  ;;  %v2885_v24 = vmul.f32 %v6939_v16, %v8514_v8  ;;  %v3280_v59 = vcombine.high %v3006_v2, %v3006_v2  ;;  %v3287_v30 = vrot.slane %v3006_v2, %v7489_v15 }
 0x1f5   : > { %v6943_v60 = vpop.eup %6942  ;;  %v2983_v36 = vmul.f32 %v2942_v26, %v8489_v3  ;;  %v2943_v17 = vadd.f32 1.0, %v2902_v46  ;;  %v2903_v4 = vmul.f32 %v6941_v19, %v8518_v14 }
 0x1f6   : > { %v2966_v55 = vmul.f32 %v2925_v33, %v8500_v9  ;;  %v2926_v51 = vadd.f32 1.0, %v2885_v24  ;;  %v3294_v58 = vrot.slane %v3280_v59, %v7489_v15  ;;  %v3295_v63 = vcombine.high %v3287_v30, %v3287_v30 }
 0x1f7   : > { %v4164_v53 = vcombine.low %v3279_v29, %v3287_v30  ;;  %v3024_v16 = vmul.f32 0.5, %v2983_v36  ;;  %v2984_v10 = vmul.f32 %v2943_v17, %v8508_v42  ;;  %v8638_v2 = vmul.f32 %v6943_v60, %v8522_v38 }
 0x1f8   : > { %v3007_v20 = vmul.f32 0.5, %v2966_v55  ;;  %v4180_v9 = vcombine.low %v3295_v63, %v3294_v58  ;;  %v3296_v31 = vcombine.high %v3294_v58, %v3294_v58  ;;  %v2967_v29 = vmul.f32 %v2926_v51, %v8514_v8 }
 0x1f9   : > { %10186 = vst [vmem:[#allocation38_spill] sm:$0xff] %v8638_v2  ;;  %v4178_v3 = vrot.slane %v4164_v53, %v7489_v15  ;;  %v3586_v33 = vcombine.high %v3024_v16, %v3024_v16  ;;  %v3593_v26 = vrot.slane %v3024_v16, %v7489_v15  ;;  %v8644_v36 = vpop.eup %6944  ;;  %v2944_v57 = vadd.f32 1.0, %v2903_v4 }
 0x1fa   : > { %v3297_v22 = vcombine.high %v3007_v20, %v3007_v20  ;;  %v3304_v46 = vrot.slane %v3007_v20, %v7489_v15  ;;  %10187 = vst [vmem:[#allocation43_spill] sm:$0xff] %v8644_v36  ;;  %v8649_v24 = vpop.eup %6946  ;;  %v4188_v60 = vrot.slane %v4180_v9, %v7489_v15  ;;  %v3025_v55 = vmul.f32 0.5, %v2984_v10 }
 0x1fb   : > { %v4179_v19 = vcombine.low %v4171_v62, %v4178_v3  ;;  %v8647_v17 = vrot.slane %v3586_v33, %v7489_v15  ;;  %v3601_v42 = vcombine.high %v3593_v26, %v3593_v26  ;;  %10188 = vst [vmem:[#allocation48_spill] sm:$0xff] %v8649_v24  ;;  %v4492_v59 = vcombine.low %v3585_v5, %v3593_v26  ;;  %v8658_v58 = vpop.eup %6948  ;;  %v10190_v26 = vld [vmem:[#allocation32_spill] sm:$0xff] }
 0x1fc   : > { %v4181_v30 = vcombine.low %v3296_v31, %v3304_v46  ;;  %v3311_v62 = vrot.slane %v3297_v22, %v7489_v15  ;;  %v3312_v51 = vcombine.high %v3304_v46, %v3304_v46  ;;  %10189 = vst [vmem:[#allocation49_spill] sm:$0xff] %v8658_v58  ;;  %v3603_v10 = vcombine.high %v3025_v55, %v3025_v55  ;;  %v8694_v12 = vpop.eup %6950 }
 0x1fd   : > { %v4765_v20 = vsel %vm3844_vm1, %v4179_v19, 0.0  ;;  %v8655_v8 = vcombine.low %v3601_v42, %v8647_v17  ;;  %10192 = vst [vmem:[#allocation32_spill] sm:$0xff] %v8694_v12  ;;  %v8715_v13 = vrot.slane %v3025_v55, %v7489_v15 }
 0x1fe   : > { %v8661_v4 = vmul.f32 %v7465_v23, %v4765_v20  ;;  %v8664_v63 = vmul.f32 %v7481_v11, %v4765_v20  ;;  %v5342_v5 = vmul.f32 %v7512_v37, %v4765_v20  ;;  %v8668_v53 = vmul.f32 %v7517_v45, %v4765_v20 }
 0x1ff   : > { %v8671_v16 = vmul.f32 %v7546_v28, %v4765_v20  ;;  %v5896_v3 = vmul.f32 %v7552_v34, %v4765_v20  ;;  %v8675_v9 = vmul.f32 %v7556_v35, %v4765_v20  ;;  %v8678_v33 = vmul.f32 %v10072_v44, %v4765_v20 }
 0x200   : > { %v8681_v31 = vadd.f32 %v5342_v5, %v10190_v26  ;;  %v8684_v22 = vmul.f32 %v7629_v1, %v4765_v20  ;;  %v4966_v19 = vrot.slane %v8661_v4, 1  ;;  %v4506_v20 = vrot.slane %v4492_v59, %v7489_v15 }
 0x201   : > { %v8692_v61 = vadd.f32 %v5896_v3, %v10191_v18  ;;  %v3313_v58 = vcombine.high %v3311_v62, %v3311_v62  ;;  %v4195_v46 = vrot.slane %v4181_v30, %v7489_v15  ;;  %v4203_v52 = vrot.slane %v3312_v51, %v7489_v15  ;;  %v6832_v3 = vpop.f32.mrb[31].mxu1 }
 0x202   : > { %v8705_v18 = vrot.slane %v3603_v10, %v7489_v15  ;;  %v10194_v5 = vrot.slane %v8583_v47, %v7489_v15  ;;  %v8719_v51 = vmul.f32 0.5, %v2967_v29  ;;  %v8722_v10 = vmul.f32 %v2944_v57, %v8518_v14 }
 0x203   : > { %v8712_v26 = vcombine.low %v3311_v62, %v3313_v58  ;;  %v4196_v4 = vcombine.low %v4188_v60, %v4195_v46  ;;  %v4767_v30 = vsel %vm3903_vm2, %v4203_v52, 0.0  ;;  %v3618_v62 = vcombine.high %v8715_v13, %v8715_v13 }
 0x204   : > { %v4507_v42 = vcombine.low %v10194_v5, %v4506_v20  ;;  %10196 = vst [vmem:[#allocation51_spill] sm:$0xff] %v8722_v10  ;;  %v4861_v5 = vmul.f32 %v7465_v23, %v4767_v30  ;;  %v5106_v29 = vmul.f32 %v7481_v11, %v4767_v30  ;;  %v10198_v10 = vrot.slane %v8664_v63, 2 }
 0x205   : > { %10195 = vst [vmem:[#allocation50_spill] sm:$0xff] %v8712_v26  ;;  %v4819_v56 = vmul.f32 %v10072_v44, %v4196_v4  ;;  %v4860_v3 = vmul.f32 %v7465_v23, %v4196_v4  ;;  %v5343_v12 = vmul.f32 %v7512_v37, %v4196_v4  ;;  %v5415_v54 = vmul.f32 %v7517_v45, %v4196_v4 }
 0x206   : > { %v4789_v47 = vsel %vm3844_vm1, %v4507_v42, 0.0  ;;  %v4969_v59 = vrot.slane %v4861_v5, 1  ;;  %v5897_v5 = vmul.f32 %v7552_v34, %v4196_v4 }
 0x207   : > { %v8732_v60 = vmul.f32 %v7465_v23, %v4789_v47  ;;  %v8735_v52 = vmul.f32 %v7481_v11, %v4789_v47  ;;  %v5358_v14 = vmul.f32 %v7512_v37, %v4789_v47  ;;  %v8740_v57 = vmul.f32 %v7517_v45, %v4789_v47 }
 0x208   : > { %v8743_v58 = vmul.f32 %v7546_v28, %v4789_v47  ;;  %v5912_v46 = vmul.f32 %v7552_v34, %v4789_v47  ;;  %v8747_v42 = vmul.f32 %v7556_v35, %v4789_v47  ;;  %v8750_v20 = vmul.f32 %v10072_v44, %v4789_v47 }
 0x209   : > { %v8755_v55 = vadd.f32 %v5358_v14, %v8435_v41  ;;  %v8763_v24 = vmul.f32 %v7629_v1, %v4789_v47  ;;  %v5105_v41 = vmul.f32 %v7481_v11, %v4196_v4  ;;  %v5214_v14 = vrot.slane %v5106_v29, 2 }
 0x20a   : > { %v8760_v43 = vadd.f32 %v5912_v46, %v8454_v27  ;;  %v4967_v49 = vrot.slane %v4860_v3, 1  ;;  %v5416_v27 = vmul.f32 %v7517_v45, %v4767_v30  ;;  %v5659_v47 = vmul.f32 %v7546_v28, %v4196_v4 }
 0x20b   : > { %v5660_v46 = vmul.f32 %v7546_v28, %v4767_v30  ;;  %v5212_v40 = vrot.slane %v5105_v41, 2  ;;  %v5375_v26 = vadd.f32 %v5343_v12, %v8379_v32  ;;  %v5519_v39 = vrot.slane %v5415_v54, 1 }
 0x20c   : > { %10197 = vst [vmem:[#allocation52_spill] sm:$0xff] %v8760_v43  ;;  %v4968_v38 = vsel %vm4940_vm3, %v4966_v19, %v4967_v49  ;;  %v4970_v29 = vsel %vm4940_vm3, %v4967_v49, %v4969_v59  ;;  %v5521_v36 = vrot.slane %v5416_v27, 1  ;;  %v5763_v0 = vrot.slane %v5659_v47, 2 }
 0x20d   : > { %v5063_v3 = vadd.f32 %v4968_v38, %v8678_v33  ;;  %v5064_v2 = vadd.f32 %v4970_v29, %v4819_v56  ;;  %v5213_v43 = vsel %vm5185_vm4, %v10198_v10, %v5212_v40  ;;  %v5215_v41 = vsel %vm5185_vm4, %v5212_v40, %v5214_v14 }
 0x20e   : > { %v10199_v32 = vrot.slane %v8668_v53, 1  ;;  %v5522_v12 = vsel %vm4940_vm3, %v5519_v39, %v5521_v36  ;;  %v10200_v19 = vrot.slane %v8671_v16, 2  ;;  %v5765_v59 = vrot.slane %v5660_v46, 2 }
 0x20f   : > { %v8790_v27 = vadd.f32 %v5213_v43, %v5063_v3  ;;  %v8792_v38 = vadd.f32 %v5215_v41, %v5064_v2  ;;  %v5619_v63 = vadd.f32 %v5522_v12, %v5375_v26  ;;  %v5929_v53 = vadd.f32 %v5897_v5, %v8381_v7 }
 0x210   : > { %v5520_v54 = vsel %vm4940_vm3, %v10199_v32, %v5519_v39  ;;  %v5764_v49 = vsel %vm5185_vm4, %v10200_v19, %v5763_v0  ;;  %v5766_v40 = vsel %vm5185_vm4, %v5763_v0, %v5765_v59  ;;  %v5968_v33 = vmul.f32 %v7556_v35, %v4196_v4 }
 0x211   : > { %v5618_v56 = vadd.f32 %v5520_v54, %v8681_v31  ;;  %v5969_v39 = vmul.f32 %v7556_v35, %v4767_v30  ;;  %v8801_v16 = vadd.f32 %v5766_v40, %v5619_v63  ;;  %v6212_v43 = vmul.f32 %v7629_v1, %v4196_v4 }
 0x212   : > { %v6213_v2 = vmul.f32 %v7629_v1, %v4767_v30  ;;  %v6070_v10 = vrot.slane %v5968_v33, 1  ;;  %v10201_v0 = vcombine.high %v8647_v17, %v8647_v17  ;;  %v4531_v7 = vrot.slane %v3618_v62, %v7489_v15  ;;  %v8824_v62 = vpop.f32.mrb[40].mxu0 }
 0x213   : > { %v8799_v36 = vadd.f32 %v5764_v49, %v5618_v56  ;;  %v6072_v14 = vrot.slane %v5969_v39, 1  ;;  %v6353_v26 = vrot.slane %v8763_v24, 2  ;;  %v6314_v47 = vrot.slane %v6212_v43, 2  ;;  %10204 = vst [vmem:[#allocation53_spill] sm:$0xff] %v8824_v62  ;;  %v6799_v12 = vpop.f32.mrb[41].mxu0  ;;  %v10220_v24 = vld [vmem:[#allocation3_spill] sm:$0xff] }
 0x214   : > { %v4509_v31 = vcombine.low %v10201_v0, %v8715_v13  ;;  %v6316_v46 = vrot.slane %v6213_v2, 2  ;;  %v10202_v5 = vcombine.high %v8705_v18, %v8705_v18  ;;  %v10203_v30 = vrot.slane %v8675_v9, 1 }
 0x215   : > { %v6073_v3 = vsel %vm4940_vm3, %v6070_v10, %v6072_v14  ;;  %v4791_v17 = vsel %vm3903_vm2, %v4531_v7, 0.0  ;;  %v10205_v54 = vrot.slane %v8684_v22, 2  ;;  %v10206_v19 = vrot.slane %v8655_v8, %v7489_v15 }
 0x216   : > { %v8815_v4 = vcombine.low %v8705_v18, %v10202_v5  ;;  %v6071_v29 = vsel %vm4940_vm3, %v10203_v30, %v6070_v10  ;;  %v4523_v13 = vrot.slane %v4509_v31, %v7489_v15  ;;  %v6173_v32 = vadd.f32 %v6073_v3, %v5929_v53 }
 0x217   : > { %v6172_v41 = vadd.f32 %v6071_v29, %v8692_v61  ;;  %v6315_v18 = vsel %vm5185_vm4, %v10205_v54, %v6314_v47  ;;  %v6317_v9 = vsel %vm5185_vm4, %v6314_v47, %v6316_v46  ;;  %v4885_v59 = vmul.f32 %v7465_v23, %v4791_v17  ;;  %v8838_v61 = vpop.f32.mrb[42].mxu0 }
 0x218   : > { %v4524_v49 = vcombine.low %v10206_v19, %v4523_v13  ;;  %v5130_v56 = vmul.f32 %v7481_v11, %v4791_v17  ;;  %v3314_v63 = vcombine.high %v8719_v51, %v8719_v51  ;;  %10207 = vst [vmem:[#allocation54_spill] sm:$0xff] %v8838_v61  ;;  %v6417_v22 = vadd.f32 %v6317_v9, %v6173_v32  ;;  %v6800_v39 = vpop.f32.mrb[43].mxu0 }
 0x219   : > { %v6416_v40 = vadd.f32 %v6315_v18, %v6172_v41  ;;  %v5440_v53 = vmul.f32 %v7517_v45, %v4791_v17  ;;  %v5684_v33 = vmul.f32 %v7546_v28, %v4791_v17  ;;  %v5009_v2 = vrot.slane %v4885_v59, 1 }
 0x21a   : > { %v4835_v43 = vmul.f32 %v10072_v44, %v4524_v49  ;;  %v4884_v8 = vmul.f32 %v7465_v23, %v4524_v49  ;;  %v5129_v10 = vmul.f32 %v7481_v11, %v4524_v49  ;;  %v6486_v31 = vmul.f32 %v6417_v22, %v6417_v22 }
 0x21b   : > { %v6447_v14 = vadd.f32 %v8417_v50, %v6416_v40  ;;  %v6485_v0 = vmul.f32 %v6416_v40, %v6416_v40  ;;  %v5254_v7 = vrot.slane %v5130_v56, 2  ;;  %v5359_v5 = vmul.f32 %v7512_v37, %v4524_v49 }
 0x21c   : > { %v5007_v47 = vrot.slane %v4884_v8, 1  ;;  %v5252_v46 = vrot.slane %v5129_v10, 2  ;;  %v5439_v30 = vmul.f32 %v7517_v45, %v4524_v49  ;;  %v5561_v13 = vrot.slane %v5440_v53, 1 }
 0x21d   : > { %v8848_v29 = vadd.f32 %v6447_v14, %v6417_v22  ;;  %v6516_v3 = vadd.f32 %v8429_v21, %v6485_v0  ;;  %v5683_v41 = vmul.f32 %v7546_v28, %v4524_v49  ;;  %v10208_v32 = vrot.slane %v8732_v60, 1 }
 0x21e   : > { %v5010_v54 = vsel %vm4940_vm3, %v5007_v47, %v5009_v2  ;;  %v10209_v18 = vrot.slane %v8735_v52, 2  ;;  %v5255_v12 = vsel %vm5185_vm4, %v5252_v46, %v5254_v7  ;;  %v5391_v56 = vadd.f32 %v5359_v5, %v8494_v6 }
 0x21f   : > { %v5008_v50 = vsel %vm4940_vm3, %v10208_v32, %v5007_v47  ;;  %v8860_v19 = vadd.f32 %v6516_v3, %v6486_v31  ;;  %v5080_v21 = vadd.f32 %v5010_v54, %v4835_v43  ;;  %v5559_v40 = vrot.slane %v5439_v30, 1  ;;  %v10213_v32 = vld [vmem:[#allocation52_spill] sm:$0xff] }
 0x220   : > { %v5253_v9 = vsel %vm5185_vm4, %v10209_v18, %v5252_v46  ;;  %v5079_v59 = vadd.f32 %v5008_v50, %v8750_v20  ;;  %v5803_v22 = vrot.slane %v5683_v41, 2  ;;  %v5805_v60 = vrot.slane %v5684_v33, 2 }
 0x221   : > { %v5913_v53 = vmul.f32 %v7552_v34, %v4524_v49  ;;  %v8867_v8 = vadd.f32 %v5255_v12, %v5080_v21  ;;  %v5992_v52 = vmul.f32 %v7556_v35, %v4524_v49  ;;  %v5993_v2 = vmul.f32 %v7556_v35, %v4791_v17  ;;  %v10215_v21 = vld [vmem:[#allocation38_spill] sm:$0xff] }
 0x222   : > { %v8865_v39 = vadd.f32 %v5253_v9, %v5079_v59  ;;  %v10210_v10 = vrot.slane %v8740_v57, 1  ;;  %v5562_v43 = vsel %vm4940_vm3, %v5559_v40, %v5561_v13  ;;  %v10211_v6 = vrot.slane %v8743_v58, 2 }
 0x223   : > { %v5806_v14 = vsel %vm5185_vm4, %v5803_v22, %v5805_v60  ;;  %v5635_v31 = vadd.f32 %v5562_v43, %v5391_v56  ;;  %v5945_v7 = vadd.f32 %v5913_v53, %v8496_v48  ;;  %v6110_v47 = vrot.slane %v5992_v52, 1 }
 0x224   : > { %v5560_v20 = vsel %vm4940_vm3, %v10210_v10, %v5559_v40  ;;  %v5804_v33 = vsel %vm5185_vm4, %v10211_v6, %v5803_v22  ;;  %v6112_v46 = vrot.slane %v5993_v2, 1  ;;  %v6236_v5 = vmul.f32 %v7629_v1, %v4524_v49  ;;  %v10217_v40 = vld [vmem:[#allocation43_spill] sm:$0xff] }
 0x225   : > { %v5634_v0 = vadd.f32 %v5560_v20, %v8755_v55  ;;  %v6237_v57 = vmul.f32 %v7629_v1, %v4791_v17  ;;  %v3321_v30 = vrot.slane %v8719_v51, %v7489_v15  ;;  %v8887_v58 = vadd.f32 %v5806_v14, %v5635_v31  ;;  %v10214_v51 = vld [vmem:[#allocation51_spill] sm:$0xff]  ;;  %v10223_v14 = vld [vmem:[#allocation50_spill] sm:$0xff] }
 0x226   : > { %v10212_v13 = vrot.slane %v8747_v42, 1  ;;  %v3328_v41 = vrot.slane %v3314_v63, %v7489_v15  ;;  %v6113_v48 = vsel %vm4940_vm3, %v6110_v47, %v6112_v46  ;;  %v6354_v49 = vrot.slane %v6236_v5, 2  ;;  %v10216_v63 = vld [vmem:[#allocation11_spill] sm:$0xff] }
 0x227   : > { %v8885_v3 = vadd.f32 %v5804_v33, %v5634_v0  ;;  %v6356_v54 = vrot.slane %v6237_v57, 2  ;;  %v6189_v17 = vadd.f32 %v6113_v48, %v5945_v7  ;;  %v3329_v18 = vcombine.high %v3321_v30, %v3321_v30  ;;  %v10221_v6 = vld [vmem:[#allocation7_spill] sm:$0xff]  ;;  %v10224_v7 = vld [vmem:[#allocation20_spill] sm:$0xff] }
 0x228   : > { %v6111_v55 = vsel %vm4940_vm3, %v10212_v13, %v6110_v47  ;;  %v3330_v9 = vcombine.high %v3328_v41, %v3328_v41  ;;  %v3026_v12 = vmul.f32 0.5, %v10214_v51  ;;  %v6355_v59 = vsel %vm5185_vm4, %v6353_v26, %v6354_v49  ;;  %v10228_v48 = vld [vmem:[#allocation48_spill] sm:$0xff] }
 0x229   : > { %v6188_v50 = vadd.f32 %v6111_v55, %v10213_v32  ;;  %v6357_v42 = vsel %vm5185_vm4, %v6354_v49, %v6356_v54  ;;  %v2927_v56 = vadd.f32 1.0, %v10215_v21  ;;  %v2904_v22 = vmul.f32 %v10217_v40, %v10216_v63  ;;  %v10236_v40 = vld [vmem:[#allocation32_spill] sm:$0xff] }
 0x22a   : > { %v8905_v53 = vadd.f32 %v6357_v42, %v6189_v17  ;;  %v4205_v52 = vcombine.low %v3321_v30, %v3329_v18  ;;  %v8907_v2 = vcombine.low %v3328_v41, %v3330_v9  ;;  %v3620_v10 = vcombine.high %v3026_v12, %v3026_v12  ;;  %v10226_v30 = vld [vmem:[#allocation22_spill] sm:$0xff]  ;;  %v10232_v9 = vld [vmem:[#allocation49_spill] sm:$0xff] }
 0x22b   : > { %v8903_v60 = vadd.f32 %v6355_v59, %v6188_v50  ;;  %v3627_v20 = vrot.slane %v3026_v12, %v7489_v15  ;;  %v2968_v43 = vmul.f32 %v2927_v56, %v10220_v24  ;;  %v2945_v26 = vadd.f32 1.0, %v2904_v22  ;;  %v10227_v41 = vld [vmem:[#allocation10_spill] sm:$0xff]  ;;  %v10229_v50 = vld [vmem:[#allocation35_spill] sm:$0xff] }
 0x22c   : > { %10219 = vst [vmem:[#allocation51_spill] sm:$0xff] %v8905_v53  ;;  %v8913_v33 = vmul.f32 %v7552_v34, %v10221_v6  ;;  %v4212_v0 = vrot.slane %v10223_v14, %v7489_v15  ;;  %v4219_v31 = vrot.slane %v4205_v52, %v7489_v15  ;;  %v8919_v47 = vadd.f32 1.0, %v10224_v7  ;;  %v10231_v18 = vld [vmem:[#allocation14_spill] sm:$0xff]  ;;  %v10233_v12 = vld [vmem:[#allocation31_spill] sm:$0xff] }
 0x22d   : > { %10218 = vst [vmem:[#allocation52_spill] sm:$0xff] %v8903_v60  ;;  %v3634_v46 = vrot.slane %v3620_v10, %v7489_v15  ;;  %v3635_v5 = vcombine.high %v3627_v20, %v3627_v20  ;;  %v3009_v57 = vmul.f32 0.5, %v2968_v43  ;;  %6952 = vrsqrt.f32 %v10226_v30 }
 0x22e   : > { %10222 = vst [vmem:[#allocation38_spill] sm:$0xff] %v8913_v33  ;;  %10225 = vst [vmem:[#allocation11_spill] sm:$0xff] %v8919_v47  ;;  %v4220_v13 = vcombine.low %v4212_v0, %v4219_v31  ;;  %v2986_v55 = vmul.f32 %v2945_v26, %v10216_v63  ;;  %v2887_v32 = vmul.f32 %v10228_v48, %v10227_v41  ;;  %6954 = vrsqrt.f32 %v10233_v12  ;;  %v10235_v63 = vld [vmem:[#allocation8_spill] sm:$0xff] }
 0x22f   : > { %v8928_v49 = vmul.f32 %v10229_v50, %v10229_v50  ;;  %v4540_v54 = vrot.slane %v8815_v4, %v7489_v15  ;;  %v2888_v51 = vmul.f32 %v10232_v9, %v10231_v18  ;;  %v3636_v21 = vcombine.high %v3634_v46, %v3634_v46 }
 0x230   : > { %v4768_v42 = vsel %vm3844_vm1, %v4220_v13, 0.0  ;;  %v4533_v56 = vcombine.low %v3627_v20, %v3635_v5  ;;  %v2905_v22 = vmul.f32 %v10236_v40, %v10235_v63  ;;  %v3331_v10 = vcombine.high %v3009_v57, %v3009_v57 }
 0x231   : > { %10230 = vst [vmem:[#allocation43_spill] sm:$0xff] %v8928_v49  ;;  %v8942_v52 = vmul.f32 %v7465_v23, %v4768_v42  ;;  %v5344_v4 = vmul.f32 %v7512_v37, %v4768_v42  ;;  %v3338_v24 = vrot.slane %v3009_v57, %v7489_v15  ;;  %v8947_v43 = vmul.f32 %v7481_v11, %v4768_v42 }
 0x232   : > { %v5898_v26 = vmul.f32 %v7552_v34, %v4768_v42  ;;  %v3027_v6 = vmul.f32 0.5, %v2986_v55  ;;  %v2928_v14 = vadd.f32 1.0, %v2887_v32  ;;  %v8954_v0 = vmul.f32 %v7517_v45, %v4768_v42 }
 0x233   : > { %v8951_v20 = vadd.f32 %v5344_v4, %v8790_v27  ;;  %v8957_v31 = vmul.f32 %v7546_v28, %v4768_v42  ;;  %v2929_v7 = vadd.f32 1.0, %v2888_v51  ;;  %v8960_v5 = vmul.f32 %v10072_v44, %v4768_v42  ;;  %v8971_v27 = vpop.f32.mrb[32].mxu1 }
 0x234   : > { %v8963_v57 = vadd.f32 %v5898_v26, %v8799_v36  ;;  %v8966_v30 = vmul.f32 %v7556_v35, %v4768_v42  ;;  %v8969_v13 = vmul.f32 %v7629_v1, %v4768_v42  ;;  %10237 = vst [vmem:[#allocation3_spill] sm:$0xff] %v8971_v27  ;;  %v4547_v48 = vrot.slane %v4533_v56, %v7489_v15  ;;  %v6835_v51 = vpop.f32.mrb[33].mxu1 }
 0x235   : > { %v8975_v32 = vcombine.low %v3634_v46, %v3636_v21  ;;  %v8978_v9 = vrot.slane %v3331_v10, %v7489_v15  ;;  %v3346_v12 = vcombine.high %v3338_v24, %v3338_v24  ;;  %v3637_v40 = vcombine.high %v3027_v6, %v3027_v6  ;;  %v2737_v42 = vpop.f32.mrb[34].mxu1 }
 0x236   : > { %v3644_v4 = vrot.slane %v3027_v6, %v7489_v15  ;;  %v4548_v56 = vcombine.low %v4540_v54, %v4547_v48  ;;  %v6836_v21 = vpop.f32.mrb[35].mxu1  ;;  %v2969_v6 = vmul.f32 %v2928_v14, %v10227_v41  ;;  %v9032_v10 = vmul.f32 %v2929_v7, %v10231_v18 }
 0x237   : > { %10238 = vst [vmem:[#allocation7_spill] sm:$0xff] %v8978_v9  ;;  %v8982_v26 = vpop.eup %6952  ;;  %v4244_v46 = vrot.slane %v8978_v9, %v7489_v15  ;;  %v2742_v42 = vpop.f32.mrb[36].mxu1  ;;  %v4222_v54 = vcombine.low %v3338_v24, %v3346_v12  ;;  %v9000_v48 = vrot.slane %v3637_v40, %v7489_v15  ;;  %v9034_v17 = vadd.f32 1.0, %v2905_v22 }
 0x238   : > { %10239 = vst [vmem:[#allocation50_spill] sm:$0xff] %v8982_v26  ;;  %v8993_v53 = vpop.eup %6954  ;;  %v8997_v55 = vsel %vm3844_vm1, %v4548_v56, 0.0  ;;  %v6839_v51 = vpop.f32.mrb[37].mxu1  ;;  %v3652_v56 = vcombine.high %v3644_v4, %v3644_v4  ;;  %v10245_v47 = vrot.slane %v8942_v52, 1 }
 0x239   : > { %10240 = vst [vmem:[#allocation20_spill] sm:$0xff] %v8993_v53  ;;  %10241 = vst [vmem:[#allocation22_spill] sm:$0xff] %v8997_v55  ;;  %v9006_v36 = vmul.f32 %v7465_v23, %v8997_v55  ;;  %v5360_v41 = vmul.f32 %v7512_v37, %v8997_v55  ;;  %v4770_v14 = vsel %vm3903_vm2, %v4244_v46, 0.0  ;;  %v2745_v42 = vpop.f32.mrb[38].mxu1  ;;  %v9014_v24 = vmul.f32 %v7517_v45, %v8997_v55 }
 0x23a   : > { %v9018_v12 = vmul.f32 %v7546_v28, %v8997_v55  ;;  %v5914_v40 = vmul.f32 %v7552_v34, %v8997_v55  ;;  %v9024_v51 = vmul.f32 %v7556_v35, %v8997_v55  ;;  %v6840_v21 = vpop.f32.mrb[39].mxu1  ;;  %v9029_v42 = vmul.f32 0.5, %v2969_v6 }
 0x23b   : > { %v9027_v46 = vadd.f32 %v5360_v41, %v8865_v39  ;;  %v4236_v39 = vrot.slane %v4222_v54, %v7489_v15  ;;  %v4864_v6 = vmul.f32 %v7465_v23, %v4770_v14  ;;  %v5109_v18 = vmul.f32 %v7481_v11, %v4770_v14 }
 0x23c   : > { %10242 = vst [vmem:[#allocation10_spill] sm:$0xff] %v9024_v51  ;;  %v9040_v61 = vadd.f32 %v5914_v40, %v8885_v3  ;;  %v5419_v22 = vmul.f32 %v7517_v45, %v4770_v14  ;;  %v5663_v7 = vmul.f32 %v7546_v28, %v4770_v14  ;;  %v5972_v41 = vmul.f32 %v7556_v35, %v4770_v14 }
 0x23d   : > { %v6216_v33 = vmul.f32 %v7629_v1, %v4770_v14  ;;  %v10244_v3 = vrot.slane %v8907_v2, %v7489_v15  ;;  %v4974_v27 = vrot.slane %v4864_v6, 1  ;;  %v5219_v21 = vrot.slane %v5109_v18, 2 }
 0x23e   : > { %10243 = vst [vmem:[#allocation48_spill] sm:$0xff] %v9040_v61  ;;  %v4550_v60 = vcombine.low %v3644_v4, %v3652_v56  ;;  %v5526_v54 = vrot.slane %v5419_v22, 1  ;;  %v5770_v61 = vrot.slane %v5663_v7, 2  ;;  %v6077_v62 = vrot.slane %v5972_v41, 1 }
 0x23f   : > { %v4237_v40 = vcombine.low %v10244_v3, %v4236_v39  ;;  %v6321_v50 = vrot.slane %v6216_v33, 2  ;;  %v10246_v51 = vrot.slane %v8947_v43, 2 }
 0x241   : > { %v4821_v53 = vmul.f32 %v10072_v44, %v4237_v40  ;;  %v4863_v55 = vmul.f32 %v7465_v23, %v4237_v40  ;;  %v5108_v59 = vmul.f32 %v7481_v11, %v4237_v40  ;;  %v5345_v49 = vmul.f32 %v7512_v37, %v4237_v40 }
 0x242   : > { %v5418_v14 = vmul.f32 %v7517_v45, %v4237_v40  ;;  %v5662_v2 = vmul.f32 %v7546_v28, %v4237_v40  ;;  %v5899_v39 = vmul.f32 %v7552_v34, %v4237_v40  ;;  %v5971_v4 = vmul.f32 %v7556_v35, %v4237_v40 }
 0x243   : > { %v4972_v56 = vrot.slane %v4863_v55, 1  ;;  %v5217_v6 = vrot.slane %v5108_v59, 2  ;;  %v5377_v33 = vadd.f32 %v5345_v49, %v8792_v38  ;;  %v6215_v18 = vmul.f32 %v7629_v1, %v4237_v40 }
 0x244   : > { %v5524_v22 = vrot.slane %v5418_v14, 1  ;;  %v5768_v7 = vrot.slane %v5662_v2, 2  ;;  %v5931_v41 = vadd.f32 %v5899_v39, %v8801_v16  ;;  %v6075_v3 = vrot.slane %v5971_v4, 1 }
 0x245   : > { %v4973_v26 = vsel %vm4940_vm3, %v10245_v47, %v4972_v56  ;;  %v4975_v9 = vsel %vm4940_vm3, %v4972_v56, %v4974_v27  ;;  %v5218_v55 = vsel %vm5185_vm4, %v10246_v51, %v5217_v6  ;;  %v5220_v59 = vsel %vm5185_vm4, %v5217_v6, %v5219_v21 }
 0x246   : > { %v5065_v38 = vadd.f32 %v4973_v26, %v8960_v5  ;;  %v5066_v49 = vadd.f32 %v4975_v9, %v4821_v53  ;;  %v10247_v40 = vrot.slane %v8954_v0, 1  ;;  %v5527_v14 = vsel %vm4940_vm3, %v5524_v22, %v5526_v54 }
 0x247   : > { %v5621_v47 = vadd.f32 %v5527_v14, %v5377_v33  ;;  %v10248_v27 = vrot.slane %v8957_v31, 2  ;;  %v5771_v51 = vsel %vm5185_vm4, %v5768_v7, %v5770_v61  ;;  %v10249_v53 = vrot.slane %v8966_v30, 1 }
 0x248   : > { %v5525_v16 = vsel %vm4940_vm3, %v10247_v40, %v5524_v22  ;;  %v9082_v2 = vadd.f32 %v5218_v55, %v5065_v38  ;;  %v9084_v21 = vadd.f32 %v5220_v59, %v5066_v49  ;;  %v6078_v5 = vsel %vm4940_vm3, %v6075_v3, %v6077_v62 }
 0x249   : > { %v5620_v52 = vadd.f32 %v5525_v16, %v8951_v20  ;;  %v5769_v43 = vsel %vm5185_vm4, %v10248_v27, %v5768_v7  ;;  %v6076_v0 = vsel %vm4940_vm3, %v10249_v53, %v6075_v3  ;;  %v9092_v20 = vadd.f32 %v5771_v51, %v5621_v47 }
 0x24a   : > { %v6174_v31 = vadd.f32 %v6076_v0, %v8963_v57  ;;  %v6175_v26 = vadd.f32 %v6078_v5, %v5931_v41  ;;  %v6319_v54 = vrot.slane %v6215_v18, 2  ;;  %v4564_v61 = vrot.slane %v4550_v60, %v7489_v15 }
 0x24b   : > { %v9090_v9 = vadd.f32 %v5769_v43, %v5620_v52  ;;  %v4572_v39 = vrot.slane %v9000_v48, %v7489_v15  ;;  %v3348_v30 = vcombine.high %v9029_v42, %v9029_v42  ;;  %v9102_v4 = vrot.slane %v9029_v42, %v7489_v15 }
 0x24c   : > { %v9105_v62 = vmul.f32 0.5, %v9032_v10  ;;  %v9109_v57 = vmul.f32 %v9034_v17, %v10235_v63  ;;  %v3653_v60 = vcombine.high %v9000_v48, %v9000_v48  ;;  %v10250_v56 = vrot.slane %v8969_v13, 2 }
 0x24d   : > { %v6322_v33 = vsel %vm5185_vm4, %v6319_v54, %v6321_v50  ;;  %v10251_v42 = vrot.slane %v8975_v32, %v7489_v15  ;;  %v4794_v10 = vsel %vm3903_vm2, %v4572_v39, 0.0  ;;  %v10252_v51 = vrot.slane %v9006_v36, 1 }
 0x24e   : > { %v6320_v6 = vsel %vm5185_vm4, %v10250_v56, %v6319_v54  ;;  %v6419_v7 = vadd.f32 %v6322_v33, %v6175_v26  ;;  %v4888_v17 = vmul.f32 %v7465_v23, %v4794_v10  ;;  %v5133_v63 = vmul.f32 %v7481_v11, %v4794_v10 }
 0x24f   : > { %v4565_v18 = vcombine.low %v10251_v42, %v4564_v61  ;;  %v6418_v22 = vadd.f32 %v6320_v6, %v6174_v31  ;;  %v5443_v43 = vmul.f32 %v7517_v45, %v4794_v10  ;;  %v5687_v54 = vmul.f32 %v7546_v28, %v4794_v10 }
 0x250   : > { %v6488_v59 = vmul.f32 %v6419_v7, %v6419_v7  ;;  %v5014_v38 = vrot.slane %v4888_v17, 1  ;;  %v5259_v16 = vrot.slane %v5133_v63, 2  ;;  %v10253_v6 = vrot.slane %v9014_v24, 1 }
 0x251   : > { %v4837_v41 = vmul.f32 %v10072_v44, %v4565_v18  ;;  %v4887_v13 = vmul.f32 %v7465_v23, %v4565_v18  ;;  %v9127_v3 = vmul.f32 %v7481_v11, %v4565_v18  ;;  %v5361_v50 = vmul.f32 %v7512_v37, %v4565_v18 }
 0x252   : > { %v6449_v32 = vadd.f32 %v8848_v29, %v6418_v22  ;;  %v6487_v55 = vmul.f32 %v6418_v22, %v6418_v22  ;;  %v5442_v27 = vmul.f32 %v7517_v45, %v4565_v18  ;;  %v5566_v26 = vrot.slane %v5443_v43, 1 }
 0x253   : > { %v5012_v49 = vrot.slane %v4887_v13, 1  ;;  %v10034_v40 = vrot.slane %v9127_v3, 2  ;;  %v5393_v14 = vadd.f32 %v5361_v50, %v8867_v8  ;;  %v5686_v8 = vmul.f32 %v7546_v28, %v4565_v18 }
 0x254   : > { %v9133_v52 = vadd.f32 %v6449_v32, %v6419_v7  ;;  %v6518_v47 = vadd.f32 %v8860_v19, %v6487_v55  ;;  %v5564_v31 = vrot.slane %v5442_v27, 1  ;;  %v5915_v36 = vmul.f32 %v7552_v34, %v4565_v18 }
 0x255   : > { %v9141_v29 = vsel %vm4940_vm3, %v10252_v51, %v5012_v49  ;;  %v5015_v53 = vsel %vm4940_vm3, %v5012_v49, %v5014_v38  ;;  %v5260_v0 = vsel %vm5185_vm4, %v10034_v40, %v5259_v16  ;;  %v5808_v61 = vrot.slane %v5686_v8, 2  ;;  %v10257_v16 = vld [vmem:[#allocation10_spill] sm:$0xff] }
 0x256   : > { %v9148_v5 = vadd.f32 %v6518_v47, %v6488_v59  ;;  %v5082_v19 = vadd.f32 %v5015_v53, %v4837_v41  ;;  %v5995_v39 = vmul.f32 %v7556_v35, %v4565_v18  ;;  %v5565_v33 = vsel %vm4940_vm3, %v10253_v6, %v5564_v31 }
 0x257   : > { %v5567_v42 = vsel %vm4940_vm3, %v5564_v31, %v5566_v26  ;;  %v5996_v22 = vmul.f32 %v7556_v35, %v4794_v10  ;;  %v9161_v7 = vadd.f32 %v5565_v33, %v9027_v46  ;;  %v10254_v63 = vrot.slane %v9018_v12, 2 }
 0x258   : > { %v9153_v56 = vadd.f32 %v5260_v0, %v5082_v19  ;;  %v5637_v17 = vadd.f32 %v5567_v42, %v5393_v14  ;;  %v5810_v13 = vrot.slane %v5687_v54, 2  ;;  %v5947_v50 = vadd.f32 %v5915_v36, %v8887_v58  ;;  %v10262_v36 = vld [vmem:[#allocation39_spill] sm:$0xff] }
 0x259   : > { %v9166_v41 = vsel %vm5185_vm4, %v10254_v63, %v5808_v61  ;;  %v6115_v32 = vrot.slane %v5995_v39, 1  ;;  %v6117_v24 = vrot.slane %v5996_v22, 1  ;;  %v9170_v55 = vmul.f32 %v7629_v1, %v4565_v18 }
 0x25a   : > { %10255 = vst [vmem:[#allocation14_spill] sm:$0xff] %v9166_v41  ;;  %v5811_v59 = vsel %vm5185_vm4, %v5808_v61, %v5810_v13  ;;  %v6240_v38 = vmul.f32 %v7629_v1, %v4794_v10  ;;  %v3362_v46 = vrot.slane %v3348_v30, %v7489_v15  ;;  %v3363_v12 = vcombine.high %v9102_v4, %v9102_v4  ;;  %v10260_v10 = vld [vmem:[#allocation7_spill] sm:$0xff] }
 0x25b   : > { %10256 = vst [vmem:[#allocation49_spill] sm:$0xff] %v9170_v55  ;;  %v9177_v49 = vadd.f32 %v5811_v59, %v5637_v17  ;;  %v10258_v14 = vrot.slane %v10257_v16, 1  ;;  %v6118_v47 = vsel %vm4940_vm3, %v6115_v32, %v6117_v24  ;;  %v10033_v18 = vrot.slane %v9170_v55, 2  ;;  %v10267_v24 = vld [vmem:[#allocation11_spill] sm:$0xff] }
 0x25c   : > { %v6191_v27 = vadd.f32 %v6118_v47, %v5947_v50  ;;  %v6361_v43 = vrot.slane %v6240_v38, 2  ;;  %v10261_v30 = vcombine.high %v10260_v10, %v10260_v10  ;;  %v4246_v53 = vcombine.low %v3363_v12, %v3362_v46  ;;  %v10268_v59 = vld [vmem:[#allocation43_spill] sm:$0xff] }
 0x25d   : > { %v9182_v58 = vsel %vm4940_vm3, %v10258_v14, %v6115_v32  ;;  %v3364_v0 = vcombine.high %v3362_v46, %v3362_v46  ;;  %v3365_v8 = vcombine.high %v9105_v62, %v9105_v62  ;;  %v3372_v19 = vrot.slane %v9105_v62, %v7489_v15  ;;  %v10265_v62 = vld [vmem:[#allocation21_spill] sm:$0xff] }
 0x25e   : > { %10259 = vst [vmem:[#allocation31_spill] sm:$0xff] %v9182_v58  ;;  %v4245_v51 = vcombine.low %v10261_v30, %v9102_v4  ;;  %v3028_v31 = vmul.f32 0.5, %v9109_v57  ;;  %v6362_v26 = vsel %vm5185_vm4, %v10033_v18, %v6361_v43  ;;  %v4260_v61 = vrot.slane %v4246_v53, %v7489_v15  ;;  %v10263_v4 = vld [vmem:[#allocation50_spill] sm:$0xff] }
 0x25f   : > { %v2906_v39 = vmul.f32 %v10263_v4, %v10262_v36  ;;  %v9202_v6 = vadd.f32 %v6362_v26, %v6191_v27  ;;  %v3379_v33 = vrot.slane %v3365_v8, %v7489_v15  ;;  %v3380_v42 = vcombine.high %v3372_v19, %v3372_v19 }
 0x260   : > { %v4253_v54 = vrot.slane %v4245_v51, %v7489_v15  ;;  %v4262_v22 = vcombine.low %v3364_v0, %v3372_v19  ;;  %v9207_v57 = vmul.f32 %v7512_v37, %v10265_v62  ;;  %v3654_v63 = vcombine.high %v3028_v31, %v3028_v31  ;;  %v10270_v0 = vld [vmem:[#allocation22_spill] sm:$0xff] }
 0x261   : > { %10264 = vst [vmem:[#allocation8_spill] sm:$0xff] %v9202_v6  ;;  %v3661_v13 = vrot.slane %v3028_v31, %v7489_v15  ;;  %v3381_v50 = vcombine.high %v3379_v33, %v3379_v33  ;;  %v2947_v32 = vadd.f32 1.0, %v2906_v39  ;;  %6956 = vrsqrt.f32 %v10267_v24 }
 0x262   : > { %10266 = vst [vmem:[#allocation32_spill] sm:$0xff] %v9207_v57  ;;  %v4261_v17 = vcombine.low %v4253_v54, %v4260_v61  ;;  %v9212_v38 = vadd.f32 1.0, %v10268_v59  ;;  %v4263_v16 = vcombine.low %v3380_v42, %v3379_v33  ;;  %v9219_v14 = vrot.slane %v3654_v63, %v7489_v15 }
 0x263   : > { %v9224_v47 = vcombine.low %v3653_v60, %v3661_v13  ;;  %v3669_v30 = vcombine.high %v3661_v13, %v3661_v13  ;;  %v9252_v8 = vmul.f32 %v7481_v11, %v10270_v0  ;;  %v4270_v26 = vrot.slane %v4262_v22, %v7489_v15 }
 0x264   : > { %v9216_v12 = vsel %vm3844_vm1, %v4261_v17, 0.0  ;;  %v10271_v54 = vmov 0.0   ;;  %v4277_v17 = vrot.slane %v4263_v16, %v7489_v15  ;;  %v4285_v63 = vrot.slane %v3381_v50, %v7489_v15  ;;  %v10273_v50 = vld [vmem:[#allocation20_spill] sm:$0xff] }
 0x265   : > { %v4865_v27 = vmul.f32 %v7465_v23, %v9216_v12  ;;  %v5110_v43 = vmul.f32 %v7481_v11, %v9216_v12  ;;  %v5346_v10 = vmul.f32 %v7512_v37, %v9216_v12  ;;  %v5420_v51 = vmul.f32 %v7517_v45, %v9216_v12  ;;  %229 = vst [vmem:[%s9248_s30] sm:$0x3] %v10271_v54 }
 0x266   : > { %v9237_v53 = vmul.f32 %v7546_v28, %v9216_v12  ;;  %v5900_v48 = vmul.f32 %v7552_v34, %v9216_v12  ;;  %v9243_v60 = vmul.f32 %v7556_v35, %v9216_v12  ;;  %v4822_v19 = vmul.f32 %v10072_v44, %v9216_v12 }
 0x267   : > { %v5378_v31 = vadd.f32 %v5346_v10, %v9082_v2  ;;  %v4976_v61 = vrot.slane %v4865_v27, 1  ;;  %v5221_v4 = vrot.slane %v5110_v43, 2  ;;  %v5528_v39 = vrot.slane %v5420_v51, 1  ;;  %v10272_v43 = vld [vmem:[#allocation17_spill] sm:$0xff] }
 0x268   : > { %v9261_v33 = vadd.f32 %v5900_v48, %v9090_v9  ;;  %v5772_v42 = vrot.slane %v9237_v53, 2  ;;  %v4574_v13 = vcombine.low %v3669_v30, %v9219_v14  ;;  %v6079_v2 = vrot.slane %v9243_v60, 1 }
 0x269   : > { %v4581_v22 = vrot.slane %v9224_v47, %v7489_v15  ;;  %v2988_v24 = vmul.f32 %v2947_v32, %v10262_v36  ;;  %v4278_v9 = vcombine.low %v4270_v26, %v4277_v17  ;;  %v4773_v27 = vsel %vm3903_vm2, %v4285_v63, 0.0 }
 0x26a   : > { %v4588_v16 = vrot.slane %v4574_v13, %v7489_v15  ;;  %v2889_v10 = vmul.f32 %v10273_v50, %v10272_v43  ;;  %v4867_v30 = vmul.f32 %v7465_v23, %v4773_v27  ;;  %v5112_v51 = vmul.f32 %v7481_v11, %v4773_v27 }
 0x26b   : > { %v5422_v47 = vmul.f32 %v7517_v45, %v4773_v27  ;;  %v5666_v36 = vmul.f32 %v7546_v28, %v4773_v27  ;;  %v6957_v32 = vpop.eup %6956  ;;  %v4823_v53 = vmul.f32 %v10072_v44, %v4278_v9  ;;  %v4866_v48 = vmul.f32 %v7465_v23, %v4278_v9 }
 0x26c   : > { %v5111_v60 = vmul.f32 %v7481_v11, %v4278_v9  ;;  %v5347_v26 = vmul.f32 %v7512_v37, %v4278_v9  ;;  %v4979_v54 = vrot.slane %v4867_v30, 1  ;;  %v5224_v17 = vrot.slane %v5112_v51, 2 }
 0x26d   : > { %v5421_v63 = vmul.f32 %v7517_v45, %v4278_v9  ;;  %v5531_v13 = vrot.slane %v5422_v47, 1  ;;  %v4977_v50 = vrot.slane %v4866_v48, 1  ;;  %v5665_v59 = vmul.f32 %v7546_v28, %v4278_v9 }
 0x26e   : > { %v5222_v18 = vrot.slane %v5111_v60, 2  ;;  %v5379_v40 = vadd.f32 %v5347_v26, %v9084_v21  ;;  %v5775_v57 = vrot.slane %v5666_v36, 2  ;;  %v5901_v62 = vmul.f32 %v7552_v34, %v4278_v9 }
 0x26f   : > { %v5529_v6 = vrot.slane %v5421_v63, 1  ;;  %v5974_v55 = vmul.f32 %v7556_v35, %v4278_v9  ;;  %v4978_v58 = vsel %vm4940_vm3, %v4976_v61, %v4977_v50  ;;  %v4980_v30 = vsel %vm4940_vm3, %v4977_v50, %v4979_v54 }
 0x270   : > { %v9294_v51 = vsel %vm5185_vm4, %v5221_v4, %v5222_v18  ;;  %v9297_v47 = vsel %vm5185_vm4, %v5222_v18, %v5224_v17  ;;  %v9299_v48 = vadd.f32 %v4978_v58, %v4822_v19  ;;  %v9301_v21 = vadd.f32 %v4980_v30, %v4823_v53 }
 0x271   : > { %v5530_v36 = vsel %vm4940_vm3, %v5528_v39, %v5529_v6  ;;  %v5532_v60 = vsel %vm4940_vm3, %v5529_v6, %v5531_v13  ;;  %v5773_v61 = vrot.slane %v5665_v59, 2  ;;  %v5933_v54 = vadd.f32 %v5901_v62, %v9092_v20 }
 0x272   : > { %v9305_v26 = vadd.f32 %v5530_v36, %v5378_v31  ;;  %v9307_v63 = vadd.f32 %v5532_v60, %v5379_v40  ;;  %v5975_v4 = vmul.f32 %v7556_v35, %v4773_v27  ;;  %v6080_v50 = vrot.slane %v5974_v55, 1 }
 0x273   : > { %v9312_v18 = vmul.f32 %v7629_v1, %v4278_v9  ;;  %v6219_v58 = vmul.f32 %v7629_v1, %v4773_v27  ;;  %v9316_v19 = vsel %vm5185_vm4, %v5772_v42, %v5773_v61  ;;  %v9319_v6 = vsel %vm5185_vm4, %v5773_v61, %v5775_v57  ;;  %v10274_v27 = vld [vmem:[#allocation12_spill] sm:$0xff] }
 0x274   : > { %v4589_v31 = vcombine.low %v4581_v22, %v4588_v16  ;;  %v3029_v40 = vmul.f32 0.5, %v2988_v24  ;;  %v9322_v39 = vsel %vm4940_vm3, %v6079_v2, %v6080_v50  ;;  %v6082_v20 = vrot.slane %v5975_v4, 1 }
 0x275   : > { %v10037_v62 = vrot.slane %v9312_v18, 2  ;;  %v6326_v55 = vrot.slane %v6219_v58, 2  ;;  %v2930_v53 = vadd.f32 1.0, %v2889_v10  ;;  %v2907_v17 = vmul.f32 %v6957_v32, %v10274_v27 }
 0x276   : > { %v3671_v59 = vcombine.high %v3029_v40, %v3029_v40  ;;  %v3678_v9 = vrot.slane %v3029_v40, %v7489_v15  ;;  %v4836_v42 = vmul.f32 %v10072_v44, %v10270_v0  ;;  %v6083_v57 = vsel %vm4940_vm3, %v6080_v50, %v6082_v20 }
 0x277   : > { %v6327_v2 = vsel %vm5185_vm4, %v10037_v62, %v6326_v55  ;;  %6958 = vrsqrt.f32 %v9212_v38  ;;  %v9336_v22 = vmul.f32 %v7629_v1, %v10270_v0  ;;  %v9340_v24 = vmul.f32 %v7629_v1, %v9216_v12 }
 0x278   : > { %v6177_v16 = vadd.f32 %v6083_v57, %v5933_v54  ;;  %v9344_v10 = vsel %vm3844_vm1, %v4589_v31, 0.0  ;;  %v3685_v32 = vrot.slane %v3671_v59, %v7489_v15  ;;  %v3686_v13 = vcombine.high %v3678_v9, %v3678_v9 }
 0x279   : > { %10275 = vst [vmem:[#allocation10_spill] sm:$0xff] %v9336_v22  ;;  %v10276_v30 = vcombine.high %v9219_v14, %v9219_v14  ;;  %v2971_v36 = vmul.f32 %v2930_v53, %v10272_v43  ;;  %v5256_v0 = vrot.slane %v9252_v8, 2  ;;  %v4889_v12 = vmul.f32 %v7465_v23, %v9344_v10 }
 0x27a   : > { %v9352_v60 = vadd.f32 %v6327_v2, %v6177_v16  ;;  %v2948_v61 = vadd.f32 1.0, %v2907_v17  ;;  %v3687_v54 = vcombine.high %v3685_v32, %v3685_v32  ;;  %v4591_v4 = vcombine.low %v3686_v13, %v3685_v32 }
 0x27b   : > { %v4590_v38 = vcombine.low %v10276_v30, %v3678_v9  ;;  %v3012_v58 = vmul.f32 0.5, %v2971_v36  ;;  %v9361_v43 = vmul.f32 %v7517_v45, %v9344_v10  ;;  %v9369_v9 = vmul.f32 %v7556_v35, %v9344_v10 }
 0x27c   : > { %v2989_v8 = vmul.f32 %v2948_v61, %v10274_v27  ;;  %v4605_v40 = vrot.slane %v4591_v4, %v7489_v15  ;;  %v4613_v20 = vrot.slane %v3687_v54, %v7489_v15  ;;  %v9373_v53 = vmul.f32 %v7629_v1, %v9344_v10 }
 0x27d   : > { %v4598_v50 = vrot.slane %v4590_v38, %v7489_v15  ;;  %v3382_v55 = vcombine.high %v3012_v58, %v3012_v58  ;;  %v3389_v59 = vrot.slane %v3012_v58, %v7489_v15  ;;  %v5081_v17 = vadd.f32 %v9141_v29, %v4836_v42 }
 0x27e   : > { %v10277_v57 = vrot.slane %v9127_v3, 2  ;;  %v4797_v16 = vsel %vm3903_vm2, %v4613_v20, 0.0  ;;  %v4838_v32 = vmul.f32 %v10072_v44, %v9344_v10  ;;  %v5016_v13 = vrot.slane %v4889_v12, 1 }
 0x27f   : > { %v9379_v2 = vcombine.low %v4598_v50, %v4605_v40  ;;  %v3396_v30 = vrot.slane %v3382_v55, %v7489_v15  ;;  %v3397_v38 = vcombine.high %v3389_v59, %v3389_v59  ;;  %v3030_v36 = vmul.f32 0.5, %v2989_v8 }
 0x280   : > { %v5258_v27 = vsel %vm5185_vm4, %v5256_v0, %v10277_v57  ;;  %v5134_v29 = vmul.f32 %v7481_v11, %v9344_v10  ;;  %v5999_v61 = vmul.f32 %v7556_v35, %v4797_v16  ;;  %v9402_v54 = vmul.f32 %v7465_v23, %v4797_v16 }
 0x281   : > { %v9388_v42 = vpop.eup %6958  ;;  %v5917_v3 = vmul.f32 %v7552_v34, %v9379_v2  ;;  %v9394_v0 = vmul.f32 %v7556_v35, %v9379_v2  ;;  %v9399_v12 = vmul.f32 %v7629_v1, %v9379_v2  ;;  %v9405_v4 = vmul.f32 %v7481_v11, %v4797_v16 }
 0x282   : > { %v9408_v50 = vmul.f32 %v7517_v45, %v4797_v16  ;;  %v9411_v58 = vmul.f32 %v7546_v28, %v4797_v16  ;;  %v6122_v20 = vrot.slane %v5999_v61, 1  ;;  %v6243_v55 = vmul.f32 %v7629_v1, %v4797_v16 }
 0x283   : > { %10278 = vst [vmem:[#allocation7_spill] sm:$0xff] %v9399_v12  ;;  %v5949_v8 = vadd.f32 %v5917_v3, %v9177_v49  ;;  %v10040_v40 = vrot.slane %v9394_v0, 1  ;;  %v3398_v31 = vcombine.high %v3396_v30, %v3396_v30  ;;  %v4286_v14 = vcombine.low %v3389_v59, %v3397_v38 }
 0x284   : > { %v3688_v62 = vcombine.high %v3030_v36, %v3030_v36  ;;  %v6366_v22 = vrot.slane %v6243_v55, 2  ;;  %v3695_v41 = vrot.slane %v3030_v36, %v7489_v15  ;;  %v9423_v49 = vmul.f32 %v7465_v23, %v9379_v2 }
 0x285   : > { %v6123_v25 = vsel %vm4940_vm3, %v10040_v40, %v6122_v20  ;;  %v4287_v61 = vcombine.low %v3396_v30, %v3398_v31  ;;  %v4294_v16 = vrot.slane %v4286_v14, %v7489_v15  ;;  %v10280_v59 = vrot.slane %v9399_v12, 2 }
 0x286   : > { %v9425_v3 = vadd.f32 %v6123_v25, %v5949_v8  ;;  %v3702_v57 = vrot.slane %v3688_v62, %v7489_v15  ;;  %v3703_v20 = vcombine.high %v3695_v41, %v3695_v41  ;;  %v10044_v55 = vrot.slane %v9423_v49, 1 }
 0x287   : > { %v9432_v38 = vsel %vm5185_vm4, %v10280_v59, %v6366_v22  ;;  %v9437_v36 = vmul.f32 %v7481_v11, %v9379_v2  ;;  %v4301_v25 = vrot.slane %v4287_v61, %v7489_v15  ;;  %v5261_v31 = vrot.slane %v5134_v29, 2 }
 0x288   : > { %10279 = vst [vmem:[#allocation39_spill] sm:$0xff] %v9425_v3  ;;  %10281 = vst [vmem:[#allocation50_spill] sm:$0xff] %v9432_v38  ;;  %v3704_v8 = vcombine.high %v3702_v57, %v3702_v57  ;;  %v5326_v30 = vadd.f32 %v5258_v27, %v5081_v17  ;;  %v4614_v14 = vcombine.low %v3695_v41, %v3703_v20  ;;  %v5568_v27 = vrot.slane %v9361_v43, 1 }
 0x289   : > { %v5018_v62 = vsel %vm4940_vm3, %v5016_v13, %v10044_v55  ;;  %v10042_v22 = vrot.slane %v9437_v36, 2  ;;  %v5362_v59 = vmul.f32 %v7512_v37, %v9344_v10  ;;  %v4302_v40 = vcombine.low %v4294_v16, %v4301_v25 }
 0x28a   : > { %v4615_v38 = vcombine.low %v3702_v57, %v3704_v8  ;;  %v5083_v3 = vadd.f32 %v5018_v62, %v4838_v32  ;;  %v9448_v12 = vmul.f32 %v7517_v45, %v9379_v2  ;;  %v4622_v29 = vrot.slane %v4614_v14, %v7489_v15 }
 0x28b   : > { %v5263_v41 = vsel %vm5185_vm4, %v5261_v31, %v10042_v22  ;;  %v5394_v17 = vadd.f32 %v5362_v59, %v5326_v30  ;;  %v4774_v13 = vsel %vm3844_vm1, %v4302_v40, 0.0  ;;  %v9461_v16 = vmul.f32 %v9352_v60, %v9352_v60 }
 0x28c   : > { %v4629_v61 = vrot.slane %v4615_v38, %v7489_v15  ;;  %v5328_v57 = vadd.f32 %v5263_v41, %v5083_v3  ;;  %v10043_v32 = vrot.slane %v9448_v12, 1  ;;  %v9465_v20 = vmul.f32 %v7552_v34, %v9344_v10 }
 0x28d   : > { %v5019_v8 = vrot.slane %v9402_v54, 1  ;;  %v9474_v31 = vmul.f32 %v7465_v23, %v4774_v13  ;;  %v9477_v30 = vmul.f32 %v7481_v11, %v4774_v13  ;;  %v9480_v14 = vmul.f32 %v7517_v45, %v4774_v13  ;;  %v10285_v23 = vld [vmem:[#allocation35_spill] sm:$0xff] }
 0x28e   : > { %v4630_v62 = vcombine.low %v4622_v29, %v4629_v61  ;;  %v9483_v59 = vmul.f32 %v10072_v44, %v4774_v13  ;;  %v9486_v54 = vmul.f32 %v7546_v28, %v4774_v13  ;;  %v9489_v41 = vmul.f32 %v7556_v35, %v4774_v13 }
 0x28f   : > { %v5570_v43 = vsel %vm4940_vm3, %v5568_v27, %v10043_v32  ;;  %v9495_v25 = vmul.f32 %v7629_v1, %v4774_v13  ;;  %v5688_v61 = vmul.f32 %v7546_v28, %v9344_v10  ;;  %v5348_v3 = vmul.f32 %v7512_v37, %v4774_v13 }
 0x290   : > { %10282 = vst [vmem:[#allocation11_spill] sm:$0xff] %v9483_v59  ;;  %v9499_v38 = vsel %vm3844_vm1, %v4630_v62, 0.0  ;;  %v5638_v29 = vadd.f32 %v5570_v43, %v5394_v17  ;;  %v5902_v22 = vmul.f32 %v7552_v34, %v4774_v13  ;;  %v9509_v27 = vmul.f32 %v7546_v28, %v9379_v2  ;;  %v10286_v17 = vld [vmem:[#allocation34_spill] sm:$0xff] }
 0x291   : > { %10283 = vst [vmem:[#allocation43_spill] sm:$0xff] %v9495_v25  ;;  %v5364_v40 = vmul.f32 %v7512_v37, %v9499_v38  ;;  %v5812_v43 = vrot.slane %v5688_v61, 2  ;;  %v5918_v11 = vmul.f32 %v7552_v34, %v9499_v38  ;;  %v2890_v32 = vmul.f32 %v9388_v42, %v10285_v23  ;;  %v6969_v61 = vld [vmem:[%s9970_s2] ss:$0 sm:$0xff] }
 0x292   : > { %v5813_v13 = vrot.slane %v9509_v27, 2  ;;  %v9528_v10 = vadd.f32 %v6969_v61, %v10286_v17  ;;  %v5312_v27 = vadd.f32 %v9294_v51, %v9299_v48  ;;  %v9538_v59 = vadd.f32 %v9297_v47, %v9301_v21 }
 0x293   : > { %v9516_v46 = vadd.f32 %v5364_v40, %v5328_v57  ;;  %v10287_v40 = vld [vmem:[#allocation53_spill] sm:$0xff]  ;;  %v2931_v62 = vadd.f32 1.0, %v2890_v32  ;;  %v5866_v17 = vadd.f32 %v9316_v19, %v9305_v26  ;;  %v9550_v51 = vadd.f32 %v9319_v6, %v9307_v63  ;;  %v10291_v6 = vld [vmem:[#allocation3_spill] sm:$0xff] }
 0x294   : > { %v5814_v57 = vsel %vm5185_vm4, %v5812_v43, %v5813_v13  ;;  %v9532_v55 = vadd.f32 %v6969_v61, %v10287_v40  ;;  %v9546_v40 = vadd.f32 %v5348_v3, %v5312_v27  ;;  %v6176_v47 = vadd.f32 %v9322_v39, %v9261_v33  ;;  %v10290_v27 = vld [vmem:[#allocation54_spill] sm:$0xff] }
 0x295   : > { %10284 = vst [vmem:[#allocation22_spill] sm:$0xff] %v9516_v46  ;;  %v5882_v42 = vadd.f32 %v5814_v57, %v5638_v29  ;;  %v2785_v46 = vmul.f32 %v9528_v10, %v9528_v10  ;;  %v2972_v21 = vmul.f32 %v2931_v62, %v10285_v23  ;;  %v9557_v29 = vadd.f32 %v5902_v22, %v5866_v17 }
 0x296   : > { %v2768_v43 = vmul.f32 %v9532_v55, %v9532_v55  ;;  %v10288_v19 = vrot.slane %v9312_v18, 2  ;;  %v10289_v3 = vrot.slane %v9340_v24, 2  ;;  %v9565_v63 = vadd.f32 %v6969_v61, %v10290_v27 }
 0x297   : > { %v9554_v48 = vadd.f32 %v5918_v11, %v5882_v42  ;;  %v2826_v32 = vadd.f32 1.0, %v2785_v46  ;;  %v9568_v25 = vadd.f32 %v6969_v61, %v10291_v6  ;;  %v3013_v11 = vmul.f32 0.5, %v2972_v21 }
 0x298   : > { %v2809_v26 = vadd.f32 1.0, %v2768_v43  ;;  %v6325_v57 = vsel %vm5185_vm4, %v10289_v3, %v10288_v19  ;;  %v4839_v23 = vmul.f32 %v10072_v44, %v9379_v2  ;;  %v9574_v46 = vmul.f32 %v7517_v45, %v9499_v38 }
 0x299   : > { %6960 = vrsqrt.f32 %v2826_v32  ;;  %v6420_v33 = vadd.f32 %v6325_v57, %v6176_v47  ;;  %v2769_v18 = vmul.f32 %v9565_v63, %v9565_v63  ;;  %v10292_v39 = vrot.slane %v9423_v49, 1 }
 0x29a   : > { %6962 = vrsqrt.f32 %v2809_v26  ;;  %v3399_v22 = vcombine.high %v3013_v11, %v3013_v11  ;;  %v3406_v62 = vrot.slane %v3013_v11, %v7489_v15  ;;  %v9585_v17 = vmul.f32 %v7546_v28, %v9499_v38 }
 0x29b   : > { %v5020_v24 = vsel %vm4940_vm3, %v10292_v39, %v5019_v8  ;;  %v6451_v61 = vadd.f32 %v9133_v52, %v6420_v33  ;;  %v6489_v42 = vmul.f32 %v6420_v33, %v6420_v33  ;;  %v2786_v43 = vmul.f32 %v9568_v25, %v9568_v25 }
 0x29c   : > { %v5084_v47 = vadd.f32 %v5020_v24, %v4839_v23  ;;  %v10293_v21 = vrot.slane %v9405_v4, 2  ;;  %v10294_v49 = vrot.slane %v9437_v36, 2  ;;  %v3413_v32 = vrot.slane %v3399_v22, %v7489_v15 }
 0x29d   : > { %v3414_v26 = vcombine.high %v3406_v62, %v3406_v62  ;;  %v9596_v52 = vadd.f32 %v6451_v61, %v9352_v60  ;;  %v6520_v19 = vadd.f32 %v9148_v5, %v6489_v42  ;;  %v9601_v3 = vmul.f32 %v7556_v35, %v9499_v38 }
 0x29e   : > { %v5265_v8 = vsel %vm5185_vm4, %v10294_v49, %v10293_v21  ;;  %v5363_v4 = vmul.f32 %v7512_v37, %v9379_v2  ;;  %v10295_v36 = vrot.slane %v9408_v50, 1  ;;  %v10296_v27 = vrot.slane %v9448_v12, 1  ;;  %v10298_v12 = vld [vmem:[#allocation14_spill] sm:$0xff] }
 0x29f   : > { %v9603_v57 = vadd.f32 %v5265_v8, %v5084_v47  ;;  %v3415_v11 = vcombine.high %v3413_v32, %v3413_v32  ;;  %v4303_v60 = vcombine.low %v3406_v62, %v3414_v26  ;;  %v9613_v33 = vadd.f32 %v6520_v19, %v9461_v16  ;;  %v10301_v47 = vld [vmem:[#allocation48_spill] sm:$0xff]  ;;  %v10305_v26 = vld [vmem:[#allocation10_spill] sm:$0xff] }
 0x2a0   : > { %v5572_v6 = vsel %vm4940_vm3, %v10296_v27, %v10295_v36  ;;  %v2810_v5 = vadd.f32 1.0, %v2769_v18  ;;  %v9617_v23 = vmul.f32 %v7629_v1, %v9499_v38  ;;  %v5395_v39 = vadd.f32 %v5363_v4, %v9153_v56  ;;  %v10307_v27 = vld [vmem:[#allocation7_spill] sm:$0xff] }
 0x2a1   : > { %v10297_v2 = vrot.slane %v9411_v58, 2  ;;  %v5880_v24 = vadd.f32 %v10298_v12, %v9161_v7  ;;  %v4304_v16 = vcombine.low %v3413_v32, %v3415_v11  ;;  %v2827_v61 = vadd.f32 1.0, %v2786_v43  ;;  %v10303_v32 = vld [vmem:[#allocation49_spill] sm:$0xff] }
 0x2a2   : > { %v5639_v18 = vadd.f32 %v5572_v6, %v5395_v39  ;;  %v10299_v38 = vrot.slane %v9394_v0, 1  ;;  %v10300_v56 = vrot.slane %v9369_v9, 1  ;;  %v4311_v7 = vrot.slane %v4303_v60, %v7489_v15 }
 0x2a3   : > { %v5816_v50 = vsel %vm5185_vm4, %v5813_v13, %v10297_v2  ;;  %v5948_v42 = vadd.f32 %v9465_v20, %v5880_v24  ;;  %v10302_v13 = vld [vmem:[#allocation31_spill] sm:$0xff]  ;;  %v6961_v49 = vpop.eup %6960  ;;  %v4318_v8 = vrot.slane %v4304_v16, %v7489_v15  ;;  %6964 = vrsqrt.f32 %v2810_v5 }
 0x2a4   : > { %v6121_v58 = vsel %vm4940_vm3, %v10300_v56, %v10299_v38  ;;  %v6190_v21 = vadd.f32 %v10302_v13, %v10301_v47  ;;  %v10304_v43 = vrot.slane %v10303_v32, 2  ;;  %v10306_v19 = vrot.slane %v10305_v26, 2  ;;  %v6963_v0 = vpop.eup %6962  ;;  %v10313_v47 = vld [vmem:[#allocation4_spill] sm:$0xff] }
 0x2a5   : > { %v2908_v9 = vmul.f32 %v6961_v49, %v9528_v10  ;;  %v9643_v4 = vadd.f32 %v5816_v50, %v5639_v18  ;;  %v6192_v36 = vadd.f32 %v6121_v58, %v5948_v42  ;;  %v10308_v6 = vrot.slane %v10307_v27, 2  ;;  %v10310_v50 = vld [vmem:[#allocation39_spill] sm:$0xff]  ;;  %v10311_v18 = vld [vmem:[#allocation50_spill] sm:$0xff] }
 0x2a6   : > { %v6360_v20 = vsel %vm5185_vm4, %v10306_v19, %v10304_v43  ;;  %v10309_v11 = vrot.slane %v9373_v53, 2  ;;  %v4319_v39 = vcombine.low %v4311_v7, %v4318_v8  ;;  %v2891_v2 = vmul.f32 %v6963_v0, %v9532_v55  ;;  %v10312_v53 = vld [vmem:[#allocation2_spill] sm:$0xff] }
 0x2a7   : > { %v9652_v12 = vadd.f32 %v6360_v20, %v6190_v21  ;;  %v2949_v16 = vadd.f32 1.0, %v2908_v9  ;;  %v9659_v42 = vadd.f32 %v10311_v18, %v10310_v50  ;;  %6966 = vrsqrt.f32 %v2827_v61 }
 0x2a8   : > { %v6365_v60 = vsel %vm5185_vm4, %v10309_v11, %v10308_v6  ;;  %v2932_v56 = vadd.f32 1.0, %v2891_v2  ;;  %v9662_v58 = vmul.f32 %v10312_v53, %v4319_v39  ;;  %v9665_v13 = vmul.f32 %v10313_v47, %v4319_v39 }
 0x2a9   : > { %v9655_v38 = vadd.f32 %v6365_v60, %v6192_v36  ;;  %v2990_v21 = vmul.f32 %v2949_v16, %v9528_v10  ;;  %v5349_v49 = vmul.f32 %v7512_v37, %v4319_v39  ;;  %v9670_v7 = vmul.f32 %v7517_v45, %v4319_v39  ;;  %v10316_v16 = vld [vmem:[#allocation11_spill] sm:$0xff] }
 0x2aa   : > { %v9673_v8 = vmul.f32 %v7546_v28, %v4319_v39  ;;  %v2973_v32 = vmul.f32 %v2932_v56, %v9532_v55  ;;  %v4982_v43 = vrot.slane %v9662_v58, 1  ;;  %v5227_v26 = vrot.slane %v9665_v13, 2 }
 0x2ab   : > { %v5903_v19 = vmul.f32 %v7552_v34, %v4319_v39  ;;  %v3031_v20 = vmul.f32 0.5, %v2990_v21  ;;  %v5381_v61 = vadd.f32 %v5349_v49, %v9538_v59  ;;  %v5534_v10 = vrot.slane %v9670_v7, 1 }
 0x2ac   : > { %v5778_v0 = vrot.slane %v9673_v8, 2  ;;  %v3014_v9 = vmul.f32 0.5, %v2973_v32  ;;  %v10314_v36 = vrot.slane %v9474_v31, 1  ;;  %v10315_v55 = vrot.slane %v9477_v30, 2 }
 0x2ad   : > { %v5935_v11 = vadd.f32 %v5903_v19, %v9550_v51  ;;  %v3705_v60 = vcombine.high %v3031_v20, %v3031_v20  ;;  %v3712_v2 = vrot.slane %v3031_v20, %v7489_v15  ;;  %v10317_v50 = vrot.slane %v9480_v14, 1  ;;  %v6965_v56 = vpop.eup %6964 }
 0x2ae   : > { %v4983_v27 = vsel %vm4940_vm3, %v10314_v36, %v4982_v43  ;;  %v5228_v6 = vsel %vm5185_vm4, %v10315_v55, %v5227_v26  ;;  %v3416_v58 = vcombine.high %v3014_v9, %v3014_v9  ;;  %v3423_v31 = vrot.slane %v3014_v9, %v7489_v15 }
 0x2af   : > { %v5069_v59 = vadd.f32 %v4983_v27, %v10316_v16  ;;  %v5535_v18 = vsel %vm4940_vm3, %v10317_v50, %v5534_v10  ;;  %v10318_v30 = vrot.slane %v9486_v54, 2  ;;  %v3719_v51 = vrot.slane %v3705_v60, %v7489_v15 }
 0x2b0   : > { %v5624_v13 = vadd.f32 %v5535_v18, %v9546_v40  ;;  %v3720_v49 = vcombine.high %v3712_v2, %v3712_v2  ;;  %v5977_v8 = vmul.f32 %v7556_v35, %v4319_v39  ;;  %v9704_v14 = vrot.slane %v3416_v58, %v7489_v15 }
 0x2b1   : > { %v5779_v21 = vsel %vm5185_vm4, %v10318_v30, %v5778_v0  ;;  %v9700_v7 = vadd.f32 %v5228_v6, %v5069_v59  ;;  %v3431_v32 = vcombine.high %v3423_v31, %v3423_v31  ;;  %v4326_v19 = vrot.slane %v3423_v31, %v7489_v15  ;;  %v6967_v27 = vpop.eup %6966 }
 0x2b2   : > { %v9707_v20 = vadd.f32 %v5779_v21, %v5624_v13  ;;  %v3721_v40 = vcombine.high %v3719_v51, %v3719_v51  ;;  %v4631_v9 = vcombine.low %v3712_v2, %v3720_v49  ;;  %v4825_v54 = vmul.f32 %v10072_v44, %v4319_v39 }
 0x2b3   : > { %v6085_v36 = vrot.slane %v5977_v8, 1  ;;  %v9711_v55 = vcombine.low %v3431_v32, %v9704_v14  ;;  %v4776_v60 = vsel %vm3903_vm2, %v4326_v19, 0.0  ;;  %v6221_v16 = vmul.f32 %v7629_v1, %v4319_v39 }
 0x2b4   : > { %v2892_v59 = vmul.f32 %v6965_v56, %v9565_v63  ;;  %v4632_v50 = vcombine.low %v3719_v51, %v3721_v40  ;;  %v4639_v18 = vrot.slane %v4631_v9, %v7489_v15  ;;  %v4870_v58 = vmul.f32 %v10312_v53, %v4776_v60 }
 0x2b5   : > { %v5115_v2 = vmul.f32 %v10313_v47, %v4776_v60  ;;  %v5425_v31 = vmul.f32 %v7517_v45, %v4776_v60  ;;  %v5669_v13 = vmul.f32 %v7546_v28, %v4776_v60  ;;  %v5978_v30 = vmul.f32 %v7556_v35, %v4776_v60 }
 0x2b6   : > { %v3432_v21 = vcombine.high %v9704_v14, %v9704_v14  ;;  %v4646_v39 = vrot.slane %v4632_v50, %v7489_v15  ;;  %v4984_v49 = vrot.slane %v4870_v58, 1  ;;  %v10320_v51 = vrot.slane %v9489_v41, 1 }
 0x2b7   : > { %v5229_v56 = vrot.slane %v5115_v2, 2  ;;  %v5536_v32 = vrot.slane %v5425_v31, 1  ;;  %v5780_v19 = vrot.slane %v5669_v13, 2  ;;  %v6087_v40 = vrot.slane %v5978_v30, 1 }
 0x2b8   : > { %v6086_v8 = vsel %vm4940_vm3, %v10320_v51, %v6085_v36  ;;  %v4647_v24 = vcombine.low %v4639_v18, %v4646_v39  ;;  %v4985_v5 = vsel %vm4940_vm3, %v4982_v43, %v4984_v49  ;;  %v6222_v14 = vmul.f32 %v7629_v1, %v4776_v60 }
 0x2b9   : > { %v6178_v9 = vadd.f32 %v6086_v8, %v9557_v29  ;;  %v5230_v62 = vsel %vm5185_vm4, %v5227_v26, %v5229_v56  ;;  %v5070_v22 = vadd.f32 %v4985_v5, %v4825_v54  ;;  %v5537_v50 = vsel %vm4940_vm3, %v5534_v10, %v5536_v32  ;;  %v10321_v5 = vld [vmem:[#allocation43_spill] sm:$0xff] }
 0x2ba   : > { %v5781_v58 = vsel %vm5185_vm4, %v5778_v0, %v5780_v19  ;;  %v6088_v41 = vsel %vm4940_vm3, %v6085_v36, %v6087_v40  ;;  %v5625_v2 = vadd.f32 %v5537_v50, %v5381_v61  ;;  %v6329_v13 = vrot.slane %v6221_v16, 2 }
 0x2bb   : > { %v6179_v31 = vadd.f32 %v6088_v41, %v5935_v11  ;;  %v6331_v30 = vrot.slane %v6222_v14, 2  ;;  %v9736_v51 = vadd.f32 %v5230_v62, %v5070_v22  ;;  %v2933_v29 = vadd.f32 1.0, %v2892_v59 }
 0x2bc   : > { %v2909_v43 = vmul.f32 %v6967_v27, %v9568_v25  ;;  %v5365_v26 = vmul.f32 %v7512_v37, %v4647_v24  ;;  %v9740_v18 = vadd.f32 %v5781_v58, %v5625_v2  ;;  %v10322_v54 = vrot.slane %v10321_v5, 2 }
 0x2bd   : > { %v6332_v0 = vsel %vm5185_vm4, %v6329_v13, %v6331_v30  ;;  %v9747_v61 = vmul.f32 %v7517_v45, %v4647_v24  ;;  %v2974_v22 = vmul.f32 %v2933_v29, %v9565_v63  ;;  %v9755_v16 = vmul.f32 %v7546_v28, %v4647_v24 }
 0x2be   : > { %v6330_v10 = vsel %vm5185_vm4, %v10322_v54, %v6329_v13  ;;  %v6423_v36 = vadd.f32 %v6332_v0, %v6179_v31  ;;  %v2950_v62 = vadd.f32 1.0, %v2909_v43  ;;  %v9751_v27 = vadd.f32 %v5365_v26, %v9603_v57 }
 0x2bf   : > { %v6422_v11 = vadd.f32 %v6330_v10, %v6178_v9  ;;  %v5574_v60 = vrot.slane %v9747_v61, 1  ;;  %v5919_v59 = vmul.f32 %v7552_v34, %v4647_v24  ;;  %v3015_v8 = vmul.f32 0.5, %v2974_v22  ;;  %v10352_v61 = vld [vmem:[#allocation29_spill] sm:$0xff] }
 0x2c0   : > { %v6492_v56 = vmul.f32 %v6423_v36, %v6423_v36  ;;  %v2991_v32 = vmul.f32 %v2950_v62, %v9568_v25  ;;  %v10323_v63 = vrot.slane %v9574_v46, 1  ;;  %v5818_v19 = vrot.slane %v9755_v16, 2  ;;  %v10324_v25 = vld [vmem:[#allocation22_spill] sm:$0xff]  ;;  %v10356_v16 = vld [vmem:[#allocation45_spill] sm:$0xff] }
 0x2c1   : > { %v6453_v39 = vadd.f32 %v9596_v52, %v6422_v11  ;;  %v6491_v49 = vmul.f32 %v6422_v11, %v6422_v11  ;;  %v9767_v40 = vadd.f32 %v5919_v59, %v9643_v4  ;;  %v3433_v14 = vcombine.high %v3015_v8, %v3015_v8  ;;  %v10326_v11 = vld [vmem:[#allocation21_spill] sm:$0xff]  ;;  %v10328_v59 = vld [vmem:[#allocation40_spill] sm:$0xff] }
 0x2c2   : > { %v5575_v57 = vsel %vm4940_vm3, %v10323_v63, %v5574_v60  ;;  %v3440_v50 = vrot.slane %v3015_v8, %v7489_v15  ;;  %v3032_v58 = vmul.f32 0.5, %v2991_v32  ;;  %v10325_v46 = vrot.slane %v9585_v17, 2 }
 0x2c3   : > { %v9769_v9 = vadd.f32 %v6453_v39, %v6423_v36  ;;  %v6522_v52 = vadd.f32 %v9613_v33, %v6491_v49  ;;  %v5640_v41 = vadd.f32 %v5575_v57, %v10324_v25  ;;  %v9780_v31 = vmul.f32 %v7556_v35, %v4647_v24  ;;  %v10329_v49 = vld [vmem:[#allocation13_spill] sm:$0xff] }
 0x2c4   : > { %v5819_v2 = vsel %vm5185_vm4, %v10325_v46, %v5818_v19  ;;  %v3447_v13 = vrot.slane %v3433_v14, %v7489_v15  ;;  %v3448_v33 = vcombine.high %v3440_v50, %v3440_v50  ;;  %v4328_v30 = vcombine.low %v3432_v21, %v3440_v50 }
 0x2c5   : > { %v9782_v4 = vadd.f32 %v6522_v52, %v6492_v56  ;;  %v3729_v29 = vrot.slane %v3032_v58, %v7489_v15  ;;  %v9786_v43 = vadd.f32 %v5819_v2, %v5640_v41  ;;  %v6125_v26 = vrot.slane %v9780_v31, 1 }
 0x2c6   : > { %v9790_v5 = vmul.f32 %v7629_v1, %v4647_v24  ;;  %v4335_v17 = vrot.slane %v9711_v55, %v7489_v15  ;;  %v3449_v54 = vcombine.high %v3447_v13, %v3447_v13  ;;  %v4342_v10 = vrot.slane %v4328_v30, %v7489_v15 }
 0x2c7   : > { %v4344_v0 = vcombine.low %v3448_v33, %v3447_v13  ;;  %v9797_v36 = vmul.f32 %v7552_v34, %v10326_v11  ;;  %v4654_v21 = vrot.slane %v3729_v29, %v7489_v15  ;;  %v10327_v22 = vrot.slane %v9601_v3, 1  ;;  %v10330_v3 = vld [vmem:[#allocation42_spill] sm:$0xff] }
 0x2c8   : > { %v6369_v62 = vrot.slane %v9790_v5, 2  ;;  %v9808_v55 = vmul.f32 %v7552_v34, %v10328_v59  ;;  %v4343_v39 = vcombine.low %v4335_v17, %v4342_v10  ;;  %v4345_v56 = vcombine.low %v3449_v54, %v10329_v49 }
 0x2c9   : > { %v6126_v24 = vsel %vm4940_vm3, %v10327_v22, %v6125_v26  ;;  %v4352_v32 = vrot.slane %v4344_v0, %v7489_v15  ;;  %v9817_v63 = vsel %vm3903_vm2, %v4654_v21, 0.0  ;;  %v9821_v57 = vmul.f32 %v7552_v34, %v10330_v3 }
 0x2ca   : > { %v9812_v8 = vadd.f32 %v6126_v24, %v9554_v48  ;;  %v10331_v52 = vrot.slane %v9617_v23, 2  ;;  %v4359_v48 = vrot.slane %v4345_v56, %v7489_v15  ;;  %v4777_v58 = vsel %vm3844_vm1, %v4343_v39, 0.0 }
 0x2cb   : > { %v9835_v6 = vmul.f32 %v7517_v45, %v9817_v63  ;;  %v9839_v25 = vmul.f32 %v7546_v28, %v9817_v63  ;;  %v4826_v41 = vmul.f32 %v10072_v44, %v4777_v58  ;;  %v4871_v23 = vmul.f32 %v10312_v53, %v4777_v58 }
 0x2cc   : > { %v9828_v14 = vsel %vm5185_vm4, %v10331_v52, %v6369_v62  ;;  %v5116_v46 = vmul.f32 %v10313_v47, %v4777_v58  ;;  %v5350_v2 = vmul.f32 %v7512_v37, %v4777_v58  ;;  %v4360_v15 = vcombine.low %v4352_v32, %v4359_v48  ;;  %v10333_v48 = vld [vmem:[#allocation37_spill] sm:$0xff] }
 0x2cd   : > { %v5426_v13 = vmul.f32 %v7517_v45, %v4777_v58  ;;  %v5670_v33 = vmul.f32 %v7546_v28, %v4777_v58  ;;  %v5904_v30 = vmul.f32 %v7552_v34, %v4777_v58  ;;  %v4986_v29 = vrot.slane %v4871_v23, 1  ;;  %v10335_v23 = vld [vmem:[#allocation41_spill] sm:$0xff] }
 0x2ce   : > { %v5231_v17 = vrot.slane %v5116_v46, 2  ;;  %v5382_v54 = vadd.f32 %v5350_v2, %v9700_v7  ;;  %v5979_v10 = vmul.f32 %v7556_v35, %v4777_v58  ;;  %v4827_v0 = vmul.f32 %v10072_v44, %v4360_v15 }
 0x2cf   : > { %v4872_v11 = vmul.f32 %v10312_v53, %v4360_v15  ;;  %v5117_v21 = vmul.f32 %v10313_v47, %v4360_v15  ;;  %v5351_v22 = vmul.f32 %v7512_v37, %v4360_v15  ;;  %v5427_v24 = vmul.f32 %v7517_v45, %v4360_v15 }
 0x2d0   : > { %v5538_v59 = vrot.slane %v5426_v13, 1  ;;  %v5671_v39 = vmul.f32 %v7546_v28, %v4360_v15  ;;  %v5782_v49 = vrot.slane %v5670_v33, 2  ;;  %v5905_v3 = vmul.f32 %v7552_v34, %v4360_v15 }
 0x2d1   : > { %v4987_v56 = vrot.slane %v4872_v11, 1  ;;  %v5232_v32 = vrot.slane %v5117_v21, 2  ;;  %v5383_v7 = vadd.f32 %v5351_v22, %v9736_v51  ;;  %v5539_v52 = vrot.slane %v5427_v24, 1  ;;  %v10337_v11 = vld [vmem:[#allocation19_spill] sm:$0xff]  ;;  %v10339_v24 = vld [vmem:[#allocation9_spill] sm:$0xff] }
 0x2d2   : > { %v5783_v44 = vrot.slane %v5671_v39, 2  ;;  %v5936_v53 = vadd.f32 %v5904_v30, %v9707_v20  ;;  %v5980_v47 = vmul.f32 %v7556_v35, %v4360_v15  ;;  %v10334_v45 = vrot.slane %v10333_v48, 1 }
 0x2d3   : > { %v4988_v37 = vsel %vm4940_vm3, %v4986_v29, %v4987_v56  ;;  %v5233_v28 = vsel %vm5185_vm4, %v5231_v17, %v5232_v32  ;;  %v10336_v46 = vrot.slane %v10335_v23, 2  ;;  %v5540_v33 = vsel %vm4940_vm3, %v5538_v59, %v5539_v52 }
 0x2d4   : > { %v4990_v50 = vsel %vm4940_vm3, %v4987_v56, %v10334_v45  ;;  %v5071_v2 = vadd.f32 %v4988_v37, %v4826_v41  ;;  %v10338_v20 = vrot.slane %v10337_v11, 1  ;;  %v5626_v21 = vadd.f32 %v5540_v33, %v5382_v54  ;;  %v10342_v54 = vld [vmem:[#allocation32_spill] sm:$0xff]  ;;  %v10347_v11 = vld [vmem:[#allocation27_spill] sm:$0xff] }
 0x2d5   : > { %v5235_v51 = vsel %vm5185_vm4, %v5232_v32, %v10336_v46  ;;  %v5072_v13 = vadd.f32 %v4990_v50, %v4827_v0  ;;  %v5784_v22 = vsel %vm5185_vm4, %v5782_v49, %v5783_v44  ;;  %v10340_v39 = vrot.slane %v10339_v24, 2  ;;  %v10341_v50 = vld [vmem:[#allocation16_spill] sm:$0xff]  ;;  %v10343_v46 = vld [vmem:[#allocation38_spill] sm:$0xff] }
 0x2d6   : > { %v5542_v30 = vsel %vm4940_vm3, %v5539_v52, %v10338_v20  ;;  %v5316_v56 = vadd.f32 %v5233_v28, %v5071_v2  ;;  %v5937_v32 = vadd.f32 %v5905_v3, %v9740_v18  ;;  %v6089_v41 = vrot.slane %v5979_v10, 1  ;;  %v10344_v10 = vld [vmem:[#allocation36_spill] sm:$0xff] }
 0x2d7   : > { %v5627_v29 = vadd.f32 %v5542_v30, %v5383_v7  ;;  %v5786_v17 = vsel %vm5185_vm4, %v5783_v44, %v10340_v39  ;;  %v5317_v48 = vadd.f32 %v5235_v51, %v5072_v13  ;;  %v5870_v0 = vadd.f32 %v5784_v22, %v5626_v21  ;;  %v10346_v51 = vld [vmem:[#allocation23_spill] sm:$0xff]  ;;  %v10348_v30 = vld [vmem:[#allocation24_spill] sm:$0xff]  ;;  %v10349_v21 = vld [vmem:[#allocation25_spill] sm:$0xff] }
 0x2d8   : > { %v6090_v59 = vrot.slane %v5980_v47, 1  ;;  %v6223_v45 = vmul.f32 %v7629_v1, %v4777_v58  ;;  %v5384_v52 = vadd.f32 %v10341_v50, %v5316_v56  ;;  %v6224_v49 = vmul.f32 %v7629_v1, %v4360_v15 }
 0x2d9   : > { %v5871_v37 = vadd.f32 %v5786_v17, %v5627_v29  ;;  %v5385_v7 = vadd.f32 %v10342_v54, %v5317_v48  ;;  %v5576_v23 = vrot.slane %v9835_v6, 1  ;;  %v5938_v44 = vadd.f32 %v10343_v46, %v5870_v0  ;;  %v10350_v17 = vld [vmem:[#allocation15_spill] sm:$0xff] }
 0x2da   : > { %v6091_v18 = vsel %vm4940_vm3, %v6089_v41, %v6090_v59  ;;  %v10345_v3 = vrot.slane %v10344_v10, 1  ;;  %v5628_v58 = vadd.f32 %v10346_v51, %v5384_v52  ;;  %v6333_v33 = vrot.slane %v6223_v45, 2 }
 0x2db   : > { %v5939_v28 = vadd.f32 %v9797_v36, %v5871_v37  ;;  %v6180_v2 = vadd.f32 %v6091_v18, %v5936_v53  ;;  %v6182_v20 = vadd.f32 %v10347_v11, %v5938_v44  ;;  %v6334_v15 = vrot.slane %v6224_v49, 2  ;;  %v10354_v49 = vld [vmem:[#allocation28_spill] sm:$0xff] }
 0x2dc   : > { %v6093_v47 = vsel %vm4940_vm3, %v6090_v59, %v10345_v3  ;;  %v5577_v6 = vsel %vm4940_vm3, %v5574_v60, %v5576_v23  ;;  %v5629_v36 = vadd.f32 %v10348_v30, %v5385_v7  ;;  %v5872_v29 = vadd.f32 %v10349_v21, %v5628_v58  ;;  %v10353_v60 = vld [vmem:[#allocation26_spill] sm:$0xff]  ;;  %v10355_v44 = vld [vmem:[#allocation44_spill] sm:$0xff] }
 0x2dd   : > { %v6181_v13 = vadd.f32 %v6093_v47, %v5937_v32  ;;  %v5641_v22 = vadd.f32 %v5577_v6, %v9751_v27  ;;  %v5820_v24 = vrot.slane %v9839_v25, 2  ;;  %v6002_v53 = vmul.f32 %v7556_v35, %v9817_v63  ;;  %v10357_v47 = vld [vmem:[#allocation30_spill] sm:$0xff] }
 0x2de   : > { %v6335_v39 = vsel %vm5185_vm4, %v6333_v33, %v6334_v15  ;;  %v10351_v56 = vrot.slane %v10350_v17, 2  ;;  %v6426_v32 = vadd.f32 %v10352_v61, %v6182_v20  ;;  %v5873_v41 = vadd.f32 %v10353_v60, %v5629_v36 }
 0x2df   : > { %v5940_v0 = vadd.f32 %v9808_v55, %v5872_v29  ;;  %v6424_v37 = vadd.f32 %v6335_v39, %v6180_v2  ;;  %v5821_v27 = vsel %vm5185_vm4, %v5818_v19, %v5820_v24  ;;  %v6127_v50 = vrot.slane %v6002_v53, 1  ;;  %v10359_v2 = vld [vmem:[#allocation47_spill] sm:$0xff]  ;;  %v10360_v24 = vld [vmem:[#allocation18_spill] sm:$0xff] }
 0x2e0   : > { %v6337_v48 = vsel %vm5185_vm4, %v6334_v15, %v10351_v56  ;;  %v5885_v25 = vadd.f32 %v5821_v27, %v5641_v22  ;;  %v5941_v45 = vadd.f32 %v9821_v57, %v5873_v41  ;;  %v6495_v7 = vmul.f32 %v6426_v32, %v6426_v32 }
 0x2e1   : > { %v6425_v59 = vadd.f32 %v6337_v48, %v6181_v13  ;;  %v6455_v52 = vadd.f32 %v9769_v9, %v6424_v37  ;;  %v6493_v54 = vmul.f32 %v6424_v37, %v6424_v37  ;;  %v6183_v23 = vadd.f32 %v10354_v49, %v5939_v28  ;;  %v10358_v28 = vld [vmem:[#allocation46_spill] sm:$0xff]  ;;  %v10362_v48 = vld [vmem:[#allocation52_spill] sm:$0xff] }
 0x2e2   : > { %v6128_v55 = vsel %vm4940_vm3, %v6125_v26, %v6127_v50  ;;  %v6184_v18 = vadd.f32 %v10355_v44, %v5940_v0  ;;  %v6185_v10 = vadd.f32 %v10356_v16, %v5941_v45  ;;  %v6246_v9 = vmul.f32 %v7629_v1, %v9817_v63  ;;  %v10363_v0 = vld [vmem:[#allocation51_spill] sm:$0xff] }
 0x2e3   : > { %v6494_v46 = vmul.f32 %v6425_v59, %v6425_v59  ;;  %v6456_v19 = vadd.f32 %v6455_v52, %v6425_v59  ;;  %v6524_v3 = vadd.f32 %v9782_v4, %v6493_v54  ;;  %v6195_v57 = vadd.f32 %v6128_v55, %v9767_v40 }
 0x2e4   : > { %v6427_v51 = vadd.f32 %v10357_v47, %v6183_v23  ;;  %v6428_v58 = vadd.f32 %v10358_v28, %v6184_v18  ;;  %v6429_v31 = vadd.f32 %v10359_v2, %v6185_v10  ;;  %v6371_v33 = vrot.slane %v6246_v9, 2 }
 0x2e5   : > { %v6457_v13 = vadd.f32 %v6456_v19, %v6426_v32  ;;  %v6525_v26 = vadd.f32 %v6524_v3, %v6494_v46  ;;  %v6438_v11 = vadd.f32 %v9828_v14, %v9812_v8  ;;  %v6499_v53 = vmul.f32 %v10360_v24, %v10360_v24  ;;  %v10361_v14 = vld [vmem:[#allocation33_spill] sm:$0xff] }
 0x2e6   : > { %v6496_v20 = vmul.f32 %v6427_v51, %v6427_v51  ;;  %v6372_v40 = vsel %vm5185_vm4, %v6369_v62, %v6371_v33  ;;  %v6497_v63 = vmul.f32 %v6428_v58, %v6428_v58  ;;  %v6498_v29 = vmul.f32 %v6429_v31, %v6429_v31 }
 0x2e7   : > { %v6526_v15 = vadd.f32 %v6525_v26, %v6495_v7  ;;  %v6458_v4 = vadd.f32 %v6457_v13, %v6427_v51  ;;  %v6439_v6 = vadd.f32 %v6372_v40, %v6195_v57  ;;  %v6500_v17 = vmul.f32 %v10361_v14, %v10361_v14  ;;  %v10364_v7 = vld [vmem:[#allocation8_spill] sm:$0xff] }
 0x2e8   : > { %v6003_v56 = vmul.f32 0.0, %v7556_v35  ;;  %v6501_v61 = vmul.f32 %v10362_v48, %v10362_v48  ;;  %v5920_v32 = vmul.f32 0.0, %v7552_v34  ;;  %v6502_v37 = vmul.f32 %v10363_v0, %v10363_v0 }
 0x2e9   : > { %v6459_v30 = vadd.f32 %v6458_v4, %v6428_v58  ;;  %v6527_v36 = vadd.f32 %v6526_v15, %v6496_v20  ;;  %v6247_v50 = vmul.f32 0.0, %v7629_v1  ;;  %v6503_v54 = vmul.f32 %v9652_v12, %v9652_v12 }
 0x2ea   : > { %v6129_v45 = vrot.slane %v6003_v56, 1  ;;  %v5952_v52 = vadd.f32 %v5920_v32, %v9786_v43  ;;  %v6504_v49 = vmul.f32 %v10364_v7, %v10364_v7  ;;  %v5953_v23 = vadd.f32 %v5920_v32, %v5885_v25 }
 0x2eb   : > { %v6460_v21 = vadd.f32 %v6459_v30, %v6429_v31  ;;  %v6528_v22 = vadd.f32 %v6527_v36, %v6497_v63  ;;  %v6373_v44 = vrot.slane %v6247_v50, 2  ;;  %v6505_v1 = vmul.f32 %v9655_v38, %v9655_v38 }
 0x2ec   : > { %v6196_v18 = vadd.f32 %v6129_v45, %v5952_v52  ;;  %v6197_v10 = vadd.f32 %v6129_v45, %v5953_v23  ;;  %v6507_v9 = vmul.f32 %v6438_v11, %v6438_v11  ;;  %v6508_v58 = vmul.f32 %v6439_v6, %v6439_v6 }
 0x2ed   : > { %v6461_v39 = vadd.f32 %v6460_v21, %v10360_v24  ;;  %v6529_v8 = vadd.f32 %v6528_v22, %v6498_v29 }
 0x2ee   : > { %v6440_v57 = vadd.f32 %v6373_v44, %v6196_v18  ;;  %v6441_v51 = vadd.f32 %v6373_v44, %v6197_v10 }
 0x2ef   : > { %v6462_v5 = vadd.f32 %v6461_v39, %v10361_v14  ;;  %v6530_v62 = vadd.f32 %v6529_v8, %v6499_v53  ;;  %v6548_v53 = vld [vmem:[%s9248_s30] sm:$0x3] }
 0x2f0   : > { %v6509_v13 = vmul.f32 %v6440_v57, %v6440_v57  ;;  %v6510_v33 = vmul.f32 %v6441_v51, %v6441_v51 }
 0x2f1   : > { %v6463_v60 = vadd.f32 %v6462_v5, %v10362_v48  ;;  %v6531_v41 = vadd.f32 %v6530_v62, %v6500_v17 }
 0x2f3   : > { %v6464_v59 = vadd.f32 %v6463_v60, %v10363_v0  ;;  %v6532_v27 = vadd.f32 %v6531_v41, %v6501_v61 }
 0x2f5   : > { %v6465_v35 = vadd.f32 %v6464_v59, %v9652_v12  ;;  %v6533_v34 = vadd.f32 %v6532_v27, %v6502_v37  ;;  %v6506_v12 = vmul.f32 %v9659_v42, %v9659_v42 }
 0x2f7   : > { %v6466_v46 = vadd.f32 %v6465_v35, %v10364_v7  ;;  %v6534_v55 = vadd.f32 %v6533_v34, %v6503_v54 }
 0x2f9   : > { %v6467_v16 = vadd.f32 %v6466_v46, %v9655_v38  ;;  %v6535_v43 = vadd.f32 %v6534_v55, %v6504_v49 }
 0x2fb   : > { %v6468_v19 = vadd.f32 %v6467_v16, %v9659_v42  ;;  %v6536_v3 = vadd.f32 %v6535_v43, %v6505_v1 }
 0x2fd   : > { %v6469_v25 = vadd.f32 %v6468_v19, %v6438_v11  ;;  %v6537_v47 = vadd.f32 %v6536_v3, %v6506_v12 }
 0x2ff   : > { %v6470_v28 = vadd.f32 %v6469_v25, %v6439_v6  ;;  %v6538_v2 = vadd.f32 %v6537_v47, %v6507_v9 }
 0x301   : > { %v6471_v31 = vadd.f32 %v6470_v28, %v6440_v57  ;;  %v6539_v26 = vadd.f32 %v6538_v2, %v6508_v58 }
 0x303   : > { %v6472_v38 = vadd.f32 %v6471_v31, %v6441_v51  ;;  %v6540_v20 = vadd.f32 %v6539_v26, %v6509_v13 }
 0x305   : > { %v6473_v15 = vrot.slane %v6472_v38, 4  ;;  %v6541_v40 = vadd.f32 %v6540_v20, %v6510_v33 }
 0x307   : > { %v6474_v42 = vadd.f32 %v6473_v15, %v6472_v38  ;;  %v6542_v4 = vrot.slane %v6541_v40, 4 }
 0x309   : > { %v6475_v63 = vrot.slane %v6474_v42, 2  ;;  %v6543_v30 = vadd.f32 %v6542_v4, %v6541_v40 }
 0x30b   : > { %v6476_v11 = vadd.f32 %v6475_v63, %v6474_v42  ;;  %v6544_v36 = vrot.slane %v6543_v30, 2 }
 0x30d   : > { %v6477_v21 = vrot.slane %v6476_v11, 1  ;;  %v6545_v29 = vadd.f32 %v6544_v36, %v6543_v30 }
 0x30f   : > { %v6546_v6 = vrot.slane %v6545_v29, 1  ;;  %v6478_v22 = vadd.f32 %v6477_v21, %v6476_v11 }
 0x311   : > { %v6547_v24 = vadd.f32 %v6546_v6, %v6545_v29 }
 0x313   : > { %v6550_v39 = vsel %vm6549_vm5, %v6478_v22, %v6547_v24 }
 0x314   : > { %v6551_v8 = vadd.f32 %v6550_v39, %v6548_v53 }
 0x316   : > { %6552 = vst [vmem:[%s9248_s30] sm:$0x3] %v6551_v8 }
 0x317 PF: > { %s14_s17 = sadd.s32 1, %s6992_s17   ;;  %s10365_s15 = smov %s6988_s16 }
 0x318   : > { %p11_p5 = scmp.ge.s32.totalorder %s14_s17, 4   ;;  %s10366_s16 = smov %s10368_s18 }
 0x31a   :  { %13 = sbr.rel (!%p11_p5) target bundleno = 2 (0x2), region = 71 }

// kernel: _lambda_.5
= control target key start
LH: loop header
LB: loop body
LE: loop exit
PB: predicated region body
PF: predicated region fallthrough
CT: control target
= control target key end

     0   :  { %s7726_s21 = smov 0   ;;  %s7728_s22 = smov 0   ;;  %s10789_s0 = inlined_call_operand.vmem [shape: bf16[2,18,18,128], index: 0, kind: input, shape index: {}]   ;;  %s10790_s1 = inlined_call_operand.vmem [shape: bf16[128,128], index: 1, kind: input, shape index: {}]   ;;  %s10791_s2 = inlined_call_operand.vmem [shape: f32[1,128], index: 2, kind: input, shape index: {}]   ;;  %s10792_s3 = inlined_call_operand.vmem [shape: f32[3,3,128], index: 3, kind: input, shape index: {}]   ;;  %s10793_s4 = inlined_call_operand.vmem [shape: f32[2,128], index: 4, kind: input, shape index: {}]   ;;  %s10794_s5 = inlined_call_operand.vmem [shape: bf16[128,128], index: 5, kind: input, shape index: {}]   ;;  %s10795_s6 = inlined_call_operand.vmem [shape: f32[2,16,16,2], index: 6, kind: output, shape index: {}]  }
   0x1   :  { %s7730_s23 = smov 0  }
   0x2 LB: > { %s28_s24 = sadd.s32 1, %s7681_s22  ;;  %p7155_p0 = scmp.ge.s32.totalorder %s7685_s23, 1  ;;  %s7685_s23 = sphi %s7730_s23, %s16_s23   ;;  %s7681_s22 = sphi %s7728_s22, %s11282_s22   ;;  %s7677_s21 = sphi %s7726_s21, %s11281_s21  }
   0x3   : > { %p30_p1 = scmp.ge.s32.totalorder %s28_s24, 2  ;;  %p226_p2 = scmp.lt.s32.totalorder %s7685_s23, 3 }
   0x5   : > { %s11284_s24 = smov (%p30_p1, %s28_s24), 0  ;;  %p227_p3 = pnand %p7155_p0, %p226_p2 }
   0x7   : > { %230 = sbr.rel (%p227_p3) target bundleno = 1067 (0x42b), region = 44 }
   0xe   : > { %v7502_v0 = vld [vmem:[%s10790_s1] sm:$0xff]   ;;  %v7687_v1 = vmov 0.0   ;;  %v7503_v2 = vld [vmem:[%s10790_s1 + $0x8] sm:$0xff]   ;;  %vm7688_vm0 = vmmov 0   ;;  %p261_p4 = scmp.lt.s32.totalorder %s7677_s21, 1  ;;  %v421_v3 = vlaneseq  ;;  %v7504_v4 = vld [vmem:[%s10790_s1 + $0x10] sm:$0xff]  }
   0xf   : > { %7309 = vmatprep.subr.bf16.mxu0 %v7687_v1  ;;  %7457 = vmatprep.subr.bf16.mxu1 %v7687_v1  ;;  %v7505_v6 = vld [vmem:[%s10790_s1 + $0x18] sm:$0xff]   ;;  %v7689_v8 = vmov 1966171168   ;;  %v7506_v19 = vld [vmem:[%s10790_s1 + $0x20] sm:$0xff]   ;;  %v7507_v29 = vld [vmem:[%s10790_s1 + $0x28] sm:$0xff]   ;;  %vm4988_vm3 = vcmask 1046528  }
  0x10   : > { %7310 = vmatpush3.bf16.msra.mxu0 %v7502_v0  ;;  %7325 = vmatprep.mubr.msk.bf16.mxu0 %vm7688_vm0, %v7687_v1  ;;  %s11286_s21 = smov (!%p261_p4, %s7677_s21), 1  ;;  %v7765_v5 = vshrl.u32 %v421_v3, 7  ;;  %v419_v9 = vunpack.c.l.s4 %v7689_v8  ;;  %v7508_v43 = vld [vmem:[%s10790_s1 + $0x30] sm:$0xff]   ;;  %vm5233_vm4 = vcmask 1045504   ;;  %vm7029_vm5 = vcmask 15360  }
  0x11   : > { %7311 = vmatprep.subr.bf16.mxu0 %v7687_v1  ;;  %7465 = vmatpush3.bf16.msra.mxu1 %v7502_v0  ;;  %s7473_s7 = smul.u32 216, %s11286_s21  ;;  %s7255_s28 = sshll.u32 %s11286_s21, 8 }
  0x12   : > { %7458 = vmatprep.subr.bf16.mxu1 %v7687_v1  ;;  %7385 = vmatprep.mubr.msk.bf16.mxu1 %vm7688_vm0, %v7687_v1  ;;  %v420_v12 = vunpack.c.0.s8 %v419_v9 }
  0x13   : > { %s7773_s12 = scalar_lea.vmem %s10789_s0, %s7473_s7 }
  0x14   : > { %7312 = vmatpush3.bf16.msra.mxu0 %v7503_v2  ;;  %v7159_v7 = vld.sshfl [vmem:[%s7773_s12] sm:$0x33 pattern:$0x75316420]  ;;  %v7783_v16 = vsub.s32 %v420_v12, %v7765_v5 }
  0x15   : > { %7313 = vmatprep.subr.bf16.mxu0 %v7687_v1  ;;  %7466 = vmatpush3.bf16.msra.mxu1 %v7503_v2  ;;  %v7160_v10 = vld.sshfl [vmem:[%s7773_s12 + $0x4] sm:$0x33 pattern:$0x75316420]  ;;  %v417_v11 = vcombine.high %v7159_v7, %v7159_v7 }
  0x16   : > { %7459 = vmatprep.subr.bf16.mxu1 %v7687_v1  ;;  %v441_v13 = vcombine.high %v7160_v10, %v7160_v10  ;;  %v7161_v14 = vld.sshfl [vmem:[%s7773_s12 + $0x8] sm:$0x1 pattern:$0x75316420]  ;;  %v424_v21 = vrot.slane %v7159_v7, %v7783_v16  ;;  %v448_v23 = vrot.slane %v7160_v10, %v7783_v16  ;;  %v7509_v10 = vld [vmem:[%s10790_s1 + $0x38] sm:$0xff]  }
  0x17   : > { %v7162_v15 = vld.sshfl [vmem:[%s7773_s12 + $0xc] sm:$0x33 pattern:$0x75316420]  ;;  %v431_v22 = vrot.slane %v417_v11, %v7783_v16  ;;  %v471_v25 = vrot.slane %v7161_v14, %v7783_v16 }
  0x18   : > { %7314 = vmatpush3.bf16.msra.mxu0 %v7504_v4  ;;  %v7163_v17 = vld.sshfl [vmem:[%s7773_s12 + $0x10] sm:$0x33 pattern:$0x75316420]  ;;  %v479_v18 = vcombine.high %v7162_v15, %v7162_v15  ;;  %v455_v24 = vrot.slane %v441_v13, %v7783_v16  ;;  %v486_v26 = vrot.slane %v7162_v15, %v7783_v16 }
  0x19   : > { %7315 = vmatprep.subr.bf16.mxu0 %v7687_v1  ;;  %7467 = vmatpush3.bf16.msra.mxu1 %v7504_v4  ;;  %v503_v20 = vcombine.high %v7163_v17, %v7163_v17  ;;  %v510_v28 = vrot.slane %v7163_v17, %v7783_v16  ;;  %v1532_v30 = vcombine.low %v424_v21, %v431_v22  ;;  %v7164_v38 = vld.sshfl [vmem:[%s7773_s12 + $0x14] sm:$0x1 pattern:$0x75316420] }
  0x1a   : > { %7460 = vmatprep.subr.bf16.mxu1 %v7687_v1  ;;  %v493_v27 = vrot.slane %v479_v18, %v7783_v16  ;;  %v7214_v31 = vcombine.high %v424_v21, %v431_v22  ;;  %v1534_v32 = vcombine.low %v448_v23, %v455_v24  ;;  %v7215_v33 = vcombine.high %v448_v23, %v455_v24  ;;  %v7165_v48 = vld.sshfl [vmem:[%s7773_s12 + $0x18] sm:$0x33 pattern:$0x75316420] }
  0x1b   : > { %v494_v34 = vcombine.high %v486_v26, %v486_v26  ;;  %v517_v36 = vrot.slane %v503_v20, %v7783_v16  ;;  %v518_v37 = vcombine.high %v510_v28, %v510_v28  ;;  %v1542_v39 = vrot.slane %v1532_v30, %v7783_v16  ;;  %v7166_v51 = vld.sshfl [vmem:[%s7773_s12 + $0x1c] sm:$0x33 pattern:$0x75316420] }
  0x1c   : > { %7316 = vmatpush3.bf16.msra.mxu0 %v7505_v6  ;;  %v495_v35 = vcombine.high %v493_v27, %v493_v27  ;;  %v1549_v40 = vrot.slane %v7214_v31, %v7783_v16  ;;  %v1556_v41 = vrot.slane %v1534_v32, %v7783_v16  ;;  %v1563_v42 = vrot.slane %v7215_v33, %v7783_v16  ;;  %v7167_v58 = vld.sshfl [vmem:[%s7773_s12 + $0x20] sm:$0x1 pattern:$0x75316420] }
  0x1d   : > { %7317 = vmatprep.subr.bf16.mxu0 %v7687_v1  ;;  %7468 = vmatpush3.bf16.msra.mxu1 %v7505_v6  ;;  %v1581_v44 = vcombine.low %v471_v25, %v486_v26  ;;  %v1582_v45 = vcombine.low %v493_v27, %v494_v34  ;;  %v1584_v47 = vcombine.low %v517_v36, %v518_v37  ;;  %v7168_v63 = vld.sshfl [vmem:[%s7773_s12 + $0x24] sm:$0x33 pattern:$0x75316420] }
  0x1e   : > { %7461 = vmatprep.subr.bf16.mxu1 %v7687_v1  ;;  %v1583_v46 = vcombine.low %v495_v35, %v510_v28  ;;  %v1564_v49 = vcombine.low %v1542_v39, %v1549_v40  ;;  %v1565_v50 = vcombine.low %v1556_v41, %v1563_v42  ;;  %v519_v52 = vcombine.high %v517_v36, %v517_v36  ;;  %v7169_v9 = vld.sshfl [vmem:[%s7773_s12 + $0x28] sm:$0x33 pattern:$0x75316420] }
  0x1f   : > { %v533_v53 = vrot.slane %v7164_v38, %v7783_v16  ;;  %v1591_v54 = vrot.slane %v1581_v44, %v7783_v16  ;;  %v1598_v55 = vrot.slane %v1582_v45, %v7783_v16  ;;  %v1612_v57 = vrot.slane %v1584_v47, %v7783_v16  ;;  %v7170_v28 = vld.sshfl [vmem:[%s7773_s12 + $0x2c] sm:$0x1 pattern:$0x75316420] }
  0x20   : > { %7318 = vmatpush3.bf16.msra.mxu0 %v7506_v19  ;;  %v1605_v56 = vrot.slane %v1583_v46, %v7783_v16  ;;  %v1572_v59 = vrot.slane %v1564_v49, %v7783_v16  ;;  %v1579_v60 = vrot.slane %v1565_v50, %v7783_v16  ;;  %v541_v61 = vcombine.high %v7165_v48, %v7165_v48  ;;  %v7171_v32 = vld.sshfl [vmem:[%s7773_s12 + $0x30] sm:$0x33 pattern:$0x75316420] }
  0x21   : > { %7319 = vmatprep.subr.bf16.mxu0 %v7687_v1  ;;  %7469 = vmatpush3.bf16.msra.mxu1 %v7506_v19  ;;  %v548_v62 = vrot.slane %v7165_v48, %v7783_v16  ;;  %v7826_v0 = vcombine.low %v1591_v54, %v1598_v55  ;;  %v565_v3 = vcombine.high %v7166_v51, %v7166_v51  ;;  %v7172_v42 = vld.sshfl [vmem:[%s7773_s12 + $0x34] sm:$0x33 pattern:$0x75316420] }
  0x22   : > { %7462 = vmatprep.subr.bf16.mxu1 %v7687_v1  ;;  %v7828_v2 = vcombine.low %v1605_v56, %v1612_v57  ;;  %v572_v4 = vrot.slane %v7166_v51, %v7783_v16  ;;  %v1580_v6 = vcombine.low %v1572_v59, %v1579_v60  ;;  %v555_v7 = vrot.slane %v541_v61, %v7783_v16  ;;  %v7173_v54 = vld.sshfl [vmem:[%s7773_s12 + $0x38] sm:$0x1 pattern:$0x75316420] }
  0x23   : > { %v1630_v8 = vcombine.low %v519_v52, %v533_v53  ;;  %v1621_v11 = vrot.slane %v7826_v0, %v7783_v16  ;;  %v579_v12 = vrot.slane %v565_v3, %v7783_v16  ;;  %v595_v13 = vrot.slane %v7167_v58, %v7783_v16  ;;  %v7174_v60 = vld.sshfl [vmem:[%s7773_s12 + $0x3c] sm:$0x33 pattern:$0x75316420] }
  0x24   : > { %7320 = vmatpush3.bf16.msra.mxu0 %v7507_v29  ;;  %v603_v14 = vcombine.high %v7168_v63, %v7168_v63  ;;  %v1631_v15 = vcombine.low %v548_v62, %v555_v7  ;;  %v7216_v17 = vcombine.high %v548_v62, %v555_v7  ;;  %v610_v19 = vrot.slane %v7168_v63, %v7783_v16 }
  0x25   : > { %7321 = vmatprep.subr.bf16.mxu0 %v7687_v1  ;;  %7470 = vmatpush3.bf16.msra.mxu1 %v7507_v29  ;;  %v1640_v18 = vrot.slane %v1630_v8, %v7783_v16  ;;  %v1628_v20 = vrot.slane %v7828_v2, %v7783_v16  ;;  %v1633_v21 = vcombine.low %v572_v4, %v579_v12 }
  0x26   : > { %7463 = vmatprep.subr.bf16.mxu1 %v7687_v1  ;;  %v617_v22 = vrot.slane %v603_v14, %v7783_v16  ;;  %v634_v23 = vrot.slane %v7169_v9, %v7783_v16  ;;  %v1647_v24 = vrot.slane %v1631_v15, %v7783_v16  ;;  %v1654_v25 = vrot.slane %v7216_v17, %v7783_v16  ;;  %v7199_v17 = vld.sshfl [vmem:[%s7773_s12 + $0xa0] sm:$0x33 pattern:$0x75316420] }
  0x27   : > { %v618_v26 = vcombine.high %v610_v19, %v610_v19  ;;  %v7217_v27 = vcombine.high %v572_v4, %v579_v12  ;;  %v1661_v29 = vrot.slane %v1633_v21, %v7783_v16  ;;  %v1680_v31 = vcombine.low %v595_v13, %v610_v19 }
  0x28   : > { %7322 = vmatpush3.bf16.msra.mxu0 %v7508_v43  ;;  %v619_v30 = vcombine.high %v617_v22, %v617_v22  ;;  %v627_v33 = vcombine.high %v7169_v9, %v7169_v9  ;;  %v1662_v34 = vcombine.low %v1640_v18, %v1647_v24  ;;  %v642_v37 = vcombine.high %v634_v23, %v634_v23 }
  0x29   : > { %7323 = vmatprep.subr.bf16.mxu0 %v7687_v1  ;;  %7471 = vmatpush3.bf16.msra.mxu1 %v7508_v43  ;;  %v1681_v35 = vcombine.low %v617_v22, %v618_v26  ;;  %v1689_v36 = vrot.slane %v7217_v27, %v7783_v16  ;;  %v1663_v38 = vcombine.low %v1654_v25, %v1661_v29  ;;  %v7200_v22 = vld.sshfl [vmem:[%s7773_s12 + $0xa4] sm:$0x1 pattern:$0x75316420] }
  0x2a   : > { %7464 = vmatprep.subr.bf16.mxu1 %v7687_v1  ;;  %v1682_v39 = vcombine.low %v619_v30, %v634_v23  ;;  %v1696_v40 = vrot.slane %v1680_v31, %v7783_v16  ;;  %v641_v41 = vrot.slane %v627_v33, %v7783_v16  ;;  %v1670_v43 = vrot.slane %v1662_v34, %v7783_v16  ;;  %v7201_v26 = vld.sshfl [vmem:[%s7773_s12 + $0xa8] sm:$0x33 pattern:$0x75316420] }
  0x2b   : > { %v1703_v44 = vrot.slane %v1681_v35, %v7783_v16  ;;  %v657_v45 = vrot.slane %v7170_v28, %v7783_v16  ;;  %v665_v46 = vcombine.high %v7171_v32, %v7171_v32  ;;  %v1677_v47 = vrot.slane %v1663_v38, %v7783_v16 }
  0x2c   : > { %7324 = vmatpush3.bf16.msra.mxu0 %v7509_v10  ;;  %v1710_v48 = vrot.slane %v1682_v39, %v7783_v16  ;;  %v1711_v49 = vcombine.low %v1689_v36, %v1696_v40  ;;  %v643_v50 = vcombine.high %v641_v41, %v641_v41  ;;  %v672_v51 = vrot.slane %v7171_v32, %v7783_v16  ;;  %v7175_v40 = vld.sshfl [vmem:[%s7773_s12 + $0x40] sm:$0x33 pattern:$0x75316420] }
  0x2d   : > { %7472 = vmatpush3.bf16.msra.mxu1 %v7509_v10  ;;  %v679_v52 = vrot.slane %v665_v46, %v7783_v16  ;;  %v1728_v53 = vcombine.low %v641_v41, %v642_v37  ;;  %v689_v55 = vcombine.high %v7172_v42, %v7172_v42  ;;  %v1629_v56 = vcombine.low %v1621_v11, %v1628_v20  ;;  %v7879_v11 = vld.sshfl [vmem:[%s7773_s12 + $0x9c] sm:$0x33 pattern:$0x75316420] }
  0x2e   : > { %v1678_v57 = vcombine.low %v1670_v43, %v1677_v47  ;;  %v1712_v58 = vcombine.low %v1703_v44, %v1710_v48  ;;  %v1729_v59 = vcombine.low %v643_v50, %v657_v45  ;;  %v696_v0 = vrot.slane %v7172_v42, %v7783_v16  ;;  %v7176_v45 = vld.sshfl [vmem:[%s7773_s12 + $0x44] sm:$0x1 pattern:$0x75316420] }
  0x2f   : > { %7326 = vmatmul.mubr.bf16.vlgmr.msra.gmra.mrb[0].mxu0 %v1580_v6  ;;  %v1730_v61 = vcombine.low %v672_v51, %v679_v52  ;;  %v7218_v62 = vcombine.high %v672_v51, %v679_v52  ;;  %v1738_v63 = vrot.slane %v1728_v53, %v7783_v16  ;;  %v1719_v2 = vrot.slane %v1711_v49, %v7783_v16  ;;  %v7177_v52 = vld.sshfl [vmem:[%s7773_s12 + $0x48] sm:$0x33 pattern:$0x75316420] }
  0x30   : > { %7329 = vmatprep.mubr.msk.bf16.mxu0 %vm7688_vm0, %v7687_v1  ;;  %v1745_v3 = vrot.slane %v1729_v59, %v7783_v16  ;;  %v703_v4 = vrot.slane %v689_v55, %v7783_v16  ;;  %v719_v6 = vrot.slane %v7173_v54, %v7783_v16  ;;  %v727_v9 = vcombine.high %v7174_v60, %v7174_v60 }
  0x31   : > { %v1752_v7 = vrot.slane %v1730_v61, %v7783_v16  ;;  %v1759_v8 = vrot.slane %v7218_v62, %v7783_v16  ;;  %v734_v10 = vrot.slane %v7174_v60, %v7783_v16  ;;  %v1726_v12 = vrot.slane %v1712_v58, %v7783_v16 }
  0x32   : > { %v1760_v13 = vcombine.low %v1738_v63, %v1745_v3  ;;  %v1777_v14 = vcombine.low %v696_v0, %v703_v4  ;;  %v7219_v15 = vcombine.high %v696_v0, %v703_v4  ;;  %v741_v19 = vrot.slane %v727_v9, %v7783_v16  ;;  %v7202_v0 = vld.sshfl [vmem:[%s7773_s12 + $0xac] sm:$0x33 pattern:$0x75316420] }
  0x33   : > { %v1761_v18 = vcombine.low %v1752_v7, %v1759_v8  ;;  %v742_v20 = vcombine.high %v734_v10, %v734_v10  ;;  %v1779_v21 = vcombine.low %v719_v6, %v734_v10  ;;  %v1223_v27 = vcombine.high %v7879_v11, %v7879_v11  ;;  %v7203_v10 = vld.sshfl [vmem:[%s7773_s12 + $0xb0] sm:$0x1 pattern:$0x75316420] }
  0x34   : > { %v1768_v23 = vrot.slane %v1760_v13, %v7783_v16  ;;  %v1787_v24 = vrot.slane %v1777_v14, %v7783_v16  ;;  %v1794_v25 = vrot.slane %v7219_v15, %v7783_v16  ;;  %v1247_v31 = vcombine.high %v7199_v17, %v7199_v17  ;;  %v7204_v15 = vld.sshfl [vmem:[%s7773_s12 + $0xb4] sm:$0x33 pattern:$0x75316420] }
  0x35   : > { %v1775_v28 = vrot.slane %v1761_v18, %v7783_v16  ;;  %v1780_v29 = vcombine.low %v741_v19, %v742_v20  ;;  %v1801_v30 = vrot.slane %v1779_v21, %v7783_v16  ;;  %v1727_v32 = vcombine.low %v1719_v2, %v1726_v12 }
  0x36   : > { %v1809_v33 = vcombine.low %v1787_v24, %v1794_v25  ;;  %v7896_v34 = vrot.slane %v1223_v27, %v7783_v16  ;;  %v1254_v35 = vrot.slane %v7199_v17, %v7783_v16  ;;  %v1261_v37 = vrot.slane %v1247_v31, %v7783_v16 }
  0x37   : > { %7330 = vmatmul.mubr.bf16.gmra.mrb[4].mxu0 %v1629_v56  ;;  %v1808_v36 = vrot.slane %v1780_v29, %v7783_v16  ;;  %v1277_v38 = vrot.slane %v7200_v22, %v7783_v16  ;;  %v1285_v39 = vcombine.high %v7201_v26, %v7201_v26  ;;  %v7903_v41 = vcombine.low %v1768_v23, %v1775_v28 }
  0x38   : > { %7333 = vmatprep.mubr.msk.bf16.mxu0 %vm7688_vm0, %v7687_v1  ;;  %v1239_v42 = vcombine.high %v7896_v34, %v7896_v34  ;;  %v1262_v43 = vcombine.high %v1254_v35, %v1254_v35  ;;  %v1292_v44 = vrot.slane %v7201_v26, %v7783_v16  ;;  %v1263_v47 = vcombine.high %v1261_v37, %v1261_v37  ;;  %v7178_v26 = vld.sshfl [vmem:[%s7773_s12 + $0x4c] sm:$0x33 pattern:$0x75316420] }
  0x39   : > { %v1810_v46 = vcombine.low %v1801_v30, %v1808_v36  ;;  %v1299_v48 = vrot.slane %v1285_v39, %v7783_v16  ;;  %v743_v49 = vcombine.high %v741_v19, %v741_v19  ;;  %v751_v53 = vcombine.high %v7175_v40, %v7175_v40 }
  0x3a   : > { %v2267_v50 = vcombine.low %v1239_v42, %v1254_v35  ;;  %v2268_v51 = vcombine.low %v1261_v37, %v1262_v43  ;;  %v758_v54 = vrot.slane %v7175_v40, %v7783_v16  ;;  %v1817_v55 = vrot.slane %v1809_v33, %v7783_v16  ;;  %v7179_v37 = vld.sshfl [vmem:[%s7773_s12 + $0x50] sm:$0x1 pattern:$0x75316420] }
  0x3b   : > { %v2269_v56 = vcombine.low %v1263_v47, %v1277_v38  ;;  %v2270_v58 = vcombine.low %v1292_v44, %v1299_v48  ;;  %v781_v59 = vrot.slane %v7176_v45, %v7783_v16  ;;  %v765_v62 = vrot.slane %v751_v53, %v7783_v16  ;;  %v7180_v42 = vld.sshfl [vmem:[%s7773_s12 + $0x54] sm:$0x33 pattern:$0x75316420] }
  0x3c   : > { %v2277_v60 = vrot.slane %v2267_v50, %v7783_v16  ;;  %v2284_v61 = vrot.slane %v2268_v51, %v7783_v16  ;;  %v766_v63 = vcombine.high %v758_v54, %v758_v54  ;;  %v789_v4 = vcombine.high %v7177_v52, %v7177_v52 }
  0x3d   : > { %v2291_v2 = vrot.slane %v2269_v56, %v7783_v16  ;;  %v2298_v3 = vrot.slane %v2270_v58, %v7783_v16  ;;  %v767_v7 = vcombine.high %v765_v62, %v765_v62  ;;  %v796_v8 = vrot.slane %v7177_v52, %v7783_v16 }
  0x3e   : > { %v2299_v6 = vcombine.low %v2277_v60, %v2284_v61  ;;  %v1826_v9 = vcombine.low %v743_v49, %v758_v54  ;;  %v803_v13 = vrot.slane %v789_v4, %v7783_v16  ;;  %v1827_v14 = vcombine.low %v765_v62, %v766_v63 }
  0x3f   : > { %7334 = vmatmul.mubr.bf16.gmra.mrb[8].mxu0 %v1678_v57  ;;  %v1824_v57 = vrot.slane %v1810_v46, %v7783_v16  ;;  %v2300_v12 = vcombine.low %v2291_v2, %v2298_v3  ;;  %v1309_v17 = vcombine.high %v7202_v0, %v7202_v0  ;;  %v1828_v19 = vcombine.low %v767_v7, %v781_v59  ;;  %v7205_v59 = vld.sshfl [vmem:[%s7773_s12 + $0xb8] sm:$0x33 pattern:$0x75316420] }
  0x40   : > { %7337 = vmatprep.mubr.msk.bf16.mxu0 %vm7688_vm0, %v7687_v1  ;;  %v2307_v18 = vrot.slane %v2299_v6, %v7783_v16  ;;  %v1836_v20 = vrot.slane %v1826_v9, %v7783_v16  ;;  %v1316_v21 = vrot.slane %v7202_v0, %v7783_v16  ;;  %v1829_v23 = vcombine.low %v796_v8, %v803_v13 }
  0x41   : > { %v2314_v22 = vrot.slane %v2300_v12, %v7783_v16  ;;  %v1843_v24 = vrot.slane %v1827_v14, %v7783_v16  ;;  %v1323_v25 = vrot.slane %v1309_v17, %v7783_v16  ;;  %v1850_v27 = vrot.slane %v1828_v19, %v7783_v16 }
  0x42   : > { %v1339_v28 = vrot.slane %v7203_v10, %v7783_v16  ;;  %v1354_v29 = vrot.slane %v7204_v15, %v7783_v16  ;;  %v7228_v30 = vcombine.high %v1292_v44, %v1299_v48  ;;  %v1857_v33 = vrot.slane %v1829_v23, %v7783_v16 }
  0x43   : > { %v2315_v31 = vcombine.low %v2307_v18, %v2314_v22  ;;  %v1858_v35 = vcombine.low %v1836_v20, %v1843_v24  ;;  %v2317_v36 = vcombine.low %v1316_v21, %v1323_v25  ;;  %v7229_v38 = vcombine.high %v1316_v21, %v1323_v25  ;;  %v7181_v20 = vld.sshfl [vmem:[%s7773_s12 + $0x58] sm:$0x33 pattern:$0x75316420] }
  0x44   : > { %v2319_v39 = vcombine.low %v1339_v28, %v1354_v29  ;;  %v2326_v40 = vrot.slane %v7228_v30, %v7783_v16  ;;  %v813_v43 = vcombine.high %v7178_v26, %v7178_v26  ;;  %v7943_v45 = vcombine.low %v1817_v55, %v1824_v57  ;;  %v7206_v57 = vld.sshfl [vmem:[%s7773_s12 + $0xbc] sm:$0x1 pattern:$0x75316420] }
  0x45   : > { %7386 = vmatmul.mubr.bf16.vlgmr.msra.gmra.mrb[0].mxu1 %v2315_v31  ;;  %v2333_v44 = vrot.slane %v2317_v36, %v7783_v16  ;;  %v820_v46 = vrot.slane %v7178_v26, %v7783_v16  ;;  %v2340_v47 = vrot.slane %v7229_v38, %v7783_v16  ;;  %v843_v50 = vrot.slane %v7179_v37, %v7783_v16  ;;  %v7182_v24 = vld.sshfl [vmem:[%s7773_s12 + $0x5c] sm:$0x1 pattern:$0x75316420] }
  0x46   : > { %7389 = vmatprep.mubr.msk.bf16.mxu1 %vm7688_vm0, %v7687_v1  ;;  %v2347_v48 = vrot.slane %v2319_v39, %v7783_v16  ;;  %v827_v49 = vrot.slane %v813_v43, %v7783_v16  ;;  %v1866_v51 = vrot.slane %v1858_v35, %v7783_v16  ;;  %v858_v53 = vrot.slane %v7180_v42, %v7783_v16  ;;  %v7207_v36 = vld.sshfl [vmem:[%s7773_s12 + $0xc0] sm:$0x33 pattern:$0x75316420] }
  0x47   : > { %7338 = vmatmul.mubr.bf16.gmra.mrb[12].mxu0 %v1727_v32  ;;  %v1859_v32 = vcombine.low %v1850_v27, %v1857_v33  ;;  %v2348_v52 = vcombine.low %v2326_v40, %v2333_v44  ;;  %v7220_v54 = vcombine.high %v796_v8, %v803_v13  ;;  %v1347_v60 = vcombine.high %v7204_v15, %v7204_v15 }
  0x48   : > { %7341 = vmatprep.mubr.msk.bf16.mxu0 %vm7688_vm0, %v7687_v1  ;;  %v2349_v55 = vcombine.low %v2340_v47, %v2347_v48  ;;  %v1876_v56 = vcombine.low %v820_v46, %v827_v49  ;;  %v7221_v58 = vcombine.high %v820_v46, %v827_v49  ;;  %v1878_v63 = vcombine.low %v843_v50, %v858_v53  ;;  %v7208_v46 = vld.sshfl [vmem:[%s7773_s12 + $0xc4] sm:$0x33 pattern:$0x75316420] }
  0x49   : > { %v1873_v61 = vrot.slane %v1859_v32, %v7783_v16  ;;  %v2356_v62 = vrot.slane %v2348_v52, %v7783_v16  ;;  %v1885_v0 = vrot.slane %v7220_v54, %v7783_v16  ;;  %v1361_v6 = vrot.slane %v1347_v60, %v7783_v16 }
  0x4a   : > { %v2363_v2 = vrot.slane %v2349_v55, %v7783_v16  ;;  %v1892_v3 = vrot.slane %v1876_v56, %v7783_v16  ;;  %v1899_v4 = vrot.slane %v7221_v58, %v7783_v16  ;;  %v1906_v7 = vrot.slane %v1878_v63, %v7783_v16 }
  0x4b   : > { %v1362_v8 = vcombine.high %v1354_v29, %v1354_v29  ;;  %v1371_v9 = vcombine.high %v7205_v59, %v7205_v59  ;;  %v1378_v10 = vrot.slane %v7205_v59, %v7783_v16  ;;  %v1363_v14 = vcombine.high %v1361_v6, %v1361_v6  ;;  %v7183_v59 = vld.sshfl [vmem:[%s7773_s12 + $0x60] sm:$0x33 pattern:$0x75316420] }
  0x4c   : > { %v2364_v12 = vcombine.low %v2356_v62, %v2363_v2  ;;  %v1907_v13 = vcombine.low %v1885_v0, %v1892_v3  ;;  %v1401_v15 = vrot.slane %v7206_v57, %v7783_v16  ;;  %v7970_v17 = vcombine.low %v1899_v4, %v1906_v7  ;;  %v7184_v7 = vld.sshfl [vmem:[%s7773_s12 + $0x64] sm:$0x33 pattern:$0x75316420] }
  0x4d   : > { %v1385_v18 = vrot.slane %v1371_v9, %v7783_v16  ;;  %v2365_v19 = vcombine.low %v1361_v6, %v1362_v8  ;;  %v1874_v21 = vcombine.low %v1866_v51, %v1873_v61  ;;  %v2366_v23 = vcombine.low %v1363_v14, %v1378_v10 }
  0x4e   : > { %7390 = vmatmul.mubr.bf16.gmra.mrb[4].mxu1 %v2364_v12  ;;  %v1915_v22 = vrot.slane %v1907_v13, %v7783_v16  ;;  %v851_v25 = vcombine.high %v7180_v42, %v7180_v42  ;;  %v866_v29 = vcombine.high %v858_v53, %v858_v53  ;;  %v875_v33 = vcombine.high %v7181_v20, %v7181_v20 }
  0x4f   : > { %7342 = vmatmul.mubr.bf16.gmra.mrb[16].mxu0 %v7903_v41  ;;  %v1386_v41 = vcombine.high %v1378_v10, %v1378_v10  ;;  %7393 = vmatprep.mubr.msk.bf16.mxu1 %vm7688_vm0, %v7687_v1  ;;  %v1387_v26 = vcombine.high %v1385_v18, %v1385_v18  ;;  %v2375_v28 = vrot.slane %v2365_v19, %v7783_v16  ;;  %v7185_v19 = vld.sshfl [vmem:[%s7773_s12 + $0x68] sm:$0x1 pattern:$0x75316420] }
  0x50   : > { %7345 = vmatprep.mubr.msk.bf16.mxu0 %vm7688_vm0, %v7687_v1  ;;  %v2382_v30 = vrot.slane %v2366_v23, %v7783_v16  ;;  %v865_v31 = vrot.slane %v851_v25, %v7783_v16  ;;  %v882_v35 = vrot.slane %v7181_v20, %v7783_v16  ;;  %v1922_v37 = vrot.slane %v7970_v17, %v7783_v16  ;;  %v7186_v25 = vld.sshfl [vmem:[%s7773_s12 + $0x6c] sm:$0x33 pattern:$0x75316420] }
  0x51   : > { %v2367_v27 = vcombine.low %v1385_v18, %v1386_v41  ;;  %v2368_v38 = vcombine.low %v1387_v26, %v1401_v15  ;;  %v905_v40 = vrot.slane %v7182_v24, %v7783_v16  ;;  %v889_v32 = vrot.slane %v875_v33, %v7783_v16 }
  0x52   : > { %v2397_v42 = vcombine.low %v2375_v28, %v2382_v30  ;;  %v867_v43 = vcombine.high %v865_v31, %v865_v31  ;;  %v890_v44 = vcombine.high %v882_v35, %v882_v35  ;;  %v1924_v48 = vcombine.low %v865_v31, %v866_v29  ;;  %v7187_v31 = vld.sshfl [vmem:[%s7773_s12 + $0x70] sm:$0x33 pattern:$0x75316420] }
  0x53   : > { %v2389_v39 = vrot.slane %v2367_v27, %v7783_v16  ;;  %v2396_v47 = vrot.slane %v2368_v38, %v7783_v16  ;;  %v1409_v49 = vcombine.high %v7207_v36, %v7207_v36  ;;  %v1416_v50 = vrot.slane %v7207_v36, %v7783_v16 }
  0x54   : > { %v2405_v51 = vrot.slane %v2397_v42, %v7783_v16  ;;  %v891_v52 = vcombine.high %v889_v32, %v889_v32  ;;  %v1925_v53 = vcombine.low %v867_v43, %v882_v35  ;;  %v1926_v54 = vcombine.low %v889_v32, %v890_v44 }
  0x55   : > { %v2398_v55 = vcombine.low %v2389_v39, %v2396_v47  ;;  %v1934_v56 = vrot.slane %v1924_v48, %v7783_v16  ;;  %v1433_v58 = vcombine.high %v7208_v46, %v7208_v46  ;;  %v1440_v63 = vrot.slane %v7208_v46, %v7783_v16 }
  0x56   : > { %v1927_v60 = vcombine.low %v891_v52, %v905_v40  ;;  %v1941_v61 = vrot.slane %v1925_v53, %v7783_v16  ;;  %v1948_v62 = vrot.slane %v1926_v54, %v7783_v16  ;;  %v913_v8 = vcombine.high %v7183_v59, %v7183_v59 }
  0x57   : > { %7346 = vmatmul.mubr.bf16.gmra.mrb[20].mxu0 %v7943_v45  ;;  %v1423_v45 = vrot.slane %v1409_v49, %v7783_v16  ;;  %v2412_v0 = vrot.slane %v2398_v55, %v7783_v16  ;;  %v1447_v57 = vrot.slane %v1433_v58, %v7783_v16  ;;  %v920_v9 = vrot.slane %v7183_v59, %v7783_v16  ;;  %v7209_v55 = vld.sshfl [vmem:[%s7773_s12 + $0xc8] sm:$0x1 pattern:$0x75316420] }
  0x58   : > { %7349 = vmatprep.mubr.msk.bf16.mxu0 %vm7688_vm0, %v7687_v1  ;;  %v1955_v4 = vrot.slane %v1927_v60, %v7783_v16  ;;  %v8004_v6 = vcombine.low %v1934_v56, %v1941_v61  ;;  %v1923_v15 = vcombine.low %v1915_v22, %v1922_v37  ;;  %v927_v41 = vrot.slane %v913_v8, %v7783_v16  ;;  %v7210_v58 = vld.sshfl [vmem:[%s7773_s12 + $0xcc] sm:$0x33 pattern:$0x75316420] }
  0x59   : > { %v2414_v2 = vcombine.low %v1416_v50, %v1423_v45  ;;  %v7230_v3 = vcombine.high %v1416_v50, %v1423_v45  ;;  %v2413_v10 = vcombine.low %v2405_v51, %v2412_v0  ;;  %v2416_v12 = vcombine.low %v1440_v63, %v1447_v57  ;;  %v7211_v61 = vld.sshfl [vmem:[%s7773_s12 + $0xd0] sm:$0x33 pattern:$0x75316420] }
  0x5a   : > { %v7231_v13 = vcombine.high %v1440_v63, %v1447_v57  ;;  %v1957_v17 = vcombine.low %v1948_v62, %v1955_v4  ;;  %v937_v24 = vcombine.high %v7184_v7, %v7184_v7  ;;  %v1964_v22 = vrot.slane %v8004_v6, %v7783_v16 }
  0x5b   : > { %v2424_v14 = vrot.slane %v2414_v2, %v7783_v16  ;;  %v2431_v18 = vrot.slane %v7230_v3, %v7783_v16  ;;  %7394 = vmatmul.mubr.bf16.gmra.mrb[8].mxu1 %v2413_v10  ;;  %v2438_v20 = vrot.slane %v2416_v12, %v7783_v16  ;;  %v944_v27 = vrot.slane %v7184_v7, %v7783_v16  ;;  %v7188_v10 = vld.sshfl [vmem:[%s7773_s12 + $0x74] sm:$0x1 pattern:$0x75316420] }
  0x5c   : > { %v2445_v23 = vrot.slane %v7231_v13, %v7783_v16  ;;  %7397 = vmatprep.mubr.msk.bf16.mxu1 %vm7688_vm0, %v7687_v1  ;;  %v951_v28 = vrot.slane %v937_v24, %v7783_v16  ;;  %v1973_v29 = vcombine.low %v920_v9, %v927_v41  ;;  %v7222_v30 = vcombine.high %v920_v9, %v927_v41 }
  0x5d   : > { %v2446_v26 = vcombine.low %v2424_v14, %v2431_v18  ;;  %v1971_v33 = vrot.slane %v1957_v17, %v7783_v16  ;;  %v967_v36 = vrot.slane %v7185_v19, %v7783_v16  ;;  %v975_v37 = vcombine.high %v7186_v25, %v7186_v25  ;;  %v7189_v17 = vld.sshfl [vmem:[%s7773_s12 + $0x78] sm:$0x33 pattern:$0x75316420] }
  0x5e   : > { %v1975_v39 = vcombine.low %v944_v27, %v951_v28  ;;  %v7223_v40 = vcombine.high %v944_v27, %v951_v28  ;;  %v1983_v42 = vrot.slane %v1973_v29, %v7783_v16  ;;  %v1990_v43 = vrot.slane %v7222_v30, %v7783_v16 }
  0x5f   : > { %7350 = vmatmul.mubr.bf16.gmra.mrb[24].mxu0 %v1874_v21  ;;  %v2447_v21 = vcombine.low %v2438_v20, %v2445_v23  ;;  %v2454_v35 = vrot.slane %v2446_v26, %v7783_v16  ;;  %v982_v32 = vrot.slane %v7186_v25, %v7783_v16  ;;  %v989_v44 = vrot.slane %v975_v37, %v7783_v16  ;;  %v7190_v23 = vld.sshfl [vmem:[%s7773_s12 + $0x7c] sm:$0x33 pattern:$0x75316420] }
  0x60   : > { %7353 = vmatprep.mubr.msk.bf16.mxu0 %vm7688_vm0, %v7687_v1  ;;  %v999_v46 = vcombine.high %v7187_v31, %v7187_v31  ;;  %v1997_v48 = vrot.slane %v1975_v39, %v7783_v16  ;;  %v2004_v49 = vrot.slane %v7223_v40, %v7783_v16  ;;  %v1006_v50 = vrot.slane %v7187_v31, %v7783_v16 }
  0x61   : > { %v2461_v38 = vrot.slane %v2447_v21, %v7783_v16  ;;  %v2005_v51 = vcombine.low %v1983_v42, %v1990_v43  ;;  %v990_v52 = vcombine.high %v982_v32, %v982_v32  ;;  %v991_v53 = vcombine.high %v989_v44, %v989_v44 }
  0x62   : > { %v1013_v54 = vrot.slane %v999_v46, %v7783_v16  ;;  %v1014_v56 = vcombine.high %v1006_v50, %v1006_v50  ;;  %v2022_v45 = vcombine.low %v967_v36, %v982_v32  ;;  %v2006_v59 = vcombine.low %v1997_v48, %v2004_v49  ;;  %v7192_v36 = vld.sshfl [vmem:[%s7773_s12 + $0x84] sm:$0x33 pattern:$0x75316420] }
  0x63   : > { %v2462_v47 = vcombine.low %v2454_v35, %v2461_v38  ;;  %v2023_v60 = vcombine.low %v989_v44, %v990_v52  ;;  %v2024_v62 = vcombine.low %v991_v53, %v1006_v50  ;;  %v1463_v0 = vrot.slane %v7209_v55, %v7783_v16  ;;  %v7191_v46 = vld.sshfl [vmem:[%s7773_s12 + $0x80] sm:$0x1 pattern:$0x75316420] }
  0x64   : > { %v2025_v63 = vcombine.low %v1013_v54, %v1014_v56  ;;  %v1972_v57 = vcombine.low %v1964_v22, %v1971_v33  ;;  %v2013_v2 = vrot.slane %v2005_v51, %v7783_v16  ;;  %v1471_v3 = vcombine.high %v7210_v58, %v7210_v58  ;;  %v7193_v50 = vld.sshfl [vmem:[%s7773_s12 + $0x88] sm:$0x33 pattern:$0x75316420] }
  0x65   : > { %7398 = vmatmul.mubr.bf16.gmra.mrb[12].mxu1 %v2462_v47  ;;  %v1478_v4 = vrot.slane %v7210_v58, %v7783_v16  ;;  %v2032_v6 = vrot.slane %v2022_v45, %v7783_v16  ;;  %v2039_v7 = vrot.slane %v2023_v60, %v7783_v16  ;;  %v1495_v8 = vcombine.high %v7211_v61, %v7211_v61 }
  0x66   : > { %7401 = vmatprep.mubr.msk.bf16.mxu1 %vm7688_vm0, %v7687_v1  ;;  %v1502_v9 = vrot.slane %v7211_v61, %v7783_v16  ;;  %v2020_v12 = vrot.slane %v2006_v59, %v7783_v16  ;;  %v1485_v13 = vrot.slane %v1471_v3, %v7783_v16  ;;  %v2046_v18 = vrot.slane %v2024_v62, %v7783_v16 }
  0x67   : > { %7354 = vmatmul.mubr.bf16.gmra.mrb[28].mxu0 %v1923_v15  ;;  %v1486_v14 = vcombine.high %v1478_v4, %v1478_v4  ;;  %v2463_v15 = vcombine.low %v1463_v0, %v1478_v4  ;;  %v2053_v41 = vrot.slane %v2025_v63, %v7783_v16  ;;  %v8056_v19 = vrot.slane %v1495_v8, %v7783_v16 }
  0x68   : > { %7357 = vmatprep.mubr.msk.bf16.mxu0 %vm7688_vm0, %v7687_v1  ;;  %v1510_v20 = vcombine.high %v1502_v9, %v1502_v9  ;;  %v1487_v24 = vcombine.high %v1485_v13, %v1485_v13  ;;  %v1015_v26 = vcombine.high %v1013_v54, %v1013_v54  ;;  %v2054_v27 = vcombine.low %v2032_v6, %v2039_v7  ;;  %v7195_v6 = vld.sshfl [vmem:[%s7773_s12 + $0x90] sm:$0x33 pattern:$0x75316420] }
  0x69   : > { %v2464_v25 = vcombine.low %v1485_v13, %v1486_v14  ;;  %v2473_v22 = vrot.slane %v2463_v15, %v7783_v16  ;;  %v1029_v28 = vrot.slane %v7188_v10, %v7783_v16  ;;  %v1037_v29 = vcombine.high %v7189_v17, %v7189_v17 }
  0x6a   : > { %v2466_v21 = vcombine.low %v8056_v19, %v1510_v20  ;;  %v2465_v30 = vcombine.low %v1487_v24, %v1502_v9  ;;  %v1044_v33 = vrot.slane %v7189_v17, %v7783_v16  ;;  %v1061_v35 = vcombine.high %v7190_v23, %v7190_v23 }
  0x6b   : > { %v2480_v31 = vrot.slane %v2464_v25, %v7783_v16  ;;  %v2055_v37 = vcombine.low %v2046_v18, %v2053_v41  ;;  %v1051_v39 = vrot.slane %v1037_v29, %v7783_v16  ;;  %v1068_v40 = vrot.slane %v7190_v23, %v7783_v16  ;;  %v7194_v18 = vld.sshfl [vmem:[%s7773_s12 + $0x8c] sm:$0x1 pattern:$0x75316420] }
  0x6c   : > { %v2494_v38 = vrot.slane %v2466_v21, %v7783_v16  ;;  %v2487_v42 = vrot.slane %v2465_v30, %v7783_v16  ;;  %v1075_v32 = vrot.slane %v1061_v35, %v7783_v16  ;;  %v2071_v44 = vcombine.low %v1015_v26, %v1029_v28 }
  0x6d   : > { %v2495_v43 = vcombine.low %v2473_v22, %v2480_v31  ;;  %v2021_v47 = vcombine.low %v2013_v2, %v2020_v12  ;;  %v2072_v48 = vcombine.low %v1044_v33, %v1051_v39  ;;  %v7224_v49 = vcombine.high %v1044_v33, %v1051_v39  ;;  %v7196_v31 = vld.sshfl [vmem:[%s7773_s12 + $0x94] sm:$0x33 pattern:$0x75316420] }
  0x6e   : > { %v1099_v51 = vcombine.high %v7192_v36, %v7192_v36  ;;  %v2062_v52 = vrot.slane %v2054_v27, %v7783_v16  ;;  %v2496_v53 = vcombine.low %v2487_v42, %v2494_v38  ;;  %v2074_v55 = vcombine.low %v1068_v40, %v1075_v32 }
  0x6f   : > { %7358 = vmatmul.mubr.bf16.gmra.mrb[32].mxu0 %v1972_v57  ;;  %v2503_v54 = vrot.slane %v2495_v43, %v7783_v16  ;;  %v2069_v56 = vrot.slane %v2055_v37, %v7783_v16  ;;  %v1091_v45 = vrot.slane %v7191_v46, %v7783_v16  ;;  %v1106_v58 = vrot.slane %v7192_v36, %v7783_v16 }
  0x70   : > { %7361 = vmatprep.mubr.msk.bf16.mxu0 %vm7688_vm0, %v7687_v1  ;;  %v1113_v59 = vrot.slane %v1099_v51, %v7783_v16  ;;  %v2510_v60 = vrot.slane %v2496_v53, %v7783_v16  ;;  %v2081_v61 = vrot.slane %v2071_v44, %v7783_v16  ;;  %v2088_v62 = vrot.slane %v2072_v48, %v7783_v16 }
  0x71   : > { %v1130_v63 = vrot.slane %v7193_v50, %v7783_v16  ;;  %v2095_v0 = vrot.slane %v7224_v49, %v7783_v16  ;;  %v2102_v57 = vrot.slane %v2074_v55, %v7783_v16  ;;  %v1114_v2 = vcombine.high %v1106_v58, %v1106_v58 }
  0x72   : > { %v1115_v3 = vcombine.high %v1113_v59, %v1113_v59  ;;  %v2511_v4 = vcombine.low %v2503_v54, %v2510_v60  ;;  %v1123_v7 = vcombine.high %v7193_v50, %v7193_v50  ;;  %v7225_v8 = vcombine.high %v1068_v40, %v1075_v32  ;;  %v7197_v32 = vld.sshfl [vmem:[%s7773_s12 + $0x98] sm:$0x1 pattern:$0x75316420] }
  0x73   : > { %v2121_v9 = vcombine.low %v1091_v45, %v1106_v58  ;;  %v2122_v10 = vcombine.low %v1113_v59, %v1114_v2  ;;  %v2070_v14 = vcombine.low %v2062_v52, %v2069_v56  ;;  %v2103_v15 = vcombine.low %v2081_v61, %v2088_v62 }
  0x74   : > { %7402 = vmatmul.mubr.bf16.gmra.mrb[16].mxu1 %v2511_v4  ;;  %v2123_v12 = vcombine.low %v1115_v3, %v1130_v63  ;;  %v1137_v13 = vrot.slane %v1123_v7, %v7783_v16  ;;  %v2104_v17 = vcombine.low %v2095_v0, %v2102_v57  ;;  %v1161_v41 = vcombine.high %v7195_v6, %v7195_v6 }
  0x75   : > { %7405 = vmatprep.mubr.msk.bf16.mxu1 %vm7688_vm0, %v7687_v1  ;;  %v2130_v20 = vrot.slane %v7225_v8, %v7783_v16  ;;  %v2137_v23 = vrot.slane %v2121_v9, %v7783_v16  ;;  %v1138_v24 = vcombine.high %v1130_v63, %v1130_v63  ;;  %v2144_v25 = vrot.slane %v2122_v10, %v7783_v16 }
  0x76   : > { %v2151_v22 = vrot.slane %v2123_v12, %v7783_v16  ;;  %v1139_v26 = vcombine.high %v1137_v13, %v1137_v13  ;;  %v1153_v27 = vrot.slane %v7194_v18, %v7783_v16  ;;  %v2111_v21 = vrot.slane %v2103_v15, %v7783_v16 }
  0x77   : > { %7362 = vmatmul.mubr.bf16.gmra.mrb[36].mxu0 %v2021_v47  ;;  %v2118_v28 = vrot.slane %v2104_v17, %v7783_v16  ;;  %v1168_v29 = vrot.slane %v7195_v6, %v7783_v16  ;;  %v1175_v30 = vrot.slane %v1161_v41, %v7783_v16  ;;  %v2152_v33 = vcombine.low %v2130_v20, %v2137_v23 }
  0x78   : > { %7365 = vmatprep.mubr.msk.bf16.mxu0 %vm7688_vm0, %v7687_v1  ;;  %v2169_v35 = vcombine.low %v1137_v13, %v1138_v24  ;;  %v2153_v36 = vcombine.low %v2144_v25, %v2151_v22  ;;  %v2170_v37 = vcombine.low %v1139_v26, %v1153_v27  ;;  %v1185_v38 = vcombine.high %v7196_v31, %v7196_v31 }
  0x79   : > { %v2119_v39 = vcombine.low %v2111_v21, %v2118_v28  ;;  %v2171_v40 = vcombine.low %v1168_v29, %v1175_v30  ;;  %v7226_v42 = vcombine.high %v1168_v29, %v1175_v30  ;;  %v1230_v43 = vrot.slane %v7879_v11, %v7783_v16 }
  0x7a   : > { %v2160_v44 = vrot.slane %v2152_v33, %v7783_v16  ;;  %v2179_v46 = vrot.slane %v2169_v35, %v7783_v16  ;;  %v2167_v47 = vrot.slane %v2153_v36, %v7783_v16  ;;  %v2186_v48 = vrot.slane %v2170_v37, %v7783_v16 }
  0x7b   : > { %v1192_v49 = vrot.slane %v7196_v31, %v7783_v16  ;;  %v1199_v50 = vrot.slane %v1185_v38, %v7783_v16  ;;  %v2193_v51 = vrot.slane %v2171_v40, %v7783_v16  ;;  %v2200_v52 = vrot.slane %v7226_v42, %v7783_v16  ;;  %v295_v40 = vld [vmem:[%s10792_s3] sm:$0x7] }
  0x7c   : > { %v1215_v11 = vrot.slane %v7197_v32, %v7783_v16  ;;  %v1238_v53 = vcombine.high %v1230_v43, %v1230_v43  ;;  %v2168_v54 = vcombine.low %v2160_v44, %v2167_v47  ;;  %v2201_v55 = vcombine.low %v2179_v46, %v2186_v48 }
  0x7d   : > { %v2218_v56 = vcombine.low %v1192_v49, %v1199_v50  ;;  %v2202_v45 = vcombine.low %v2193_v51, %v2200_v52  ;;  %v7227_v58 = vcombine.high %v1192_v49, %v1199_v50  ;;  %v7690_v28 = vmov 1983009808  }
  0x7e   : > { %v2220_v59 = vcombine.low %v1215_v11, %v1230_v43  ;;  %v2221_v60 = vcombine.low %v7896_v34, %v1238_v53  ;;  %v2209_v61 = vrot.slane %v2201_v55, %v7783_v16  ;;  %v3160_v29 = vunpack.c.l.s4 %v7690_v28  ;;  %v296_v55 = vld [vmem:[%s10792_s3 + $0x4] sm:$0x7] }
  0x7f   : > { %7366 = vmatmul.mubr.bf16.gmra.mrb[40].mxu0 %v2070_v14  ;;  %v2228_v62 = vrot.slane %v2218_v56, %v7783_v16  ;;  %v2216_v63 = vrot.slane %v2202_v45, %v7783_v16  ;;  %v2235_v0 = vrot.slane %v7227_v58, %v7783_v16  ;;  %v8135_v14 = vld [vmem:[%s10791_s2] ss:$0 sm:$0xff]  ;;  %v8158_v42 = vsub.s32 0, %v7765_v5 }
  0x80   : > { %7369 = vmatprep.mubr.msk.bf16.mxu0 %vm7688_vm0, %v7687_v1  ;;  %v2242_v57 = vrot.slane %v2220_v59, %v7783_v16  ;;  %v2249_v2 = vrot.slane %v2221_v60, %v7783_v16  ;;  %v3161_v38 = vunpack.c.0.s8 %v3160_v29  ;;  %v5135_v32 = vsub.s32 2, %v7765_v5 }
  0x81   : > { %v2217_v3 = vcombine.low %v2209_v61, %v2216_v63  ;;  %v2250_v4 = vcombine.low %v2228_v62, %v2235_v0  ;;  %10928 = vst [vmem:[#allocation2_spill] sm:$0xff] %v8158_v42  ;;  %v8168_v51 = vadd.s32 4294967295, %v7765_v5  ;;  %v8176_v56 = vrot.slane %v295_v40, %v8158_v42 }
  0x82   : > { %v2251_v6 = vcombine.low %v2242_v57, %v2249_v2  ;;  %v8165_v50 = vsub.s32 %v3161_v38, %v7765_v5  ;;  %v8187_v0 = vrot.slane %v295_v40, %v5135_v32  ;;  %v3834_v57 = vadd.s32 16, %v7765_v5 }
  0x83   : > { %v2258_v34 = vrot.slane %v2250_v4, %v7783_v16  ;;  %vm3892_vm1 = vcmp.ge.s32.totalorder %v8168_v51, 0 }
  0x84   : > { %v2265_v7 = vrot.slane %v2251_v6, %v7783_v16 }
  0x86   : > { %v2266_v8 = vcombine.low %v2258_v34, %v2265_v7 }
  0x87   : > { %7370 = vmatmul.mubr.bf16.gmra.mrb[44].mxu0 %v2119_v39  ;;  %v4890_v39 = vsub.s32 1, %v7765_v5  ;;  %v297_v5 = vld [vmem:[%s10792_s3 + $0x8] sm:$0x7] }
  0x88   : > { %7373 = vmatprep.mubr.msk.bf16.mxu0 %vm7688_vm0, %v7687_v1 }
  0x89   : > { %v8170_v52 = vrot.slane %v295_v40, %v4890_v39 }
  0x8f   : > { %7374 = vmatmul.mubr.bf16.gmra.mrb[48].mxu0 %v2168_v54 }
  0x90   : > { %7377 = vmatprep.mubr.msk.bf16.mxu0 %vm7688_vm0, %v7687_v1 }
  0x97   : > { %7378 = vmatmul.mubr.bf16.gmra.mrb[52].mxu0 %v2217_v3 }
  0x98   : > { %7381 = vmatprep.mubr.msk.bf16.mxu0 %vm7688_vm0, %v7687_v1 }
  0x9f   : > { %7382 = vmatmul.mubr.bf16.gmra.mrb[56].mxu0 %v2266_v8 }
 0x102   : > { %v2630_v9 = vpop.f32.mrb[0].mxu0 }
 0x103   : > { %v7327_v10 = vpop.f32.mrb[1].mxu0 }
 0x104   : > { %v2633_v12 = vpop.f32.mrb[2].mxu0  ;;  %v8198_v10 = vrot.slane %v296_v55, %v8158_v42 }
 0x105   : > { %v7328_v13 = vpop.f32.mrb[3].mxu0  ;;  %v8200_v12 = vrot.slane %v296_v55, %v4890_v39 }
 0x10a   : > { %v2638_v15 = vpop.f32.mrb[4].mxu0 }
 0x10b   : > { %v2639_v17 = vadd.f32 %v8135_v14, %v2638_v15  ;;  %v7331_v18 = vpop.f32.mrb[5].mxu0 }
 0x10c   : > { %v2641_v41 = vpop.f32.mrb[6].mxu0 }
 0x10d   : > { %v2798_v20 = vmul.f32 %v2639_v17, %v2639_v17  ;;  %v8139_v23 = vadd.f32 %v8135_v14, %v2641_v41  ;;  %v7332_v1 = vpop.f32.mrb[7].mxu0 }
 0x10e   : > { %v8210_v1 = vadd.s32 4294967295, %v3834_v57 }
 0x10f   : > { %v2839_v24 = vadd.f32 1.0, %v2798_v20  ;;  %v2799_v25 = vmul.f32 %v8139_v23, %v8139_v23 }
 0x110   : > { %vm3951_vm2 = vcmp.lt.s32.totalorder %v8210_v1, 16 }
 0x111   : > { %7518 = vrsqrt.f32 %v2839_v24  ;;  %v2840_v22 = vadd.f32 1.0, %v2799_v25 }
 0x112   : > { %v2646_v26 = vpop.f32.mrb[8].mxu0 }
 0x113   : > { %7520 = vrsqrt.f32 %v2840_v22  ;;  %v8144_v27 = vadd.f32 %v8135_v14, %v2646_v26  ;;  %v7335_v21 = vpop.f32.mrb[9].mxu0  ;;  %v8212_v22 = vrot.slane %v297_v5, %v4890_v39 }
 0x114   : > { %v2649_v30 = vpop.f32.mrb[10].mxu0  ;;  %v8217_v21 = vrot.slane %v297_v5, %v5135_v32 }
 0x115   : > { %v2800_v31 = vmul.f32 %v8144_v27, %v8144_v27  ;;  %v8149_v33 = vadd.f32 %v8135_v14, %v2649_v30  ;;  %v7336_v35 = vpop.f32.mrb[11].mxu0 }
 0x117   : > { %v2841_v36 = vadd.f32 1.0, %v2800_v31  ;;  %v2801_v37 = vmul.f32 %v8149_v33, %v8149_v33 }
 0x118   : > { %v2750_v53 = vpop.f32.mrb[0].mxu1 }
 0x119   : > { %7522 = vrsqrt.f32 %v2841_v36  ;;  %v2842_v43 = vadd.f32 1.0, %v2801_v37  ;;  %v8184_v60 = vadd.f32 %v8135_v14, %v2750_v53  ;;  %v7387_v61 = vpop.f32.mrb[1].mxu1 }
 0x11a   : > { %v2654_v44 = vpop.f32.mrb[12].mxu0  ;;  %v2753_v2 = vpop.f32.mrb[2].mxu1 }
 0x11b   : > { %v7519_v46 = vpop.eup %7518  ;;  %7524 = vrsqrt.f32 %v2842_v43  ;;  %v8162_v47 = vadd.f32 %v8135_v14, %v2654_v44  ;;  %v7339_v48 = vpop.f32.mrb[13].mxu0  ;;  %v2826_v6 = vmul.f32 %v8184_v60, %v8184_v60  ;;  %v8195_v34 = vadd.f32 %v8135_v14, %v2753_v2 }
 0x11c   : > { %v2921_v49 = vmul.f32 %v7519_v46, %v2639_v17  ;;  %v2657_v11 = vpop.f32.mrb[14].mxu0  ;;  %v7388_v7 = vpop.f32.mrb[3].mxu1 }
 0x11d   : > { %v7521_v54 = vpop.eup %7520  ;;  %v2802_v45 = vmul.f32 %v8162_v47, %v8162_v47  ;;  %v8181_v58 = vadd.f32 %v8135_v14, %v2657_v11  ;;  %v7340_v59 = vpop.f32.mrb[15].mxu0  ;;  %v2867_v15 = vadd.f32 1.0, %v2826_v6  ;;  %v2827_v18 = vmul.f32 %v8195_v34, %v8195_v34  ;;  %v7510_v6 = vld [vmem:[%s10794_s5] sm:$0xff]  }
 0x11e   : > { %v2962_v62 = vadd.f32 1.0, %v2921_v49  ;;  %v2922_v63 = vmul.f32 %v7521_v54, %v8139_v23  ;;  %7409 = vmatprep.subr.bf16.mxu1 %v7510_v6 }
 0x11f   : > { %v2843_v3 = vadd.f32 1.0, %v2802_v45  ;;  %v2803_v4 = vmul.f32 %v8181_v58, %v8181_v58  ;;  %v2868_v40 = vadd.f32 1.0, %v2827_v18  ;;  %7410 = vmatpush3.bf16.msra.mxu1 %v7510_v6 }
 0x120   : > { %v3003_v8 = vmul.f32 %v2962_v62, %v2639_v17  ;;  %v2963_v9 = vadd.f32 1.0, %v2922_v63  ;;  %v8208_v17 = vrot.slane %v296_v55, %v5135_v32 }
 0x121   : > { %7526 = vrsqrt.f32 %v2843_v3  ;;  %v2844_v13 = vadd.f32 1.0, %v2803_v4  ;;  %v8227_v43 = vpop.f32.mrb[4].mxu1 }
 0x122   : > { %v3044_v41 = vmul.f32 0.5, %v3003_v8  ;;  %v3004_v20 = vmul.f32 %v2963_v9, %v8139_v23  ;;  %v2662_v24 = vpop.f32.mrb[16].mxu0  ;;  %v7391_v49 = vpop.f32.mrb[5].mxu1 }
 0x123   : > { %v7523_v25 = vpop.eup %7522  ;;  %7528 = vrsqrt.f32 %v2844_v13  ;;  %v8215_v26 = vadd.f32 %v8135_v14, %v2662_v24  ;;  %v7343_v28 = vpop.f32.mrb[17].mxu0 }
 0x124   : > { %v3158_v29 = vcombine.high %v3044_v41, %v3044_v41  ;;  %v3165_v30 = vrot.slane %v3044_v41, %v8165_v50  ;;  %v3045_v31 = vmul.f32 0.5, %v3004_v20  ;;  %v2923_v23 = vmul.f32 %v7523_v25, %v8144_v27  ;;  %v2665_v35 = vpop.f32.mrb[18].mxu0  ;;  %v8234_v45 = vpop.f32.mrb[6].mxu1 }
 0x125   : > { %v7525_v36 = vpop.eup %7524  ;;  %v2804_v37 = vmul.f32 %v8215_v26, %v8215_v26  ;;  %v8225_v38 = vadd.f32 %v8135_v14, %v2665_v35  ;;  %v7344_v39 = vpop.f32.mrb[19].mxu0  ;;  %7530 = vrsqrt.f32 %v2867_v15 }
 0x126   : > { %v3172_v32 = vrot.slane %v3158_v29, %v8165_v50  ;;  %v3173_v44 = vcombine.high %v3165_v30, %v3165_v30  ;;  %v3175_v46 = vcombine.high %v3045_v31, %v3045_v31  ;;  %v3182_v48 = vrot.slane %v3045_v31, %v8165_v50  ;;  %v7392_v57 = vpop.f32.mrb[7].mxu1 }
 0x127   : > { %v2964_v11 = vadd.f32 1.0, %v2923_v23  ;;  %v2924_v53 = vmul.f32 %v7525_v36, %v8149_v33  ;;  %v2845_v54 = vadd.f32 1.0, %v2804_v37  ;;  %v2805_v55 = vmul.f32 %v8225_v38, %v8225_v38  ;;  %v7511_v37 = vld [vmem:[%s10794_s5 + $0x8] sm:$0xff]  }
 0x128   : > { %v4047_v59 = vcombine.low %v3173_v44, %v3172_v32  ;;  %v3174_v61 = vcombine.high %v3172_v32, %v3172_v32  ;;  %v3189_v62 = vrot.slane %v3175_v46, %v8165_v50  ;;  %v3190_v63 = vcombine.high %v3182_v48, %v3182_v48  ;;  %7411 = vmatprep.subr.bf16.mxu1 %v7511_v37 }
 0x129   : > { %v3005_v2 = vmul.f32 %v2964_v11, %v8144_v27  ;;  %v2965_v3 = vadd.f32 1.0, %v2924_v53  ;;  %7532 = vrsqrt.f32 %v2845_v54  ;;  %v2846_v4 = vadd.f32 1.0, %v2805_v55  ;;  %7412 = vmatpush3.bf16.msra.mxu1 %v7511_v37 }
 0x12a   : > { %v4055_v7 = vrot.slane %v4047_v59, %v8165_v50  ;;  %v4048_v8 = vcombine.low %v3174_v61, %v3182_v48  ;;  %v4064_v9 = vcombine.low %v3190_v63, %v3189_v62  ;;  %v3191_v5 = vcombine.high %v3189_v62, %v3189_v62  ;;  %v2670_v13 = vpop.f32.mrb[20].mxu0 }
 0x12b   : > { %v7527_v15 = vpop.eup %7526  ;;  %v3046_v18 = vmul.f32 0.5, %v3005_v2  ;;  %v3006_v41 = vmul.f32 %v2965_v3, %v8149_v33  ;;  %7534 = vrsqrt.f32 %v2846_v4  ;;  %v8245_v27 = vadd.f32 %v8135_v14, %v2670_v13  ;;  %v7347_v20 = vpop.f32.mrb[21].mxu0 }
 0x12c   : > { %v4062_v24 = vrot.slane %v4048_v8, %v8165_v50  ;;  %v4072_v25 = vrot.slane %v4064_v9, %v8165_v50  ;;  %v2925_v28 = vmul.f32 %v7527_v15, %v8162_v47  ;;  %v2673_v29 = vpop.f32.mrb[22].mxu0  ;;  %7536 = vrsqrt.f32 %v2868_v40 }
 0x12d   : > { %v7529_v30 = vpop.eup %7528  ;;  %v3192_v31 = vcombine.high %v3046_v18, %v3046_v18  ;;  %v3199_v23 = vrot.slane %v3046_v18, %v8165_v50  ;;  %v3047_v33 = vmul.f32 0.5, %v3006_v41  ;;  %v8253_v35 = vmul.f32 %v8245_v27, %v8245_v27  ;;  %v7348_v36 = vpop.f32.mrb[23].mxu0 }
 0x12e   : > { %v4063_v39 = vcombine.low %v4055_v7, %v4062_v24  ;;  %v2966_v32 = vadd.f32 1.0, %v2925_v28  ;;  %v2926_v44 = vmul.f32 %v7529_v30, %v8181_v58  ;;  %v8260_v40 = vadd.f32 %v8135_v14, %v2673_v29  ;;  %v8286_v8 = vpop.f32.mrb[8].mxu1 }
 0x12f   : > { %v8262_v46 = vpop.eup %7530  ;;  %v3206_v48 = vrot.slane %v3192_v31, %v8165_v50  ;;  %v3207_v49 = vcombine.high %v3199_v23, %v3199_v23  ;;  %v4065_v11 = vcombine.low %v3191_v5, %v3199_v23  ;;  %v3209_v53 = vcombine.high %v3047_v33, %v3047_v33  ;;  %v7395_v20 = vpop.f32.mrb[9].mxu1 }
 0x130   : > { %v4801_v54 = vsel %vm3892_vm1, %v4063_v39, 0.0  ;;  %v3216_v55 = vrot.slane %v3047_v33, %v8165_v50  ;;  %v3007_v59 = vmul.f32 %v2966_v32, %v8162_v47  ;;  %v8269_v61 = vadd.f32 1.0, %v2926_v44  ;;  %v8298_v23 = vpop.f32.mrb[10].mxu1 }
 0x131   : > { %v4858_v62 = vmul.f32 %v8176_v56, %v4801_v54  ;;  %v4895_v63 = vmul.f32 %v8170_v52, %v4801_v54  ;;  %v5140_v57 = vmul.f32 %v8187_v0, %v4801_v54  ;;  %v8275_v2 = vmul.f32 %v8198_v10, %v4801_v54 }
 0x132   : > { %v8278_v3 = vmul.f32 %v8200_v12, %v4801_v54  ;;  %v8281_v4 = vmul.f32 %v8208_v17, %v4801_v54  ;;  %v3208_v6 = vcombine.high %v3206_v48, %v3206_v48  ;;  %v4079_v47 = vrot.slane %v4065_v11, %v8165_v50  ;;  %v8284_v7 = vpop.f32.mrb[24].mxu0 }
 0x133   : > { %10929 = vst [vmem:[#allocation3_spill] sm:$0xff] %v8275_v2  ;;  %v8288_v9 = vpop.eup %7532  ;;  %v4994_v5 = vrot.slane %v4895_v63, 1  ;;  %v5239_v13 = vrot.slane %v5140_v57, 2  ;;  %v4087_v15 = vrot.slane %v3207_v49, %v8165_v50  ;;  %v3223_v18 = vrot.slane %v3209_v53, %v8165_v50  ;;  %v7351_v41 = vpop.f32.mrb[25].mxu0 }
 0x134   : > { %10930 = vst [vmem:[#allocation4_spill] sm:$0xff] %v8278_v3  ;;  %10931 = vst [vmem:[#allocation5_spill] sm:$0xff] %v8281_v4  ;;  %v8294_v29 = vcombine.low %v4072_v25, %v4079_v47  ;;  %v4088_v30 = vcombine.low %v3206_v48, %v3208_v6  ;;  %v8296_v31 = vpop.f32.mrb[26].mxu0  ;;  %v3224_v37 = vcombine.high %v3216_v55, %v3216_v55  ;;  %v3048_v32 = vmul.f32 0.5, %v3007_v59  ;;  %v7396_v49 = vpop.f32.mrb[11].mxu1 }
 0x135   : > { %v7535_v33 = vpop.eup %7534  ;;  %v4803_v36 = vsel %vm3951_vm2, %v4087_v15, 0.0  ;;  %v3225_v39 = vcombine.high %v3223_v18, %v3223_v18  ;;  %v7352_v44 = vpop.f32.mrb[27].mxu0 }
 0x136   : > { %v8302_v11 = vpop.eup %7536  ;;  %v4096_v53 = vrot.slane %v4088_v30, %v8165_v50  ;;  %v4859_v25 = vmul.f32 %v8176_v56, %v8294_v29  ;;  %v4896_v48 = vmul.f32 %v8170_v52, %v8294_v29  ;;  %v4897_v54 = vmul.f32 %v8170_v52, %v4803_v36 }
 0x137   : > { %v5141_v63 = vmul.f32 %v8187_v0, %v8294_v29  ;;  %v5142_v57 = vmul.f32 %v8187_v0, %v4803_v36  ;;  %v8315_v59 = vmul.f32 %v8200_v12, %v8294_v29  ;;  %v5452_v6 = vmul.f32 %v8200_v12, %v4803_v36 }
 0x138   : > { %v4995_v47 = vrot.slane %v4896_v48, 1  ;;  %v4997_v15 = vrot.slane %v4897_v54, 1  ;;  %v8319_v41 = vmul.f32 %v8208_v17, %v4803_v36  ;;  %v4089_v20 = vcombine.low %v3216_v55, %v3224_v37  ;;  %v8328_v48 = vpop.f32.mrb[12].mxu1 }
 0x139   : > { %10932 = vst [vmem:[#allocation6_spill] sm:$0xff] %v8315_v59  ;;  %v5240_v30 = vrot.slane %v5141_v63, 2  ;;  %v5242_v44 = vrot.slane %v5142_v57, 2  ;;  %v10799_v49 = vrot.slane %v8315_v59, 1  ;;  %v5549_v28 = vrot.slane %v5452_v6, 1  ;;  %v7399_v57 = vpop.f32.mrb[13].mxu1 }
 0x13a   : > { %10933 = vst [vmem:[#allocation7_spill] sm:$0xff] %v8319_v41  ;;  %v4996_v24 = vsel %vm4988_vm3, %v4994_v5, %v4995_v47  ;;  %v4998_v4 = vsel %vm4988_vm3, %v4995_v47, %v4997_v15  ;;  %v4103_v2 = vrot.slane %v4089_v20, %v8165_v50  ;;  %v8326_v3 = vpop.f32.mrb[28].mxu0  ;;  %v4105_v47 = vcombine.low %v3223_v18, %v3225_v39  ;;  %v8339_v42 = vpop.f32.mrb[14].mxu1 }
 0x13b   : > { %v5103_v36 = vadd.f32 %v4996_v24, %v4858_v62  ;;  %v5104_v54 = vadd.f32 %v4998_v4, %v4859_v25  ;;  %v5241_v55 = vsel %vm5233_vm4, %v5239_v13, %v5240_v30  ;;  %v5243_v37 = vsel %vm5233_vm4, %v5240_v30, %v5242_v44  ;;  %v7355_v63 = vpop.f32.mrb[29].mxu0  ;;  %v7400_v30 = vpop.f32.mrb[15].mxu1 }
 0x13c   : > { %v8335_v5 = vsel %vm4988_vm3, %v10799_v49, %v5549_v28  ;;  %v4104_v6 = vcombine.low %v4096_v53, %v4103_v2  ;;  %v3226_v15 = vcombine.high %v3048_v32, %v3048_v32  ;;  %v8337_v20 = vpop.f32.mrb[30].mxu0  ;;  %v3233_v13 = vrot.slane %v3048_v32, %v8165_v50 }
 0x13d   : > { %10934 = vst [vmem:[#allocation8_spill] sm:$0xff] %v8335_v5  ;;  %v8341_v62 = vadd.f32 %v5241_v55, %v5103_v36  ;;  %v5349_v4 = vadd.f32 %v5243_v37, %v5104_v54  ;;  %v3008_v24 = vmul.f32 %v8269_v61, %v8181_v58  ;;  %v7356_v25 = vpop.f32.mrb[31].mxu0  ;;  %v4113_v28 = vrot.slane %v4105_v47, %v8165_v50 }
 0x13e   : > { %v8349_v2 = vsel %vm3892_vm1, %v4104_v6, 0.0  ;;  %v3240_v18 = vrot.slane %v3226_v15, %v8165_v50  ;;  %v2927_v39 = vmul.f32 %v8288_v9, %v8215_v26  ;;  %v3241_v32 = vcombine.high %v3233_v13, %v3233_v13 }
 0x13f   : > { %10935 = vst [vmem:[#allocation9_spill] sm:$0xff] %v8341_v62  ;;  %10936 = vst [vmem:[#allocation10_spill] sm:$0xff] %v8349_v2  ;;  %v8356_v53 = vmul.f32 %v8200_v12, %v8349_v2  ;;  %v3049_v44 = vmul.f32 0.5, %v3008_v24  ;;  %v2928_v58 = vmul.f32 %v7535_v33, %v8225_v38  ;;  %v2847_v55 = vadd.f32 1.0, %v8253_v35 }
 0x140   : > { %v4128_v61 = vrot.slane %v3240_v18, %v8165_v50  ;;  %v3242_v36 = vcombine.high %v3240_v18, %v3240_v18  ;;  %v2968_v54 = vadd.f32 1.0, %v2927_v39  ;;  %v4106_v63 = vcombine.low %v3233_v13, %v3241_v32 }
 0x141   : > { %10937 = vst [vmem:[#allocation11_spill] sm:$0xff] %v8356_v53  ;;  %v3243_v57 = vcombine.high %v3049_v44, %v3049_v44  ;;  %v3250_v9 = vrot.slane %v3049_v44, %v8165_v50  ;;  %v2969_v15 = vadd.f32 1.0, %v2928_v58  ;;  %7538 = vrsqrt.f32 %v2847_v55  ;;  %v7512_v58 = vld [vmem:[%s10794_s5 + $0x10] sm:$0xff]  }
 0x142   : > { %v8365_v6 = vsel %vm3951_vm2, %v4128_v61, 0.0  ;;  %v3009_v47 = vmul.f32 %v2968_v54, %v8215_v26  ;;  %v8368_v33 = vpop.f32.mrb[32].mxu0  ;;  %v4120_v24 = vrot.slane %v4106_v63, %v8165_v50  ;;  %7413 = vmatprep.subr.bf16.mxu1 %v7512_v58 }
 0x143   : > { %10938 = vst [vmem:[#allocation12_spill] sm:$0xff] %v8365_v6  ;;  %v4900_v35 = vmul.f32 %v8170_v52, %v8365_v6  ;;  %v5145_v13 = vmul.f32 %v8187_v0, %v8365_v6  ;;  %v5455_v25 = vmul.f32 %v8200_v12, %v8365_v6  ;;  %v7359_v30 = vpop.f32.mrb[33].mxu0  ;;  %v5699_v18 = vmul.f32 %v8208_v17, %v8365_v6 }
 0x144   : > { %v8381_v26 = vmul.f32 %v8212_v22, %v8365_v6  ;;  %v3257_v39 = vrot.slane %v3243_v57, %v8165_v50  ;;  %v3258_v32 = vcombine.high %v3250_v9, %v3250_v9  ;;  %v8384_v44 = vpop.f32.mrb[34].mxu0  ;;  %v8389_v61 = vcombine.low %v4113_v28, %v4120_v24  ;;  %7414 = vmatpush3.bf16.msra.mxu1 %v7512_v58 }
 0x145   : > { %v5002_v54 = vrot.slane %v4900_v35, 1  ;;  %v5247_v55 = vrot.slane %v5145_v13, 2  ;;  %v5554_v63 = vrot.slane %v5455_v25, 1  ;;  %v7360_v30 = vpop.f32.mrb[35].mxu0  ;;  %v5798_v37 = vrot.slane %v5699_v18, 2  ;;  %v7513_v13 = vld [vmem:[%s10794_s5 + $0x18] sm:$0xff]  }
 0x146   : > { %10939 = vst [vmem:[#allocation13_spill] sm:$0xff] %v8381_v26  ;;  %10940 = vst [vmem:[#allocation14_spill] sm:$0xff] %v8389_v61  ;;  %v4129_v49 = vcombine.low %v3242_v36, %v3250_v9  ;;  %v4130_v62 = vcombine.low %v3258_v32, %v3257_v39  ;;  %v3050_v53 = vmul.f32 0.5, %v3009_v47  ;;  %v4861_v57 = vmul.f32 %v8176_v56, %v8389_v61 }
 0x147   : > { %v8395_v6 = vmul.f32 %v8170_v52, %v8389_v61  ;;  %v8399_v28 = vmul.f32 %v8187_v0, %v8389_v61  ;;  %v5385_v24 = vmul.f32 %v8198_v10, %v8389_v61  ;;  %v8405_v36 = vmul.f32 %v8200_v12, %v8389_v61  ;;  %7415 = vmatprep.subr.bf16.mxu1 %v7513_v13 }
 0x148   : > { %v8409_v9 = vmul.f32 %v8208_v17, %v8389_v61  ;;  %v4137_v47 = vrot.slane %v4129_v49, %v8165_v50  ;;  %v4144_v35 = vrot.slane %v4130_v62, %v8165_v50  ;;  %v3259_v58 = vcombine.high %v3257_v39, %v3257_v39  ;;  %7416 = vmatpush3.bf16.msra.mxu1 %v7513_v13 }
 0x149   : > { %10941 = vst [vmem:[#allocation15_spill] sm:$0xff] %v8395_v6  ;;  %10942 = vst [vmem:[#allocation16_spill] sm:$0xff] %v8399_v28  ;;  %v10805_v25 = vrot.slane %v8395_v6, 1  ;;  %v10806_v18 = vrot.slane %v8399_v28, 2  ;;  %v5417_v32 = vadd.f32 %v5385_v24, %v5349_v4  ;;  %v10807_v30 = vrot.slane %v8405_v36, 1 }
 0x14a   : > { %10943 = vst [vmem:[#allocation17_spill] sm:$0xff] %v8405_v36  ;;  %10944 = vst [vmem:[#allocation18_spill] sm:$0xff] %v8409_v9  ;;  %v4145_v41 = vcombine.low %v4137_v47, %v4144_v35  ;;  %v3260_v61 = vcombine.high %v3050_v53, %v3050_v53  ;;  %v8420_v5 = vpop.f32.mrb[36].mxu0  ;;  %v3267_v4 = vrot.slane %v3050_v53, %v8165_v50 }
 0x14b   : > { %v5003_v49 = vsel %vm4988_vm3, %v10805_v25, %v5002_v54  ;;  %v8428_v62 = vsel %vm5233_vm4, %v10806_v18, %v5247_v55  ;;  %v3010_v39 = vmul.f32 %v2969_v15, %v8225_v38  ;;  %v7363_v24 = vpop.f32.mrb[37].mxu0  ;;  %v7539_v47 = vpop.eup %7538  ;;  %v5555_v26 = vsel %vm4988_vm3, %v10807_v30, %v5554_v63  ;;  %v7514_v38 = vld [vmem:[%s10794_s5 + $0x20] sm:$0xff]  }
 0x14c   : > { %10945 = vst [vmem:[#allocation19_spill] sm:$0xff] %v8428_v62  ;;  %v8432_v35 = vadd.f32 %v5003_v49, %v4861_v57  ;;  %v10947_v54 = vrot.slane %v8409_v9, 2  ;;  %v8442_v55 = vsel %vm3892_vm1, %v4145_v41, 0.0  ;;  %v8444_v53 = vpop.f32.mrb[38].mxu0  ;;  %v5661_v15 = vadd.f32 %v5555_v26, %v5417_v32  ;;  %v8450_v24 = vpop.f32.mrb[16].mxu1  ;;  %7417 = vmatprep.subr.bf16.mxu1 %v7514_v38 }
 0x14d   : > { %10948 = vst [vmem:[#allocation21_spill] sm:$0xff] %v8442_v55  ;;  %v3274_v57 = vrot.slane %v3260_v61, %v8165_v50  ;;  %v3275_v13 = vcombine.high %v3267_v4, %v3267_v4  ;;  %v4146_v49 = vcombine.low %v3259_v58, %v3267_v4  ;;  %v7364_v63 = vpop.f32.mrb[39].mxu0  ;;  %v3051_v18 = vmul.f32 0.5, %v3010_v39  ;;  %v7403_v30 = vpop.f32.mrb[17].mxu1  ;;  %7418 = vmatpush3.bf16.msra.mxu1 %v7514_v38 }
 0x14e   : > { %10946 = vst [vmem:[#allocation20_spill] sm:$0xff] %v8432_v35  ;;  %v5799_v25 = vsel %vm5233_vm4, %v10947_v54, %v5798_v37  ;;  %v2929_v37 = vmul.f32 %v7539_v47, %v8245_v27  ;;  %v2807_v41 = vmul.f32 %v8260_v40, %v8260_v40  ;;  %v8457_v54 = vadd.f32 %v8135_v14, %v8284_v7  ;;  %v2785_v4 = vpop.f32.mrb[18].mxu1  ;;  %v7515_v7 = vld [vmem:[%s10794_s5 + $0x28] sm:$0xff]  }
 0x14f   : > { %v8459_v26 = vadd.f32 %v5799_v25, %v5661_v15  ;;  %v3276_v61 = vcombine.high %v3274_v57, %v3274_v57  ;;  %v4147_v32 = vcombine.low %v3275_v13, %v3274_v57  ;;  %v4154_v58 = vrot.slane %v4146_v49, %v8165_v50  ;;  %v7404_v6 = vpop.f32.mrb[19].mxu1  ;;  %7419 = vmatprep.subr.bf16.mxu1 %v7515_v7 }
 0x150   : > { %v3277_v39 = vcombine.high %v3051_v18, %v3051_v18  ;;  %v3284_v47 = vrot.slane %v3051_v18, %v8165_v50  ;;  %v2970_v63 = vadd.f32 1.0, %v2929_v37  ;;  %v2848_v28 = vadd.f32 1.0, %v2807_v41 }
 0x151   : > { %10949 = vst [vmem:[#allocation22_spill] sm:$0xff] %v8459_v26  ;;  %v4161_v30 = vrot.slane %v4147_v32, %v8165_v50  ;;  %v4169_v25 = vrot.slane %v3276_v61, %v8165_v50  ;;  %v2808_v15 = vmul.f32 %v8457_v54, %v8457_v54  ;;  %v8472_v38 = vadd.f32 %v8135_v14, %v8296_v31 }
 0x152   : > { %v3291_v18 = vrot.slane %v3277_v39, %v8165_v50  ;;  %v3292_v57 = vcombine.high %v3284_v47, %v3284_v47  ;;  %v3011_v13 = vmul.f32 %v2970_v63, %v8245_v27  ;;  %7540 = vrsqrt.f32 %v2848_v28  ;;  %v8476_v49 = vpop.f32.mrb[40].mxu0  ;;  %7420 = vmatpush3.bf16.msra.mxu1 %v7515_v7 }
 0x153   : > { %v8478_v6 = vcombine.low %v4154_v58, %v4161_v30  ;;  %v4809_v37 = vsel %vm3951_vm2, %v4169_v25, 0.0  ;;  %v2849_v41 = vadd.f32 1.0, %v2808_v15  ;;  %v2809_v61 = vmul.f32 %v8472_v38, %v8472_v38  ;;  %v7367_v31 = vpop.f32.mrb[41].mxu0 }
 0x154   : > { %v4903_v32 = vmul.f32 %v8170_v52, %v4809_v37  ;;  %v8486_v4 = vmul.f32 %v8187_v0, %v4809_v37  ;;  %v8489_v27 = vmul.f32 %v8200_v12, %v4809_v37  ;;  %v8492_v28 = vmul.f32 %v8208_v17, %v4809_v37  ;;  %v8494_v58 = vpop.f32.mrb[42].mxu0 }
 0x155   : > { %10950 = vst [vmem:[#allocation23_spill] sm:$0xff] %v8478_v6  ;;  %v8498_v39 = vmul.f32 %v8170_v52, %v8478_v6  ;;  %v8501_v63 = vmul.f32 %v8212_v22, %v4809_v37  ;;  %v8504_v7 = vmul.f32 %v8217_v21, %v4809_v37  ;;  %v3293_v30 = vcombine.high %v3291_v18, %v3291_v18  ;;  %v7368_v25 = vpop.f32.mrb[43].mxu0 }
 0x156   : > { %10951 = vst [vmem:[#allocation24_spill] sm:$0xff] %v8486_v4  ;;  %10952 = vst [vmem:[#allocation25_spill] sm:$0xff] %v8489_v27  ;;  %v5007_v15 = vrot.slane %v4903_v32, 1  ;;  %v4170_v55 = vcombine.low %v3284_v47, %v3292_v57  ;;  %v3052_v2 = vmul.f32 0.5, %v3011_v13  ;;  %7542 = vrsqrt.f32 %v2849_v41 }
 0x157   : > { %10953 = vst [vmem:[#allocation26_spill] sm:$0xff] %v8492_v28  ;;  %10954 = vst [vmem:[#allocation27_spill] sm:$0xff] %v8498_v39  ;;  %v10817_v26 = vrot.slane %v8498_v39, 1  ;;  %v4171_v36 = vcombine.low %v3291_v18, %v3293_v30  ;;  %v2850_v37 = vadd.f32 1.0, %v2809_v61  ;;  %v8520_v31 = vadd.f32 %v8135_v14, %v8326_v3 }
 0x158   : > { %10955 = vst [vmem:[#allocation28_spill] sm:$0xff] %v8501_v63  ;;  %10956 = vst [vmem:[#allocation29_spill] sm:$0xff] %v8504_v7  ;;  %v4178_v25 = vrot.slane %v4170_v55, %v8165_v50  ;;  %v2949_v35 = vmul.f32 %v8262_v46, %v8184_v60  ;;  %v3294_v18 = vcombine.high %v3052_v2, %v3052_v2 }
 0x159   : > { %v8515_v32 = vsel %vm4988_vm3, %v10817_v26, %v5007_v15  ;;  %v4185_v47 = vrot.slane %v4171_v36, %v8165_v50  ;;  %v3301_v57 = vrot.slane %v3052_v2, %v8165_v50  ;;  %7544 = vrsqrt.f32 %v2850_v37 }
 0x15a   : > { %10957 = vst [vmem:[#allocation30_spill] sm:$0xff] %v8515_v32  ;;  %v8526_v13 = vpop.f32.mrb[44].mxu0  ;;  %v2810_v41 = vmul.f32 %v8520_v31, %v8520_v31  ;;  %v2990_v61 = vadd.f32 1.0, %v2949_v35  ;;  %v8532_v55 = vadd.f32 %v8135_v14, %v8337_v20  ;;  %v2950_v3 = vmul.f32 %v8302_v11, %v8195_v34 }
 0x15b   : > { %v7371_v46 = vpop.f32.mrb[45].mxu0  ;;  %v4186_v36 = vcombine.low %v4178_v25, %v4185_v47  ;;  %v3308_v15 = vrot.slane %v3294_v18, %v8165_v50  ;;  %v3309_v2 = vcombine.high %v3301_v57, %v3301_v57  ;;  %v8539_v37 = vadd.f32 %v8135_v14, %v8227_v43 }
 0x15c   : > { %v7541_v30 = vpop.eup %7540  ;;  %v8541_v26 = vpop.f32.mrb[46].mxu0  ;;  %v2851_v62 = vadd.f32 1.0, %v2810_v41  ;;  %v3031_v20 = vmul.f32 %v2990_v61, %v8184_v60  ;;  %v2811_v11 = vmul.f32 %v8532_v55, %v8532_v55  ;;  %v2991_v6 = vadd.f32 1.0, %v2950_v3 }
 0x15d   : > { %v2930_v35 = vmul.f32 %v7541_v30, %v8260_v40  ;;  %v7372_v46 = vpop.f32.mrb[47].mxu0  ;;  %v8549_v25 = vsel %vm3892_vm1, %v4186_v36, 0.0  ;;  %v3310_v47 = vcombine.high %v3308_v15, %v3308_v15  ;;  %v4187_v18 = vcombine.low %v3301_v57, %v3309_v2  ;;  %v7516_v30 = vld [vmem:[%s10794_s5 + $0x30] sm:$0xff]  }
 0x15e   : > { %10958 = vst [vmem:[#allocation31_spill] sm:$0xff] %v8549_v25  ;;  %7546 = vrsqrt.f32 %v2851_v62  ;;  %v3072_v9 = vmul.f32 0.5, %v3031_v20  ;;  %v2852_v4 = vadd.f32 1.0, %v2811_v11  ;;  %v3032_v60 = vmul.f32 %v2991_v6, %v8195_v34  ;;  %7421 = vmatprep.subr.bf16.mxu1 %v7516_v30 }
 0x15f   : > { %v2971_v43 = vadd.f32 1.0, %v2930_v35  ;;  %v4188_v39 = vcombine.low %v3308_v15, %v3310_v47  ;;  %v4195_v41 = vrot.slane %v4187_v18, %v8165_v50  ;;  %v2828_v61 = vmul.f32 %v8539_v37, %v8539_v37  ;;  %7422 = vmatpush3.bf16.msra.mxu1 %v7516_v30 }
 0x160   : > { %v3634_v57 = vcombine.high %v3072_v9, %v3072_v9  ;;  %v8560_v3 = vrot.slane %v3072_v9, %v8165_v50  ;;  %7548 = vrsqrt.f32 %v2852_v4  ;;  %v7543_v62 = vpop.eup %7542  ;;  %v8563_v2 = vmul.f32 0.5, %v3032_v60 }
 0x161   : > { %v3012_v36 = vmul.f32 %v2971_v43, %v8260_v40  ;;  %v4202_v15 = vrot.slane %v4188_v39, %v8165_v50  ;;  %v2869_v34 = vadd.f32 1.0, %v2828_v61  ;;  %v8567_v6 = vadd.f32 %v8135_v14, %v8234_v45 }
 0x162   : > { %10959 = vst [vmem:[#allocation32_spill] sm:$0xff] %v8560_v3  ;;  %v8569_v35 = vpop.f32.mrb[48].mxu0  ;;  %v2931_v40 = vmul.f32 %v7543_v62, %v8457_v54  ;;  %v8573_v9 = vrot.slane %v3634_v57, %v8165_v50  ;;  %v3649_v4 = vcombine.high %v8560_v3, %v8560_v3  ;;  %v8583_v45 = vrot.slane %v8563_v2, %v8165_v50 }
 0x163   : > { %v3053_v20 = vmul.f32 0.5, %v3012_v36  ;;  %v7375_v39 = vpop.f32.mrb[49].mxu0  ;;  %v7545_v11 = vpop.eup %7544  ;;  %v8577_v46 = vcombine.low %v4195_v41, %v4202_v15  ;;  %7550 = vrsqrt.f32 %v2869_v34 }
 0x164   : > { %v8585_v47 = vpop.f32.mrb[50].mxu0  ;;  %v2972_v60 = vadd.f32 1.0, %v2931_v40  ;;  %v2932_v61 = vmul.f32 %v7545_v11, %v8472_v38  ;;  %v8600_v62 = vcombine.low %v3649_v4, %v8573_v9 }
 0x165   : > { %10960 = vst [vmem:[#allocation33_spill] sm:$0xff] %v8577_v46  ;;  %v3311_v18 = vcombine.high %v3053_v20, %v3053_v20  ;;  %v3318_v43 = vrot.slane %v3053_v20, %v8165_v50  ;;  %v7376_v30 = vpop.f32.mrb[51].mxu0  ;;  %v4865_v41 = vmul.f32 %v8176_v56, %v8577_v46  ;;  %v8593_v36 = vmul.f32 %v8170_v52, %v8577_v46 }
 0x166   : > { %v8597_v57 = vmul.f32 %v8187_v0, %v8577_v46  ;;  %v3013_v40 = vmul.f32 %v2972_v60, %v8457_v54  ;;  %v2973_v30 = vadd.f32 1.0, %v2932_v61 }
 0x167   : > { %10961 = vst [vmem:[#allocation34_spill] sm:$0xff] %v8593_v36  ;;  %v3325_v15 = vrot.slane %v3311_v18, %v8165_v50  ;;  %v3326_v34 = vcombine.high %v3318_v43, %v3318_v43  ;;  %v4210_v20 = vrot.slane %v3318_v43, %v8165_v50 }
 0x168   : > { %10962 = vst [vmem:[#allocation35_spill] sm:$0xff] %v8597_v57  ;;  %v7547_v32 = vpop.eup %7546  ;;  %v3054_v46 = vmul.f32 0.5, %v3013_v40 }
 0x169   : > { %v4211_v28 = vcombine.low %v3326_v34, %v3325_v15  ;;  %v4812_v4 = vsel %vm3951_vm2, %v4210_v20, 0.0  ;;  %v3327_v18 = vcombine.high %v3325_v15, %v3325_v15  ;;  %v2933_v3 = vmul.f32 %v7547_v32, %v8520_v31 }
 0x16a   : > { %v4906_v25 = vmul.f32 %v8170_v52, %v4812_v4  ;;  %v5151_v43 = vmul.f32 %v8187_v0, %v4812_v4  ;;  %v8614_v54 = vmul.f32 %v8200_v12, %v4812_v4  ;;  %v8617_v60 = vmul.f32 %v8208_v17, %v4812_v4  ;;  %v7549_v61 = vpop.eup %7548 }
 0x16b   : > { %v4219_v14 = vrot.slane %v4211_v28, %v8165_v50  ;;  %v8621_v34 = vmul.f32 %v8212_v22, %v4812_v4  ;;  %v8624_v20 = vmul.f32 %v8217_v21, %v4812_v4  ;;  %v3328_v15 = vcombine.high %v3054_v46, %v3054_v46 }
 0x16c   : > { %10963 = vst [vmem:[#allocation36_spill] sm:$0xff] %v8614_v54  ;;  %10964 = vst [vmem:[#allocation37_spill] sm:$0xff] %v8617_v60  ;;  %v5012_v40 = vrot.slane %v4906_v25, 1  ;;  %v5257_v11 = vrot.slane %v5151_v43, 2  ;;  %v3335_v7 = vrot.slane %v3054_v46, %v8165_v50  ;;  %v3014_v28 = vmul.f32 %v2973_v30, %v8472_v38 }
 0x16d   : > { %10965 = vst [vmem:[#allocation38_spill] sm:$0xff] %v8621_v34  ;;  %10966 = vst [vmem:[#allocation39_spill] sm:$0xff] %v8624_v20  ;;  %v3342_v63 = vrot.slane %v3328_v15, %v8165_v50  ;;  %v8632_v59 = vpop.eup %7550  ;;  %v10967_v4 = vrot.slane %v8593_v36, 1  ;;  %v10968_v25 = vrot.slane %v8597_v57, 2  ;;  %v2934_v39 = vmul.f32 %v7549_v61, %v8532_v55 }
 0x16e   : > { %v3343_v46 = vcombine.high %v3335_v7, %v3335_v7  ;;  %v4212_v60 = vcombine.low %v3327_v18, %v3335_v7  ;;  %v3055_v15 = vmul.f32 0.5, %v3014_v28  ;;  %v2974_v38 = vadd.f32 1.0, %v2933_v3 }
 0x16f   : > { %v5013_v20 = vsel %vm4988_vm3, %v10967_v4, %v5012_v40  ;;  %v5258_v43 = vsel %vm5233_vm4, %v10968_v25, %v5257_v11  ;;  %v3344_v54 = vcombine.high %v3342_v63, %v3342_v63  ;;  %v2975_v30 = vadd.f32 1.0, %v2934_v39 }
 0x170   : > { %v5110_v27 = vadd.f32 %v5013_v20, %v4865_v41  ;;  %v3650_v36 = vcombine.high %v8573_v9, %v8573_v9  ;;  %v4226_v40 = vrot.slane %v4212_v60, %v8165_v50  ;;  %v4228_v4 = vcombine.low %v3343_v46, %v3342_v63 }
 0x171   : > { %v3345_v11 = vcombine.high %v3055_v15, %v3055_v15  ;;  %v3352_v32 = vrot.slane %v3055_v15, %v8165_v50  ;;  %v3015_v61 = vmul.f32 %v2974_v38, %v8520_v31  ;;  %v3016_v41 = vmul.f32 %v2975_v30, %v8532_v55 }
 0x172   : > { %v8644_v34 = vadd.f32 %v5258_v43, %v5110_v27  ;;  %v10970_v7 = vcombine.high %v8563_v2, %v8563_v2  ;;  %v4227_v39 = vcombine.low %v4219_v14, %v4226_v40  ;;  %v4236_v9 = vrot.slane %v4228_v4, %v8165_v50 }
 0x173   : > { %v3359_v27 = vrot.slane %v3345_v11, %v8165_v50  ;;  %v3666_v63 = vcombine.high %v8583_v45, %v8583_v45  ;;  %v3360_v18 = vcombine.high %v3352_v32, %v3352_v32  ;;  %v4229_v60 = vcombine.low %v3344_v54, %v3352_v32 }
 0x174   : > { %10969 = vst [vmem:[#allocation40_spill] sm:$0xff] %v8644_v34  ;;  %v3665_v3 = vrot.slane %v10970_v7, %v8165_v50  ;;  %v3056_v20 = vmul.f32 0.5, %v3015_v61  ;;  %v3057_v28 = vmul.f32 0.5, %v3016_v41  ;;  %v8660_v31 = vsel %vm3892_vm1, %v4227_v39, 0.0 }
 0x175   : > { %10971 = vst [vmem:[#allocation41_spill] sm:$0xff] %v8660_v31  ;;  %v3361_v55 = vcombine.high %v3359_v27, %v3359_v27  ;;  %v4557_v2 = vcombine.low %v3650_v36, %v8583_v45  ;;  %v4243_v14 = vrot.slane %v4229_v60, %v8165_v50  ;;  %v4251_v43 = vrot.slane %v3360_v18, %v8165_v50 }
 0x176   : > { %v3667_v25 = vcombine.high %v3665_v3, %v3665_v3  ;;  %v3362_v46 = vcombine.high %v3056_v20, %v3056_v20  ;;  %v3369_v15 = vrot.slane %v3056_v20, %v8165_v50  ;;  %v3379_v30 = vcombine.high %v3057_v28, %v3057_v28 }
 0x177   : > { %v4252_v38 = vcombine.low %v3359_v27, %v3361_v55  ;;  %v3386_v54 = vrot.slane %v3057_v28, %v8165_v50  ;;  %v4571_v40 = vrot.slane %v4557_v2, %v8165_v50  ;;  %v8668_v4 = vcombine.low %v4236_v9, %v4243_v14 }
 0x178   : > { %v8672_v11 = vsel %vm3951_vm2, %v4251_v43, 0.0  ;;  %v3376_v45 = vrot.slane %v3362_v46, %v8165_v50  ;;  %v3377_v36 = vcombine.high %v3369_v15, %v3369_v15  ;;  %v8707_v57 = vrot.slane %v3379_v30, %v8165_v50 }
 0x179   : > { %10972 = vst [vmem:[#allocation42_spill] sm:$0xff] %v8668_v4  ;;  %10973 = vst [vmem:[#allocation43_spill] sm:$0xff] %v8672_v11  ;;  %v4260_v32 = vrot.slane %v4252_v38, %v8165_v50  ;;  %v4909_v61 = vmul.f32 %v8170_v52, %v8672_v11  ;;  %v5154_v41 = vmul.f32 %v8187_v0, %v8672_v11 }
 0x17a   : > { %v8682_v7 = vmul.f32 %v8200_v12, %v8672_v11  ;;  %v4867_v39 = vmul.f32 %v8176_v56, %v8668_v4  ;;  %v8688_v9 = vmul.f32 %v8170_v52, %v8668_v4  ;;  %v8692_v27 = vmul.f32 %v8187_v0, %v8668_v4 }
 0x17b   : > { %v8696_v18 = vmul.f32 %v8208_v17, %v8672_v11  ;;  %v5017_v60 = vrot.slane %v4909_v61, 1  ;;  %v5262_v20 = vrot.slane %v5154_v41, 2  ;;  %v8701_v55 = vmul.f32 %v8212_v22, %v8672_v11 }
 0x17c   : > { %10974 = vst [vmem:[#allocation44_spill] sm:$0xff] %v8682_v7  ;;  %10975 = vst [vmem:[#allocation45_spill] sm:$0xff] %v8688_v9  ;;  %v10837_v2 = vrot.slane %v8688_v9, 1  ;;  %v10836_v14 = vrot.slane %v8692_v27, 2  ;;  %v3378_v46 = vcombine.high %v3376_v45, %v3376_v45  ;;  %v4253_v38 = vcombine.low %v3369_v15, %v3377_v36 }
 0x17d   : > { %10976 = vst [vmem:[#allocation46_spill] sm:$0xff] %v8692_v27  ;;  %10977 = vst [vmem:[#allocation47_spill] sm:$0xff] %v8696_v18  ;;  %v3394_v34 = vcombine.high %v3386_v54, %v3386_v54  ;;  %v10979_v61 = vrot.slane %v8600_v62, %v8165_v50  ;;  %v4579_v15 = vrot.slane %v3666_v63, %v8165_v50 }
 0x17e   : > { %10978 = vst [vmem:[#allocation48_spill] sm:$0xff] %v8701_v55  ;;  %v5018_v28 = vsel %vm4988_vm3, %v10837_v2, %v5017_v60  ;;  %v8720_v7 = vsel %vm5233_vm4, %v10836_v14, %v5262_v20  ;;  %v4269_v43 = vcombine.low %v3376_v45, %v3378_v46  ;;  %v4267_v36 = vrot.slane %v4253_v38, %v8165_v50 }
 0x17f   : > { %v8712_v41 = vcombine.low %v10979_v61, %v4571_v40  ;;  %10981 = vst [vmem:[#allocation50_spill] sm:$0xff] %v8720_v7  ;;  %v8723_v30 = vadd.f32 %v5018_v28, %v4867_v39  ;;  %v4270_v18 = vcombine.low %v3386_v54, %v3394_v34  ;;  %v4292_v62 = vrot.slane %v8707_v57, %v8165_v50 }
 0x180   : > { %v4277_v40 = vrot.slane %v4269_v43, %v8165_v50  ;;  %v8729_v61 = vcombine.low %v3665_v3, %v3667_v25  ;;  %v8733_v60 = vsel %vm3951_vm2, %v4579_v15, 0.0  ;;  %v4268_v63 = vcombine.low %v4260_v32, %v4267_v36 }
 0x181   : > { %10980 = vst [vmem:[#allocation49_spill] sm:$0xff] %v8712_v41  ;;  %10982 = vst [vmem:[#allocation51_spill] sm:$0xff] %v8723_v30  ;;  %v4883_v45 = vmul.f32 %v8176_v56, %v8712_v41  ;;  %v4284_v39 = vrot.slane %v4270_v18, %v8165_v50  ;;  %v8740_v34 = vsel %vm3951_vm2, %v4292_v62, 0.0  ;;  %v8744_v54 = vmul.f32 %v8170_v52, %v8712_v41 }
 0x182   : > { %10983 = vst [vmem:[#allocation52_spill] sm:$0xff] %v8733_v60  ;;  %10984 = vst [vmem:[#allocation53_spill] sm:$0xff] %v8740_v34  ;;  %v4912_v3 = vmul.f32 %v8170_v52, %v8740_v34  ;;  %v5157_v25 = vmul.f32 %v8187_v0, %v8740_v34  ;;  %v8752_v20 = vmul.f32 %v8200_v12, %v8740_v34  ;;  %v8760_v18 = vsel %vm3892_vm1, %v4268_v63, 0.0 }
 0x183   : > { %10985 = vst [vmem:[#allocation54_spill] sm:$0xff] %v8744_v54  ;;  %v8756_v32 = vmul.f32 %v8208_v17, %v8740_v34  ;;  %10988 = vst [vmem:[#allocation57_spill] sm:$0xff] %v8760_v18  ;;  %v8762_v28 = vcombine.low %v4277_v40, %v4284_v39  ;;  %v8766_v43 = vmul.f32 %v8212_v22, %v8740_v34  ;;  %v10998_v30 = vrot.slane %v8744_v54, 1 }
 0x184   : > { %10986 = vst [vmem:[#allocation55_spill] sm:$0xff] %v8752_v20  ;;  %v5022_v38 = vrot.slane %v4912_v3, 1  ;;  %v5267_v15 = vrot.slane %v5157_v25, 2  ;;  %v4933_v39 = vmul.f32 %v8170_v52, %v8733_v60  ;;  %v8787_v25 = vmul.f32 %v8187_v0, %v8712_v41 }
 0x185   : > { %10987 = vst [vmem:[#allocation56_spill] sm:$0xff] %v8756_v32  ;;  %10989 = vst [vmem:[#allocation58_spill] sm:$0xff] %v8762_v28  ;;  %v4869_v14 = vmul.f32 %v8176_v56, %v8762_v28  ;;  %v8776_v40 = vmul.f32 %v8170_v52, %v8762_v28  ;;  %v8780_v63 = vmul.f32 %v8187_v0, %v8762_v28 }
 0x186   : > { %10990 = vst [vmem:[#allocation59_spill] sm:$0xff] %v8766_v43  ;;  %10993 = vst [vmem:[#allocation62_spill] sm:$0xff] %v8787_v25  ;;  %v5178_v62 = vmul.f32 %v8187_v0, %v8733_v60  ;;  %v8793_v36 = vmul.f32 %v8200_v12, %v8733_v60  ;;  %v5057_v32 = vrot.slane %v4933_v39, 1  ;;  %v8799_v20 = vmul.f32 %v8208_v17, %v8733_v60 }
 0x187   : > { %10991 = vst [vmem:[#allocation60_spill] sm:$0xff] %v8776_v40  ;;  %10992 = vst [vmem:[#allocation61_spill] sm:$0xff] %v8780_v63  ;;  %v10847_v2 = vrot.slane %v8776_v40, 1  ;;  %v10846_v46 = vrot.slane %v8780_v63, 2  ;;  %v8805_v9 = vmul.f32 %v8212_v22, %v8733_v60  ;;  %v11001_v60 = vrot.slane %v8787_v25, 2 }
 0x188   : > { %10994 = vst [vmem:[#allocation63_spill] sm:$0xff] %v8793_v36  ;;  %10995 = vst [vmem:[#allocation64_spill] sm:$0xff] %v8799_v20  ;;  %v5302_v41 = vrot.slane %v5178_v62, 2  ;;  %v5058_v3 = vsel %vm4988_vm3, %v10998_v30, %v5057_v32  ;;  %v8835_v30 = vld [vmem:[%s10791_s2] ss:$0 sm:$0xff] }
 0x189   : > { %10996 = vst [vmem:[#allocation65_spill] sm:$0xff] %v8805_v9  ;;  %v5023_v7 = vsel %vm4988_vm3, %v10847_v2, %v5022_v38  ;;  %v8813_v39 = vsel %vm5233_vm4, %v10846_v46, %v5267_v15  ;;  %v8821_v36 = vadd.f32 %v5058_v3, %v4883_v45  ;;  %v2951_v38 = vmul.f32 %v8632_v59, %v8539_v37 }
 0x18a   : > { %10997 = vst [vmem:[#allocation66_spill] sm:$0xff] %v8813_v39  ;;  %v8819_v27 = vadd.f32 %v5023_v7, %v4869_v14  ;;  %v8826_v9 = vsel %vm5233_vm4, %v11001_v60, %v5302_v41  ;;  %v2829_v15 = vmul.f32 %v8567_v6, %v8567_v6  ;;  %v8839_v7 = vadd.f32 %v8835_v30, %v8368_v33 }
 0x18b   : > { %11000 = vst [vmem:[#allocation68_spill] sm:$0xff] %v8821_v36  ;;  %11002 = vst [vmem:[#allocation69_spill] sm:$0xff] %v8826_v9  ;;  %v8845_v41 = vadd.f32 %v8835_v30, %v8384_v44  ;;  %v2992_v59 = vadd.f32 1.0, %v2951_v38  ;;  %v8849_v60 = vadd.f32 %v8835_v30, %v8286_v8  ;;  %v8853_v45 = vadd.f32 %v8835_v30, %v8298_v23 }
 0x18c   : > { %10999 = vst [vmem:[#allocation67_spill] sm:$0xff] %v8819_v27  ;;  %v8857_v33 = vadd.f32 %v8835_v30, %v8328_v48  ;;  %v2870_v32 = vadd.f32 1.0, %v2829_v15  ;;  %v2812_v3 = vmul.f32 %v8839_v7, %v8839_v7  ;;  %v8865_v38 = vadd.f32 %v8835_v30, %v8420_v5 }
 0x18d   : > { %v2813_v44 = vmul.f32 %v8845_v41, %v8845_v41  ;;  %v3033_v8 = vmul.f32 %v2992_v59, %v8539_v37  ;;  %v2830_v23 = vmul.f32 %v8849_v60, %v8849_v60  ;;  %v2831_v48 = vmul.f32 %v8853_v45, %v8853_v45 }
 0x18e   : > { %v2832_v15 = vmul.f32 %v8857_v33, %v8857_v33  ;;  %7552 = vrsqrt.f32 %v2870_v32  ;;  %v2853_v62 = vadd.f32 1.0, %v2812_v3  ;;  %v2814_v2 = vmul.f32 %v8865_v38, %v8865_v38 }
 0x18f   : > { %v2854_v46 = vadd.f32 1.0, %v2813_v44  ;;  %v3074_v14 = vmul.f32 0.5, %v3033_v8  ;;  %v2871_v5 = vadd.f32 1.0, %v2830_v23  ;;  %v2872_v25 = vadd.f32 1.0, %v2831_v48 }
 0x190   : > { %v2873_v54 = vadd.f32 1.0, %v2832_v15  ;;  %7554 = vrsqrt.f32 %v2853_v62  ;;  %v2855_v37 = vadd.f32 1.0, %v2814_v2  ;;  %v8878_v59 = vadd.f32 %v8835_v30, %v8339_v42 }
 0x191   : > { %v8882_v9 = vadd.f32 %v8835_v30, %v8444_v53  ;;  %v3668_v32 = vcombine.high %v3074_v14, %v3074_v14  ;;  %v3675_v3 = vrot.slane %v3074_v14, %v8165_v50  ;;  %7556 = vrsqrt.f32 %v2854_v46 }
 0x192   : > { %v8887_v44 = vadd.f32 %v8835_v30, %v8476_v49  ;;  %7558 = vrsqrt.f32 %v2871_v5  ;;  %v2833_v2 = vmul.f32 %v8878_v59, %v8878_v59  ;;  %v8895_v62 = vadd.f32 %v8835_v30, %v8450_v24 }
 0x193   : > { %v2815_v42 = vmul.f32 %v8882_v9, %v8882_v9  ;;  %v3682_v53 = vrot.slane %v3668_v32, %v8165_v50  ;;  %v3683_v8 = vcombine.high %v3675_v3, %v3675_v3  ;;  %7560 = vrsqrt.f32 %v2872_v25 }
 0x194   : > { %v2816_v46 = vmul.f32 %v8887_v44, %v8887_v44  ;;  %7562 = vrsqrt.f32 %v2873_v54  ;;  %v2874_v49 = vadd.f32 1.0, %v2833_v2  ;;  %v2834_v23 = vmul.f32 %v8895_v62, %v8895_v62 }
 0x195   : > { %v2856_v14 = vadd.f32 1.0, %v2815_v42  ;;  %v3684_v48 = vcombine.high %v3682_v53, %v3682_v53  ;;  %v4581_v15 = vcombine.low %v3675_v3, %v3683_v8  ;;  %7564 = vrsqrt.f32 %v2855_v37 }
 0x196   : > { %v2857_v5 = vadd.f32 1.0, %v2816_v46  ;;  %7566 = vrsqrt.f32 %v2874_v49  ;;  %v2875_v24 = vadd.f32 1.0, %v2834_v23  ;;  %v8904_v32 = vadd.f32 %v8835_v30, %v8494_v58 }
 0x197   : > { %v8908_v25 = vadd.f32 %v8835_v30, %v8526_v13  ;;  %v4595_v54 = vrot.slane %v4581_v15, %v8165_v50  ;;  %v8911_v2 = vcombine.low %v3682_v53, %v3684_v48  ;;  %7568 = vrsqrt.f32 %v2856_v14 }
 0x198   : > { %v8915_v3 = vadd.f32 %v8835_v30, %v8541_v26  ;;  %v7553_v37 = vpop.eup %7552  ;;  %7570 = vrsqrt.f32 %v2857_v5  ;;  %v2817_v42 = vmul.f32 %v8904_v32, %v8904_v32  ;;  %v8923_v13 = vadd.f32 %v8835_v30, %v8569_v35 }
 0x199   : > { %v2818_v58 = vmul.f32 %v8908_v25, %v8908_v25  ;;  %v11003_v53 = vrot.slane %v8729_v61, %v8165_v50  ;;  %v2952_v46 = vmul.f32 %v7553_v37, %v8567_v6  ;;  %7572 = vrsqrt.f32 %v2875_v24 }
 0x19a   : > { %v7555_v49 = vpop.eup %7554  ;;  %v2858_v14 = vadd.f32 1.0, %v2817_v42  ;;  %v2819_v48 = vmul.f32 %v8915_v3, %v8915_v3  ;;  %v2820_v35 = vmul.f32 %v8923_v13, %v8923_v13 }
 0x19b   : > { %v4596_v8 = vcombine.low %v11003_v53, %v4595_v54  ;;  %v2859_v23 = vadd.f32 1.0, %v2818_v58  ;;  %v7557_v15 = vpop.eup %7556  ;;  %v2993_v5 = vadd.f32 1.0, %v2952_v46  ;;  %v2935_v54 = vmul.f32 %v7555_v49, %v8839_v7  ;;  %v8941_v53 = vld.sshfl [vmem:[%s7773_s12 + $0xd4] sm:$0x1 pattern:$0x75316420]  ;;  %s10689_s12 = scalar_lea.vmem %s10795_s6, %s7255_s28 }
 0x19c   : > { %v7559_v37 = vpop.eup %7558  ;;  %v2936_v42 = vmul.f32 %v7557_v15, %v8845_v41  ;;  %7574 = vrsqrt.f32 %v2858_v14  ;;  %v2860_v58 = vadd.f32 1.0, %v2819_v48  ;;  %v2861_v26 = vadd.f32 1.0, %v2820_v35 }
 0x19d   : > { %v8937_v61 = vsel %vm3892_vm1, %v4596_v8, 0.0  ;;  %v7561_v36 = vpop.eup %7560  ;;  %v3034_v20 = vmul.f32 %v2993_v5, %v8567_v6  ;;  %v2976_v63 = vadd.f32 1.0, %v2935_v54  ;;  %v2953_v8 = vmul.f32 %v7559_v37, %v8849_v60 }
 0x19e   : > { %11004 = vst [vmem:[#allocation70_spill] sm:$0xff] %v8937_v61  ;;  %7576 = vrsqrt.f32 %v2859_v23  ;;  %v7563_v46 = vpop.eup %7562  ;;  %v2977_v49 = vadd.f32 1.0, %v2936_v42  ;;  %v2954_v61 = vmul.f32 %v7561_v36, %v8853_v45 }
 0x19f   : > { %7578 = vrsqrt.f32 %v2860_v58  ;;  %v7565_v40 = vpop.eup %7564  ;;  %v3075_v15 = vmul.f32 0.5, %v3034_v20  ;;  %v3017_v14 = vmul.f32 %v2976_v63, %v8839_v7  ;;  %v2994_v48 = vadd.f32 1.0, %v2953_v8  ;;  %v7517_v63 = vld [vmem:[%s10794_s5 + $0x38] sm:$0xff]   ;;  %v8964_v7 = vpop.f32.mrb[52].mxu0 }
 0x1a0   : > { %v2955_v35 = vmul.f32 %v7563_v46, %v8857_v33  ;;  %v8953_v6 = vpop.eup %7566  ;;  %v3018_v5 = vmul.f32 %v2977_v49, %v8845_v41  ;;  %v2995_v23 = vadd.f32 1.0, %v2954_v61  ;;  %v2937_v54 = vmul.f32 %v7565_v40, %v8865_v38  ;;  %v7379_v46 = vpop.f32.mrb[53].mxu0  ;;  %7423 = vmatprep.subr.bf16.mxu1 %v7517_v63 }
 0x1a1   : > { %7580 = vrsqrt.f32 %v2861_v26  ;;  %v8957_v36 = vpop.eup %7568  ;;  %v3685_v37 = vcombine.high %v3075_v15, %v3075_v15  ;;  %v3692_v42 = vrot.slane %v3075_v15, %v8165_v50  ;;  %v3058_v58 = vmul.f32 0.5, %v3017_v14  ;;  %7424 = vmatpush3.bf16.msra.mxu1 %v7517_v63  ;;  %v8982_v46 = vpop.f32.mrb[54].mxu0 }
 0x1a2   : > { %v3035_v20 = vmul.f32 %v2994_v48, %v8849_v60  ;;  %v8966_v8 = vpop.eup %7570  ;;  %v3059_v41 = vmul.f32 0.5, %v3018_v5  ;;  %v3036_v40 = vmul.f32 %v2995_v23, %v8853_v45  ;;  %v8969_v26 = vadd.f32 1.0, %v2955_v35  ;;  %v7380_v43 = vpop.f32.mrb[55].mxu0 }
 0x1a3   : > { %v8971_v61 = vadd.f32 1.0, %v2937_v54  ;;  %v8973_v49 = vpop.eup %7572  ;;  %v3699_v60 = vrot.slane %v3685_v37, %v8165_v50  ;;  %v3700_v15 = vcombine.high %v3692_v42, %v3692_v42  ;;  %v3396_v14 = vcombine.high %v3058_v58, %v3058_v58 }
 0x1a4   : > { %v3403_v48 = vrot.slane %v3058_v58, %v8165_v50  ;;  %v3413_v24 = vcombine.high %v3059_v41, %v3059_v41  ;;  %v3420_v39 = vrot.slane %v3059_v41, %v8165_v50  ;;  %v3076_v5 = vmul.f32 0.5, %v3035_v20 }
 0x1a5   : > { %v8978_v27 = vmul.f32 0.5, %v3036_v40  ;;  %v4598_v45 = vcombine.low %v3692_v42, %v3700_v15  ;;  %v4620_v35 = vrot.slane %v3699_v60, %v8165_v50  ;;  %v3410_v23 = vrot.slane %v3396_v14, %v8165_v50 }
 0x1a6   : > { %v3411_v54 = vcombine.high %v3403_v48, %v3403_v48  ;;  %v8984_v37 = vpop.eup %7574  ;;  %v11005_v58 = vcombine.high %v8707_v57, %v8707_v57  ;;  %v3427_v41 = vrot.slane %v3413_v24, %v8165_v50  ;;  %v3428_v20 = vcombine.high %v3420_v39, %v3420_v39 }
 0x1a7   : > { %v3701_v40 = vcombine.high %v3699_v60, %v3699_v60  ;;  %v4612_v42 = vrot.slane %v4598_v45, %v8165_v50  ;;  %v8995_v15 = vsel %vm3951_vm2, %v4620_v35, 0.0  ;;  %v3412_v28 = vcombine.high %v3410_v23, %v3410_v23 }
 0x1a8   : > { %v4293_v34 = vcombine.low %v11005_v58, %v3403_v48  ;;  %v8990_v63 = vpop.eup %7576  ;;  %11006 = vst [vmem:[#allocation71_spill] sm:$0xff] %v8995_v15  ;;  %v4294_v14 = vcombine.low %v3411_v54, %v3410_v23  ;;  %v4936_v57 = vmul.f32 %v8170_v52, %v8995_v15  ;;  %v5181_v24 = vmul.f32 %v8187_v0, %v8995_v15 }
 0x1a9   : > { %v8997_v18 = vpop.eup %7578  ;;  %v9005_v43 = vmul.f32 %v8200_v12, %v8995_v15  ;;  %v9009_v60 = vmul.f32 %v8208_v17, %v8995_v15  ;;  %v11009_v48 = vrot.slane %v8911_v2, %v8165_v50  ;;  %v9018_v35 = vmul.f32 %v8212_v22, %v8995_v15 }
 0x1aa   : > { %v4301_v23 = vrot.slane %v4293_v34, %v8165_v50  ;;  %v4308_v54 = vrot.slane %v4294_v14, %v8165_v50  ;;  %v5062_v11 = vrot.slane %v4936_v57, 1  ;;  %v5307_v55 = vrot.slane %v5181_v24, 2 }
 0x1ab   : > { %11007 = vst [vmem:[#allocation72_spill] sm:$0xff] %v9005_v43  ;;  %11008 = vst [vmem:[#allocation73_spill] sm:$0xff] %v9009_v60  ;;  %v9014_v45 = vcombine.low %v11009_v48, %v4612_v42  ;;  %v9022_v58 = vpop.eup %7580  ;;  %v3429_v48 = vcombine.high %v3427_v41, %v3427_v41  ;;  %v4310_v15 = vcombine.low %v3412_v28, %v3420_v39 }
 0x1ac   : > { %11011 = vst [vmem:[#allocation75_spill] sm:$0xff] %v9018_v35  ;;  %v4309_v14 = vcombine.low %v4301_v23, %v4308_v54  ;;  %v4311_v57 = vcombine.low %v3428_v20, %v3427_v41  ;;  %v3702_v24 = vcombine.high %v3076_v5, %v3076_v5  ;;  %v3709_v43 = vrot.slane %v3076_v5, %v8165_v50  ;;  %v9043_v35 = vpop.f32.mrb[56].mxu0 }
 0x1ad   : > { %11010 = vst [vmem:[#allocation74_spill] sm:$0xff] %v9014_v45  ;;  %v4885_v2 = vmul.f32 %v8176_v56, %v9014_v45  ;;  %v9030_v42 = vmul.f32 %v8170_v52, %v9014_v45  ;;  %v9034_v34 = vmul.f32 %v8187_v0, %v9014_v45  ;;  %v4318_v45 = vrot.slane %v4310_v15, %v8165_v50  ;;  %v7383_v41 = vpop.f32.mrb[57].mxu0 }
 0x1ae   : > { %v9040_v60 = vsel %vm3892_vm1, %v4309_v14, 0.0  ;;  %v4325_v23 = vrot.slane %v4311_v57, %v8165_v50  ;;  %v4333_v28 = vrot.slane %v3429_v48, %v8165_v50  ;;  %v3716_v39 = vrot.slane %v3702_v24, %v8165_v50 }
 0x1af   : > { %11012 = vst [vmem:[#allocation76_spill] sm:$0xff] %v9030_v42  ;;  %11013 = vst [vmem:[#allocation77_spill] sm:$0xff] %v9034_v34  ;;  %v10869_v4 = vrot.slane %v9030_v42, 1  ;;  %v10868_v31 = vrot.slane %v9034_v34, 2  ;;  %v3717_v5 = vcombine.high %v3709_v43, %v3709_v43  ;;  %v4621_v14 = vcombine.low %v3701_v40, %v3709_v43 }
 0x1b0   : > { %11014 = vst [vmem:[#allocation78_spill] sm:$0xff] %v9040_v60  ;;  %v9057_v60 = vpop.f32.mrb[58].mxu0  ;;  %v9061_v57 = vcombine.low %v4318_v45, %v4325_v23  ;;  %v9065_v48 = vsel %vm3951_vm2, %v4333_v28, 0.0  ;;  %v3718_v24 = vcombine.high %v3716_v39, %v3716_v39  ;;  %v3719_v28 = vcombine.high %v8978_v27, %v8978_v27 }
 0x1b1   : > { %v5063_v20 = vsel %vm4988_vm3, %v10869_v4, %v5062_v11  ;;  %v9055_v54 = vsel %vm5233_vm4, %v10868_v31, %v5307_v55  ;;  %v7384_v41 = vpop.f32.mrb[59].mxu0  ;;  %v4915_v11 = vmul.f32 %v8170_v52, %v9065_v48  ;;  %v9071_v55 = vmul.f32 %v8187_v0, %v9065_v48 }
 0x1b2   : > { %11015 = vst [vmem:[#allocation79_spill] sm:$0xff] %v9055_v54  ;;  %v9059_v15 = vadd.f32 %v5063_v20, %v4885_v2  ;;  %v9075_v40 = vmul.f32 %v8200_v12, %v9065_v48  ;;  %v9079_v43 = vmul.f32 %v8208_v17, %v9065_v48  ;;  %v9083_v45 = vmul.f32 %v8170_v52, %v9061_v57 }
 0x1b3   : > { %11017 = vst [vmem:[#allocation81_spill] sm:$0xff] %v9071_v55  ;;  %v4622_v2 = vcombine.low %v3717_v5, %v3716_v39  ;;  %v4629_v23 = vrot.slane %v4621_v14, %v8165_v50  ;;  %v5027_v20 = vrot.slane %v4915_v11, 1  ;;  %v3726_v54 = vrot.slane %v8978_v27, %v8165_v50 }
 0x1b4   : > { %11016 = vst [vmem:[#allocation80_spill] sm:$0xff] %v9059_v15  ;;  %11018 = vst [vmem:[#allocation82_spill] sm:$0xff] %v9083_v45  ;;  %v10874_v34 = vrot.slane %v9083_v45, 1  ;;  %v3733_v39 = vrot.slane %v3719_v28, %v8165_v50  ;;  %v3037_v5 = vmul.f32 %v8969_v26, %v8857_v33  ;;  %v3019_v14 = vmul.f32 %v8971_v61, %v8865_v38 }
 0x1b5   : > { %v4636_v42 = vrot.slane %v4622_v2, %v8165_v50  ;;  %v2956_v11 = vmul.f32 %v8953_v6, %v8878_v59  ;;  %v2938_v41 = vmul.f32 %v8957_v36, %v8882_v9  ;;  %v3734_v4 = vcombine.high %v3726_v54, %v3726_v54 }
 0x1b6   : > { %v9107_v2 = vsel %vm4988_vm3, %v10874_v34, %v5027_v20  ;;  %v3735_v28 = vcombine.high %v3733_v39, %v3733_v39  ;;  %v4638_v31 = vcombine.low %v3718_v24, %v3726_v54  ;;  %v3078_v15 = vmul.f32 0.5, %v3037_v5 }
 0x1b7   : > { %11019 = vst [vmem:[#allocation83_spill] sm:$0xff] %v9107_v2  ;;  %v4637_v27 = vcombine.low %v4629_v23, %v4636_v42  ;;  %v3060_v33 = vmul.f32 0.5, %v3019_v14  ;;  %v2997_v26 = vadd.f32 1.0, %v2956_v11  ;;  %v4639_v6 = vcombine.low %v3734_v4, %v3733_v39 }
 0x1b8   : > { %v4661_v61 = vrot.slane %v3735_v28, %v8165_v50  ;;  %v2979_v36 = vadd.f32 1.0, %v2938_v41  ;;  %v4646_v55 = vrot.slane %v4638_v31, %v8165_v50  ;;  %v3736_v45 = vcombine.high %v3078_v15, %v3078_v15 }
 0x1b9   : > { %v9111_v38 = vsel %vm3892_vm1, %v4637_v27, 0.0  ;;  %v3743_v20 = vrot.slane %v3078_v15, %v8165_v50  ;;  %v3430_v42 = vcombine.high %v3060_v33, %v3060_v33  ;;  %v4653_v23 = vrot.slane %v4639_v6, %v8165_v50 }
 0x1ba   : > { %11020 = vst [vmem:[#allocation84_spill] sm:$0xff] %v9111_v38  ;;  %v9119_v54 = vsel %vm3951_vm2, %v4661_v61, 0.0  ;;  %v3437_v24 = vrot.slane %v3060_v33, %v8165_v50  ;;  %v3038_v5 = vmul.f32 %v2997_v26, %v8878_v59  ;;  %v3750_v59 = vrot.slane %v3736_v45, %v8165_v50 }
 0x1bb   : > { %11021 = vst [vmem:[#allocation85_spill] sm:$0xff] %v9119_v54  ;;  %v9125_v4 = vmul.f32 %v8170_v52, %v9119_v54  ;;  %v9129_v31 = vmul.f32 %v8187_v0, %v9119_v54  ;;  %v9133_v15 = vmul.f32 %v8200_v12, %v9119_v54  ;;  %v9137_v41 = vmul.f32 %v8208_v17, %v9119_v54 }
 0x1bc   : > { %v9139_v39 = vcombine.low %v4646_v55, %v4653_v23  ;;  %v3751_v14 = vcombine.high %v3743_v20, %v3743_v20  ;;  %v3444_v11 = vrot.slane %v3430_v42, %v8165_v50  ;;  %v3752_v6 = vcombine.high %v3750_v59, %v3750_v59 }
 0x1bd   : > { %11022 = vst [vmem:[#allocation86_spill] sm:$0xff] %v9133_v15  ;;  %11023 = vst [vmem:[#allocation87_spill] sm:$0xff] %v9137_v41  ;;  %v3445_v34 = vcombine.high %v3437_v24, %v3437_v24  ;;  %v3079_v38 = vmul.f32 0.5, %v3038_v5  ;;  %v3020_v55 = vmul.f32 %v2979_v36, %v8882_v9  ;;  %v2939_v45 = vmul.f32 %v8966_v8, %v8887_v44 }
 0x1be   : > { %11024 = vst [vmem:[#allocation88_spill] sm:$0xff] %v9139_v39  ;;  %v4662_v61 = vcombine.low %v3743_v20, %v3751_v14  ;;  %v3446_v54 = vcombine.high %v3444_v11, %v3444_v11  ;;  %v2957_v42 = vmul.f32 %v8973_v49, %v8895_v62  ;;  %v4663_v23 = vcombine.low %v3750_v59, %v3752_v6 }
 0x1bf   : > { %v4334_v27 = vcombine.low %v3437_v24, %v3445_v34  ;;  %v3753_v15 = vcombine.high %v3079_v38, %v3079_v38  ;;  %v3760_v26 = vrot.slane %v3079_v38, %v8165_v50  ;;  %v3061_v20 = vmul.f32 0.5, %v3020_v55 }
 0x1c0   : > { %v4670_v28 = vrot.slane %v4662_v61, %v8165_v50  ;;  %v4335_v33 = vcombine.low %v3444_v11, %v3446_v54  ;;  %v2980_v14 = vadd.f32 1.0, %v2939_v45  ;;  %v4677_v5 = vrot.slane %v4663_v23, %v8165_v50 }
 0x1c1   : > { %v4342_v9 = vrot.slane %v4334_v27, %v8165_v50  ;;  %v2998_v8 = vadd.f32 1.0, %v2957_v42  ;;  %v3767_v41 = vrot.slane %v3753_v15, %v8165_v50  ;;  %v3768_v49 = vcombine.high %v3760_v26, %v3760_v26 }
 0x1c2   : > { %v4349_v36 = vrot.slane %v4335_v33, %v8165_v50  ;;  %v3447_v59 = vcombine.high %v3061_v20, %v3061_v20  ;;  %v3454_v6 = vrot.slane %v3061_v20, %v8165_v50  ;;  %v4678_v34 = vcombine.low %v4670_v28, %v4677_v5 }
 0x1c3   : > { %v3021_v24 = vmul.f32 %v2980_v14, %v8887_v44  ;;  %v3039_v38 = vmul.f32 %v2998_v8, %v8895_v62  ;;  %v3769_v11 = vcombine.high %v3767_v41, %v3767_v41  ;;  %v4679_v61 = vcombine.low %v3760_v26, %v3768_v49 }
 0x1c4   : > { %v4350_v54 = vcombine.low %v4342_v9, %v4349_v36  ;;  %v3461_v55 = vrot.slane %v3447_v59, %v8165_v50  ;;  %v3462_v27 = vcombine.high %v3454_v6, %v3454_v6  ;;  %v9164_v33 = vsel %vm3892_vm1, %v4678_v34, 0.0 }
 0x1c5   : > { %11025 = vst [vmem:[#allocation89_spill] sm:$0xff] %v9164_v33  ;;  %v3062_v45 = vmul.f32 0.5, %v3021_v24  ;;  %v3080_v28 = vmul.f32 0.5, %v3039_v38  ;;  %v9172_v44 = vmul.f32 %v8198_v10, %v9164_v33  ;;  %v9176_v62 = vmul.f32 %v8200_v12, %v9164_v33 }
 0x1c6   : > { %v9168_v15 = vsel %vm3892_vm1, %v4350_v54, 0.0  ;;  %v9180_v26 = vmul.f32 %v8208_v17, %v9164_v33  ;;  %v4680_v42 = vcombine.low %v3767_v41, %v3769_v11  ;;  %v4687_v23 = vrot.slane %v4679_v61, %v8165_v50 }
 0x1c7   : > { %11026 = vst [vmem:[#allocation90_spill] sm:$0xff] %v9172_v44  ;;  %11027 = vst [vmem:[#allocation91_spill] sm:$0xff] %v9176_v62  ;;  %v3463_v20 = vcombine.high %v3461_v55, %v3461_v55  ;;  %v4351_v14 = vcombine.low %v3454_v6, %v3462_v27  ;;  %v3464_v5 = vcombine.high %v3062_v45, %v3062_v45 }
 0x1c8   : > { %11028 = vst [vmem:[#allocation92_spill] sm:$0xff] %v9180_v26  ;;  %v4694_v8 = vrot.slane %v4680_v42, %v8165_v50  ;;  %v3471_v49 = vrot.slane %v3062_v45, %v8165_v50  ;;  %v3777_v41 = vrot.slane %v3080_v28, %v8165_v50  ;;  %v4887_v11 = vmul.f32 %v8176_v56, %v9139_v39 }
 0x1c9   : > { %v4352_v59 = vcombine.low %v3461_v55, %v3463_v20  ;;  %v4359_v34 = vrot.slane %v4351_v14, %v8165_v50  ;;  %v9189_v54 = vrot.slane %v3464_v5, %v8165_v50  ;;  %v9201_v55 = vmul.f32 %v8170_v52, %v9139_v39 }
 0x1ca   : > { %v9192_v24 = vcombine.low %v4687_v23, %v4694_v8  ;;  %v3479_v6 = vcombine.high %v3471_v49, %v3471_v49  ;;  %v4374_v38 = vrot.slane %v3471_v49, %v8165_v50  ;;  %v4702_v27 = vrot.slane %v3777_v41, %v8165_v50 }
 0x1cb   : > { %v4366_v61 = vrot.slane %v4352_v59, %v8165_v50  ;;  %11030 = vst [vmem:[#allocation94_spill] sm:$0xff] %v9201_v55  ;;  %v9205_v45 = vmul.f32 %v8187_v0, %v9139_v39 }
 0x1cc   : > { %11029 = vst [vmem:[#allocation93_spill] sm:$0xff] %v9192_v24  ;;  %v9208_v28 = vcombine.low %v3479_v6, %v9189_v54  ;;  %v4824_v42 = vsel %vm3951_vm2, %v4374_v38, 0.0  ;;  %v5413_v23 = vmul.f32 %v8198_v10, %v9192_v24  ;;  %v9216_v20 = vmul.f32 %v8200_v12, %v9192_v24 }
 0x1cd   : > { %11031 = vst [vmem:[#allocation95_spill] sm:$0xff] %v9205_v45  ;;  %v9218_v14 = vcombine.low %v4359_v34, %v4366_v61  ;;  %v4918_v5 = vmul.f32 %v8170_v52, %v4824_v42  ;;  %v5163_v8 = vmul.f32 %v8187_v0, %v4824_v42  ;;  %v9223_v49 = vmul.f32 %v8200_v12, %v4824_v42 }
 0x1ce   : > { %11032 = vst [vmem:[#allocation96_spill] sm:$0xff] %v9216_v20  ;;  %v9228_v41 = vmul.f32 %v8208_v17, %v4824_v42  ;;  %v9231_v6 = vmul.f32 %v8212_v22, %v4824_v42  ;;  %v9234_v38 = vmul.f32 %v8217_v21, %v4824_v42  ;;  %v4848_v39 = vsel %vm3951_vm2, %v4702_v27, 0.0 }
 0x1cf   : > { %11033 = vst [vmem:[#allocation97_spill] sm:$0xff] %v9223_v49  ;;  %v4873_v34 = vmul.f32 %v8176_v56, %v9218_v14  ;;  %v9240_v61 = vmul.f32 %v8170_v52, %v9218_v14  ;;  %v5032_v36 = vrot.slane %v4918_v5, 1  ;;  %v9244_v9 = vmul.f32 %v8187_v0, %v9218_v14 }
 0x1d0   : > { %11034 = vst [vmem:[#allocation98_spill] sm:$0xff] %v9228_v41  ;;  %11035 = vst [vmem:[#allocation99_spill] sm:$0xff] %v9234_v38  ;;  %v5277_v59 = vrot.slane %v5163_v8, 2  ;;  %v10894_v5 = vrot.slane %v9201_v55, 1  ;;  %v5497_v38 = vmul.f32 %v8200_v12, %v4848_v39  ;;  %v9259_v26 = vmul.f32 %v8208_v17, %v9192_v24 }
 0x1d1   : > { %11036 = vst [vmem:[#allocation100_spill] sm:$0xff] %v9240_v61  ;;  %11037 = vst [vmem:[#allocation101_spill] sm:$0xff] %v9244_v9  ;;  %v10891_v62 = vrot.slane %v9240_v61, 1  ;;  %v10893_v33 = vrot.slane %v9244_v9, 2  ;;  %v11039_v42 = vrot.slane %v9125_v4, 1  ;;  %v5741_v8 = vmul.f32 %v8208_v17, %v4848_v39 }
 0x1d2   : > { %11038 = vst [vmem:[#allocation102_spill] sm:$0xff] %v9259_v26  ;;  %v11040_v24 = vrot.slane %v9129_v31, 2  ;;  %v11041_v61 = vrot.slane %v9205_v45, 2  ;;  %v10895_v9 = vrot.slane %v9259_v26, 2  ;;  %v9280_v4 = vmul.f32 %v8212_v22, %v4848_v39 }
 0x1d3   : > { %v5033_v44 = vsel %vm4988_vm3, %v10891_v62, %v5032_v36  ;;  %v5278_v27 = vsel %vm5233_vm4, %v10893_v33, %v5277_v59  ;;  %v5068_v2 = vsel %vm4988_vm3, %v10894_v5, %v11039_v42  ;;  %v5624_v62 = vrot.slane %v5497_v38, 1 }
 0x1d4   : > { %v5118_v41 = vadd.f32 %v5033_v44, %v4873_v34  ;;  %v5132_v49 = vadd.f32 %v5068_v2, %v4887_v11  ;;  %v5313_v36 = vsel %vm5233_vm4, %v11041_v61, %v11040_v24  ;;  %v5868_v59 = vrot.slane %v5741_v8, 2  ;;  %11042 = vst [vmem:[#allocation103_spill] sm:$0xff] %v9280_v4 }
 0x1d5   : > { %v9283_v33 = vmul.f32 %v8217_v21, %v4848_v39  ;;  %v11044_v2 = vrot.slane %v9216_v20, 1  ;;  %v2940_v24 = vmul.f32 %v8984_v37, %v8904_v32  ;;  %v2942_v37 = vmul.f32 %v8997_v18, %v8915_v3 }
 0x1d6   : > { %v9285_v42 = vadd.f32 %v5278_v27, %v5118_v41  ;;  %v5377_v44 = vadd.f32 %v5313_v36, %v5132_v49  ;;  %v9295_v11 = vsel %vm5233_vm4, %v10895_v9, %v5868_v59  ;;  %v3480_v41 = vcombine.high %v9189_v54, %v9189_v54 }
 0x1d7   : > { %11043 = vst [vmem:[#allocation104_spill] sm:$0xff] %v9283_v33  ;;  %v5625_v31 = vsel %vm4988_vm3, %v11044_v2, %v5624_v62  ;;  %11045 = vst [vmem:[#allocation105_spill] sm:$0xff] %v9295_v11  ;;  %v2981_v34 = vadd.f32 1.0, %v2940_v24  ;;  %v2941_v62 = vmul.f32 %v8990_v63, %v8908_v25  ;;  %v2943_v61 = vmul.f32 %v9022_v58, %v8923_v13 }
 0x1d8   : > { %v5445_v49 = vadd.f32 %v5413_v23, %v5377_v44  ;;  %v11046_v8 = vrot.slane %v8941_v53, %v7783_v16  ;;  %v11047_v27 = vcombine.high %v8056_v19, %v8056_v19  ;;  %v9315_v54 = vadd.f32 %v8835_v30, %v8585_v47 }
 0x1d9   : > { %v4856_v23 = vmul.f32 0.0, %v8176_v56  ;;  %v3022_v18 = vmul.f32 %v2981_v34, %v8904_v32  ;;  %v2982_v59 = vadd.f32 1.0, %v2941_v62  ;;  %v2983_v44 = vadd.f32 1.0, %v2942_v37 }
 0x1da   : > { %v2512_v36 = vcombine.low %v11047_v27, %v11046_v8  ;;  %v9318_v63 = vadd.f32 %v5625_v31, %v5445_v49  ;;  %v2984_v58 = vadd.f32 1.0, %v2943_v61  ;;  %v2821_v53 = vmul.f32 %v9315_v54, %v9315_v54 }
 0x1db   : > { %v4892_v19 = vmul.f32 0.0, %v8170_v52  ;;  %v3063_v24 = vmul.f32 0.5, %v3022_v18  ;;  %v3023_v47 = vmul.f32 %v2982_v59, %v8908_v25  ;;  %v3024_v8 = vmul.f32 %v2983_v44, %v8915_v3 }
 0x1dc   : > { %11048 = vst [vmem:[#allocation106_spill] sm:$0xff] %v9318_v63  ;;  %v2519_v2 = vrot.slane %v2512_v36, %v7783_v16  ;;  %v9328_v31 = vmul.f32 0.0, %v8187_v0  ;;  %v3025_v32 = vmul.f32 %v2984_v58, %v8923_v13  ;;  %v2862_v34 = vadd.f32 1.0, %v2821_v53 }
 0x1dd   : > { %v4989_v62 = vrot.slane %v4892_v19, 1  ;;  %v3481_v37 = vcombine.high %v3063_v24, %v3063_v24  ;;  %v3488_v61 = vrot.slane %v3063_v24, %v8165_v50  ;;  %v3064_v27 = vmul.f32 0.5, %v3023_v47 }
 0x1de   : > { %v2526_v49 = vrot.slane %v2519_v2, %v7783_v16  ;;  %v3065_v36 = vmul.f32 0.5, %v3024_v8  ;;  %v3066_v5 = vmul.f32 0.5, %v3025_v32  ;;  %7582 = vrsqrt.f32 %v2862_v34 }
 0x1df   : > { %v9333_v25 = vadd.f32 %v4989_v62, %v4856_v23  ;;  %v3495_v18 = vrot.slane %v3481_v37, %v8165_v50  ;;  %v3496_v59 = vcombine.high %v3488_v61, %v3488_v61  ;;  %v4376_v13 = vcombine.low %v3480_v41, %v3488_v61 }
 0x1e0   : > { %7406 = vmatmul.mubr.bf16.gmra.mrb[20].mxu1 %v2526_v49  ;;  %v3498_v44 = vcombine.high %v3064_v27, %v3064_v27  ;;  %v3505_v16 = vrot.slane %v3064_v27, %v8165_v50  ;;  %v3515_v58 = vcombine.high %v3065_v36, %v3065_v36  ;;  %v3522_v2 = vrot.slane %v3065_v36, %v8165_v50 }
 0x1e1   : > { %v3532_v53 = vcombine.high %v3066_v5, %v3066_v5  ;;  %v4390_v19 = vrot.slane %v4376_v13, %v8165_v50  ;;  %v4392_v24 = vcombine.low %v3496_v59, %v3495_v18  ;;  %v3497_v47 = vcombine.high %v3495_v18, %v3495_v18 }
 0x1e2   : > { %v3512_v23 = vrot.slane %v3498_v44, %v8165_v50  ;;  %v3513_v8 = vcombine.high %v3505_v16, %v3505_v16  ;;  %v3529_v32 = vrot.slane %v3515_v58, %v8165_v50  ;;  %v3530_v49 = vcombine.high %v3522_v2, %v3522_v2 }
 0x1e3   : > { %v3539_v34 = vrot.slane %v3066_v5, %v8165_v50  ;;  %v11049_v41 = vrot.slane %v9208_v28, %v8165_v50  ;;  %v4400_v37 = vrot.slane %v4392_v24, %v8165_v50  ;;  %v4393_v27 = vcombine.low %v3497_v47, %v3505_v16 }
 0x1e4   : > { %v3514_v61 = vcombine.high %v3512_v23, %v3512_v23  ;;  %v4415_v36 = vrot.slane %v3513_v8, %v8165_v50  ;;  %v3531_v59 = vcombine.high %v3529_v32, %v3529_v32  ;;  %v4417_v18 = vcombine.low %v3522_v2, %v3530_v49 }
 0x1e5   : > { %v4391_v62 = vcombine.low %v11049_v41, %v4390_v19  ;;  %v9349_v13 = vrot.slane %v3532_v53, %v8165_v50  ;;  %v4407_v5 = vrot.slane %v4393_v27, %v8165_v50  ;;  %v3547_v28 = vcombine.high %v3539_v34, %v3539_v34 }
 0x1e6   : > { %v4416_v58 = vcombine.low %v3512_v23, %v3514_v61  ;;  %v9358_v19 = vsel %vm3951_vm2, %v4415_v36, 0.0  ;;  %v4431_v16 = vrot.slane %v4417_v18, %v8165_v50  ;;  %v4433_v24 = vcombine.low %v3529_v32, %v3531_v59 }
 0x1e7   : > { %v9353_v44 = vsel %vm3892_vm1, %v4391_v62, 0.0  ;;  %v4456_v2 = vrot.slane %v9349_v13, %v8165_v50  ;;  %v9363_v53 = vcombine.low %v4400_v37, %v4407_v5  ;;  %v4921_v8 = vmul.f32 %v8170_v52, %v9358_v19 }
 0x1e8   : > { %v4424_v47 = vrot.slane %v4416_v58, %v8165_v50  ;;  %v5166_v23 = vmul.f32 %v8187_v0, %v9358_v19  ;;  %v7583_v49 = vpop.eup %7582  ;;  %v9372_v41 = vmul.f32 %v8200_v12, %v9358_v19  ;;  %v9376_v32 = vmul.f32 %v8208_v17, %v9358_v19 }
 0x1e9   : > { %v9380_v62 = vmul.f32 %v8212_v22, %v9358_v19  ;;  %v4441_v37 = vrot.slane %v4433_v24, %v8165_v50  ;;  %v4875_v61 = vmul.f32 %v8176_v56, %v9363_v53  ;;  %v9387_v27 = vmul.f32 %v8170_v52, %v9363_v53 }
 0x1ea   : > { %11050 = vst [vmem:[#allocation107_spill] sm:$0xff] %v9376_v32  ;;  %v5037_v36 = vrot.slane %v4921_v8, 1  ;;  %v9391_v59 = vmul.f32 %v8187_v0, %v9363_v53  ;;  %v5282_v18 = vrot.slane %v5166_v23, 2  ;;  %v4432_v39 = vcombine.low %v4424_v47, %v4431_v16 }
 0x1eb   : > { %11051 = vst [vmem:[#allocation108_spill] sm:$0xff] %v9387_v27  ;;  %v10899_v24 = vrot.slane %v9387_v27, 1  ;;  %v4434_v38 = vcombine.low %v3539_v34, %v3547_v28  ;;  %v9399_v3 = vsel %vm3951_vm2, %v4456_v2, 0.0 }
 0x1ec   : > { %11052 = vst [vmem:[#allocation109_spill] sm:$0xff] %v9391_v59  ;;  %v10898_v9 = vrot.slane %v9391_v59, 2  ;;  %11053 = vst [vmem:[#allocation110_spill] sm:$0xff] %v9399_v3  ;;  %v9403_v8 = vsel %vm3892_vm1, %v4432_v39, 0.0  ;;  %v4924_v23 = vmul.f32 %v8170_v52, %v9399_v3  ;;  %v5169_v58 = vmul.f32 %v8187_v0, %v9399_v3 }
 0x1ed   : > { %11054 = vst [vmem:[#allocation111_spill] sm:$0xff] %v9403_v8  ;;  %v9411_v16 = vmul.f32 %v8200_v12, %v9399_v3  ;;  %v5038_v34 = vsel %vm4988_vm3, %v10899_v24, %v5037_v36  ;;  %v4448_v39 = vrot.slane %v4434_v38, %v8165_v50  ;;  %v9424_v2 = vmul.f32 %v8208_v17, %v9399_v3 }
 0x1ee   : > { %v9419_v28 = vsel %vm5233_vm4, %v10898_v9, %v5282_v18  ;;  %v9426_v47 = vadd.f32 %v5038_v34, %v4875_v61  ;;  %v5042_v5 = vrot.slane %v4924_v23, 1  ;;  %v5287_v45 = vrot.slane %v5169_v58, 2 }
 0x1ef   : > { %11055 = vst [vmem:[#allocation112_spill] sm:$0xff] %v9411_v16  ;;  %11056 = vst [vmem:[#allocation113_spill] sm:$0xff] %v9419_v28  ;;  %v9429_v11 = vcombine.low %v4441_v37, %v4448_v39  ;;  %v9434_v18 = vmul.f32 %v8212_v22, %v9399_v3  ;;  %v2944_v38 = vmul.f32 %v7583_v49, %v9315_v54  ;;  %v11061_v61 = vrot.slane %v9328_v31, 2  ;;  %v11062_v37 = vld [vmem:[#allocation6_spill] sm:$0xff]  ;;  %v11064_v39 = vld [vmem:[#allocation4_spill] sm:$0xff] }
 0x1f0   : > { %11057 = vst [vmem:[#allocation114_spill] sm:$0xff] %v9424_v2  ;;  %11058 = vst [vmem:[#allocation115_spill] sm:$0xff] %v9426_v47  ;;  %v3548_v9 = vcombine.high %v9349_v13, %v9349_v13  ;;  %v5383_v58 = vmul.f32 %v8198_v10, %v8294_v29  ;;  %v11063_v34 = vrot.slane %v11062_v37, 1  ;;  %v11065_v36 = vrot.slane %v11064_v39, 1  ;;  %v11068_v13 = vld [vmem:[#allocation3_spill] sm:$0xff]  ;;  %v11094_v28 = vld [vmem:[#allocation29_spill] sm:$0xff] }
 0x1f1   : > { %11059 = vst [vmem:[#allocation116_spill] sm:$0xff] %v9429_v11  ;;  %11060 = vst [vmem:[#allocation117_spill] sm:$0xff] %v9434_v18  ;;  %v5346_v23 = vadd.f32 %v11061_v61, %v9333_v25  ;;  %v4877_v24 = vmul.f32 %v8176_v56, %v9429_v11  ;;  %v9453_v49 = vmul.f32 %v8170_v52, %v9429_v11  ;;  %v2985_v25 = vadd.f32 1.0, %v2944_v38  ;;  %v11070_v38 = vld [vmem:[#allocation10_spill] sm:$0xff] }
 0x1f2   : > { %v5548_v55 = vsel %vm4988_vm3, %v11065_v36, %v11063_v34  ;;  %v9457_v31 = vmul.f32 %v8187_v0, %v9429_v11  ;;  %v5695_v37 = vmul.f32 %v8208_v17, %v8294_v29  ;;  %v7657_v36 = vld [vmem:[%s10792_s3 + $0x8] sm:$0x7]  ;;  %v11069_v34 = vld [vmem:[#allocation2_spill] sm:$0xff] }
 0x1f3   : > { %11066 = vst [vmem:[#allocation6_spill] sm:$0xff] %v9453_v49  ;;  %v5414_v61 = vadd.f32 %v11068_v13, %v5346_v23  ;;  %v5415_v63 = vadd.f32 %v5383_v58, %v5346_v23  ;;  %v9466_v39 = vrot.slane %v7657_v36, %v11069_v34  ;;  %v10908_v33 = vrot.slane %v9453_v49, 1  ;;  %v11071_v58 = vld [vmem:[#allocation8_spill] sm:$0xff] }
 0x1f4   : > { %11067 = vst [vmem:[#allocation4_spill] sm:$0xff] %v9457_v31  ;;  %v10909_v26 = vrot.slane %v9457_v31, 2  ;;  %v3026_v20 = vmul.f32 %v2985_v25, %v9315_v54  ;;  %v6006_v13 = vmul.f32 %v8212_v22, %v11070_v38  ;;  %v5791_v29 = vrot.slane %v5695_v37, 2  ;;  %v11073_v25 = vld [vmem:[#allocation14_spill] sm:$0xff] }
 0x1f5   : > { %v5658_v23 = vadd.f32 %v5548_v55, %v5414_v61  ;;  %v5659_v4 = vadd.f32 %v11071_v58, %v5415_v63  ;;  %v5938_v2 = vmul.f32 %v9466_v39, %v11070_v38  ;;  %v5043_v36 = vsel %vm4988_vm3, %v10908_v33, %v5042_v5  ;;  %v11075_v63 = vld [vmem:[#allocation5_spill] sm:$0xff]  ;;  %v11077_v58 = vld [vmem:[#allocation7_spill] sm:$0xff] }
 0x1f6   : > { %v9482_v34 = vsel %vm5233_vm4, %v10909_v26, %v5287_v45  ;;  %v3067_v54 = vmul.f32 0.5, %v3026_v20  ;;  %v5939_v16 = vmul.f32 %v9466_v39, %v11073_v25  ;;  %v9486_v55 = vadd.f32 %v5043_v36, %v4877_v24  ;;  %v11079_v24 = vld [vmem:[#allocation13_spill] sm:$0xff] }
 0x1f7   : > { %11072 = vst [vmem:[#allocation3_spill] sm:$0xff] %v9482_v34  ;;  %v11076_v61 = vrot.slane %v11075_v63, 2  ;;  %v11078_v59 = vrot.slane %v11077_v58, 2  ;;  %v6007_v5 = vmul.f32 %v8212_v22, %v11073_v25  ;;  %v6102_v31 = vrot.slane %v6006_v13, 1 }
 0x1f8   : > { %11074 = vst [vmem:[#allocation2_spill] sm:$0xff] %v9486_v55  ;;  %v3549_v33 = vcombine.high %v3067_v54, %v3067_v54  ;;  %v3556_v45 = vrot.slane %v3067_v54, %v8165_v50  ;;  %v6105_v36 = vrot.slane %v11079_v24, 1  ;;  %v6250_v63 = vmul.f32 %v8217_v21, %v11070_v38 }
 0x1f9   : > { %v5792_v37 = vsel %vm5233_vm4, %v11076_v61, %v5791_v29  ;;  %v5794_v49 = vsel %vm5233_vm4, %v5791_v29, %v11078_v59  ;;  %v6103_v34 = vrot.slane %v6007_v5, 1 }
 0x1fa   : > { %v5902_v20 = vadd.f32 %v5792_v37, %v5658_v23  ;;  %v5903_v26 = vadd.f32 %v5794_v49, %v5659_v4  ;;  %v9501_v61 = vrot.slane %v3549_v33, %v8165_v50  ;;  %v3564_v58 = vcombine.high %v3556_v45, %v3556_v45  ;;  %v11080_v37 = vld [vmem:[#allocation12_spill] sm:$0xff] }
 0x1fb   : > { %v4457_v59 = vcombine.low %v3548_v9, %v3556_v45  ;;  %v6104_v27 = vsel %vm4988_vm3, %v6102_v31, %v6103_v34  ;;  %v6106_v54 = vsel %vm4988_vm3, %v6103_v34, %v6105_v36  ;;  %v6251_v4 = vmul.f32 %v8217_v21, %v11073_v25  ;;  %v9526_v25 = vld [vmem:[%s10793_s4] ss:$0 sm:$0xff]  ;;  %v11081_v45 = vld [vmem:[#allocation17_spill] sm:$0xff]  ;;  %v11083_v36 = vld [vmem:[#allocation11_spill] sm:$0xff] }
 0x1fc   : > { %v5970_v29 = vadd.f32 %v5938_v2, %v5902_v20  ;;  %v5971_v55 = vadd.f32 %v5939_v16, %v5903_v26  ;;  %v4458_v49 = vcombine.low %v3564_v58, %v9501_v61  ;;  %v6252_v33 = vmul.f32 %v8217_v21, %v11080_v37  ;;  %v11085_v37 = vld [vmem:[#allocation9_spill] sm:$0xff]  ;;  %v7658_v31 = vld [vmem:[%s10791_s2] ss:$0 sm:$0xff] }
 0x1fd   : > { %v4465_v13 = vrot.slane %v4457_v59, %v8165_v50  ;;  %v6346_v24 = vrot.slane %v6250_v63, 2  ;;  %v6347_v9 = vrot.slane %v6251_v4, 2  ;;  %v9513_v26 = vadd.f32 %v8835_v30, %v8964_v7  ;;  %v9543_v4 = vld [vmem:[%s10793_s4 + $0x1] ss:$0 sm:$0xff] }
 0x1fe   : > { %v6214_v23 = vadd.f32 %v6104_v27, %v5970_v29  ;;  %v6215_v5 = vadd.f32 %v6106_v54, %v5971_v55  ;;  %v4472_v16 = vrot.slane %v4458_v49, %v8165_v50  ;;  %v6349_v2 = vrot.slane %v6252_v33, 2 }
 0x1ff   : > { %v9520_v34 = vadd.f32 %v8835_v30, %v8982_v46  ;;  %v6348_v27 = vsel %vm5233_vm4, %v6346_v24, %v6347_v9  ;;  %v2822_v7 = vmul.f32 %v9513_v26, %v9513_v26  ;;  %v5384_v55 = vmul.f32 %v8198_v10, %v11070_v38 }
 0x200   : > { %v11082_v20 = vrot.slane %v11081_v45, 1  ;;  %v11084_v63 = vrot.slane %v11083_v36, 1  ;;  %v4473_v46 = vcombine.low %v4465_v13, %v4472_v16  ;;  %v6350_v58 = vsel %vm5233_vm4, %v6347_v9, %v6349_v2  ;;  %v11087_v16 = vld [vmem:[#allocation21_spill] sm:$0xff]  ;;  %v11088_v45 = vld [vmem:[#allocation23_spill] sm:$0xff] }
 0x201   : > { %v6458_v59 = vadd.f32 %v6348_v27, %v6214_v23  ;;  %v2823_v29 = vmul.f32 %v9520_v34, %v9520_v34  ;;  %v6459_v54 = vadd.f32 %v6350_v58, %v6215_v5  ;;  %v2863_v49 = vadd.f32 1.0, %v2822_v7 }
 0x202   : > { %v5553_v30 = vsel %vm4988_vm3, %v11084_v63, %v11082_v20  ;;  %v5416_v33 = vadd.f32 %v5384_v55, %v11085_v37  ;;  %v5697_v24 = vmul.f32 %v8208_v17, %v11070_v38  ;;  %v9550_v13 = vsel %vm3892_vm1, %v4473_v46, 0.0  ;;  %v11089_v46 = vld [vmem:[#allocation18_spill] sm:$0xff] }
 0x203   : > { %11086 = vst [vmem:[#allocation10_spill] sm:$0xff] %v9550_v13  ;;  %v6496_v23 = vmul.f32 %v9526_v25, %v6458_v59  ;;  %v2864_v9 = vadd.f32 1.0, %v2823_v29  ;;  %v5940_v5 = vmul.f32 %v9466_v39, %v11087_v16  ;;  %v6497_v2 = vmul.f32 %v9526_v25, %v6459_v54  ;;  %v11091_v37 = vld [vmem:[#allocation22_spill] sm:$0xff] }
 0x204   : > { %7584 = vrsqrt.f32 %v2863_v49  ;;  %v5660_v27 = vadd.f32 %v5553_v30, %v5416_v33  ;;  %v5795_v7 = vrot.slane %v5697_v24, 2  ;;  %v5941_v20 = vmul.f32 %v9466_v39, %v11088_v45 }
 0x205   : > { %v9557_v55 = vadd.f32 %v9543_v4, %v6496_v23  ;;  %7586 = vrsqrt.f32 %v2864_v9  ;;  %v6009_v36 = vmul.f32 %v8212_v22, %v11087_v16  ;;  %v9564_v63 = vadd.f32 %v9543_v4, %v6497_v2 }
 0x206   : > { %v11090_v58 = vrot.slane %v11089_v46, 2  ;;  %v6010_v30 = vmul.f32 %v8212_v22, %v11088_v45  ;;  %v6253_v29 = vmul.f32 %v8217_v21, %v11087_v16  ;;  %v5973_v33 = vadd.f32 %v5941_v20, %v11091_v37 }
 0x207   : > { %v6564_v54 = vmul.f32 %v9557_v55, %v9557_v55  ;;  %v6107_v24 = vrot.slane %v6009_v36, 1  ;;  %v6565_v23 = vmul.f32 %v9564_v63, %v9564_v63  ;;  %v6254_v2 = vmul.f32 %v8217_v21, %v11088_v45 }
 0x208   : > { %v5797_v59 = vsel %vm5233_vm4, %v5795_v7, %v11090_v58  ;;  %v6108_v9 = vrot.slane %v6010_v30, 1  ;;  %v6351_v7 = vrot.slane %v6253_v29, 2  ;;  %v9584_v13 = vadd.f32 %v7658_v31, %v9043_v35 }
 0x209   : > { %v5904_v49 = vadd.f32 %v5797_v59, %v5660_v27  ;;  %v6596_v46 = vadd.f32 1.0, %v6564_v54  ;;  %v9587_v27 = vadd.f32 %v7658_v31, %v9057_v60  ;;  %v6597_v20 = vadd.f32 1.0, %v6565_v23  ;;  %v11092_v59 = vld [vmem:[#allocation28_spill] sm:$0xff] }
 0x20a   : > { %v6109_v36 = vsel %vm4988_vm3, %v6107_v24, %v6108_v9  ;;  %v11093_v30 = vrot.slane %v11092_v59, 1  ;;  %v6352_v29 = vrot.slane %v6254_v2, 2  ;;  %v11095_v60 = vrot.slane %v11094_v28, 2  ;;  %v11096_v28 = vld [vmem:[#allocation20_spill] sm:$0xff] }
 0x20b   : > { %v5972_v58 = vadd.f32 %v5940_v5, %v5904_v49  ;;  %7588 = vrsqrt.f32 %v6596_v46  ;;  %v2824_v49 = vmul.f32 %v9584_v13, %v9584_v13  ;;  %v2825_v24 = vmul.f32 %v9587_v27, %v9587_v27 }
 0x20c   : > { %v6111_v37 = vsel %vm4988_vm3, %v6108_v9, %v11093_v30  ;;  %7590 = vrsqrt.f32 %v6597_v20  ;;  %v6353_v35 = vsel %vm5233_vm4, %v6351_v7, %v6352_v29  ;;  %v6355_v31 = vsel %vm5233_vm4, %v6352_v29, %v11095_v60  ;;  %v11097_v20 = vld [vmem:[#allocation19_spill] sm:$0xff] }
 0x20d   : > { %v6216_v5 = vadd.f32 %v6109_v36, %v5972_v58  ;;  %v6217_v54 = vadd.f32 %v6111_v37, %v5973_v33  ;;  %v2865_v9 = vadd.f32 1.0, %v2824_v49  ;;  %v4860_v2 = vmul.f32 %v8176_v56, %v11070_v38 }
 0x20e   : > { %v7585_v33 = vpop.eup %7584  ;;  %v2866_v46 = vadd.f32 1.0, %v2825_v24  ;;  %v4898_v58 = vmul.f32 %v8170_v52, %v11070_v38  ;;  %v5143_v7 = vmul.f32 %v8187_v0, %v11070_v38  ;;  %v5351_v36 = vadd.f32 %v11097_v20, %v11096_v28 }
 0x20f   : > { %v6460_v23 = vadd.f32 %v6353_v35, %v6216_v5  ;;  %v6461_v59 = vadd.f32 %v6355_v31, %v6217_v54  ;;  %v7587_v30 = vpop.eup %7586  ;;  %v2945_v37 = vmul.f32 %v7585_v33, %v9513_v26  ;;  %7592 = vrsqrt.f32 %v2865_v9  ;;  %v11100_v9 = vld [vmem:[#allocation16_spill] sm:$0xff] }
 0x210   : > { %v2946_v54 = vmul.f32 %v7587_v30, %v9520_v34  ;;  %7594 = vrsqrt.f32 %v2866_v46  ;;  %v4999_v49 = vrot.slane %v4898_v58, 1  ;;  %v5244_v35 = vrot.slane %v5143_v7, 2 }
 0x211   : > { %v6498_v29 = vmul.f32 %v9526_v25, %v6460_v23  ;;  %v6499_v5 = vmul.f32 %v9526_v25, %v6461_v59  ;;  %v2986_v60 = vadd.f32 1.0, %v2945_v37  ;;  %v5386_v24 = vmul.f32 %v8198_v10, %v11087_v16  ;;  %v11098_v23 = vld [vmem:[#allocation15_spill] sm:$0xff] }
 0x212   : > { %v2987_v33 = vadd.f32 1.0, %v2946_v54  ;;  %v11099_v28 = vrot.slane %v11098_v23, 1  ;;  %v11101_v20 = vrot.slane %v11100_v9, 2  ;;  %v5387_v58 = vmul.f32 %v8198_v10, %v11088_v45 }
 0x213   : > { %v9614_v31 = vadd.f32 %v9543_v4, %v6498_v29  ;;  %v9617_v38 = vadd.f32 %v9543_v4, %v6499_v5  ;;  %v3027_v7 = vmul.f32 %v2986_v60, %v9513_v26 }
 0x214   : > { %v5001_v59 = vsel %vm4988_vm3, %v4999_v49, %v11099_v28  ;;  %v5246_v46 = vsel %vm5233_vm4, %v5244_v35, %v11101_v20  ;;  %v3028_v5 = vmul.f32 %v2987_v33, %v9520_v34  ;;  %v9635_v54 = vadd.f32 %v5387_v58, %v5351_v36 }
 0x215   : > { %v6566_v30 = vmul.f32 %v9614_v31, %v9614_v31  ;;  %v6567_v37 = vmul.f32 %v9617_v38, %v9617_v38  ;;  %v5105_v29 = vadd.f32 %v5001_v59, %v4860_v2  ;;  %v9639_v49 = vmul.f32 %v8200_v12, %v11087_v16  ;;  %v7589_v26 = vpop.eup %7588 }
 0x216   : > { %v9643_v35 = vmul.f32 %v8200_v12, %v11088_v45  ;;  %v3068_v60 = vmul.f32 0.5, %v3027_v7  ;;  %v7591_v20 = vpop.eup %7590  ;;  %v6660_v2 = vmul.f32 %v7589_v26, %v9557_v55  ;;  %v3069_v59 = vmul.f32 0.5, %v3028_v5 }
 0x217   : > { %v6598_v23 = vadd.f32 1.0, %v6566_v30  ;;  %v6599_v28 = vadd.f32 1.0, %v6567_v37  ;;  %v5350_v9 = vadd.f32 %v5246_v46, %v5105_v29  ;;  %v6661_v33 = vmul.f32 %v7591_v20, %v9564_v63 }
 0x218   : > { %v3566_v58 = vcombine.high %v3068_v60, %v3068_v60  ;;  %v3573_v47 = vrot.slane %v3068_v60, %v8165_v50  ;;  %v6692_v3 = vadd.f32 1.0, %v6660_v2  ;;  %v3583_v18 = vcombine.high %v3069_v59, %v3069_v59 }
 0x219   : > { %7596 = vrsqrt.f32 %v6598_v23  ;;  %v3590_v7 = vrot.slane %v3069_v59, %v8165_v50  ;;  %v7593_v46 = vpop.eup %7592  ;;  %v6693_v30 = vadd.f32 1.0, %v6661_v33  ;;  %v11102_v5 = vcombine.high %v9501_v61, %v9501_v61 }
 0x21a   : > { %7598 = vrsqrt.f32 %v6599_v28  ;;  %v3580_v37 = vrot.slane %v3566_v58, %v8165_v50  ;;  %v3581_v29 = vcombine.high %v3573_v47, %v3573_v47  ;;  %v7595_v34 = vpop.eup %7594  ;;  %v6724_v20 = vmul.f32 %v6692_v3, %v9557_v55 }
 0x21b   : > { %v4474_v26 = vcombine.low %v11102_v5, %v3573_v47  ;;  %v3597_v60 = vrot.slane %v3583_v18, %v8165_v50  ;;  %v3598_v23 = vcombine.high %v3590_v7, %v3590_v7  ;;  %v2947_v2 = vmul.f32 %v7593_v46, %v9584_v13 }
 0x21c   : > { %v6725_v59 = vmul.f32 %v6693_v30, %v9564_v63  ;;  %v3582_v28 = vcombine.high %v3580_v37, %v3580_v37  ;;  %v4475_v36 = vcombine.low %v3581_v29, %v3580_v37  ;;  %v6756_v58 = vmul.f32 0.5, %v6724_v20 }
 0x21d   : > { %v4482_v33 = vrot.slane %v4474_v26, %v8165_v50  ;;  %v3599_v11 = vcombine.high %v3597_v60, %v3597_v60  ;;  %v4498_v8 = vcombine.low %v3590_v7, %v3598_v23  ;;  %v2988_v32 = vadd.f32 1.0, %v2947_v2 }
 0x21e   : > { %v6757_v61 = vmul.f32 0.5, %v6725_v59  ;;  %v4489_v47 = vrot.slane %v4475_v36, %v8165_v50  ;;  %v4497_v3 = vrot.slane %v3582_v28, %v8165_v50  ;;  %v2948_v18 = vmul.f32 %v7595_v34, %v9587_v27 }
 0x21f   : > { %v4499_v55 = vcombine.low %v3597_v60, %v3599_v11  ;;  %v4506_v46 = vrot.slane %v4498_v8, %v8165_v50  ;;  %v3029_v63 = vmul.f32 %v2988_v32, %v9584_v13  ;;  %v5418_v30 = vadd.f32 %v5386_v24, %v5350_v9 }
 0x220   : > { %v6788_v37 = vpack.c.bf16 %v6757_v61, %v6756_v58  ;;  %v9665_v29 = vcombine.low %v4482_v33, %v4489_v47  ;;  %v9669_v7 = vsel %vm3951_vm2, %v4497_v3, 0.0  ;;  %v2989_v5 = vadd.f32 1.0, %v2948_v18 }
 0x221   : > { %v4927_v36 = vmul.f32 %v8170_v52, %v9669_v7  ;;  %v9675_v34 = vmul.f32 %v8187_v0, %v9669_v7  ;;  %v9679_v11 = vmul.f32 %v8200_v12, %v9669_v7  ;;  %v9683_v32 = vmul.f32 %v8208_v17, %v9669_v7 }
 0x222   : > { %7425 = vmatprep.mubr.bf16.mxu1 %v6788_v37  ;;  %v9687_v13 = vmul.f32 %v8170_v52, %v9665_v29  ;;  %v4513_v24 = vrot.slane %v4499_v55, %v8165_v50  ;;  %v3070_v9 = vmul.f32 0.5, %v3029_v63  ;;  %v3030_v26 = vmul.f32 %v2989_v5, %v9587_v27 }
 0x223   : > { %11103 = vst [vmem:[#allocation8_spill] sm:$0xff] %v9675_v34  ;;  %v7597_v8 = vpop.eup %7596  ;;  %v5047_v60 = vrot.slane %v4927_v36, 1  ;;  %v11105_v27 = vrot.slane %v9643_v35, 1  ;;  %v11106_v55 = vrot.slane %v9639_v49, 1 }
 0x224   : > { %11104 = vst [vmem:[#allocation14_spill] sm:$0xff] %v9687_v13  ;;  %v7599_v20 = vpop.eup %7598  ;;  %v10918_v28 = vrot.slane %v9687_v13, 1  ;;  %v4514_v33 = vcombine.low %v4506_v46, %v4513_v24  ;;  %v6662_v58 = vmul.f32 %v7597_v8, %v9614_v31  ;;  %v3600_v47 = vcombine.high %v3070_v9, %v3070_v9 }
 0x225   : > { %v6663_v61 = vmul.f32 %v7599_v20, %v9617_v38  ;;  %v3607_v3 = vrot.slane %v3070_v9, %v8165_v50  ;;  %v3071_v18 = vmul.f32 0.5, %v3030_v26  ;;  %v5558_v63 = vsel %vm4988_vm3, %v11106_v55, %v11105_v27  ;;  %v11108_v27 = vld [vmem:[#allocation25_spill] sm:$0xff] }
 0x226   : > { %v9706_v37 = vsel %vm4988_vm3, %v10918_v28, %v5047_v60  ;;  %v9710_v46 = vsel %vm3892_vm1, %v4514_v33, 0.0  ;;  %v6694_v5 = vadd.f32 1.0, %v6662_v58  ;;  %v3614_v8 = vrot.slane %v3600_v47, %v8165_v50 }
 0x227   : > { %11107 = vst [vmem:[#allocation5_spill] sm:$0xff] %v9706_v37  ;;  %v6695_v36 = vadd.f32 1.0, %v6663_v61  ;;  %v3615_v24 = vcombine.high %v3607_v3, %v3607_v3  ;;  %v3617_v9 = vcombine.high %v3071_v18, %v3071_v18  ;;  %v3624_v26 = vrot.slane %v3071_v18, %v8165_v50  ;;  %v11122_v37 = vld [vmem:[#allocation39_spill] sm:$0xff] }
 0x228   : > { %v6726_v49 = vmul.f32 %v6694_v5, %v9614_v31  ;;  %v11109_v55 = vrot.slane %v11108_v27, 1  ;;  %v11110_v60 = vrot.slane %v9643_v35, 1  ;;  %v5662_v33 = vadd.f32 %v5558_v63, %v5418_v30 }
 0x229   : > { %v6727_v20 = vmul.f32 %v6695_v36, %v9617_v38  ;;  %v3616_v28 = vcombine.high %v3614_v8, %v3614_v8  ;;  %v4515_v58 = vcombine.low %v3607_v3, %v3615_v24  ;;  %v3631_v61 = vrot.slane %v3617_v9, %v8165_v50  ;;  %v11111_v9 = vld [vmem:[#allocation32_spill] sm:$0xff] }
 0x22a   : > { %v5560_v23 = vsel %vm4988_vm3, %v11110_v60, %v11109_v55  ;;  %v3632_v47 = vcombine.high %v3624_v26, %v3624_v26  ;;  %v6758_v59 = vmul.f32 0.5, %v6726_v49  ;;  %v4538_v18 = vrot.slane %v3624_v26, %v8165_v50 }
 0x22b   : > { %v6759_v2 = vmul.f32 0.5, %v6727_v20  ;;  %v5663_v31 = vadd.f32 %v5560_v23, %v9635_v54  ;;  %v4516_v5 = vcombine.low %v3614_v8, %v3616_v28  ;;  %v4523_v38 = vrot.slane %v4515_v58, %v8165_v50 }
 0x22c   : > { %v3633_v36 = vcombine.high %v3631_v61, %v3631_v61  ;;  %v4539_v27 = vcombine.low %v3632_v47, %v3631_v61  ;;  %v4836_v30 = vsel %vm3951_vm2, %v4538_v18, 0.0  ;;  %v5700_v3 = vmul.f32 %v8208_v17, %v11087_v16 }
 0x22d   : > { %v6789_v35 = vpack.c.bf16 %v6759_v2, %v6758_v59  ;;  %v5701_v63 = vmul.f32 %v8208_v17, %v11088_v45  ;;  %v4530_v24 = vrot.slane %v4516_v5, %v8165_v50  ;;  %v4930_v23 = vmul.f32 %v8170_v52, %v4836_v30 }
 0x22e   : > { %v4540_v26 = vcombine.low %v3633_v36, %v11111_v9  ;;  %v4547_v54 = vrot.slane %v4539_v27, %v8165_v50  ;;  %v5175_v2 = vmul.f32 %v8187_v0, %v4836_v30  ;;  %v9737_v1 = vmul.f32 %v8200_v12, %v4836_v30 }
 0x22f   : > { %7426 = vmatmul.mubr.bf16.vlgmr.msra.gmra.mrb[24].mxu1 %v6789_v35  ;;  %v9740_v59 = vmul.f32 %v8208_v17, %v4836_v30  ;;  %v9743_v28 = vmul.f32 %v8212_v22, %v4836_v30  ;;  %v9745_v8 = vcombine.low %v4523_v38, %v4530_v24  ;;  %v5052_v20 = vrot.slane %v4930_v23, 1  ;;  %v11117_v35 = vld [vmem:[#allocation31_spill] sm:$0xff]  ;;  %v11118_v24 = vld [vmem:[#allocation33_spill] sm:$0xff] }
 0x230   : > { %11112 = vst [vmem:[#allocation7_spill] sm:$0xff] %v9737_v1  ;;  %v4554_v49 = vrot.slane %v4540_v26, %v8165_v50  ;;  %v9749_v55 = vmul.f32 %v8217_v21, %v4836_v30  ;;  %v5297_v60 = vrot.slane %v5175_v2, 2  ;;  %v5800_v36 = vrot.slane %v5700_v3, 2 }
 0x231   : > { %11113 = vst [vmem:[#allocation13_spill] sm:$0xff] %v9740_v59  ;;  %11114 = vst [vmem:[#allocation12_spill] sm:$0xff] %v9743_v28  ;;  %v4881_v5 = vmul.f32 %v8176_v56, %v9745_v8  ;;  %v9758_v38 = vmul.f32 %v8170_v52, %v9745_v8  ;;  %v9762_v50 = vmul.f32 %v8187_v0, %v9745_v8  ;;  %v5801_v27 = vrot.slane %v5701_v63, 2  ;;  %v11120_v63 = vld [vmem:[#allocation26_spill] sm:$0xff] }
 0x232   : > { %v4555_v18 = vcombine.low %v4547_v54, %v4554_v49  ;;  %v5942_v30 = vmul.f32 %v9466_v39, %v11117_v35  ;;  %v5943_v9 = vmul.f32 %v9466_v39, %v11118_v24  ;;  %v6012_v2 = vmul.f32 %v8212_v22, %v11117_v35 }
 0x233   : > { %11115 = vst [vmem:[#allocation17_spill] sm:$0xff] %v9758_v38  ;;  %11116 = vst [vmem:[#allocation11_spill] sm:$0xff] %v9762_v50  ;;  %v10926_v54 = vrot.slane %v9758_v38, 1  ;;  %v5295_v23 = vrot.slane %v9762_v50, 2  ;;  %v5802_v3 = vsel %vm5233_vm4, %v5800_v36, %v5801_v27  ;;  %v11121_v49 = vrot.slane %v11120_v63, 2 }
 0x234   : > { %v9770_v26 = vsel %vm3892_vm1, %v4555_v18, 0.0  ;;  %v6013_v58 = vmul.f32 %v8212_v22, %v11118_v24  ;;  %v6256_v51 = vmul.f32 %v8217_v21, %v11117_v35  ;;  %v5906_v59 = vadd.f32 %v5802_v3, %v5662_v33 }
 0x235   : > { %11119 = vst [vmem:[#allocation9_spill] sm:$0xff] %v9770_v26  ;;  %v5804_v61 = vsel %vm5233_vm4, %v5801_v27, %v11121_v49  ;;  %v5053_v18 = vsel %vm4988_vm3, %v10926_v54, %v5052_v20  ;;  %v5298_v47 = vsel %vm5233_vm4, %v5295_v23, %v5297_v60  ;;  %v6112_v63 = vrot.slane %v6012_v2, 1  ;;  %v11123_v54 = vld [vmem:[#allocation38_spill] sm:$0xff] }
 0x236   : > { %v5907_v36 = vadd.f32 %v5804_v61, %v5663_v31  ;;  %v5126_v26 = vadd.f32 %v5053_v18, %v4881_v5  ;;  %v6113_v1 = vrot.slane %v6013_v58, 1  ;;  %v6257_v27 = vmul.f32 %v8217_v21, %v11118_v24 }
 0x237   : > { %v5974_v49 = vadd.f32 %v5942_v30, %v5906_v59  ;;  %v6356_v13 = vrot.slane %v6256_v51, 2  ;;  %v6359_v28 = vrot.slane %v11122_v37, 2  ;;  %v11124_v50 = vrot.slane %v11123_v54, 1 }
 0x238   : > { %v5975_v34 = vadd.f32 %v5943_v9, %v5907_v36  ;;  %v9793_v38 = vadd.f32 %v5298_v47, %v5126_v26  ;;  %v6114_v20 = vsel %vm4988_vm3, %v6112_v63, %v6113_v1  ;;  %v6357_v31 = vrot.slane %v6257_v27, 2  ;;  %v11125_v9 = vld [vmem:[#allocation30_spill] sm:$0xff]  ;;  %v11126_v36 = vld [vmem:[#allocation27_spill] sm:$0xff] }
 0x239   : > { %v6116_v33 = vsel %vm4988_vm3, %v6113_v1, %v11124_v50  ;;  %v6218_v60 = vadd.f32 %v6114_v20, %v5974_v49  ;;  %v4862_v58 = vmul.f32 %v8176_v56, %v11087_v16  ;;  %v4863_v59 = vmul.f32 %v8176_v56, %v11088_v45 }
 0x23a   : > { %v6219_v61 = vadd.f32 %v6116_v33, %v5975_v34  ;;  %v6358_v5 = vsel %vm5233_vm4, %v6356_v13, %v6357_v31  ;;  %v6360_v37 = vsel %vm5233_vm4, %v6357_v31, %v6359_v28  ;;  %v4901_v47 = vmul.f32 %v8170_v52, %v11087_v16 }
 0x23b   : > { %v5146_v30 = vmul.f32 %v8187_v0, %v11087_v16  ;;  %v6462_v1 = vadd.f32 %v6358_v5, %v6218_v60  ;;  %v5108_v34 = vadd.f32 %v11125_v9, %v4863_v59  ;;  %v5147_v26 = vmul.f32 %v8187_v0, %v11088_v45  ;;  %v11128_v59 = vld [vmem:[#allocation24_spill] sm:$0xff] }
 0x23c   : > { %v6463_v50 = vadd.f32 %v6360_v37, %v6219_v61  ;;  %v5004_v54 = vrot.slane %v4901_v47, 1  ;;  %v5388_v13 = vmul.f32 %v8198_v10, %v11117_v35  ;;  %v5389_v28 = vmul.f32 %v8198_v10, %v11118_v24 }
 0x23d   : > { %v5249_v2 = vrot.slane %v5146_v30, 2  ;;  %v6500_v3 = vmul.f32 %v9526_v25, %v6462_v1  ;;  %v5250_v16 = vrot.slane %v5147_v26, 2  ;;  %v5459_v18 = vmul.f32 %v8200_v12, %v11117_v35 }
 0x23e   : > { %v6501_v51 = vmul.f32 %v9526_v25, %v6463_v50  ;;  %v11127_v63 = vrot.slane %v11126_v36, 1  ;;  %v5460_v27 = vmul.f32 %v8200_v12, %v11118_v24  ;;  %v5703_v49 = vmul.f32 %v8208_v17, %v11117_v35  ;;  %v11132_v36 = vld [vmem:[#allocation41_spill] sm:$0xff] }
 0x23f   : > { %v5704_v20 = vmul.f32 %v8208_v17, %v11118_v24  ;;  %v9830_v33 = vadd.f32 %v9543_v4, %v6500_v3  ;;  %v5251_v61 = vsel %vm5233_vm4, %v5249_v2, %v5250_v16  ;;  %v11129_v5 = vrot.slane %v11128_v59, 2  ;;  %v11133_v59 = vld [vmem:[#allocation37_spill] sm:$0xff] }
 0x240   : > { %v5006_v45 = vsel %vm4988_vm3, %v5004_v54, %v11127_v63  ;;  %v9833_v31 = vadd.f32 %v9543_v4, %v6501_v51  ;;  %v5561_v47 = vrot.slane %v5459_v18, 1  ;;  %v5562_v30 = vrot.slane %v5460_v27, 1 }
 0x241   : > { %v5107_v60 = vadd.f32 %v5006_v45, %v4862_v58  ;;  %v5253_v37 = vsel %vm5233_vm4, %v5250_v16, %v11129_v5  ;;  %v5805_v1 = vrot.slane %v5703_v49, 2  ;;  %v6568_v50 = vmul.f32 %v9830_v33, %v9830_v33  ;;  %v11130_v58 = vld [vmem:[#allocation36_spill] sm:$0xff] }
 0x242   : > { %v6569_v24 = vmul.f32 %v9833_v31, %v9833_v31  ;;  %v5353_v26 = vadd.f32 %v5253_v37, %v5108_v34  ;;  %v5563_v54 = vsel %vm4988_vm3, %v5561_v47, %v5562_v30  ;;  %v11131_v3 = vrot.slane %v11130_v58, 1 }
 0x243   : > { %v5352_v9 = vadd.f32 %v5251_v61, %v5107_v60  ;;  %v5806_v51 = vrot.slane %v5704_v20, 2  ;;  %v5944_v16 = vmul.f32 %v9466_v39, %v11132_v36  ;;  %v6600_v18 = vadd.f32 1.0, %v6568_v50  ;;  %v11135_v60 = vld [vmem:[#allocation42_spill] sm:$0xff] }
 0x244   : > { %v5565_v2 = vsel %vm4988_vm3, %v5562_v30, %v11131_v3  ;;  %v6601_v63 = vadd.f32 1.0, %v6569_v24  ;;  %v5421_v27 = vadd.f32 %v5389_v28, %v5353_v26  ;;  %v11134_v5 = vrot.slane %v11133_v59, 2  ;;  %v11136_v28 = vld [vmem:[#allocation48_spill] sm:$0xff]  ;;  %v11137_v3 = vld [vmem:[#allocation43_spill] sm:$0xff] }
 0x245   : > { %v5420_v45 = vadd.f32 %v5388_v13, %v5352_v9  ;;  %v5807_v49 = vsel %vm5233_vm4, %v5805_v1, %v5806_v51  ;;  %v5945_v61 = vmul.f32 %v9466_v39, %v11135_v60  ;;  %v6015_v37 = vmul.f32 %v8212_v22, %v11132_v36 }
 0x246   : > { %v5809_v34 = vsel %vm5233_vm4, %v5806_v51, %v11134_v5  ;;  %7600 = vrsqrt.f32 %v6600_v18  ;;  %v5665_v47 = vadd.f32 %v5565_v2, %v5421_v27  ;;  %v6016_v30 = vmul.f32 %v8212_v22, %v11135_v60 }
 0x247   : > { %v5664_v20 = vadd.f32 %v5563_v54, %v5420_v45  ;;  %7602 = vrsqrt.f32 %v6601_v63  ;;  %v6117_v13 = vrot.slane %v6015_v37, 1  ;;  %v6120_v1 = vrot.slane %v11136_v28, 1 }
 0x248   : > { %v6259_v50 = vmul.f32 %v8217_v21, %v11132_v36  ;;  %v5909_v9 = vadd.f32 %v5809_v34, %v5665_v47  ;;  %v6118_v26 = vrot.slane %v6016_v30, 1  ;;  %v6260_v58 = vmul.f32 %v8217_v21, %v11135_v60 }
 0x249   : > { %v5908_v24 = vadd.f32 %v5807_v49, %v5664_v20  ;;  %v6261_v54 = vmul.f32 %v8217_v21, %v11137_v3  ;;  %v4864_v51 = vmul.f32 %v8176_v56, %v11117_v35  ;;  %v4904_v18 = vmul.f32 %v8170_v52, %v11117_v35 }
 0x24a   : > { %v6361_v2 = vrot.slane %v6259_v50, 2  ;;  %v5977_v45 = vadd.f32 %v5945_v61, %v5909_v9  ;;  %v6119_v27 = vsel %vm4988_vm3, %v6117_v13, %v6118_v26  ;;  %v6121_v49 = vsel %vm4988_vm3, %v6118_v26, %v6120_v1  ;;  %v11138_v13 = vld [vmem:[#allocation34_spill] sm:$0xff] }
 0x24b   : > { %v5976_v63 = vadd.f32 %v5944_v16, %v5908_v24  ;;  %v6362_v59 = vrot.slane %v6260_v58, 2  ;;  %v6364_v5 = vrot.slane %v6261_v54, 2  ;;  %v5009_v34 = vrot.slane %v4904_v18, 1  ;;  %v11140_v58 = vld [vmem:[#allocation40_spill] sm:$0xff]  ;;  %v11141_v54 = vld [vmem:[#allocation35_spill] sm:$0xff] }
 0x24c   : > { %v5149_v37 = vmul.f32 %v8187_v0, %v11117_v35  ;;  %v6221_v47 = vadd.f32 %v6121_v49, %v5977_v45  ;;  %v5390_v30 = vmul.f32 %v8198_v10, %v11132_v36  ;;  %v5391_v28 = vmul.f32 %v8198_v10, %v11135_v60 }
 0x24d   : > { %v6220_v20 = vadd.f32 %v6119_v27, %v5976_v63  ;;  %v6363_v16 = vsel %vm5233_vm4, %v6361_v2, %v6362_v59  ;;  %v6365_v61 = vsel %vm5233_vm4, %v6362_v59, %v6364_v5  ;;  %v11139_v1 = vrot.slane %v11138_v13, 1 }
 0x24e   : > { %v5254_v24 = vrot.slane %v5149_v37, 2  ;;  %v6465_v26 = vadd.f32 %v6365_v61, %v6221_v47  ;;  %v5423_v3 = vadd.f32 %v5391_v28, %v11140_v58  ;;  %v11142_v18 = vrot.slane %v11141_v54, 2 }
 0x24f   : > { %v5011_v50 = vsel %vm4988_vm3, %v5009_v34, %v11139_v1  ;;  %v6464_v9 = vadd.f32 %v6363_v16, %v6220_v20  ;;  %v5462_v45 = vmul.f32 %v8200_v12, %v11132_v36  ;;  %v5463_v2 = vmul.f32 %v8200_v12, %v11135_v60 }
 0x250   : > { %v5109_v35 = vadd.f32 %v5011_v50, %v4864_v51  ;;  %v5256_v63 = vsel %vm5233_vm4, %v5254_v24, %v11142_v18  ;;  %v5706_v27 = vmul.f32 %v8208_v17, %v11132_v36  ;;  %v7601_v49 = vpop.eup %7600  ;;  %v6503_v51 = vmul.f32 %v9526_v25, %v6465_v26  ;;  %v11143_v26 = vld [vmem:[#allocation44_spill] sm:$0xff] }
 0x251   : > { %v6502_v59 = vmul.f32 %v9526_v25, %v6464_v9  ;;  %v5707_v34 = vmul.f32 %v8208_v17, %v11135_v60  ;;  %v7603_v37 = vpop.eup %7602  ;;  %v6664_v20 = vmul.f32 %v7601_v49, %v9830_v33  ;;  %v5566_v47 = vrot.slane %v5462_v45, 1  ;;  %v11145_v49 = vld [vmem:[#allocation47_spill] sm:$0xff] }
 0x252   : > { %v5354_v5 = vadd.f32 %v5256_v63, %v5109_v35  ;;  %v5567_v28 = vrot.slane %v5463_v2, 1  ;;  %v5810_v16 = vrot.slane %v5706_v27, 2  ;;  %v6665_v61 = vmul.f32 %v7603_v37, %v9833_v31 }
 0x253   : > { %v9900_v13 = vadd.f32 %v9543_v4, %v6502_v59  ;;  %v9903_v1 = vadd.f32 %v9543_v4, %v6503_v51  ;;  %v6696_v24 = vadd.f32 1.0, %v6664_v20  ;;  %v11144_v60 = vrot.slane %v11143_v26, 1 }
 0x254   : > { %v5422_v50 = vadd.f32 %v5390_v30, %v5354_v5  ;;  %v5568_v9 = vsel %vm4988_vm3, %v5566_v47, %v5567_v28  ;;  %v5811_v58 = vrot.slane %v5707_v34, 2  ;;  %v6697_v54 = vadd.f32 1.0, %v6665_v61  ;;  %v11147_v61 = vld [vmem:[#allocation57_spill] sm:$0xff] }
 0x255   : > { %v5570_v35 = vsel %vm4988_vm3, %v5567_v28, %v11144_v60  ;;  %v6570_v18 = vmul.f32 %v9900_v13, %v9900_v13  ;;  %v6571_v63 = vmul.f32 %v9903_v1, %v9903_v1  ;;  %v6728_v2 = vmul.f32 %v6696_v24, %v9830_v33  ;;  %v11149_v60 = vld [vmem:[#allocation59_spill] sm:$0xff] }
 0x256   : > { %v5666_v45 = vadd.f32 %v5568_v9, %v5422_v50  ;;  %v5667_v27 = vadd.f32 %v5570_v35, %v5423_v3  ;;  %v5812_v30 = vsel %vm5233_vm4, %v5810_v16, %v5811_v58  ;;  %v11146_v59 = vrot.slane %v11145_v49, 2  ;;  %v11148_v50 = vld [vmem:[#allocation58_spill] sm:$0xff] }
 0x257   : > { %v6729_v5 = vmul.f32 %v6697_v54, %v9833_v31  ;;  %v6602_v34 = vadd.f32 1.0, %v6570_v18  ;;  %v6603_v37 = vadd.f32 1.0, %v6571_v63  ;;  %v6760_v47 = vmul.f32 0.5, %v6728_v2  ;;  %v11150_v2 = vld [vmem:[#allocation53_spill] sm:$0xff] }
 0x258   : > { %v5814_v51 = vsel %vm5233_vm4, %v5811_v58, %v11146_v59  ;;  %v5910_v20 = vadd.f32 %v5812_v30, %v5666_v45  ;;  %v5946_v26 = vmul.f32 %v9466_v39, %v11147_v61  ;;  %v5947_v33 = vmul.f32 %v9466_v39, %v11148_v50 }
 0x259   : > { %v5911_v28 = vadd.f32 %v5814_v51, %v5667_v27  ;;  %v6761_v3 = vmul.f32 0.5, %v6729_v5  ;;  %7604 = vrsqrt.f32 %v6602_v34  ;;  %v6018_v16 = vmul.f32 %v8212_v22, %v11147_v61 }
 0x25a   : > { %v6019_v24 = vmul.f32 %v8212_v22, %v11148_v50  ;;  %7606 = vrsqrt.f32 %v6603_v37  ;;  %v5978_v31 = vadd.f32 %v5946_v26, %v5910_v20  ;;  %v6125_v35 = vrot.slane %v11149_v60, 1 }
 0x25b   : > { %v5979_v9 = vadd.f32 %v5947_v33, %v5911_v28  ;;  %v6790_v58 = vpack.c.bf16 %v6761_v3, %v6760_v47  ;;  %v6122_v54 = vrot.slane %v6018_v16, 1  ;;  %v6262_v63 = vmul.f32 %v8217_v21, %v11147_v61  ;;  %v11151_v3 = vld [vmem:[#allocation51_spill] sm:$0xff]  ;;  %v11152_v16 = vld [vmem:[#allocation50_spill] sm:$0xff] }
 0x25c   : > { %v6123_v18 = vrot.slane %v6019_v24, 1  ;;  %v6263_v45 = vmul.f32 %v8217_v21, %v11148_v50  ;;  %v6264_v27 = vmul.f32 %v8217_v21, %v11150_v2  ;;  %v4866_v30 = vmul.f32 %v8176_v56, %v11132_v36  ;;  %v11155_v2 = vld [vmem:[#allocation46_spill] sm:$0xff] }
 0x25d   : > { %v4907_v49 = vmul.f32 %v8170_v52, %v11132_v36  ;;  %7429 = vmatprep.mubr.bf16.mxu1 %v6790_v58  ;;  %v6366_v5 = vrot.slane %v6262_v63, 2  ;;  %v5152_v34 = vmul.f32 %v8187_v0, %v11132_v36  ;;  %v5357_v24 = vadd.f32 %v11152_v16, %v11151_v3 }
 0x25e   : > { %v6124_v59 = vsel %vm4988_vm3, %v6122_v54, %v6123_v18  ;;  %v6126_v51 = vsel %vm4988_vm3, %v6123_v18, %v6125_v35  ;;  %v6367_v47 = vrot.slane %v6263_v45, 2  ;;  %v6369_v28 = vrot.slane %v6264_v27, 2  ;;  %v11153_v18 = vld [vmem:[#allocation45_spill] sm:$0xff] }
 0x25f   : > { %v6222_v37 = vadd.f32 %v6124_v59, %v5978_v31  ;;  %v6223_v20 = vadd.f32 %v6126_v51, %v5979_v9  ;;  %v5014_v26 = vrot.slane %v4907_v49, 1  ;;  %v5259_v33 = vrot.slane %v5152_v34, 2 }
 0x260   : > { %v5392_v60 = vmul.f32 %v8198_v10, %v11147_v61  ;;  %v6368_v58 = vsel %vm5233_vm4, %v6366_v5, %v6367_v47  ;;  %v6370_v35 = vsel %vm5233_vm4, %v6367_v47, %v6369_v28  ;;  %v5393_v54 = vmul.f32 %v8198_v10, %v11148_v50 }
 0x261   : > { %v5465_v36 = vmul.f32 %v8200_v12, %v11147_v61  ;;  %v6466_v31 = vadd.f32 %v6368_v58, %v6222_v37  ;;  %v6467_v9 = vadd.f32 %v6370_v35, %v6223_v20  ;;  %v11154_v63 = vrot.slane %v11153_v18, 1 }
 0x262   : > { %v11156_v27 = vrot.slane %v11155_v2, 2  ;;  %v5425_v51 = vadd.f32 %v5393_v54, %v5357_v24  ;;  %v5466_v5 = vmul.f32 %v8200_v12, %v11148_v50  ;;  %v5709_v20 = vmul.f32 %v8208_v17, %v11147_v61  ;;  %v11157_v24 = vld [vmem:[#allocation78_spill] sm:$0xff] }
 0x263   : > { %v5016_v45 = vsel %vm4988_vm3, %v5014_v26, %v11154_v63  ;;  %v5571_v34 = vrot.slane %v5465_v36, 1  ;;  %v7605_v47 = vpop.eup %7604  ;;  %v6504_v28 = vmul.f32 %v9526_v25, %v6466_v31  ;;  %v6505_v37 = vmul.f32 %v9526_v25, %v6467_v9  ;;  %v11158_v63 = vld [vmem:[#allocation55_spill] sm:$0xff] }
 0x264   : > { %v5261_v49 = vsel %vm5233_vm4, %v5259_v33, %v11156_v27  ;;  %v5111_v59 = vadd.f32 %v5016_v45, %v4866_v30  ;;  %v5710_v26 = vmul.f32 %v8208_v17, %v11148_v50  ;;  %v7607_v3 = vpop.eup %7606  ;;  %v6666_v33 = vmul.f32 %v7605_v47, %v9900_v13 }
 0x265   : > { %v5572_v16 = vrot.slane %v5466_v5, 1  ;;  %v5948_v58 = vmul.f32 %v9466_v39, %v11157_v24  ;;  %v6667_v35 = vmul.f32 %v7607_v3, %v9903_v1  ;;  %v9971_v54 = vadd.f32 %v9543_v4, %v6504_v28 }
 0x266   : > { %v5356_v30 = vadd.f32 %v5261_v49, %v5111_v59  ;;  %v9974_v36 = vadd.f32 %v9543_v4, %v6505_v37  ;;  %v5815_v31 = vrot.slane %v5709_v20, 2  ;;  %v6698_v9 = vadd.f32 1.0, %v6666_v33 }
 0x267   : > { %v5573_v50 = vsel %vm4988_vm3, %v5571_v34, %v5572_v16  ;;  %v11159_v45 = vrot.slane %v11158_v63, 1  ;;  %v6699_v27 = vadd.f32 1.0, %v6667_v35  ;;  %v6572_v49 = vmul.f32 %v9971_v54, %v9971_v54  ;;  %v11160_v35 = vld [vmem:[#allocation56_spill] sm:$0xff] }
 0x268   : > { %v5424_v18 = vadd.f32 %v5392_v60, %v5356_v30  ;;  %v6573_v59 = vmul.f32 %v9974_v36, %v9974_v36  ;;  %v6730_v47 = vmul.f32 %v6698_v9, %v9900_v13  ;;  %v5816_v37 = vrot.slane %v5710_v26, 2 }
 0x269   : > { %v5575_v2 = vsel %vm4988_vm3, %v5572_v16, %v11159_v45  ;;  %v5949_v60 = vmul.f32 %v9466_v39, %v9061_v57  ;;  %v6731_v34 = vmul.f32 %v6699_v27, %v9903_v1  ;;  %v6604_v20 = vadd.f32 1.0, %v6572_v49 }
 0x26a   : > { %v5669_v5 = vadd.f32 %v5575_v2, %v5425_v51  ;;  %v5668_v28 = vadd.f32 %v5573_v50, %v5424_v18  ;;  %v6605_v3 = vadd.f32 1.0, %v6573_v59  ;;  %v6021_v33 = vmul.f32 %v8212_v22, %v11157_v24 }
 0x26b   : > { %v6762_v30 = vmul.f32 0.5, %v6730_v47  ;;  %v5817_v16 = vsel %vm5233_vm4, %v5815_v31, %v5816_v37  ;;  %v11161_v63 = vrot.slane %v11160_v35, 2  ;;  %v6022_v13 = vmul.f32 %v8212_v22, %v9061_v57 }
 0x26c   : > { %v6763_v26 = vmul.f32 0.5, %v6731_v34  ;;  %7608 = vrsqrt.f32 %v6604_v20  ;;  %v5912_v9 = vadd.f32 %v5817_v16, %v5668_v28  ;;  %v6023_v1 = vmul.f32 %v8212_v22, %v9065_v48 }
 0x26d   : > { %v5819_v51 = vsel %vm5233_vm4, %v5816_v37, %v11161_v63  ;;  %7610 = vrsqrt.f32 %v6605_v3  ;;  %v6127_v50 = vrot.slane %v6021_v33, 1  ;;  %v6128_v45 = vrot.slane %v6022_v13, 1  ;;  %v11162_v63 = vld [vmem:[#allocation67_spill] sm:$0xff] }
 0x26e   : > { %v5913_v18 = vadd.f32 %v5819_v51, %v5669_v5  ;;  %v6791_v2 = vpack.c.bf16 %v6763_v26, %v6762_v30  ;;  %v5980_v27 = vadd.f32 %v5948_v58, %v5912_v9  ;;  %v6265_v49 = vmul.f32 %v8217_v21, %v11157_v24 }
 0x26f   : > { %v6129_v59 = vsel %vm4988_vm3, %v6127_v50, %v6128_v45  ;;  %v6130_v47 = vrot.slane %v6023_v1, 1  ;;  %v6266_v37 = vmul.f32 %v8217_v21, %v9061_v57  ;;  %v6267_v5 = vmul.f32 %v8217_v21, %v9065_v48  ;;  %v11163_v48 = vld [vmem:[#allocation66_spill] sm:$0xff] }
 0x270   : > { %v5981_v31 = vadd.f32 %v5949_v60, %v5913_v18  ;;  %7430 = vmatmul.mubr.bf16.gmra.mrb[28].mxu1 %v6791_v2  ;;  %v6224_v28 = vadd.f32 %v6129_v59, %v5980_v27  ;;  %v6371_v34 = vrot.slane %v6265_v49, 2  ;;  %v4868_v20 = vmul.f32 %v8176_v56, %v11147_v61  ;;  %v11164_v2 = vld [vmem:[#allocation60_spill] sm:$0xff]  ;;  %v11166_v59 = vld [vmem:[#allocation61_spill] sm:$0xff] }
 0x271   : > { %v4910_v58 = vmul.f32 %v8170_v52, %v11147_v61  ;;  %v6131_v60 = vsel %vm4988_vm3, %v6128_v45, %v6130_v47  ;;  %v6372_v3 = vrot.slane %v6266_v37, 2  ;;  %v6374_v33 = vrot.slane %v6267_v5, 2 }
 0x272   : > { %v5155_v30 = vmul.f32 %v8187_v0, %v11147_v61  ;;  %v6225_v16 = vadd.f32 %v6131_v60, %v5981_v31  ;;  %v5359_v51 = vadd.f32 %v11163_v48, %v11162_v63  ;;  %v5394_v13 = vmul.f32 %v8198_v10, %v11157_v24 }
 0x273   : > { %v5019_v35 = vrot.slane %v4910_v58, 1  ;;  %v6373_v26 = vsel %vm5233_vm4, %v6371_v34, %v6372_v3  ;;  %v6375_v9 = vsel %vm5233_vm4, %v6372_v3, %v6374_v33  ;;  %v5395_v1 = vmul.f32 %v8198_v10, %v9061_v57 }
 0x274   : > { %v5264_v18 = vrot.slane %v5155_v30, 2  ;;  %v6468_v50 = vadd.f32 %v6373_v26, %v6224_v28  ;;  %v6469_v45 = vadd.f32 %v6375_v9, %v6225_v16  ;;  %v11165_v61 = vrot.slane %v11164_v2, 1 }
 0x275   : > { %v5468_v31 = vmul.f32 %v8200_v12, %v11157_v24  ;;  %v11167_v47 = vrot.slane %v11166_v59, 2  ;;  %v5427_v5 = vadd.f32 %v5395_v1, %v5359_v51  ;;  %v5469_v34 = vmul.f32 %v8200_v12, %v9061_v57 }
 0x276   : > { %v5021_v27 = vsel %vm4988_vm3, %v5019_v35, %v11165_v61  ;;  %v7609_v58 = vpop.eup %7608  ;;  %v6506_v28 = vmul.f32 %v9526_v25, %v6468_v50  ;;  %v6507_v60 = vmul.f32 %v9526_v25, %v6469_v45  ;;  %v5712_v33 = vmul.f32 %v8208_v17, %v11157_v24 }
 0x277   : > { %v5113_v49 = vadd.f32 %v5021_v27, %v4868_v20  ;;  %v5266_v37 = vsel %vm5233_vm4, %v5264_v18, %v11167_v47  ;;  %v5576_v3 = vrot.slane %v5468_v31, 1  ;;  %v7611_v30 = vpop.eup %7610  ;;  %v6668_v20 = vmul.f32 %v7609_v58, %v9971_v54 }
 0x278   : > { %v5577_v35 = vrot.slane %v5469_v34, 1  ;;  %v5713_v63 = vmul.f32 %v8208_v17, %v9061_v57  ;;  %v6669_v48 = vmul.f32 %v7611_v30, %v9974_v36  ;;  %v10039_v51 = vadd.f32 %v9543_v4, %v6506_v28 }
 0x279   : > { %v5358_v16 = vadd.f32 %v5266_v37, %v5113_v49  ;;  %v10042_v26 = vadd.f32 %v9543_v4, %v6507_v60  ;;  %v5820_v25 = vrot.slane %v5712_v33, 2  ;;  %v6700_v9 = vadd.f32 1.0, %v6668_v20 }
 0x27a   : > { %v5578_v1 = vsel %vm4988_vm3, %v5576_v3, %v5577_v35  ;;  %v11168_v50 = vrot.slane %v9075_v40, 1  ;;  %v6701_v2 = vadd.f32 1.0, %v6669_v48  ;;  %v6574_v61 = vmul.f32 %v10039_v51, %v10039_v51 }
 0x27b   : > { %v5426_v18 = vadd.f32 %v5394_v13, %v5358_v16  ;;  %v6575_v27 = vmul.f32 %v10042_v26, %v10042_v26  ;;  %v6732_v4 = vmul.f32 %v6700_v9, %v9971_v54  ;;  %v5821_v59 = vrot.slane %v5713_v63, 2 }
 0x27c   : > { %v5580_v45 = vsel %vm4988_vm3, %v5577_v35, %v11168_v50  ;;  %v5950_v13 = vmul.f32 %v9466_v39, %v9168_v15  ;;  %v6733_v47 = vmul.f32 %v6701_v2, %v9974_v36  ;;  %v6606_v40 = vadd.f32 1.0, %v6574_v61 }
 0x27d   : > { %v5671_v31 = vadd.f32 %v5580_v45, %v5427_v5  ;;  %v5670_v49 = vadd.f32 %v5578_v1, %v5426_v18  ;;  %v6607_v37 = vadd.f32 1.0, %v6575_v27  ;;  %v5951_v34 = vmul.f32 %v9466_v39, %v9218_v14  ;;  %v11170_v18 = vld [vmem:[#allocation99_spill] sm:$0xff] }
 0x27e   : > { %v6764_v58 = vmul.f32 0.5, %v6732_v4  ;;  %v5822_v28 = vsel %vm5233_vm4, %v5820_v25, %v5821_v59  ;;  %v11169_v60 = vrot.slane %v9079_v43, 2  ;;  %v6024_v54 = vmul.f32 %v8212_v22, %v9168_v15 }
 0x27f   : > { %v6765_v3 = vmul.f32 0.5, %v6733_v47  ;;  %7612 = vrsqrt.f32 %v6606_v40  ;;  %v5914_v33 = vadd.f32 %v5822_v28, %v5670_v49  ;;  %v6025_v36 = vmul.f32 %v8212_v22, %v9218_v14 }
 0x280   : > { %v5824_v5 = vsel %vm5233_vm4, %v5821_v59, %v11169_v60  ;;  %7614 = vrsqrt.f32 %v6607_v37  ;;  %v6132_v20 = vrot.slane %v6024_v54, 1  ;;  %v6268_v16 = vmul.f32 %v8217_v21, %v9168_v15 }
 0x281   : > { %v5915_v30 = vadd.f32 %v5824_v5, %v5671_v31  ;;  %v6792_v35 = vpack.c.bf16 %v6765_v3, %v6764_v58  ;;  %v5982_v63 = vadd.f32 %v5950_v13, %v5914_v33  ;;  %v6269_v48 = vmul.f32 %v8217_v21, %v9218_v14  ;;  %v11173_v33 = vld [vmem:[#allocation82_spill] sm:$0xff] }
 0x282   : > { %v6133_v25 = vrot.slane %v6025_v36, 1  ;;  %v6376_v9 = vrot.slane %v6268_v16, 2  ;;  %v6379_v1 = vrot.slane %v11170_v18, 2  ;;  %v4870_v50 = vmul.f32 %v8176_v56, %v11157_v24  ;;  %v11175_v16 = vld [vmem:[#allocation81_spill] sm:$0xff] }
 0x283   : > { %v5983_v43 = vadd.f32 %v5951_v34, %v5915_v30  ;;  %7433 = vmatprep.mubr.bf16.mxu1 %v6792_v35  ;;  %v6377_v45 = vrot.slane %v6269_v48, 2  ;;  %v4871_v2 = vmul.f32 %v8176_v56, %v9061_v57  ;;  %v4913_v61 = vmul.f32 %v8170_v52, %v11157_v24 }
 0x284   : > { %v5158_v27 = vmul.f32 %v8187_v0, %v11157_v24  ;;  %v6134_v31 = vsel %vm4988_vm3, %v6132_v20, %v6133_v25  ;;  %v11171_v4 = vrot.slane %v9231_v6, 1  ;;  %v5159_v59 = vmul.f32 %v8187_v0, %v9061_v57  ;;  %v11172_v24 = vld [vmem:[#allocation83_spill] sm:$0xff] }
 0x285   : > { %v5396_v13 = vmul.f32 %v8198_v10, %v9168_v15  ;;  %v6226_v47 = vadd.f32 %v6134_v31, %v5982_v63  ;;  %v6378_v37 = vsel %vm5233_vm4, %v6376_v9, %v6377_v45  ;;  %v6380_v34 = vsel %vm5233_vm4, %v6377_v45, %v6379_v1 }
 0x286   : > { %v6136_v49 = vsel %vm4988_vm3, %v6133_v25, %v11171_v4  ;;  %v5024_v58 = vrot.slane %v4913_v61, 1  ;;  %v5116_v28 = vadd.f32 %v11172_v24, %v4871_v2  ;;  %v5269_v60 = vrot.slane %v5158_v27, 2  ;;  %v10106_v25 = vld [vmem:[%s10793_s4] ss:$0 sm:$0xff]  ;;  %v11177_v24 = vld [vmem:[#allocation97_spill] sm:$0xff] }
 0x287   : > { %v6227_v40 = vadd.f32 %v6136_v49, %v5983_v43  ;;  %v5270_v5 = vrot.slane %v5159_v59, 2  ;;  %v6470_v6 = vadd.f32 %v6378_v37, %v6226_v47  ;;  %v5397_v3 = vmul.f32 %v8198_v10, %v9218_v14  ;;  %v10117_v59 = vld [vmem:[%s10793_s4 + $0x1] ss:$0 sm:$0xff] }
 0x288   : > { %v5471_v57 = vmul.f32 %v8200_v12, %v9168_v15  ;;  %v11174_v30 = vrot.slane %v11173_v33, 1  ;;  %v11176_v35 = vrot.slane %v11175_v16, 2  ;;  %v5472_v43 = vmul.f32 %v8200_v12, %v9218_v14 }
 0x289   : > { %v6471_v54 = vadd.f32 %v6380_v34, %v6227_v40  ;;  %v5271_v20 = vsel %vm5233_vm4, %v5269_v60, %v5270_v5  ;;  %v7613_v48 = vpop.eup %7612  ;;  %v6508_v9 = vmul.f32 %v10106_v25, %v6470_v6  ;;  %v5715_v4 = vmul.f32 %v8208_v17, %v9168_v15 }
 0x28a   : > { %v5026_v36 = vsel %vm4988_vm3, %v5024_v58, %v11174_v30  ;;  %v5273_v63 = vsel %vm5233_vm4, %v5270_v5, %v11176_v35  ;;  %v7615_v2 = vpop.eup %7614  ;;  %v6670_v61 = vmul.f32 %v7613_v48, %v10039_v51  ;;  %v5581_v27 = vrot.slane %v5471_v57, 1 }
 0x28b   : > { %v6509_v18 = vmul.f32 %v10106_v25, %v6471_v54  ;;  %v5115_v1 = vadd.f32 %v5026_v36, %v4870_v50  ;;  %v5361_v45 = vadd.f32 %v5273_v63, %v5116_v28  ;;  %v5582_v31 = vrot.slane %v5472_v43, 1 }
 0x28c   : > { %v6671_v49 = vmul.f32 %v7615_v2, %v10042_v26  ;;  %v10120_v47 = vadd.f32 %v10117_v59, %v6508_v9  ;;  %v6702_v37 = vadd.f32 1.0, %v6670_v61  ;;  %v11178_v28 = vrot.slane %v11177_v24, 1 }
 0x28d   : > { %v10123_v50 = vadd.f32 %v10117_v59, %v6509_v18  ;;  %v5360_v40 = vadd.f32 %v5271_v20, %v5115_v1  ;;  %v5429_v34 = vadd.f32 %v5397_v3, %v5361_v45  ;;  %v5583_v58 = vsel %vm4988_vm3, %v5581_v27, %v5582_v31  ;;  %v11179_v1 = vld [vmem:[#allocation98_spill] sm:$0xff] }
 0x28e   : > { %v5585_v60 = vsel %vm4988_vm3, %v5582_v31, %v11178_v28  ;;  %v6703_v5 = vadd.f32 1.0, %v6671_v49  ;;  %v6576_v6 = vmul.f32 %v10120_v47, %v10120_v47  ;;  %v6734_v33 = vmul.f32 %v6702_v37, %v10039_v51 }
 0x28f   : > { %v6577_v54 = vmul.f32 %v10123_v50, %v10123_v50  ;;  %v5428_v57 = vadd.f32 %v5396_v13, %v5360_v40  ;;  %v5673_v30 = vadd.f32 %v5585_v60, %v5429_v34  ;;  %v5716_v3 = vmul.f32 %v8208_v17, %v9218_v14 }
 0x290   : > { %v5825_v36 = vrot.slane %v5715_v4, 2  ;;  %v6735_v20 = vmul.f32 %v6703_v5, %v10042_v26  ;;  %v6608_v16 = vadd.f32 1.0, %v6576_v6  ;;  %v6766_v43 = vmul.f32 0.5, %v6734_v33 }
 0x291   : > { %v6609_v35 = vadd.f32 1.0, %v6577_v54  ;;  %v5672_v63 = vadd.f32 %v5583_v58, %v5428_v57  ;;  %v5826_v48 = vrot.slane %v5716_v3, 2  ;;  %v5952_v9 = vmul.f32 %v9466_v39, %v9353_v44 }
 0x292   : > { %v5953_v13 = vmul.f32 %v9466_v39, %v9363_v53  ;;  %v6767_v18 = vmul.f32 0.5, %v6735_v20  ;;  %7616 = vrsqrt.f32 %v6608_v16  ;;  %v6027_v51 = vmul.f32 %v8212_v22, %v9353_v44 }
 0x293   : > { %v6028_v14 = vmul.f32 %v8212_v22, %v9363_v53  ;;  %7618 = vrsqrt.f32 %v6609_v35  ;;  %v5827_v26 = vsel %vm5233_vm4, %v5825_v36, %v5826_v48  ;;  %v11180_v45 = vrot.slane %v11179_v1, 2 }
 0x294   : > { %v6140_v61 = vrot.slane %v9380_v62, 1  ;;  %v6793_v27 = vpack.c.bf16 %v6767_v18, %v6766_v43  ;;  %v5916_v31 = vadd.f32 %v5827_v26, %v5672_v63  ;;  %v6137_v49 = vrot.slane %v6027_v51, 1 }
 0x295   : > { %v5829_v2 = vsel %vm5233_vm4, %v5826_v48, %v11180_v45  ;;  %v6138_v40 = vrot.slane %v6028_v14, 1  ;;  %v6271_v37 = vmul.f32 %v8217_v21, %v9353_v44  ;;  %v6272_v34 = vmul.f32 %v8217_v21, %v9363_v53  ;;  %v11181_v48 = vld [vmem:[#allocation100_spill] sm:$0xff] }
 0x296   : > { %v5917_v4 = vadd.f32 %v5829_v2, %v5673_v30  ;;  %v6273_v58 = vmul.f32 %v8217_v21, %v9358_v19  ;;  %7434 = vmatmul.mubr.bf16.gmra.mrb[32].mxu1 %v6793_v27  ;;  %v5984_v24 = vadd.f32 %v5952_v9, %v5916_v31  ;;  %v4872_v62 = vmul.f32 %v8176_v56, %v9168_v15 }
 0x297   : > { %v4916_v60 = vmul.f32 %v8170_v52, %v9168_v15  ;;  %v6139_v5 = vsel %vm4988_vm3, %v6137_v49, %v6138_v40  ;;  %v6141_v6 = vsel %vm4988_vm3, %v6138_v40, %v6140_v61  ;;  %v6381_v54 = vrot.slane %v6271_v37, 2  ;;  %v11183_v40 = vld [vmem:[#allocation101_spill] sm:$0xff] }
 0x298   : > { %v5985_v28 = vadd.f32 %v5953_v13, %v5917_v4  ;;  %v6382_v57 = vrot.slane %v6272_v34, 2  ;;  %v6228_v33 = vadd.f32 %v6139_v5, %v5984_v24  ;;  %v6384_v3 = vrot.slane %v6273_v58, 2 }
 0x299   : > { %v5029_v36 = vrot.slane %v4916_v60, 1  ;;  %v5161_v20 = vmul.f32 %v8187_v0, %v9168_v15  ;;  %v5398_v16 = vmul.f32 %v8198_v10, %v9353_v44  ;;  %v5399_v35 = vmul.f32 %v8198_v10, %v9363_v53 }
 0x29a   : > { %v6229_v30 = vadd.f32 %v6141_v6, %v5985_v28  ;;  %v6383_v19 = vsel %vm5233_vm4, %v6381_v54, %v6382_v57  ;;  %v6385_v63 = vsel %vm5233_vm4, %v6382_v57, %v6384_v3  ;;  %v11182_v9 = vrot.slane %v11181_v48, 1 }
 0x29b   : > { %v6472_v43 = vadd.f32 %v6383_v19, %v6228_v33  ;;  %v5474_v18 = vmul.f32 %v8200_v12, %v9353_v44  ;;  %v5274_v26 = vrot.slane %v5161_v20, 2  ;;  %v5431_v15 = vadd.f32 %v5399_v35, %v9285_v42 }
 0x29c   : > { %v5031_v13 = vsel %vm4988_vm3, %v5029_v36, %v11182_v9  ;;  %v6473_v51 = vadd.f32 %v6385_v63, %v6229_v30  ;;  %v7617_v1 = vpop.eup %7616  ;;  %v5475_v2 = vmul.f32 %v8200_v12, %v9363_v53  ;;  %v5718_v27 = vmul.f32 %v8208_v17, %v9353_v44 }
 0x29d   : > { %v5117_v14 = vadd.f32 %v5031_v13, %v4872_v62  ;;  %v6510_v45 = vmul.f32 %v10106_v25, %v6472_v43  ;;  %v5586_v61 = vrot.slane %v5474_v18, 1  ;;  %v7619_v31 = vpop.eup %7618  ;;  %v6672_v4 = vmul.f32 %v7617_v1, %v10120_v47  ;;  %v11186_v18 = vld [vmem:[#allocation107_spill] sm:$0xff] }
 0x29e   : > { %v6511_v49 = vmul.f32 %v10106_v25, %v6473_v51  ;;  %v11184_v37 = vrot.slane %v11183_v40, 2  ;;  %v5719_v42 = vmul.f32 %v8208_v17, %v9363_v53  ;;  %v6673_v58 = vmul.f32 %v7619_v31, %v10123_v50 }
 0x29f   : > { %v10190_v24 = vadd.f32 %v10117_v59, %v6510_v45  ;;  %v5587_v62 = vrot.slane %v5475_v2, 1  ;;  %v6704_v60 = vadd.f32 1.0, %v6672_v4  ;;  %v5830_v6 = vrot.slane %v5718_v27, 2  ;;  %v11189_v2 = vld [vmem:[#allocation116_spill] sm:$0xff]  ;;  %v11190_v4 = vld [vmem:[#allocation117_spill] sm:$0xff] }
 0x2a0   : > { %v5276_v34 = vsel %vm5233_vm4, %v5274_v26, %v11184_v37  ;;  %v10193_v5 = vadd.f32 %v10117_v59, %v6511_v49  ;;  %v5831_v54 = vrot.slane %v5719_v42, 2  ;;  %v6705_v57 = vadd.f32 1.0, %v6673_v58 }
 0x2a1   : > { %v5362_v28 = vadd.f32 %v5276_v34, %v5117_v14  ;;  %v6578_v33 = vmul.f32 %v10190_v24, %v10190_v24  ;;  %v5588_v53 = vsel %vm4988_vm3, %v5586_v61, %v5587_v62  ;;  %v6736_v3 = vmul.f32 %v6704_v60, %v10120_v47  ;;  %v11188_v14 = vld [vmem:[#allocation111_spill] sm:$0xff] }
 0x2a2   : > { %v6579_v36 = vmul.f32 %v10193_v5, %v10193_v5  ;;  %v11185_v19 = vrot.slane %v9372_v41, 1  ;;  %v5832_v35 = vsel %vm5233_vm4, %v5830_v6, %v5831_v54  ;;  %v6737_v63 = vmul.f32 %v6705_v57, %v10123_v50 }
 0x2a3   : > { %v5430_v30 = vadd.f32 %v5398_v16, %v5362_v28  ;;  %v6610_v43 = vadd.f32 1.0, %v6578_v33  ;;  %v6768_v13 = vmul.f32 0.5, %v6736_v3  ;;  %v11187_v51 = vrot.slane %v11186_v18, 2  ;;  %v11191_v28 = vld [vmem:[#allocation110_spill] sm:$0xff] }
 0x2a4   : > { %v5590_v20 = vsel %vm4988_vm3, %v5587_v62, %v11185_v19  ;;  %v6611_v16 = vadd.f32 1.0, %v6579_v36  ;;  %v5954_v26 = vmul.f32 %v9466_v39, %v11188_v14  ;;  %v6769_v1 = vmul.f32 0.5, %v6737_v63 }
 0x2a5   : > { %v5674_v48 = vadd.f32 %v5588_v53, %v5430_v30  ;;  %v5675_v9 = vadd.f32 %v5590_v20, %v5431_v15  ;;  %v5834_v47 = vsel %vm5233_vm4, %v5831_v54, %v11187_v51  ;;  %7620 = vrsqrt.f32 %v6610_v43  ;;  %v11192_v43 = vld [vmem:[#allocation115_spill] sm:$0xff]  ;;  %v11194_v51 = vld [vmem:[#allocation108_spill] sm:$0xff] }
 0x2a6   : > { %7622 = vrsqrt.f32 %v6611_v16  ;;  %v5955_v50 = vmul.f32 %v9466_v39, %v11189_v2  ;;  %v6030_v15 = vmul.f32 %v8212_v22, %v11188_v14  ;;  %v6031_v61 = vmul.f32 %v8212_v22, %v11189_v2 }
 0x2a7   : > { %v5918_v41 = vadd.f32 %v5832_v35, %v5674_v48  ;;  %v5919_v45 = vadd.f32 %v5834_v47, %v5675_v9  ;;  %v6794_v27 = vpack.c.bf16 %v6769_v1, %v6768_v13  ;;  %v6145_v49 = vrot.slane %v11190_v4, 1  ;;  %v11193_v48 = vld [vmem:[#allocation113_spill] sm:$0xff] }
 0x2a8   : > { %v6274_v40 = vmul.f32 %v8217_v21, %v11188_v14  ;;  %v6142_v34 = vrot.slane %v6030_v15, 1  ;;  %v6143_v42 = vrot.slane %v6031_v61, 1  ;;  %v6275_v58 = vmul.f32 %v8217_v21, %v11189_v2 }
 0x2a9   : > { %v5986_v31 = vadd.f32 %v5954_v26, %v5918_v41  ;;  %v5987_v37 = vadd.f32 %v5955_v50, %v5919_v45  ;;  %7437 = vmatprep.mubr.bf16.mxu1 %v6794_v27  ;;  %v6276_v62 = vmul.f32 %v8217_v21, %v11191_v28  ;;  %v4874_v6 = vmul.f32 %v8176_v56, %v9353_v44  ;;  %v11196_v45 = vld [vmem:[#allocation109_spill] sm:$0xff] }
 0x2aa   : > { %v6386_v60 = vrot.slane %v6274_v40, 2  ;;  %v4919_v54 = vmul.f32 %v8170_v52, %v9353_v44  ;;  %v6144_v57 = vsel %vm4988_vm3, %v6142_v34, %v6143_v42  ;;  %v6146_v33 = vsel %vm4988_vm3, %v6143_v42, %v6145_v49 }
 0x2ab   : > { %v6387_v30 = vrot.slane %v6275_v58, 2  ;;  %v5164_v53 = vmul.f32 %v8187_v0, %v9353_v44  ;;  %v6230_v3 = vadd.f32 %v6144_v57, %v5986_v31  ;;  %v6231_v36 = vadd.f32 %v6146_v33, %v5987_v37 }
 0x2ac   : > { %v6389_v19 = vrot.slane %v6276_v62, 2  ;;  %v5034_v20 = vrot.slane %v4919_v54, 1  ;;  %v5365_v9 = vadd.f32 %v11193_v48, %v11192_v43  ;;  %v5400_v13 = vmul.f32 %v8198_v10, %v11188_v14 }
 0x2ad   : > { %v6388_v35 = vsel %vm5233_vm4, %v6386_v60, %v6387_v30  ;;  %v5279_v63 = vrot.slane %v5164_v53, 2  ;;  %v11195_v47 = vrot.slane %v11194_v51, 1  ;;  %v5401_v26 = vmul.f32 %v8198_v10, %v11189_v2  ;;  %v11200_v51 = vld [vmem:[#allocation10_spill] sm:$0xff] }
 0x2ae   : > { %v6390_v16 = vsel %vm5233_vm4, %v6387_v30, %v6389_v19  ;;  %v6474_v18 = vadd.f32 %v6388_v35, %v6230_v3  ;;  %v11197_v50 = vrot.slane %v11196_v45, 2  ;;  %v5477_v61 = vmul.f32 %v8200_v12, %v11188_v14 }
 0x2af   : > { %v5036_v44 = vsel %vm4988_vm3, %v5034_v20, %v11195_v47  ;;  %v6475_v1 = vadd.f32 %v6390_v16, %v6231_v36  ;;  %v7621_v27 = vpop.eup %7620  ;;  %v5433_v4 = vadd.f32 %v5401_v26, %v5365_v9  ;;  %v5478_v49 = vmul.f32 %v8200_v12, %v11189_v2  ;;  %v11198_v20 = vld [vmem:[#allocation112_spill] sm:$0xff] }
 0x2b0   : > { %v5119_v41 = vadd.f32 %v5036_v44, %v4874_v6  ;;  %v5281_v15 = vsel %vm5233_vm4, %v5279_v63, %v11197_v50  ;;  %v6512_v31 = vmul.f32 %v10106_v25, %v6474_v18  ;;  %v5721_v40 = vmul.f32 %v8208_v17, %v11188_v14  ;;  %v7623_v37 = vpop.eup %7622  ;;  %v11201_v50 = vld [vmem:[#allocation114_spill] sm:$0xff] }
 0x2b1   : > { %v6674_v34 = vmul.f32 %v7621_v27, %v10190_v24  ;;  %v6513_v42 = vmul.f32 %v10106_v25, %v6475_v1  ;;  %v5591_v28 = vrot.slane %v5477_v61, 1  ;;  %v6675_v62 = vmul.f32 %v7623_v37, %v10193_v5 }
 0x2b2   : > { %v5364_v58 = vadd.f32 %v5281_v15, %v5119_v41  ;;  %v10257_v60 = vadd.f32 %v10117_v59, %v6512_v31  ;;  %v5592_v6 = vrot.slane %v5478_v49, 1  ;;  %v5722_v54 = vmul.f32 %v8208_v17, %v11189_v2 }
 0x2b3   : > { %v6706_v57 = vadd.f32 1.0, %v6674_v34  ;;  %v10262_v33 = vadd.f32 %v10117_v59, %v6513_v42  ;;  %v5835_v53 = vrot.slane %v5721_v40, 2  ;;  %v6707_v3 = vadd.f32 1.0, %v6675_v62  ;;  %v2790_v62 = vpop.f32.mrb[20].mxu1 }
 0x2b4   : > { %v5432_v30 = vadd.f32 %v5400_v13, %v5364_v58  ;;  %v6580_v36 = vmul.f32 %v10257_v60, %v10257_v60  ;;  %v5593_v19 = vsel %vm4988_vm3, %v5591_v28, %v5592_v6  ;;  %v11199_v35 = vrot.slane %v11198_v20, 1 }
 0x2b5   : > { %v6738_v43 = vmul.f32 %v6706_v57, %v10190_v24  ;;  %v6581_v2 = vmul.f32 %v10262_v33, %v10262_v33  ;;  %v6739_v13 = vmul.f32 %v6707_v3, %v10193_v5  ;;  %v5836_v18 = vrot.slane %v5722_v54, 2 }
 0x2b6   : > { %v5595_v63 = vsel %vm4988_vm3, %v5592_v6, %v11199_v35  ;;  %v5676_v48 = vadd.f32 %v5593_v19, %v5432_v30  ;;  %v6612_v16 = vadd.f32 1.0, %v6580_v36  ;;  %v5956_v47 = vmul.f32 %v9466_v39, %v11200_v51 }
 0x2b7   : > { %v5677_v9 = vadd.f32 %v5595_v63, %v5433_v4  ;;  %v6770_v44 = vmul.f32 0.5, %v6738_v43  ;;  %v6613_v26 = vadd.f32 1.0, %v6581_v2  ;;  %v5957_v1 = vmul.f32 %v9466_v39, %v9665_v29 }
 0x2b8   : > { %v6033_v24 = vmul.f32 %v8212_v22, %v11200_v51  ;;  %v6771_v41 = vmul.f32 0.5, %v6739_v13  ;;  %7624 = vrsqrt.f32 %v6612_v16  ;;  %v5837_v45 = vsel %vm5233_vm4, %v5835_v53, %v5836_v18  ;;  %v7407_v53 = vpop.f32.mrb[21].mxu1 }
 0x2b9   : > { %v11202_v15 = vrot.slane %v11201_v50, 2  ;;  %7626 = vrsqrt.f32 %v6613_v26  ;;  %v5920_v61 = vadd.f32 %v5837_v45, %v5676_v48  ;;  %v6034_v31 = vmul.f32 %v8212_v22, %v9665_v29  ;;  %v2793_v35 = vpop.f32.mrb[22].mxu1  ;;  %v11204_v48 = vld [vmem:[#allocation3_spill] sm:$0xff]  ;;  %v11205_v45 = vld [vmem:[#allocation6_spill] sm:$0xff] }
 0x2ba   : > { %v6795_v4 = vpack.c.bf16 %v6771_v41, %v6770_v44  ;;  %v6035_v49 = vmul.f32 %v8212_v22, %v9669_v7  ;;  %v6147_v40 = vrot.slane %v6033_v24, 1  ;;  %v6277_v37 = vmul.f32 %v8217_v21, %v11200_v51  ;;  %v7408_v13 = vpop.f32.mrb[23].mxu1 }
 0x2bb   : > { %v5839_v5 = vsel %vm5233_vm4, %v5836_v18, %v11202_v15  ;;  %v5988_v34 = vadd.f32 %v5956_v47, %v5920_v61  ;;  %v6148_v58 = vrot.slane %v6034_v31, 1  ;;  %v6278_v28 = vmul.f32 %v8217_v21, %v9665_v29 }
 0x2bc   : > { %v5921_v27 = vadd.f32 %v5839_v5, %v5677_v9  ;;  %7438 = vmatmul.mubr.bf16.gmra.mrb[36].mxu1 %v6795_v4  ;;  %v6150_v6 = vrot.slane %v6035_v49, 1  ;;  %v6279_v54 = vmul.f32 %v8217_v21, %v9669_v7  ;;  %v6391_v57 = vrot.slane %v6277_v37, 2  ;;  %v11203_v7 = vld [vmem:[#allocation2_spill] sm:$0xff]  ;;  %v11207_v5 = vld [vmem:[#allocation4_spill] sm:$0xff] }
 0x2bd   : > { %v4876_v30 = vmul.f32 %v8176_v56, %v11188_v14  ;;  %v6149_v3 = vsel %vm4988_vm3, %v6147_v40, %v6148_v58  ;;  %v6392_v36 = vrot.slane %v6278_v28, 2  ;;  %v4922_v19 = vmul.f32 %v8170_v52, %v11188_v14 }
 0x2be   : > { %v5989_v42 = vadd.f32 %v5957_v1, %v5921_v27  ;;  %v5167_v20 = vmul.f32 %v8187_v0, %v11188_v14  ;;  %v6151_v63 = vsel %vm4988_vm3, %v6148_v58, %v6150_v6  ;;  %v6232_v43 = vadd.f32 %v6149_v3, %v5988_v34 }
 0x2bf   : > { %v6394_v2 = vrot.slane %v6279_v54, 2  ;;  %v5367_v9 = vadd.f32 %v11204_v48, %v11203_v7  ;;  %v6393_v18 = vsel %vm5233_vm4, %v6391_v57, %v6392_v36  ;;  %v5039_v47 = vrot.slane %v4922_v19, 1 }
 0x2c0   : > { %v6233_v16 = vadd.f32 %v6151_v63, %v5989_v42  ;;  %v5284_v44 = vrot.slane %v5167_v20, 2  ;;  %v6476_v1 = vadd.f32 %v6393_v18, %v6232_v43  ;;  %v5402_v14 = vmul.f32 %v8198_v10, %v11200_v51 }
 0x2c1   : > { %v6395_v26 = vsel %vm5233_vm4, %v6392_v36, %v6394_v2  ;;  %v5403_v24 = vmul.f32 %v8198_v10, %v9665_v29  ;;  %v11206_v50 = vrot.slane %v11205_v45, 1  ;;  %v11208_v61 = vrot.slane %v11207_v5, 2 }
 0x2c2   : > { %v6477_v41 = vadd.f32 %v6395_v26, %v6233_v16  ;;  %v5480_v31 = vmul.f32 %v8200_v12, %v11200_v51  ;;  %v7625_v4 = vpop.eup %7624  ;;  %v6514_v49 = vmul.f32 %v10106_v25, %v6476_v1  ;;  %v5481_v34 = vmul.f32 %v8200_v12, %v9665_v29 }
 0x2c3   : > { %v5041_v15 = vsel %vm4988_vm3, %v5039_v47, %v11206_v50  ;;  %v5286_v27 = vsel %vm5233_vm4, %v5284_v44, %v11208_v61  ;;  %v5435_v37 = vadd.f32 %v5403_v24, %v5367_v9  ;;  %v7627_v42 = vpop.eup %7626  ;;  %v6676_v58 = vmul.f32 %v7625_v4, %v10257_v60 }
 0x2c4   : > { %v5121_v40 = vadd.f32 %v5041_v15, %v4876_v30  ;;  %v6515_v28 = vmul.f32 %v10106_v25, %v6477_v41  ;;  %v5596_v62 = vrot.slane %v5480_v31, 1  ;;  %v5724_v6 = vmul.f32 %v8208_v17, %v11200_v51 }
 0x2c5   : > { %v6677_v54 = vmul.f32 %v7627_v42, %v10262_v33  ;;  %v10327_v57 = vadd.f32 %v10117_v59, %v6514_v49  ;;  %v5597_v30 = vrot.slane %v5481_v34, 1  ;;  %v6708_v3 = vadd.f32 1.0, %v6676_v58 }
 0x2c6   : > { %v5366_v53 = vadd.f32 %v5286_v27, %v5121_v40  ;;  %v10330_v36 = vadd.f32 %v10117_v59, %v6515_v28  ;;  %v5725_v19 = vmul.f32 %v8208_v17, %v9665_v29  ;;  %v5840_v20 = vrot.slane %v5724_v6, 2 }
 0x2c7   : > { %v6709_v35 = vadd.f32 1.0, %v6677_v54  ;;  %v6582_v63 = vmul.f32 %v10327_v57, %v10327_v57  ;;  %v5598_v2 = vsel %vm4988_vm3, %v5596_v62, %v5597_v30  ;;  %v6740_v7 = vmul.f32 %v6708_v3, %v10257_v60 }
 0x2c8   : > { %v5434_v43 = vadd.f32 %v5402_v14, %v5366_v53  ;;  %v6583_v48 = vmul.f32 %v10330_v36, %v10330_v36  ;;  %v11209_v9 = vrot.slane %v9679_v11, 1  ;;  %v5841_v16 = vrot.slane %v5725_v19, 2 }
 0x2c9   : > { %v6741_v18 = vmul.f32 %v6709_v35, %v10262_v33  ;;  %v6614_v47 = vadd.f32 1.0, %v6582_v63  ;;  %v6772_v1 = vmul.f32 0.5, %v6740_v7  ;;  %v11210_v41 = vrot.slane %v9683_v32, 2  ;;  %v11213_v7 = vld [vmem:[#allocation5_spill] sm:$0xff] }
 0x2ca   : > { %v5600_v13 = vsel %vm4988_vm3, %v5597_v30, %v11209_v9  ;;  %v5678_v44 = vadd.f32 %v5598_v2, %v5434_v43  ;;  %v6615_v24 = vadd.f32 1.0, %v6583_v48  ;;  %v5842_v14 = vsel %vm5233_vm4, %v5840_v20, %v5841_v16  ;;  %v11211_v30 = vld [vmem:[#allocation12_spill] sm:$0xff] }
 0x2cb   : > { %v5679_v26 = vadd.f32 %v5600_v13, %v5435_v37  ;;  %v5844_v60 = vsel %vm5233_vm4, %v5841_v16, %v11210_v41  ;;  %v6773_v45 = vmul.f32 0.5, %v6741_v18  ;;  %7628 = vrsqrt.f32 %v6614_v47  ;;  %v11214_v47 = vld [vmem:[#allocation14_spill] sm:$0xff] }
 0x2cc   : > { %v5922_v50 = vadd.f32 %v5842_v14, %v5678_v44  ;;  %7630 = vrsqrt.f32 %v6615_v24  ;;  %v5958_v15 = vmul.f32 %v9466_v39, %v9710_v46  ;;  %v5959_v33 = vmul.f32 %v9466_v39, %v9745_v8 }
 0x2cd   : > { %v5923_v11 = vadd.f32 %v5844_v60, %v5679_v26  ;;  %v6036_v5 = vmul.f32 %v8212_v22, %v9710_v46  ;;  %v6796_v61 = vpack.c.bf16 %v6773_v45, %v6772_v1  ;;  %v6037_v32 = vmul.f32 %v8212_v22, %v9745_v8  ;;  %v11216_v60 = vld [vmem:[#allocation8_spill] sm:$0xff] }
 0x2ce   : > { %v6280_v27 = vmul.f32 %v8217_v21, %v9710_v46  ;;  %v6281_v31 = vmul.f32 %v8217_v21, %v9745_v8  ;;  %v5990_v4 = vadd.f32 %v5958_v15, %v5922_v50  ;;  %v6399_v37 = vrot.slane %v9749_v55, 2 }
 0x2cf   : > { %v5991_v49 = vadd.f32 %v5959_v33, %v5923_v11  ;;  %v6152_v40 = vrot.slane %v6036_v5, 1  ;;  %7441 = vmatprep.mubr.bf16.mxu1 %v6796_v61  ;;  %v6153_v34 = vrot.slane %v6037_v32, 1  ;;  %v4878_v28 = vmul.f32 %v8176_v56, %v11200_v51 }
 0x2d0   : > { %v6396_v42 = vrot.slane %v6280_v27, 2  ;;  %v6397_v58 = vrot.slane %v6281_v31, 2  ;;  %v4879_v62 = vmul.f32 %v8176_v56, %v9665_v29  ;;  %v4925_v6 = vmul.f32 %v8170_v52, %v11200_v51 }
 0x2d1   : > { %v5170_v54 = vmul.f32 %v8187_v0, %v11200_v51  ;;  %v5171_v53 = vmul.f32 %v8187_v0, %v9665_v29  ;;  %v6154_v55 = vsel %vm4988_vm3, %v6152_v40, %v6153_v34  ;;  %v11212_v3 = vrot.slane %v11211_v30, 1 }
 0x2d2   : > { %v6398_v20 = vsel %vm5233_vm4, %v6396_v42, %v6397_v58  ;;  %v6400_v35 = vsel %vm5233_vm4, %v6397_v58, %v6399_v37  ;;  %v6234_v63 = vadd.f32 %v6154_v55, %v5990_v4  ;;  %v5044_v2 = vrot.slane %v4925_v6, 1  ;;  %v11218_v6 = vld [vmem:[#allocation7_spill] sm:$0xff] }
 0x2d3   : > { %v6156_v19 = vsel %vm4988_vm3, %v6153_v34, %v11212_v3  ;;  %v5124_v48 = vadd.f32 %v11213_v7, %v4879_v62  ;;  %v5289_v9 = vrot.slane %v5170_v54, 2  ;;  %v5290_v51 = vrot.slane %v5171_v53, 2 }
 0x2d4   : > { %v6235_v43 = vadd.f32 %v6156_v19, %v5991_v49  ;;  %v5404_v29 = vmul.f32 %v8198_v10, %v9710_v46  ;;  %v5405_v13 = vmul.f32 %v8198_v10, %v9745_v8  ;;  %v6478_v16 = vadd.f32 %v6398_v20, %v6234_v63 }
 0x2d5   : > { %v11215_v44 = vrot.slane %v11214_v47, 1  ;;  %v5483_v1 = vmul.f32 %v8200_v12, %v9710_v46  ;;  %v7629_v24 = vpop.eup %7628  ;;  %v5291_v41 = vsel %vm5233_vm4, %v5289_v9, %v5290_v51  ;;  %v11217_v45 = vrot.slane %v11216_v60, 2 }
 0x2d6   : > { %v6479_v18 = vadd.f32 %v6400_v35, %v6235_v43  ;;  %v5484_v11 = vmul.f32 %v8200_v12, %v9745_v8  ;;  %v7631_v15 = vpop.eup %7630  ;;  %v6678_v33 = vmul.f32 %v7629_v24, %v10327_v57  ;;  %v6516_v5 = vmul.f32 %v10106_v25, %v6478_v16  ;;  %v11221_v16 = vld [vmem:[#allocation49_spill] sm:$0xff] }
 0x2d7   : > { %v5046_v26 = vsel %vm4988_vm3, %v5044_v2, %v11215_v44  ;;  %v5293_v50 = vsel %vm5233_vm4, %v5290_v51, %v11217_v45  ;;  %v6679_v27 = vmul.f32 %v7631_v15, %v10330_v36  ;;  %v5601_v4 = vrot.slane %v5483_v1, 1  ;;  %v11223_v24 = vld [vmem:[#allocation13_spill] sm:$0xff] }
 0x2d8   : > { %v5123_v14 = vadd.f32 %v5046_v26, %v4878_v28  ;;  %v6517_v61 = vmul.f32 %v10106_v25, %v6479_v18  ;;  %v5369_v32 = vadd.f32 %v5293_v50, %v5124_v48  ;;  %v5602_v49 = vrot.slane %v5484_v11, 1 }
 0x2d9   : > { %v6710_v40 = vadd.f32 1.0, %v6678_v33  ;;  %v10398_v37 = vadd.f32 %v10117_v59, %v6516_v5  ;;  %v6711_v58 = vadd.f32 1.0, %v6679_v27  ;;  %v11219_v54 = vrot.slane %v11218_v6, 1  ;;  %v11225_v5 = vld [vmem:[#allocation52_spill] sm:$0xff] }
 0x2da   : > { %v5368_v31 = vadd.f32 %v5291_v41, %v5123_v14  ;;  %v10401_v34 = vadd.f32 %v10117_v59, %v6517_v61  ;;  %v5437_v42 = vadd.f32 %v5405_v13, %v5369_v32  ;;  %v5603_v62 = vsel %vm4988_vm3, %v5601_v4, %v5602_v49 }
 0x2db   : > { %v5605_v53 = vsel %vm4988_vm3, %v5602_v49, %v11219_v54  ;;  %v6742_v55 = vmul.f32 %v6710_v40, %v10327_v57  ;;  %v6584_v30 = vmul.f32 %v10398_v37, %v10398_v37  ;;  %v6743_v20 = vmul.f32 %v6711_v58, %v10330_v36  ;;  %v11220_v57 = vld [vmem:[#allocation9_spill] sm:$0xff] }
 0x2dc   : > { %v5436_v28 = vadd.f32 %v5404_v29, %v5368_v31  ;;  %v6585_v3 = vmul.f32 %v10401_v34, %v10401_v34  ;;  %v5681_v19 = vadd.f32 %v5605_v53, %v5437_v42  ;;  %v5727_v63 = vmul.f32 %v8208_v17, %v9710_v46 }
 0x2dd   : > { %v5728_v43 = vmul.f32 %v8208_v17, %v9745_v8  ;;  %v6774_v2 = vmul.f32 0.5, %v6742_v55  ;;  %v6616_v7 = vadd.f32 1.0, %v6584_v30  ;;  %v5960_v9 = vmul.f32 %v9466_v39, %v11220_v57  ;;  %v11222_v8 = vld [vmem:[#allocation65_spill] sm:$0xff] }
 0x2de   : > { %v5680_v35 = vadd.f32 %v5603_v62, %v5436_v28  ;;  %v6617_v48 = vadd.f32 1.0, %v6585_v3  ;;  %v6775_v51 = vmul.f32 0.5, %v6743_v20  ;;  %v5845_v29 = vrot.slane %v5727_v63, 2 }
 0x2df   : > { %v5846_v13 = vrot.slane %v5728_v43, 2  ;;  %v5961_v18 = vmul.f32 %v9466_v39, %v11221_v16  ;;  %7632 = vrsqrt.f32 %v6616_v7  ;;  %v6039_v36 = vmul.f32 %v8212_v22, %v11220_v57 }
 0x2e0   : > { %v6040_v47 = vmul.f32 %v8212_v22, %v11221_v16  ;;  %v6160_v44 = vrot.slane %v11222_v8, 1  ;;  %v6797_v26 = vpack.c.bf16 %v6775_v51, %v6774_v2  ;;  %7634 = vrsqrt.f32 %v6617_v48  ;;  %v11226_v2 = vld [vmem:[#allocation17_spill] sm:$0xff] }
 0x2e1   : > { %v5847_v1 = vsel %vm5233_vm4, %v5845_v29, %v5846_v13  ;;  %v11224_v14 = vrot.slane %v11223_v24, 2  ;;  %v6157_v50 = vrot.slane %v6039_v36, 1  ;;  %v6283_v15 = vmul.f32 %v8217_v21, %v11220_v57 }
 0x2e2   : > { %v5924_v60 = vadd.f32 %v5847_v1, %v5680_v35  ;;  %v6158_v11 = vrot.slane %v6040_v47, 1  ;;  %7442 = vmatmul.mubr.bf16.gmra.mrb[40].mxu1 %v6797_v26  ;;  %v6284_v33 = vmul.f32 %v8217_v21, %v11221_v16  ;;  %v6285_v61 = vmul.f32 %v8217_v21, %v11225_v5 }
 0x2e3   : > { %v5849_v41 = vsel %vm5233_vm4, %v5846_v13, %v11224_v14  ;;  %v4880_v32 = vmul.f32 %v8176_v56, %v9710_v46  ;;  %v6401_v40 = vrot.slane %v6283_v15, 2  ;;  %v4928_v28 = vmul.f32 %v8170_v52, %v9710_v46 }
 0x2e4   : > { %v5925_v45 = vadd.f32 %v5849_v41, %v5681_v19  ;;  %v5992_v27 = vadd.f32 %v5960_v9, %v5924_v60  ;;  %v6159_v4 = vsel %vm4988_vm3, %v6157_v50, %v6158_v11  ;;  %v6161_v49 = vsel %vm4988_vm3, %v6158_v11, %v6160_v44  ;;  %v11229_v11 = vld [vmem:[#allocation63_spill] sm:$0xff] }
 0x2e5   : > { %v6402_v42 = vrot.slane %v6284_v33, 2  ;;  %v6404_v58 = vrot.slane %v6285_v61, 2  ;;  %v5173_v54 = vmul.f32 %v8187_v0, %v9710_v46  ;;  %v5406_v53 = vmul.f32 %v8198_v10, %v11220_v57 }
 0x2e6   : > { %v5993_v31 = vadd.f32 %v5961_v18, %v5925_v45  ;;  %v6236_v62 = vadd.f32 %v6159_v4, %v5992_v27  ;;  %v5049_v3 = vrot.slane %v4928_v28, 1  ;;  %v5407_v19 = vmul.f32 %v8198_v10, %v11221_v16 }
 0x2e7   : > { %v6403_v55 = vsel %vm5233_vm4, %v6401_v40, %v6402_v42  ;;  %v6405_v30 = vsel %vm5233_vm4, %v6402_v42, %v6404_v58  ;;  %v5294_v63 = vrot.slane %v5173_v54, 2  ;;  %v5486_v43 = vmul.f32 %v8200_v12, %v11220_v57  ;;  %v11231_v40 = vld [vmem:[#allocation70_spill] sm:$0xff] }
 0x2e8   : > { %v6237_v6 = vadd.f32 %v6161_v49, %v5993_v31  ;;  %v6480_v20 = vadd.f32 %v6403_v55, %v6236_v62  ;;  %v11227_v7 = vrot.slane %v11226_v2, 1  ;;  %v5439_v48 = vadd.f32 %v5407_v19, %v9793_v38  ;;  %v11235_v2 = vld [vmem:[#allocation75_spill] sm:$0xff] }
 0x2e9   : > { %v5487_v9 = vmul.f32 %v8200_v12, %v11221_v16  ;;  %v5730_v51 = vmul.f32 %v8208_v17, %v11220_v57  ;;  %v7633_v29 = vpop.eup %7632  ;;  %v5296_v8 = vsel %vm5233_vm4, %v5294_v63, %v5295_v23  ;;  %v5606_v38 = vrot.slane %v5486_v43, 1 }
 0x2ea   : > { %v6481_v35 = vadd.f32 %v6405_v30, %v6237_v6  ;;  %v5051_v46 = vsel %vm4988_vm3, %v5049_v3, %v11227_v7  ;;  %v6518_v13 = vmul.f32 %v10106_v25, %v6480_v20  ;;  %v7635_v44 = vpop.eup %7634  ;;  %v6680_v26 = vmul.f32 %v7633_v29, %v10398_v37  ;;  %v11232_v30 = vld [vmem:[#allocation64_spill] sm:$0xff] }
 0x2eb   : > { %v5125_v36 = vadd.f32 %v5051_v46, %v4880_v32  ;;  %v5607_v1 = vrot.slane %v5487_v9, 1  ;;  %v5731_v24 = vmul.f32 %v8208_v17, %v11221_v16  ;;  %v6681_v14 = vmul.f32 %v7635_v44, %v10401_v34 }
 0x2ec   : > { %v6519_v18 = vmul.f32 %v10106_v25, %v6481_v35  ;;  %v10470_v41 = vadd.f32 %v10117_v59, %v6518_v13  ;;  %v6712_v50 = vadd.f32 1.0, %v6680_v26  ;;  %v11230_v15 = vrot.slane %v11229_v11, 1 }
 0x2ed   : > { %v5370_v45 = vadd.f32 %v5296_v8, %v5125_v36  ;;  %v5608_v23 = vsel %vm4988_vm3, %v5606_v38, %v5607_v1  ;;  %v5850_v5 = vrot.slane %v5730_v51, 2  ;;  %v6713_v61 = vadd.f32 1.0, %v6681_v14  ;;  %v11236_v36 = vld [vmem:[#allocation71_spill] sm:$0xff] }
 0x2ee   : > { %v10473_v60 = vadd.f32 %v10117_v59, %v6519_v18  ;;  %v5610_v33 = vsel %vm4988_vm3, %v5607_v1, %v11230_v15  ;;  %v6586_v16 = vmul.f32 %v10470_v41, %v10470_v41  ;;  %v6744_v31 = vmul.f32 %v6712_v50, %v10398_v37 }
 0x2ef   : > { %v5438_v27 = vadd.f32 %v5406_v53, %v5370_v45  ;;  %v5683_v4 = vadd.f32 %v5610_v33, %v5439_v48  ;;  %v5851_v49 = vrot.slane %v5731_v24, 2  ;;  %v5962_v42 = vmul.f32 %v9466_v39, %v11231_v40  ;;  %v11234_v53 = vld [vmem:[#allocation74_spill] sm:$0xff] }
 0x2f0   : > { %v6587_v32 = vmul.f32 %v10473_v60, %v10473_v60  ;;  %v6745_v58 = vmul.f32 %v6713_v61, %v10401_v34  ;;  %v6618_v28 = vadd.f32 1.0, %v6586_v16  ;;  %v6776_v54 = vmul.f32 0.5, %v6744_v31  ;;  %v11237_v61 = vld [vmem:[#allocation68_spill] sm:$0xff]  ;;  %v11238_v16 = vld [vmem:[#allocation69_spill] sm:$0xff] }
 0x2f1   : > { %v5682_v6 = vadd.f32 %v5608_v23, %v5438_v27  ;;  %v5852_v55 = vsel %vm5233_vm4, %v5850_v5, %v5851_v49  ;;  %v11233_v3 = vrot.slane %v11232_v30, 2  ;;  %v5963_v37 = vmul.f32 %v9466_v39, %v11234_v53 }
 0x2f2   : > { %v6619_v62 = vadd.f32 1.0, %v6587_v32  ;;  %v6777_v20 = vmul.f32 0.5, %v6745_v58  ;;  %7636 = vrsqrt.f32 %v6618_v28  ;;  %v6042_v34 = vmul.f32 %v8212_v22, %v11231_v40  ;;  %v11241_v58 = vld [vmem:[#allocation62_spill] sm:$0xff] }
 0x2f3   : > { %v5854_v19 = vsel %vm5233_vm4, %v5851_v49, %v11233_v3  ;;  %v5926_v35 = vadd.f32 %v5852_v55, %v5682_v6  ;;  %v6043_v43 = vmul.f32 %v8212_v22, %v11234_v53  ;;  %v6165_v7 = vrot.slane %v11235_v2, 1 }
 0x2f4   : > { %v5927_v63 = vadd.f32 %v5854_v19, %v5683_v4  ;;  %7638 = vrsqrt.f32 %v6619_v62  ;;  %v6798_v46 = vpack.c.bf16 %v6777_v20, %v6776_v54  ;;  %v6286_v51 = vmul.f32 %v8217_v21, %v11231_v40  ;;  %v11239_v4 = vld [vmem:[#allocation54_spill] sm:$0xff] }
 0x2f5   : > { %v5994_v48 = vadd.f32 %v5962_v42, %v5926_v35  ;;  %v6162_v29 = vrot.slane %v6042_v34, 1  ;;  %v6163_v13 = vrot.slane %v6043_v43, 1  ;;  %v6287_v18 = vmul.f32 %v8217_v21, %v11234_v53 }
 0x2f6   : > { %v5995_v9 = vadd.f32 %v5963_v37, %v5927_v63  ;;  %v6288_v47 = vmul.f32 %v8217_v21, %v11236_v36  ;;  %7445 = vmatprep.mubr.bf16.mxu1 %v6798_v46  ;;  %v6406_v8 = vrot.slane %v6286_v51, 2  ;;  %v4882_v44 = vmul.f32 %v8176_v56, %v11220_v57 }
 0x2f7   : > { %v4931_v26 = vmul.f32 %v8170_v52, %v11220_v57  ;;  %v5176_v38 = vmul.f32 %v8187_v0, %v11220_v57  ;;  %v6164_v1 = vsel %vm4988_vm3, %v6162_v29, %v6163_v13  ;;  %v6166_v24 = vsel %vm4988_vm3, %v6163_v13, %v6165_v7 }
 0x2f8   : > { %v6407_v14 = vrot.slane %v6287_v18, 2  ;;  %v6409_v45 = vrot.slane %v6288_v47, 2  ;;  %v6238_v50 = vadd.f32 %v6164_v1, %v5994_v48  ;;  %v6239_v23 = vadd.f32 %v6166_v24, %v5995_v9 }
 0x2f9   : > { %v5054_v11 = vrot.slane %v4931_v26, 1  ;;  %v5299_v15 = vrot.slane %v5176_v38, 2  ;;  %v5373_v32 = vadd.f32 %v11238_v16, %v11237_v61  ;;  %v5408_v57 = vmul.f32 %v8198_v10, %v11231_v40  ;;  %v11243_v26 = vld [vmem:[#allocation72_spill] sm:$0xff] }
 0x2fa   : > { %v6408_v33 = vsel %vm5233_vm4, %v6406_v8, %v6407_v14  ;;  %v6410_v5 = vsel %vm5233_vm4, %v6407_v14, %v6409_v45  ;;  %v11240_v49 = vrot.slane %v11239_v4, 1  ;;  %v11242_v28 = vrot.slane %v11241_v58, 2  ;;  %v11247_v16 = vld [vmem:[#allocation84_spill] sm:$0xff] }
 0x2fb   : > { %v6482_v27 = vadd.f32 %v6408_v33, %v6238_v50  ;;  %v6483_v31 = vadd.f32 %v6410_v5, %v6239_v23  ;;  %v5409_v54 = vmul.f32 %v8198_v10, %v11234_v53  ;;  %v5489_v55 = vmul.f32 %v8200_v12, %v11231_v40 }
 0x2fc   : > { %v5056_v42 = vsel %vm4988_vm3, %v5054_v11, %v11240_v49  ;;  %v5301_v62 = vsel %vm5233_vm4, %v5299_v15, %v11242_v28  ;;  %v5490_v30 = vmul.f32 %v8200_v12, %v11234_v53  ;;  %v7637_v3 = vpop.eup %7636  ;;  %v5733_v20 = vmul.f32 %v8208_v17, %v11231_v40  ;;  %v11245_v15 = vld [vmem:[#allocation73_spill] sm:$0xff] }
 0x2fd   : > { %v5127_v6 = vadd.f32 %v5056_v42, %v4882_v44  ;;  %v6520_v19 = vmul.f32 %v10106_v25, %v6482_v27  ;;  %v6521_v37 = vmul.f32 %v10106_v25, %v6483_v31  ;;  %v5734_v35 = vmul.f32 %v8208_v17, %v11234_v53  ;;  %v11248_v27 = vld [vmem:[#allocation88_spill] sm:$0xff]  ;;  %v11249_v28 = vld [vmem:[#allocation85_spill] sm:$0xff] }
 0x2fe   : > { %v7639_v63 = vpop.eup %7638  ;;  %v6682_v34 = vmul.f32 %v7637_v3, %v10470_v41  ;;  %v5441_v2 = vadd.f32 %v5409_v54, %v5373_v32  ;;  %v5611_v7 = vrot.slane %v5489_v55, 1  ;;  %v5612_v25 = vrot.slane %v5490_v30, 1 }
 0x2ff   : > { %v5372_v43 = vadd.f32 %v5301_v62, %v5127_v6  ;;  %v6683_v46 = vmul.f32 %v7639_v63, %v10473_v60  ;;  %v10539_v48 = vadd.f32 %v10117_v59, %v6520_v19  ;;  %v10542_v9 = vadd.f32 %v10117_v59, %v6521_v37 }
 0x300   : > { %v6714_v51 = vadd.f32 1.0, %v6682_v34  ;;  %v5855_v13 = vrot.slane %v5733_v20, 2  ;;  %v5856_v18 = vrot.slane %v5734_v35, 2  ;;  %v5613_v8 = vsel %vm4988_vm3, %v5611_v7, %v5612_v25 }
 0x301   : > { %v5440_v29 = vadd.f32 %v5408_v57, %v5372_v43  ;;  %v6715_v53 = vadd.f32 1.0, %v6683_v46  ;;  %v6588_v36 = vmul.f32 %v10539_v48, %v10539_v48  ;;  %v6589_v47 = vmul.f32 %v10542_v9, %v10542_v9 }
 0x302   : > { %v6746_v44 = vmul.f32 %v6714_v51, %v10470_v41  ;;  %v11244_v38 = vrot.slane %v11243_v26, 1  ;;  %v5857_v24 = vsel %vm5233_vm4, %v5855_v13, %v5856_v18  ;;  %v11246_v33 = vrot.slane %v11245_v15, 2  ;;  %v11250_v51 = vld [vmem:[#allocation80_spill] sm:$0xff] }
 0x303   : > { %v5684_v1 = vadd.f32 %v5613_v8, %v5440_v29  ;;  %v6747_v14 = vmul.f32 %v6715_v53, %v10473_v60  ;;  %v6620_v45 = vadd.f32 1.0, %v6588_v36  ;;  %v6621_v50 = vadd.f32 1.0, %v6589_v47  ;;  %v11251_v29 = vld [vmem:[#allocation79_spill] sm:$0xff]  ;;  %v10586_v8 = vpop.f32.mrb[24].mxu1  ;;  %v11252_v26 = vld [vmem:[#allocation76_spill] sm:$0xff] }
 0x304   : > { %v5615_v59 = vsel %vm4988_vm3, %v5612_v25, %v11244_v38  ;;  %v6778_v11 = vmul.f32 0.5, %v6746_v44  ;;  %v5859_v5 = vsel %vm5233_vm4, %v5856_v18, %v11246_v33  ;;  %v5964_v41 = vmul.f32 %v9466_v39, %v11247_v16  ;;  %7032 = vst.msk [vmem:[%s10689_s12 + $0x10] sm:$0xff] %vm7029_vm5, %v10586_v8 }
 0x305   : > { %v5685_v23 = vadd.f32 %v5615_v59, %v5441_v2  ;;  %v5928_v61 = vadd.f32 %v5857_v24, %v5684_v1  ;;  %v6779_v32 = vmul.f32 0.5, %v6747_v14  ;;  %7640 = vrsqrt.f32 %v6620_v45  ;;  %v10595_v24 = vpop.f32.mrb[25].mxu1 }
 0x306   : > { %v5965_v31 = vmul.f32 %v9466_v39, %v11248_v27  ;;  %7642 = vrsqrt.f32 %v6621_v50  ;;  %v6045_v4 = vmul.f32 %v8212_v22, %v11247_v16  ;;  %v6046_v49 = vmul.f32 %v8212_v22, %v11248_v27  ;;  %v11254_v50 = vld [vmem:[#allocation77_spill] sm:$0xff]  ;;  %v10602_v33 = vpop.f32.mrb[26].mxu1  ;;  %7030 = vst.msk [vmem:[%s10689_s12] sm:$0xff] %vm7029_vm5, %v10595_v24 }
 0x307   : > { %v5929_v57 = vadd.f32 %v5859_v5, %v5685_v23  ;;  %v5996_v60 = vadd.f32 %v5964_v41, %v5928_v61  ;;  %v6799_v42 = vpack.c.bf16 %v6779_v32, %v6778_v11  ;;  %v6047_v62 = vmul.f32 %v8212_v22, %v11249_v28  ;;  %v10607_v61 = vld [vmem:[%s10793_s4] ss:$0 sm:$0xff]  ;;  %7033 = vst.msk [vmem:[%s10689_s12 + $0x18] sm:$0xff] %vm7029_vm5, %v10602_v33  ;;  %v11280_v33 = vld [vmem:[#allocation90_spill] sm:$0xff] }
 0x308   : > { %v6289_v6 = vmul.f32 %v8217_v21, %v11247_v16  ;;  %v6167_v54 = vrot.slane %v6045_v4, 1  ;;  %v6168_v55 = vrot.slane %v6046_v49, 1  ;;  %v6290_v30 = vmul.f32 %v8217_v21, %v11248_v27 }
 0x309   : > { %v5997_v58 = vadd.f32 %v5965_v31, %v5929_v57  ;;  %v6291_v3 = vmul.f32 %v8217_v21, %v11249_v28  ;;  %7446 = vmatmul.mubr.bf16.gmra.mrb[44].mxu1 %v6799_v42  ;;  %v6170_v19 = vrot.slane %v6047_v62, 1  ;;  %v4884_v20 = vmul.f32 %v8176_v56, %v11231_v40  ;;  %v10614_v31 = vpop.f32.mrb[27].mxu1  ;;  %v10622_v62 = vld [vmem:[%s10793_s4 + $0x1] ss:$0 sm:$0xff] }
 0x30a   : > { %v6411_v37 = vrot.slane %v6289_v6, 2  ;;  %v4934_v35 = vmul.f32 %v8170_v52, %v11231_v40  ;;  %v6169_v63 = vsel %vm4988_vm3, %v6167_v54, %v6168_v55  ;;  %v6412_v34 = vrot.slane %v6290_v30, 2  ;;  %7031 = vst.msk [vmem:[%s10689_s12 + $0x8] sm:$0xff] %vm7029_vm5, %v10614_v31 }
 0x30b   : > { %v6414_v43 = vrot.slane %v6291_v3, 2  ;;  %v5179_v2 = vmul.f32 %v8187_v0, %v11231_v40  ;;  %v6171_v7 = vsel %vm4988_vm3, %v6168_v55, %v6170_v19  ;;  %v6240_v46 = vadd.f32 %v6169_v63, %v5996_v60  ;;  %v11256_v63 = vld [vmem:[#allocation86_spill] sm:$0xff] }
 0x30c   : > { %v5059_v25 = vrot.slane %v4934_v35, 1  ;;  %v5375_v13 = vadd.f32 %v11251_v29, %v11250_v51  ;;  %v6241_v18 = vadd.f32 %v6171_v7, %v5997_v58  ;;  %v6413_v53 = vsel %vm5233_vm4, %v6411_v37, %v6412_v34  ;;  %v11258_v29 = vld [vmem:[#allocation89_spill] sm:$0xff] }
 0x30d   : > { %v6415_v36 = vsel %vm5233_vm4, %v6412_v34, %v6414_v43  ;;  %v5304_v47 = vrot.slane %v5179_v2, 2  ;;  %v6484_v44 = vadd.f32 %v6413_v53, %v6240_v46  ;;  %v11253_v38 = vrot.slane %v11252_v26, 1 }
 0x30e   : > { %v5410_v59 = vmul.f32 %v8198_v10, %v11247_v16  ;;  %v5411_v1 = vmul.f32 %v8198_v10, %v11248_v27  ;;  %v6485_v14 = vadd.f32 %v6415_v36, %v6241_v18  ;;  %v11255_v23 = vrot.slane %v11254_v50, 2  ;;  %v11259_v36 = vld [vmem:[#allocation93_spill] sm:$0xff] }
 0x30f   : > { %v5061_v40 = vsel %vm4988_vm3, %v5059_v25, %v11253_v38  ;;  %v5492_v15 = vmul.f32 %v8200_v12, %v11247_v16  ;;  %v7641_v5 = vpop.eup %7640  ;;  %v6522_v10 = vmul.f32 %v10607_v61, %v6484_v44  ;;  %v5493_v32 = vmul.f32 %v8200_v12, %v11248_v27  ;;  %v11260_v38 = vld [vmem:[#allocation87_spill] sm:$0xff] }
 0x310   : > { %v5129_v45 = vadd.f32 %v5061_v40, %v4884_v20  ;;  %v5306_v11 = vsel %vm5233_vm4, %v5304_v47, %v11255_v23  ;;  %v5443_v41 = vadd.f32 %v5411_v1, %v5375_v13  ;;  %v5736_v57 = vmul.f32 %v8208_v17, %v11247_v16  ;;  %v7643_v60 = vpop.eup %7642 }
 0x311   : > { %v6684_v4 = vmul.f32 %v7641_v5, %v10539_v48  ;;  %v6523_v49 = vmul.f32 %v10607_v61, %v6485_v14  ;;  %v5616_v58 = vrot.slane %v5492_v15, 1  ;;  %v6685_v28 = vmul.f32 %v7643_v60, %v10542_v9 }
 0x312   : > { %v5374_v42 = vadd.f32 %v5306_v11, %v5129_v45  ;;  %v10625_v12 = vadd.f32 %v10622_v62, %v6522_v10  ;;  %v5617_v6 = vrot.slane %v5493_v32, 1  ;;  %v5737_v54 = vmul.f32 %v8208_v17, %v11248_v27 }
 0x313   : > { %v6716_v55 = vadd.f32 1.0, %v6684_v4  ;;  %v10630_v30 = vadd.f32 %v10622_v62, %v6523_v49  ;;  %v5860_v19 = vrot.slane %v5736_v57, 2  ;;  %v6717_v37 = vadd.f32 1.0, %v6685_v28 }
 0x314   : > { %v5442_v3 = vadd.f32 %v5410_v59, %v5374_v42  ;;  %v6590_v20 = vmul.f32 %v10625_v12, %v10625_v12  ;;  %v5618_v35 = vsel %vm4988_vm3, %v5616_v58, %v5617_v6  ;;  %v11257_v34 = vrot.slane %v11256_v63, 1  ;;  %v11262_v42 = vld [vmem:[#allocation103_spill] sm:$0xff] }
 0x315   : > { %v6748_v2 = vmul.f32 %v6716_v55, %v10539_v48  ;;  %v6591_v17 = vmul.f32 %v10630_v30, %v10630_v30  ;;  %v6749_v46 = vmul.f32 %v6717_v37, %v10542_v9  ;;  %v5861_v51 = vrot.slane %v5737_v54, 2  ;;  %v11266_v55 = vld [vmem:[#allocation91_spill] sm:$0xff] }
 0x316   : > { %v5620_v43 = vsel %vm4988_vm3, %v5617_v6, %v11257_v34  ;;  %v5686_v27 = vadd.f32 %v5618_v35, %v5442_v3  ;;  %v6622_v25 = vadd.f32 1.0, %v6590_v20  ;;  %v5966_v13 = vmul.f32 %v9466_v39, %v11258_v29  ;;  %v11264_v6 = vld [vmem:[#allocation96_spill] sm:$0xff] }
 0x317   : > { %v5687_v7 = vadd.f32 %v5620_v43, %v5443_v41  ;;  %v6780_v18 = vmul.f32 0.5, %v6748_v2  ;;  %v6623_v53 = vadd.f32 1.0, %v6591_v17  ;;  %v5967_v47 = vmul.f32 %v9466_v39, %v11259_v36  ;;  %v11270_v20 = vld [vmem:[#allocation92_spill] sm:$0xff] }
 0x318   : > { %v6048_v48 = vmul.f32 %v8212_v22, %v11258_v29  ;;  %v6781_v44 = vmul.f32 0.5, %v6749_v46  ;;  %7644 = vrsqrt.f32 %v6622_v25  ;;  %v5862_v26 = vsel %vm5233_vm4, %v5860_v19, %v5861_v51  ;;  %v11268_v19 = vld [vmem:[#allocation102_spill] sm:$0xff]  ;;  %v11272_v34 = vld [vmem:[#allocation104_spill] sm:$0xff]  ;;  %v11275_v46 = vld [vmem:[#allocation105_spill] sm:$0xff] }
 0x319   : > { %v11261_v40 = vrot.slane %v11260_v38, 2  ;;  %7646 = vrsqrt.f32 %v6623_v53  ;;  %v5930_v59 = vadd.f32 %v5862_v26, %v5686_v27  ;;  %v6049_v14 = vmul.f32 %v8212_v22, %v11259_v36 }
 0x31a   : > { %v6800_v45 = vpack.c.bf16 %v6781_v44, %v6780_v18  ;;  %v6172_v50 = vrot.slane %v6048_v48, 1  ;;  %v6292_v23 = vmul.f32 %v8217_v21, %v11258_v29  ;;  %v6293_v11 = vmul.f32 %v8217_v21, %v11259_v36  ;;  %v11276_v36 = vld [vmem:[#allocation94_spill] sm:$0xff] }
 0x31b   : > { %v5864_v9 = vsel %vm5233_vm4, %v5861_v51, %v11261_v40  ;;  %v5998_v15 = vadd.f32 %v5966_v13, %v5930_v59  ;;  %v6173_v10 = vrot.slane %v6049_v14, 1  ;;  %v4886_v41 = vmul.f32 %v8176_v56, %v11247_v16 }
 0x31c   : > { %v5931_v1 = vadd.f32 %v5864_v9, %v5687_v7  ;;  %7449 = vmatprep.mubr.bf16.mxu1 %v6800_v45  ;;  %v6416_v32 = vrot.slane %v6292_v23, 2  ;;  %v6417_v57 = vrot.slane %v6293_v11, 2  ;;  %v4937_v60 = vmul.f32 %v8170_v52, %v11247_v16  ;;  %v11274_v7 = vld [vmem:[#allocation106_spill] sm:$0xff] }
 0x31d   : > { %v5182_v4 = vmul.f32 %v8187_v0, %v11247_v16  ;;  %v6174_v49 = vsel %vm4988_vm3, %v6172_v50, %v6173_v10  ;;  %v11263_v58 = vrot.slane %v11262_v42, 1  ;;  %v11265_v54 = vrot.slane %v11264_v6, 1 }
 0x31e   : > { %v5999_v5 = vadd.f32 %v5967_v47, %v5931_v1  ;;  %v11267_v56 = vrot.slane %v11266_v55, 1  ;;  %v11269_v37 = vrot.slane %v11268_v19, 2  ;;  %v11271_v52 = vrot.slane %v11270_v20, 2 }
 0x31f   : > { %v6176_v28 = vsel %vm4988_vm3, %v6173_v10, %v11263_v58  ;;  %v6242_v0 = vadd.f32 %v6174_v49, %v5998_v15  ;;  %v6418_v63 = vsel %vm5233_vm4, %v6416_v32, %v6417_v57  ;;  %v11273_v43 = vrot.slane %v11272_v34, 2 }
 0x320   : > { %v5623_v3 = vsel %vm4988_vm3, %v11267_v56, %v11265_v54  ;;  %v5867_v35 = vsel %vm5233_vm4, %v11271_v52, %v11269_v37  ;;  %v6243_v16 = vadd.f32 %v6176_v28, %v5999_v5  ;;  %v5064_v17 = vrot.slane %v4937_v60, 1 }
 0x321   : > { %v6420_v2 = vsel %vm5233_vm4, %v6417_v57, %v11273_v43  ;;  %v5309_v27 = vrot.slane %v5182_v4, 2  ;;  %v5933_v25 = vadd.f32 %v11275_v46, %v11274_v7  ;;  %v5968_v51 = vmul.f32 0.0, %v9466_v39  ;;  %v11278_v39 = vld [vmem:[#allocation95_spill] sm:$0xff] }
 0x322   : > { %v6486_v29 = vadd.f32 %v6418_v63, %v6242_v0  ;;  %v6487_v13 = vadd.f32 %v6420_v2, %v6243_v16  ;;  %v6051_v18 = vmul.f32 0.0, %v8212_v22  ;;  %v6295_v53 = vmul.f32 0.0, %v8217_v21  ;;  %v7645_v40 = vpop.eup %7644 }
 0x323   : > { %v11277_v47 = vrot.slane %v11276_v36, 1  ;;  %v11279_v44 = vrot.slane %v11278_v39, 2  ;;  %v6001_v38 = vadd.f32 %v5968_v51, %v5933_v25  ;;  %v7647_v22 = vpop.eup %7646  ;;  %v6686_v21 = vmul.f32 %v7645_v40, %v10625_v12 }
 0x324   : > { %v6524_v9 = vmul.f32 %v10607_v61, %v6486_v29  ;;  %v6525_v59 = vmul.f32 %v10607_v61, %v6487_v13  ;;  %v6177_v14 = vrot.slane %v6051_v18, 1  ;;  %v6421_v45 = vrot.slane %v6295_v53, 2 }
 0x325   : > { %v5066_v48 = vsel %vm4988_vm3, %v5064_v17, %v11277_v47  ;;  %v5311_v26 = vsel %vm5233_vm4, %v5309_v27, %v11279_v44  ;;  %v6687_v50 = vmul.f32 %v7647_v22, %v10630_v30  ;;  %v6718_v15 = vadd.f32 1.0, %v6686_v21 }
 0x326   : > { %v5131_v1 = vadd.f32 %v5066_v48, %v4886_v41  ;;  %v6560_v23 = vadd.f32 %v10622_v62, %v6524_v9  ;;  %v6561_v11 = vadd.f32 %v10622_v62, %v6525_v59  ;;  %v6245_v5 = vadd.f32 %v6177_v14, %v6001_v38 }
 0x327   : > { %v6719_v24 = vadd.f32 1.0, %v6687_v50  ;;  %v6750_v31 = vmul.f32 %v6718_v15, %v10625_v12 }
 0x328   : > { %v5376_v8 = vadd.f32 %v5311_v26, %v5131_v1  ;;  %v6592_v10 = vmul.f32 %v6560_v23, %v6560_v23  ;;  %v6593_v41 = vmul.f32 %v6561_v11, %v6561_v11  ;;  %v6489_v57 = vadd.f32 %v6421_v45, %v6245_v5 }
 0x329   : > { %v6751_v60 = vmul.f32 %v6719_v24, %v10630_v30  ;;  %v6782_v58 = vmul.f32 0.5, %v6750_v31 }
 0x32a   : > { %v5444_v32 = vadd.f32 %v11280_v33, %v5376_v8  ;;  %v6624_v4 = vadd.f32 1.0, %v6592_v10  ;;  %v6625_v49 = vadd.f32 1.0, %v6593_v41  ;;  %v6527_v28 = vmul.f32 %v10607_v61, %v6489_v57 }
 0x32b   : > { %v6783_v6 = vmul.f32 0.5, %v6751_v60 }
 0x32c   : > { %v5688_v42 = vadd.f32 %v5623_v3, %v5444_v32  ;;  %7648 = vrsqrt.f32 %v6624_v4  ;;  %v6563_v55 = vadd.f32 %v10622_v62, %v6527_v28 }
 0x32d   : > { %7650 = vrsqrt.f32 %v6625_v49  ;;  %v6801_v56 = vpack.c.bf16 %v6783_v6, %v6782_v58 }
 0x32e   : > { %v5932_v54 = vadd.f32 %v5867_v35, %v5688_v42  ;;  %v6595_v37 = vmul.f32 %v6563_v55, %v6563_v55 }
 0x32f   : > { %7450 = vmatmul.mubr.bf16.gmra.mrb[48].mxu1 %v6801_v56 }
 0x330   : > { %v6000_v19 = vadd.f32 %v5968_v51, %v5932_v54  ;;  %v6627_v20 = vadd.f32 1.0, %v6595_v37 }
 0x332   : > { %v6244_v12 = vadd.f32 %v6177_v14, %v6000_v19  ;;  %7652 = vrsqrt.f32 %v6627_v20 }
 0x334   : > { %v6488_v52 = vadd.f32 %v6421_v45, %v6244_v12 }
 0x336   : > { %v6526_v30 = vmul.f32 %v10607_v61, %v6488_v52  ;;  %v7649_v3 = vpop.eup %7648 }
 0x337   : > { %v7651_v16 = vpop.eup %7650  ;;  %v6688_v63 = vmul.f32 %v7649_v3, %v6560_v23 }
 0x338   : > { %v6562_v0 = vadd.f32 %v10622_v62, %v6526_v30  ;;  %v6689_v34 = vmul.f32 %v7651_v16, %v6561_v11 }
 0x339   : > { %v6720_v43 = vadd.f32 1.0, %v6688_v63 }
 0x33a   : > { %v6594_v35 = vmul.f32 %v6562_v0, %v6562_v0  ;;  %v6721_v2 = vadd.f32 1.0, %v6689_v34 }
 0x33b   : > { %v6752_v27 = vmul.f32 %v6720_v43, %v6560_v23 }
 0x33c   : > { %v6626_v17 = vadd.f32 1.0, %v6594_v35  ;;  %v6753_v7 = vmul.f32 %v6721_v2, %v6561_v11  ;;  %v7653_v46 = vpop.eup %7652 }
 0x33d   : > { %v6784_v25 = vmul.f32 0.5, %v6752_v27  ;;  %v6691_v29 = vmul.f32 %v7653_v46, %v6563_v55 }
 0x33e   : > { %7654 = vrsqrt.f32 %v6626_v17  ;;  %v6785_v51 = vmul.f32 0.5, %v6753_v7 }
 0x33f   : > { %v6723_v62 = vadd.f32 1.0, %v6691_v29 }
 0x340   : > { %v6802_v61 = vpack.c.bf16 %v6785_v51, %v6784_v25 }
 0x341   : > { %v6755_v53 = vmul.f32 %v6723_v62, %v6563_v55 }
 0x342   : > { %7453 = vmatprep.mubr.bf16.mxu1 %v6802_v61 }
 0x343   : > { %v6787_v48 = vmul.f32 0.5, %v6755_v53  ;;  %v7431_v44 = vpop.f32.mrb[28].mxu1 }
 0x344   : > { %7036 = vst.msk [vmem:[%s10689_s12 + $0x30] sm:$0xff] %vm7029_vm5, %v7431_v44  ;;  %v6918_v38 = vpop.f32.mrb[29].mxu1 }
 0x345   : > { %7034 = vst.msk [vmem:[%s10689_s12 + $0x20] sm:$0xff] %vm7029_vm5, %v6918_v38  ;;  %v7432_v40 = vpop.f32.mrb[30].mxu1 }
 0x346   : > { %7037 = vst.msk [vmem:[%s10689_s12 + $0x38] sm:$0xff] %vm7029_vm5, %v7432_v40  ;;  %v6921_v9 = vpop.f32.mrb[31].mxu1 }
 0x347   : > { %7035 = vst.msk [vmem:[%s10689_s12 + $0x28] sm:$0xff] %vm7029_vm5, %v6921_v9 }
 0x348   : > { %v7655_v13 = vpop.eup %7654 }
 0x349   : > { %v6690_v18 = vmul.f32 %v7655_v13, %v6562_v0 }
 0x34b   : > { %v6722_v36 = vadd.f32 1.0, %v6690_v18 }
 0x34d   : > { %v6754_v47 = vmul.f32 %v6722_v36, %v6562_v0 }
 0x34f   : > { %v6786_v39 = vmul.f32 0.5, %v6754_v47 }
 0x351   : > { %v6803_v26 = vpack.c.bf16 %v6787_v48, %v6786_v39 }
 0x353   : > { %7454 = vmatmul.mubr.bf16.gmra.mrb[52].mxu1 %v6803_v26 }
 0x369   : > { %v7435_v59 = vpop.f32.mrb[32].mxu1 }
 0x36a   : > { %7040 = vst.msk [vmem:[%s10689_s12 + $0x50] sm:$0xff] %vm7029_vm5, %v7435_v59  ;;  %v6934_v1 = vpop.f32.mrb[33].mxu1 }
 0x36b   : > { %7038 = vst.msk [vmem:[%s10689_s12 + $0x40] sm:$0xff] %vm7029_vm5, %v6934_v1  ;;  %v7436_v14 = vpop.f32.mrb[34].mxu1 }
 0x36c   : > { %7041 = vst.msk [vmem:[%s10689_s12 + $0x58] sm:$0xff] %vm7029_vm5, %v7436_v14  ;;  %v6937_v22 = vpop.f32.mrb[35].mxu1 }
 0x36d   : > { %7039 = vst.msk [vmem:[%s10689_s12 + $0x48] sm:$0xff] %vm7029_vm5, %v6937_v22 }
 0x38f   : > { %v7439_v21 = vpop.f32.mrb[36].mxu1 }
 0x390   : > { %7044 = vst.msk [vmem:[%s10689_s12 + $0x70] sm:$0xff] %vm7029_vm5, %v7439_v21  ;;  %v6950_v45 = vpop.f32.mrb[37].mxu1 }
 0x391   : > { %7042 = vst.msk [vmem:[%s10689_s12 + $0x60] sm:$0xff] %vm7029_vm5, %v6950_v45  ;;  %v7440_v50 = vpop.f32.mrb[38].mxu1 }
 0x392   : > { %7045 = vst.msk [vmem:[%s10689_s12 + $0x78] sm:$0xff] %vm7029_vm5, %v7440_v50  ;;  %v6953_v23 = vpop.f32.mrb[39].mxu1 }
 0x393   : > { %7043 = vst.msk [vmem:[%s10689_s12 + $0x68] sm:$0xff] %vm7029_vm5, %v6953_v23 }
 0x3b5   : > { %v7443_v11 = vpop.f32.mrb[40].mxu1 }
 0x3b6   : > { %7048 = vst.msk [vmem:[%s10689_s12 + $0x90] sm:$0xff] %vm7029_vm5, %v7443_v11  ;;  %v6966_v8 = vpop.f32.mrb[41].mxu1 }
 0x3b7   : > { %7046 = vst.msk [vmem:[%s10689_s12 + $0x80] sm:$0xff] %vm7029_vm5, %v6966_v8  ;;  %v7444_v15 = vpop.f32.mrb[42].mxu1 }
 0x3b8   : > { %7049 = vst.msk [vmem:[%s10689_s12 + $0x98] sm:$0xff] %vm7029_vm5, %v7444_v15  ;;  %v6969_v5 = vpop.f32.mrb[43].mxu1 }
 0x3b9   : > { %7047 = vst.msk [vmem:[%s10689_s12 + $0x88] sm:$0xff] %vm7029_vm5, %v6969_v5 }
 0x3dc   : > { %v7447_v24 = vpop.f32.mrb[44].mxu1 }
 0x3dd   : > { %7052 = vst.msk [vmem:[%s10689_s12 + $0xb0] sm:$0xff] %vm7029_vm5, %v7447_v24  ;;  %v6982_v10 = vpop.f32.mrb[45].mxu1 }
 0x3de   : > { %7050 = vst.msk [vmem:[%s10689_s12 + $0xa0] sm:$0xff] %vm7029_vm5, %v6982_v10  ;;  %v7448_v41 = vpop.f32.mrb[46].mxu1 }
 0x3df   : > { %7053 = vst.msk [vmem:[%s10689_s12 + $0xb8] sm:$0xff] %vm7029_vm5, %v7448_v41  ;;  %v6985_v33 = vpop.f32.mrb[47].mxu1 }
 0x3e0   : > { %7051 = vst.msk [vmem:[%s10689_s12 + $0xa8] sm:$0xff] %vm7029_vm5, %v6985_v33 }
 0x402   : > { %v7451_v32 = vpop.f32.mrb[48].mxu1 }
 0x403   : > { %7056 = vst.msk [vmem:[%s10689_s12 + $0xd0] sm:$0xff] %vm7029_vm5, %v7451_v32  ;;  %v6998_v31 = vpop.f32.mrb[49].mxu1 }
 0x404   : > { %7054 = vst.msk [vmem:[%s10689_s12 + $0xc0] sm:$0xff] %vm7029_vm5, %v6998_v31  ;;  %v7452_v57 = vpop.f32.mrb[50].mxu1 }
 0x405   : > { %7057 = vst.msk [vmem:[%s10689_s12 + $0xd8] sm:$0xff] %vm7029_vm5, %v7452_v57  ;;  %v7001_v60 = vpop.f32.mrb[51].mxu1 }
 0x406   : > { %7055 = vst.msk [vmem:[%s10689_s12 + $0xc8] sm:$0xff] %vm7029_vm5, %v7001_v60 }
 0x426   : > { %v7455_v4 = vpop.f32.mrb[52].mxu1 }
 0x427   : > { %7060 = vst.msk [vmem:[%s10689_s12 + $0xf0] sm:$0xff] %vm7029_vm5, %v7455_v4  ;;  %v7014_v49 = vpop.f32.mrb[53].mxu1 }
 0x428   : > { %7058 = vst.msk [vmem:[%s10689_s12 + $0xe0] sm:$0xff] %vm7029_vm5, %v7014_v49  ;;  %v7456_v42 = vpop.f32.mrb[54].mxu1 }
 0x429   : > { %7061 = vst.msk [vmem:[%s10689_s12 + $0xf8] sm:$0xff] %vm7029_vm5, %v7456_v42  ;;  %v7017_v58 = vpop.f32.mrb[55].mxu1 }
 0x42a   : > { %7059 = vst.msk [vmem:[%s10689_s12 + $0xe8] sm:$0xff] %vm7029_vm5, %v7017_v58 }
 0x42b PF: > { %s16_s23 = sadd.s32 1, %s7685_s23   ;;  %s11281_s21 = smov %s7681_s22 }
 0x42c   : > { %p13_p5 = scmp.ge.s32.totalorder %s16_s23, 4   ;;  %s11282_s22 = smov %s11284_s24 }
 0x42e   :  { %15 = sbr.rel (!%p13_p5) target bundleno = 2 (0x2), region = 75 }

</bundles_post_ra>
